<compile_context>
chip_gen: v7x
topology: tpu7x:2x2x1
jax: 0.10.0
libtpu: 0.0.40
codegen_flags: <defaults>
</compile_context>

<pallas_src>
import functools

import numpy as np
import jax
import jax.numpy as jnp
from jax import lax
from jax.experimental import pallas as pl
from jax.experimental.pallas import tpu as pltpu


_C = 128            # all conv channels zero-padded to this many lanes (lane-dense)
_TM = 128           # M-chunk of the conv dots (keeps the f32 accumulator small)
_NEG = float(np.finfo(np.float32).min)   # finite "-inf" for maxpool padding


def _round_up(x, m):
    return (x + m - 1) // m * m


def _pool_out(n):
    # MaxPool2d(kernel_size=3, stride=2, padding=2), floor mode
    return (n + 2 * 2 - 3) // 2 + 1


def _stage_geom(h, w, pooled):
    """Static flat-layout geometry of one conv(+pool) stage (conv keeps h x w)."""
    ho, wo = (_pool_out(h), _pool_out(w)) if pooled else (h, w)
    # Wp: flat row pitch of this stage's padded input / conv output.
    #  - >= w + 4    : image sits at column offset 3, conv taps read up to col w+3
    #  - >= 2*wo + 1 : the pool reads padded columns [0, 2*wo]
    #  - multiple of 8 so the dy*Wp tap shifts stay sublane aligned
    wp = _round_up(max(w + 4, 2 * wo + 1), 8)
    r = (h + 3) * wp                      # rows of the flat padded input buffer
    m = h * wp                            # rows of the flat conv output
    assert r >= (h + 2) * wp + 2          # furthest shifted tap read stays in bounds
    return dict(H=h, W=w, Wp=wp, R=r, M=m, Ho=ho, Wo=wo)


# ---------------------------------------------------------------------------
# The fused kernel (one grid step == one image)
# ---------------------------------------------------------------------------
def _fused_forward_kernel(x_ref, w1_ref, b1_ref, w2_ref, b2_ref, w3_ref, b3_ref,
                          w4_ref, b4_ref, wc_ref, bc_ref, o_ref,
                          cbuf, sbuf2, sbuf3, sbuf4, *, g1, g2, g3, g4):

    def conv(src_ref, w_ref, b_ref, g, cin, fuse_taps):
        """3x3 'same' conv over the flat padded input `src_ref` -> cbuf[:M] (f32)."""
        m_tot, wp = g["M"], g["Wp"]
        for m0 in range(0, m_tot, _TM):            # static chunking, aligned starts
            ml = min(_TM, m_tot - m0)
            if fuse_taps:
                # one big-K MXU dot: LHS = lane-concat of the 9 shifted windows
                # (each piece is exactly 128 lanes -> aligned, free concat).
                lhs = jnp.concatenate(
                    [src_ref[pl.ds(m0 + dy * wp + dx, ml), :]
                     for dy in range(3) for dx in range(3)], axis=-1)
                acc = jnp.dot(lhs, w_ref[...], preferred_element_type=jnp.float32)
            else:
                # tiny Cin (conv1): 9 small-K accumulating dots.
                acc = None
                for t in range(9):
                    dy, dx = divmod(t, 3)
                    xs = src_ref[pl.ds(m0 + dy * wp + dx, ml), :]
                    p = jnp.dot(xs, w_ref[pl.ds(t * cin, cin), :],
                                preferred_element_type=jnp.float32)
                    acc = p if acc is None else acc + p
            cbuf[pl.ds(m0, ml), :] = acc + b_ref[...]

    def pool_rows(g):
        """MaxPool2d(3, 2, 2) over cbuf[:M] (f32); returns Ho values of (Wo, C)."""
        h, w, wp, ho, wo = g["H"], g["W"], g["Wp"], g["Ho"], g["Wo"]
        col = lax.broadcasted_iota(jnp.int32, (wp, _C), 0)
        valid = (col >= 2) & (col < 2 + w)          # conv data sits at cols [2, 2+W)
        L = 2 * wo - 1
        jj = lax.broadcasted_iota(jnp.int32, (wo, L), 0)
        kk = lax.broadcasted_iota(jnp.int32, (wo, L), 1)
        sel = jnp.where(kk == 2 * jj, jnp.float32(1), jnp.float32(0))
        rows = []
        for i in range(ho):
            rs = [r for r in (2 * i - 2, 2 * i - 1, 2 * i) if 0 <= r < h]
            v = cbuf[pl.ds(rs[0] * wp, wp), :]
            for r in rs[1:]:
                v = jnp.maximum(v, cbuf[pl.ds(r * wp, wp), :])
            q = jnp.where(valid, v, _NEG)           # junk / out-of-range cols -> -big
            t = jnp.maximum(jnp.maximum(q[0:L, :], q[1:1 + L, :]), q[2:2 + L, :])
            # stride-2 column subsample as a tiny 0/1 selection matmul (no relayouts)
            rows.append(jnp.dot(sel, t, preferred_element_type=jnp.float32))
        return rows

    def scatter(rows, dst_ref, wp_next, wo):
        """Write pooled rows straight into the next stage's flat padded layout."""
        for i, row in enumerate(rows):
            dst_ref[pl.ds((1 + i) * wp_next + 3, wo), :] = row.astype(dst_ref.dtype)

    # ---- stage 1: conv1 + mp1 ------------------------------------------------
    conv(x_ref, w1_ref, b1_ref, g1, cin=x_ref.shape[-1], fuse_taps=False)
    sbuf2[...] = jnp.zeros_like(sbuf2)
    scatter(pool_rows(g1), sbuf2, g2["Wp"], g1["Wo"])

    # ---- stage 2: conv2 + mp2 ------------------------------------------------
    conv(sbuf2, w2_ref, b2_ref, g2, cin=_C, fuse_taps=True)
    sbuf3[...] = jnp.zeros_like(sbuf3)
    scatter(pool_rows(g2), sbuf3, g3["Wp"], g2["Wo"])

    # ---- stage 3: conv3 (no pool) -> written directly as conv4's padded input -
    conv(sbuf3, w3_ref, b3_ref, g3, cin=_C, fuse_taps=True)
    sbuf4[...] = jnp.zeros_like(sbuf4)
    for r in range(g3["H"]):
        v = cbuf[pl.ds(r * g3["Wp"] + 2, g3["W"]), :]
        sbuf4[pl.ds((1 + r) * g4["Wp"] + 3, g3["W"]), :] = v.astype(sbuf4.dtype)

    # ---- stage 4: conv4 + mp3 ------------------------------------------------
    conv(sbuf4, w4_ref, b4_ref, g4, cin=_C, fuse_taps=True)
    rows = pool_rows(g4)

    # ---- classifier: lane-concat the pooled pixels (HWC order) -> one MXU dot -
    pieces = []
    for row in rows:                                 # row i: (Wo, C) f32
        for j in range(g4["Wo"]):
            pieces.append(row[j:j + 1, :].astype(jnp.bfloat16))
    feat = jnp.concatenate(pieces, axis=-1)          # (1, Ho*Wo*C), 128-aligned pieces
    o_ref[...] = (jnp.dot(feat, wc_ref[...], preferred_element_type=jnp.float32)
                  + bc_ref[...])


# ---------------------------------------------------------------------------
# Wrapper (parameter packing + the single pallas_call)
# ---------------------------------------------------------------------------
def _pack_conv(w, b, cin_pad, cout_pad):
    kh, kw, cin, cout = w.shape
    wp = jnp.zeros((kh, kw, cin_pad, cout_pad), jnp.float32)
    wp = wp.at[:, :, :cin, :cout].set(w.astype(jnp.float32))
    bp = jnp.zeros((cout_pad,), jnp.float32).at[:cout].set(b.astype(jnp.float32))
    return (wp.reshape(kh * kw * cin_pad, cout_pad).astype(jnp.bfloat16),
            bp.reshape(1, cout_pad))


def _pack_input(x_nhwc, g1):
    n, h, w, cin = x_nhwc.shape
    wp = g1["Wp"]
    # image at row offset 1, column offset 3 of the flat padded layout (zeros around)
    xp = jnp.pad(x_nhwc.astype(jnp.bfloat16), ((0, 0), (1, 2), (3, wp - 3 - w), (0, 0)))
    return xp.reshape(n, g1["R"], cin)


def forward(params, x_nchw):
    x = jnp.transpose(x_nchw, (0, 2, 3, 1))                     # NCHW -> NHWC
    n, h, w, cin = x.shape
    g1 = _stage_geom(h, w, True)
    g2 = _stage_geom(g1["Ho"], g1["Wo"], True)
    g3 = _stage_geom(g2["Ho"], g2["Wo"], False)
    g4 = _stage_geom(g3["H"], g3["W"], True)

    xf = _pack_input(x, g1)
    w1, b1 = _pack_conv(params["w1"], params["b1"], cin, _C)
    w2, b2 = _pack_conv(params["w2"], params["b2"], _C, _C)
    w3, b3 = _pack_conv(params["w3"], params["b3"], _C, _C)
    w4, b4 = _pack_conv(params["w4"], params["b4"], _C, _C)

    ho, wo = g4["Ho"], g4["Wo"]
    feat = ho * wo * _C
    nclass = params["wc"].shape[1]
    assert params["wc"].shape[0] == feat, (params["wc"].shape, feat)
    # classifier weight: PyTorch NCHW-flatten order -> kernel HWC-flatten order,
    # classes padded to 128 lanes for a lane-dense store (logits sliced afterwards).
    wc = (params["wc"].reshape(_C, ho, wo, nclass).transpose(1, 2, 0, 3)
          .reshape(feat, nclass))
    wc = jnp.zeros((feat, _C), jnp.float32).at[:, :nclass].set(wc).astype(jnp.bfloat16)
    bc = jnp.zeros((1, _C), jnp.float32).at[0, :nclass].set(params["bc"])

    kernel = functools.partial(_fused_forward_kernel, g1=g1, g2=g2, g3=g3, g4=g4)
    cbuf_rows = max(g1["M"], g2["M"], g3["M"], g4["M"])

    out = pl.pallas_call(
        kernel,
        out_shape=jax.ShapeDtypeStruct((n, 1, _C), jnp.float32),
        grid=(n,),
        in_specs=[
            pl.BlockSpec((None, g1["R"], cin), lambda i: (i, 0, 0)),
            pl.BlockSpec(w1.shape, lambda i: (0, 0)),
            pl.BlockSpec(b1.shape, lambda i: (0, 0)),
            pl.BlockSpec(w2.shape, lambda i: (0, 0)),
            pl.BlockSpec(b2.shape, lambda i: (0, 0)),
            pl.BlockSpec(w3.shape, lambda i: (0, 0)),
            pl.BlockSpec(b3.shape, lambda i: (0, 0)),
            pl.BlockSpec(w4.shape, lambda i: (0, 0)),
            pl.BlockSpec(b4.shape, lambda i: (0, 0)),
            pl.BlockSpec(wc.shape, lambda i: (0, 0)),
            pl.BlockSpec(bc.shape, lambda i: (0, 0)),
        ],
        out_specs=pl.BlockSpec((None, 1, _C), lambda i: (i, 0, 0)),
        scratch_shapes=[
            pltpu.VMEM((cbuf_rows, _C), jnp.float32),     # conv f32 accumulator / pool input
            pltpu.VMEM((g2["R"], _C), jnp.bfloat16),      # conv2 flat padded input
            pltpu.VMEM((g3["R"], _C), jnp.bfloat16),      # conv3 flat padded input
            pltpu.VMEM((g4["R"], _C), jnp.bfloat16),      # conv4 flat padded input
        ],
        compiler_params=pltpu.CompilerParams(
            dimension_semantics=("parallel",)),           # batch -> both TCs on v7x
    )(xf, w1, b1, w2, b2, w3, b3, w4, b4, wc, bc)
    return out[:, 0, :nclass]


# ---------------------------------------------------------------------------
# Parameters + pure-JAX reference
# ---------------------------------------------------------------------------
def init_params(key, in_hw):
    conv_io = [(3, 32), (32, 64), (64, 128), (128, 128)]
    keys = jax.random.split(key, 2 * len(conv_io) + 2)
    params = {}
    for i, (ci, co) in enumerate(conv_io):
        fan_in = 9 * ci
        params[f"w{i + 1}"] = (jax.random.normal(keys[2 * i], (3, 3, ci, co), jnp.float32)
                               / np.sqrt(fan_in))
        params[f"b{i + 1}"] = 0.01 * jax.random.normal(keys[2 * i + 1], (co,), jnp.float32)
    h = w = in_hw
    for _ in range(3):
        h, w = _pool_out(h), _pool_out(w)
    feat = 128 * h * w                       # (original spatial variant used 4788)
    # stored in PyTorch NCHW-flatten order
    params["wc"] = jax.random.normal(keys[-2], (feat, 10), jnp.float32) / np.sqrt(feat)
    params["bc"] = 0.01 * jax.random.normal(keys[-1], (10,), jnp.float32)
    return params


def ref_forward(params, x_nchw):
    # mirrors the kernel's bf16-operand / f32-accumulate precision
    x = jnp.transpose(x_nchw, (0, 2, 3, 1)).astype(jnp.bfloat16)

    def conv(x, w, b):
        y = lax.conv_general_dilated(
            x, w.astype(jnp.bfloat16), (1, 1), "SAME",
            dimension_numbers=("NHWC", "HWIO", "NHWC"),
            preferred_element_type=jnp.float32)
        return (y + b).astype(jnp.bfloat16)

    def mp(x):
        return lax.reduce_window(
            x, jnp.array(-jnp.inf, x.dtype), lax.max,
            (1, 3, 3, 1), (1, 2, 2, 1),
            [(0, 0), (2, 2), (2, 2), (0, 0)])

    c1 = conv(x, params["w1"], params["b1"]); p1 = mp(c1)
    c2 = conv(p1, params["w2"], params["b2"]); p2 = mp(c2)
    c3 = conv(p2, params["w3"], params["b3"])
    c4 = conv(c3, params["w4"], params["b4"]); p3 = mp(c4)
    n = p3.shape[0]
    flat = jnp.transpose(p3, (0, 3, 1, 2)).reshape(n, -1)      # PyTorch NCHW flatten
    return jnp.dot(flat.astype(jnp.bfloat16), params["wc"].astype(jnp.bfloat16),
                   preferred_element_type=jnp.float32) + params["bc"]


if __name__ == "__main__":
    key = jax.random.PRNGKey(0)
    k_x, k_p = jax.random.split(key)

    B, C, H, W = 2, 3, 16, 16            # small CIFAR-like NCHW input
    x = jax.random.normal(k_x, (B, C, H, W), jnp.float32)
    params = init_params(k_p, H)

    fwd = jax.jit(forward)
    out = jax.block_until_ready(fwd(params, x))
    assert out.shape == (B, 10), out.shape

    ref = jax.block_until_ready(ref_forward(params, x))
    np.testing.assert_allclose(np.asarray(out), np.asarray(ref), rtol=2e-2, atol=2e-2)

    print("KERNEL_OK")
</pallas_src>

<mosaic_0001>
module attributes {stable_mosaic.version = 11 : i64} {
  func.func @_fused_forward_kernel(%arg0: i32, %arg1: memref<1x456x3xbf16, #tpu.memory_space<vmem>>, %arg2: memref<27x128xbf16, #tpu.memory_space<vmem>>, %arg3: memref<1x128xf32, #tpu.memory_space<vmem>>, %arg4: memref<1152x128xbf16, #tpu.memory_space<vmem>>, %arg5: memref<1x128xf32, #tpu.memory_space<vmem>>, %arg6: memref<1152x128xbf16, #tpu.memory_space<vmem>>, %arg7: memref<1x128xf32, #tpu.memory_space<vmem>>, %arg8: memref<1152x128xbf16, #tpu.memory_space<vmem>>, %arg9: memref<1x128xf32, #tpu.memory_space<vmem>>, %arg10: memref<2048x128xbf16, #tpu.memory_space<vmem>>, %arg11: memref<1x128xf32, #tpu.memory_space<vmem>>, %arg12: memref<1x1x128xf32, #tpu.memory_space<vmem>>, %arg13: memref<384x128xf32, #tpu.memory_space<vmem>>, %arg14: memref<192x128xbf16, #tpu.memory_space<vmem>>, %arg15: memref<144x128xbf16, #tpu.memory_space<vmem>>, %arg16: memref<144x128xbf16, #tpu.memory_space<vmem>>) attributes {dimension_semantics = [#tpu.dimension_semantics<parallel>], iteration_bounds = array<i64: 2>, scalar_prefetch = 0 : i64, scratch_operands = 4 : i64, tpu.core_type = #tpu.core_type<tc>, window_params = [{transform_indices = @transform_0, window_bounds = array<i64: 1, 456, 3>}, {pipeline_mode = #tpu.pipeline_mode<synchronous>, transform_indices = @transform_1, window_bounds = array<i64: 27, 128>}, {pipeline_mode = #tpu.pipeline_mode<synchronous>, transform_indices = @transform_2, window_bounds = array<i64: 1, 128>}, {pipeline_mode = #tpu.pipeline_mode<synchronous>, transform_indices = @transform_3, window_bounds = array<i64: 1152, 128>}, {pipeline_mode = #tpu.pipeline_mode<synchronous>, transform_indices = @transform_4, window_bounds = array<i64: 1, 128>}, {pipeline_mode = #tpu.pipeline_mode<synchronous>, transform_indices = @transform_5, window_bounds = array<i64: 1152, 128>}, {pipeline_mode = #tpu.pipeline_mode<synchronous>, transform_indices = @transform_6, window_bounds = array<i64: 1, 128>}, {pipeline_mode = #tpu.pipeline_mode<synchronous>, transform_indices = @transform_7, window_bounds = array<i64: 1152, 128>}, {pipeline_mode = #tpu.pipeline_mode<synchronous>, transform_indices = @transform_8, window_bounds = array<i64: 1, 128>}, {pipeline_mode = #tpu.pipeline_mode<synchronous>, transform_indices = @transform_9, window_bounds = array<i64: 2048, 128>}, {pipeline_mode = #tpu.pipeline_mode<synchronous>, transform_indices = @transform_10, window_bounds = array<i64: 1, 128>}, {transform_indices = @transform_11, window_bounds = array<i64: 1, 1, 128>}]} {
    %c0 = arith.constant 0 : index
    %c0_0 = arith.constant 0 : index
    %c0_1 = arith.constant 0 : index
    %0 = vector.load %arg1[%c0, %c0_0, %c0_1] : memref<1x456x3xbf16, #tpu.memory_space<vmem>>, vector<1x128x3xbf16>
    %1 = vector.shape_cast %0 : vector<1x128x3xbf16> to vector<128x3xbf16>
    %c0_2 = arith.constant 0 : index
    %c0_3 = arith.constant 0 : index
    %2 = vector.load %arg2[%c0_2, %c0_3] : memref<27x128xbf16, #tpu.memory_space<vmem>>, vector<3x128xbf16>
    %cst = arith.constant dense<0.000000e+00> : vector<128x128xf32>
    %3 = tpu.matmul %1, %2, %cst {dimension_numbers = #tpu.dot_dimension_numbers<[1], [0], [0], [1], [0, 0, 1, 1], [], []>} : vector<128x3xbf16>, vector<3x128xbf16>, vector<128x128xf32> -> vector<128x128xf32>
    %c0_4 = arith.constant 0 : index
    %c1 = arith.constant 1 : index
    %c0_5 = arith.constant 0 : index
    %4 = vector.load %arg1[%c0_4, %c1, %c0_5] : memref<1x456x3xbf16, #tpu.memory_space<vmem>>, vector<1x128x3xbf16>
    %5 = vector.shape_cast %4 : vector<1x128x3xbf16> to vector<128x3xbf16>
    %c3 = arith.constant 3 : index
    %c0_6 = arith.constant 0 : index
    %6 = vector.load %arg2[%c3, %c0_6] : memref<27x128xbf16, #tpu.memory_space<vmem>>, vector<3x128xbf16>
    %cst_7 = arith.constant dense<0.000000e+00> : vector<128x128xf32>
    %7 = tpu.matmul %5, %6, %cst_7 {dimension_numbers = #tpu.dot_dimension_numbers<[1], [0], [0], [1], [0, 0, 1, 1], [], []>} : vector<128x3xbf16>, vector<3x128xbf16>, vector<128x128xf32> -> vector<128x128xf32>
    %8 = arith.addf %3, %7 : vector<128x128xf32>
    %c0_8 = arith.constant 0 : index
    %c2 = arith.constant 2 : index
    %c0_9 = arith.constant 0 : index
    %9 = vector.load %arg1[%c0_8, %c2, %c0_9] : memref<1x456x3xbf16, #tpu.memory_space<vmem>>, vector<1x128x3xbf16>
    %10 = vector.shape_cast %9 : vector<1x128x3xbf16> to vector<128x3xbf16>
    %c6 = arith.constant 6 : index
    %c0_10 = arith.constant 0 : index
    %11 = vector.load %arg2[%c6, %c0_10] : memref<27x128xbf16, #tpu.memory_space<vmem>>, vector<3x128xbf16>
    %cst_11 = arith.constant dense<0.000000e+00> : vector<128x128xf32>
    %12 = tpu.matmul %10, %11, %cst_11 {dimension_numbers = #tpu.dot_dimension_numbers<[1], [0], [0], [1], [0, 0, 1, 1], [], []>} : vector<128x3xbf16>, vector<3x128xbf16>, vector<128x128xf32> -> vector<128x128xf32>
    %13 = arith.addf %8, %12 : vector<128x128xf32>
    %c0_12 = arith.constant 0 : index
    %c24 = arith.constant 24 : index
    %c0_13 = arith.constant 0 : index
    %14 = vector.load %arg1[%c0_12, %c24, %c0_13] : memref<1x456x3xbf16, #tpu.memory_space<vmem>>, vector<1x128x3xbf16>
    %15 = vector.shape_cast %14 : vector<1x128x3xbf16> to vector<128x3xbf16>
    %c9 = arith.constant 9 : index
    %c0_14 = arith.constant 0 : index
    %16 = vector.load %arg2[%c9, %c0_14] : memref<27x128xbf16, #tpu.memory_space<vmem>>, vector<3x128xbf16>
    %cst_15 = arith.constant dense<0.000000e+00> : vector<128x128xf32>
    %17 = tpu.matmul %15, %16, %cst_15 {dimension_numbers = #tpu.dot_dimension_numbers<[1], [0], [0], [1], [0, 0, 1, 1], [], []>} : vector<128x3xbf16>, vector<3x128xbf16>, vector<128x128xf32> -> vector<128x128xf32>
    %18 = arith.addf %13, %17 : vector<128x128xf32>
    %c0_16 = arith.constant 0 : index
    %c25 = arith.constant 25 : index
    %c0_17 = arith.constant 0 : index
    %19 = vector.load %arg1[%c0_16, %c25, %c0_17] : memref<1x456x3xbf16, #tpu.memory_space<vmem>>, vector<1x128x3xbf16>
    %20 = vector.shape_cast %19 : vector<1x128x3xbf16> to vector<128x3xbf16>
    %c12 = arith.constant 12 : index
    %c0_18 = arith.constant 0 : index
    %21 = vector.load %arg2[%c12, %c0_18] : memref<27x128xbf16, #tpu.memory_space<vmem>>, vector<3x128xbf16>
    %cst_19 = arith.constant dense<0.000000e+00> : vector<128x128xf32>
    %22 = tpu.matmul %20, %21, %cst_19 {dimension_numbers = #tpu.dot_dimension_numbers<[1], [0], [0], [1], [0, 0, 1, 1], [], []>} : vector<128x3xbf16>, vector<3x128xbf16>, vector<128x128xf32> -> vector<128x128xf32>
    %23 = arith.addf %18, %22 : vector<128x128xf32>
    %c0_20 = arith.constant 0 : index
    %c26 = arith.constant 26 : index
    %c0_21 = arith.constant 0 : index
    %24 = vector.load %arg1[%c0_20, %c26, %c0_21] : memref<1x456x3xbf16, #tpu.memory_space<vmem>>, vector<1x128x3xbf16>
    %25 = vector.shape_cast %24 : vector<1x128x3xbf16> to vector<128x3xbf16>
    %c15 = arith.constant 15 : index
    %c0_22 = arith.constant 0 : index
    %26 = vector.load %arg2[%c15, %c0_22] : memref<27x128xbf16, #tpu.memory_space<vmem>>, vector<3x128xbf16>
    %cst_23 = arith.constant dense<0.000000e+00> : vector<128x128xf32>
    %27 = tpu.matmul %25, %26, %cst_23 {dimension_numbers = #tpu.dot_dimension_numbers<[1], [0], [0], [1], [0, 0, 1, 1], [], []>} : vector<128x3xbf16>, vector<3x128xbf16>, vector<128x128xf32> -> vector<128x128xf32>
    %28 = arith.addf %23, %27 : vector<128x128xf32>
    %c0_24 = arith.constant 0 : index
    %c48 = arith.constant 48 : index
    %c0_25 = arith.constant 0 : index
    %29 = vector.load %arg1[%c0_24, %c48, %c0_25] : memref<1x456x3xbf16, #tpu.memory_space<vmem>>, vector<1x128x3xbf16>
    %30 = vector.shape_cast %29 : vector<1x128x3xbf16> to vector<128x3xbf16>
    %c18 = arith.constant 18 : index
    %c0_26 = arith.constant 0 : index
    %31 = vector.load %arg2[%c18, %c0_26] : memref<27x128xbf16, #tpu.memory_space<vmem>>, vector<3x128xbf16>
    %cst_27 = arith.constant dense<0.000000e+00> : vector<128x128xf32>
    %32 = tpu.matmul %30, %31, %cst_27 {dimension_numbers = #tpu.dot_dimension_numbers<[1], [0], [0], [1], [0, 0, 1, 1], [], []>} : vector<128x3xbf16>, vector<3x128xbf16>, vector<128x128xf32> -> vector<128x128xf32>
    %33 = arith.addf %28, %32 : vector<128x128xf32>
    %c0_28 = arith.constant 0 : index
    %c49 = arith.constant 49 : index
    %c0_29 = arith.constant 0 : index
    %34 = vector.load %arg1[%c0_28, %c49, %c0_29] : memref<1x456x3xbf16, #tpu.memory_space<vmem>>, vector<1x128x3xbf16>
    %35 = vector.shape_cast %34 : vector<1x128x3xbf16> to vector<128x3xbf16>
    %c21 = arith.constant 21 : index
    %c0_30 = arith.constant 0 : index
    %36 = vector.load %arg2[%c21, %c0_30] : memref<27x128xbf16, #tpu.memory_space<vmem>>, vector<3x128xbf16>
    %cst_31 = arith.constant dense<0.000000e+00> : vector<128x128xf32>
    %37 = tpu.matmul %35, %36, %cst_31 {dimension_numbers = #tpu.dot_dimension_numbers<[1], [0], [0], [1], [0, 0, 1, 1], [], []>} : vector<128x3xbf16>, vector<3x128xbf16>, vector<128x128xf32> -> vector<128x128xf32>
    %38 = arith.addf %33, %37 : vector<128x128xf32>
    %c0_32 = arith.constant 0 : index
    %c50 = arith.constant 50 : index
    %c0_33 = arith.constant 0 : index
    %39 = vector.load %arg1[%c0_32, %c50, %c0_33] : memref<1x456x3xbf16, #tpu.memory_space<vmem>>, vector<1x128x3xbf16>
    %40 = vector.shape_cast %39 : vector<1x128x3xbf16> to vector<128x3xbf16>
    %c24_34 = arith.constant 24 : index
    %c0_35 = arith.constant 0 : index
    %41 = vector.load %arg2[%c24_34, %c0_35] : memref<27x128xbf16, #tpu.memory_space<vmem>>, vector<3x128xbf16>
    %cst_36 = arith.constant dense<0.000000e+00> : vector<128x128xf32>
    %42 = tpu.matmul %40, %41, %cst_36 {dimension_numbers = #tpu.dot_dimension_numbers<[1], [0], [0], [1], [0, 0, 1, 1], [], []>} : vector<128x3xbf16>, vector<3x128xbf16>, vector<128x128xf32> -> vector<128x128xf32>
    %43 = arith.addf %38, %42 : vector<128x128xf32>
    %c0_37 = arith.constant 0 : index
    %c0_38 = arith.constant 0 : index
    %44 = vector.load %arg3[%c0_37, %c0_38] : memref<1x128xf32, #tpu.memory_space<vmem>>, vector<1x128xf32>
    %45 = vector.broadcast %44 : vector<1x128xf32> to vector<128x128xf32>
    %46 = arith.addf %43, %45 : vector<128x128xf32>
    %c0_39 = arith.constant 0 : index
    %c0_40 = arith.constant 0 : index
    %47 = vector.load %arg13[%c0_39, %c0_40] : memref<384x128xf32, #tpu.memory_space<vmem>>, vector<128x128xf32>
    tpu.vector_store %arg13[%c0_39, %c0_40], %46 {strides = array<i32>} : memref<384x128xf32, #tpu.memory_space<vmem>>, vector<128x128xf32>,
    %c0_41 = arith.constant 0 : index
    %c128 = arith.constant 128 : index
    %c0_42 = arith.constant 0 : index
    %48 = vector.load %arg1[%c0_41, %c128, %c0_42] : memref<1x456x3xbf16, #tpu.memory_space<vmem>>, vector<1x128x3xbf16>
    %49 = vector.shape_cast %48 : vector<1x128x3xbf16> to vector<128x3xbf16>
    %c0_43 = arith.constant 0 : index
    %c0_44 = arith.constant 0 : index
    %50 = vector.load %arg2[%c0_43, %c0_44] : memref<27x128xbf16, #tpu.memory_space<vmem>>, vector<3x128xbf16>
    %cst_45 = arith.constant dense<0.000000e+00> : vector<128x128xf32>
    %51 = tpu.matmul %49, %50, %cst_45 {dimension_numbers = #tpu.dot_dimension_numbers<[1], [0], [0], [1], [0, 0, 1, 1], [], []>} : vector<128x3xbf16>, vector<3x128xbf16>, vector<128x128xf32> -> vector<128x128xf32>
    %c0_46 = arith.constant 0 : index
    %c129 = arith.constant 129 : index
    %c0_47 = arith.constant 0 : index
    %52 = vector.load %arg1[%c0_46, %c129, %c0_47] : memref<1x456x3xbf16, #tpu.memory_space<vmem>>, vector<1x128x3xbf16>
    %53 = vector.shape_cast %52 : vector<1x128x3xbf16> to vector<128x3xbf16>
    %c3_48 = arith.constant 3 : index
    %c0_49 = arith.constant 0 : index
    %54 = vector.load %arg2[%c3_48, %c0_49] : memref<27x128xbf16, #tpu.memory_space<vmem>>, vector<3x128xbf16>
    %cst_50 = arith.constant dense<0.000000e+00> : vector<128x128xf32>
    %55 = tpu.matmul %53, %54, %cst_50 {dimension_numbers = #tpu.dot_dimension_numbers<[1], [0], [0], [1], [0, 0, 1, 1], [], []>} : vector<128x3xbf16>, vector<3x128xbf16>, vector<128x128xf32> -> vector<128x128xf32>
    %56 = arith.addf %51, %55 : vector<128x128xf32>
    %c0_51 = arith.constant 0 : index
    %c130 = arith.constant 130 : index
    %c0_52 = arith.constant 0 : index
    %57 = vector.load %arg1[%c0_51, %c130, %c0_52] : memref<1x456x3xbf16, #tpu.memory_space<vmem>>, vector<1x128x3xbf16>
    %58 = vector.shape_cast %57 : vector<1x128x3xbf16> to vector<128x3xbf16>
    %c6_53 = arith.constant 6 : index
    %c0_54 = arith.constant 0 : index
    %59 = vector.load %arg2[%c6_53, %c0_54] : memref<27x128xbf16, #tpu.memory_space<vmem>>, vector<3x128xbf16>
    %cst_55 = arith.constant dense<0.000000e+00> : vector<128x128xf32>
    %60 = tpu.matmul %58, %59, %cst_55 {dimension_numbers = #tpu.dot_dimension_numbers<[1], [0], [0], [1], [0, 0, 1, 1], [], []>} : vector<128x3xbf16>, vector<3x128xbf16>, vector<128x128xf32> -> vector<128x128xf32>
    %61 = arith.addf %56, %60 : vector<128x128xf32>
    %c0_56 = arith.constant 0 : index
    %c152 = arith.constant 152 : index
    %c0_57 = arith.constant 0 : index
    %62 = vector.load %arg1[%c0_56, %c152, %c0_57] : memref<1x456x3xbf16, #tpu.memory_space<vmem>>, vector<1x128x3xbf16>
    %63 = vector.shape_cast %62 : vector<1x128x3xbf16> to vector<128x3xbf16>
    %c9_58 = arith.constant 9 : index
    %c0_59 = arith.constant 0 : index
    %64 = vector.load %arg2[%c9_58, %c0_59] : memref<27x128xbf16, #tpu.memory_space<vmem>>, vector<3x128xbf16>
    %cst_60 = arith.constant dense<0.000000e+00> : vector<128x128xf32>
    %65 = tpu.matmul %63, %64, %cst_60 {dimension_numbers = #tpu.dot_dimension_numbers<[1], [0], [0], [1], [0, 0, 1, 1], [], []>} : vector<128x3xbf16>, vector<3x128xbf16>, vector<128x128xf32> -> vector<128x128xf32>
    %66 = arith.addf %61, %65 : vector<128x128xf32>
    %c0_61 = arith.constant 0 : index
    %c153 = arith.constant 153 : index
    %c0_62 = arith.constant 0 : index
    %67 = vector.load %arg1[%c0_61, %c153, %c0_62] : memref<1x456x3xbf16, #tpu.memory_space<vmem>>, vector<1x128x3xbf16>
    %68 = vector.shape_cast %67 : vector<1x128x3xbf16> to vector<128x3xbf16>
    %c12_63 = arith.constant 12 : index
    %c0_64 = arith.constant 0 : index
    %69 = vector.load %arg2[%c12_63, %c0_64] : memref<27x128xbf16, #tpu.memory_space<vmem>>, vector<3x128xbf16>
    %cst_65 = arith.constant dense<0.000000e+00> : vector<128x128xf32>
    %70 = tpu.matmul %68, %69, %cst_65 {dimension_numbers = #tpu.dot_dimension_numbers<[1], [0], [0], [1], [0, 0, 1, 1], [], []>} : vector<128x3xbf16>, vector<3x128xbf16>, vector<128x128xf32> -> vector<128x128xf32>
    %71 = arith.addf %66, %70 : vector<128x128xf32>
    %c0_66 = arith.constant 0 : index
    %c154 = arith.constant 154 : index
    %c0_67 = arith.constant 0 : index
    %72 = vector.load %arg1[%c0_66, %c154, %c0_67] : memref<1x456x3xbf16, #tpu.memory_space<vmem>>, vector<1x128x3xbf16>
    %73 = vector.shape_cast %72 : vector<1x128x3xbf16> to vector<128x3xbf16>
    %c15_68 = arith.constant 15 : index
    %c0_69 = arith.constant 0 : index
    %74 = vector.load %arg2[%c15_68, %c0_69] : memref<27x128xbf16, #tpu.memory_space<vmem>>, vector<3x128xbf16>
    %cst_70 = arith.constant dense<0.000000e+00> : vector<128x128xf32>
    %75 = tpu.matmul %73, %74, %cst_70 {dimension_numbers = #tpu.dot_dimension_numbers<[1], [0], [0], [1], [0, 0, 1, 1], [], []>} : vector<128x3xbf16>, vector<3x128xbf16>, vector<128x128xf32> -> vector<128x128xf32>
    %76 = arith.addf %71, %75 : vector<128x128xf32>
    %c0_71 = arith.constant 0 : index
    %c176 = arith.constant 176 : index
    %c0_72 = arith.constant 0 : index
    %77 = vector.load %arg1[%c0_71, %c176, %c0_72] : memref<1x456x3xbf16, #tpu.memory_space<vmem>>, vector<1x128x3xbf16>
    %78 = vector.shape_cast %77 : vector<1x128x3xbf16> to vector<128x3xbf16>
    %c18_73 = arith.constant 18 : index
    %c0_74 = arith.constant 0 : index
    %79 = vector.load %arg2[%c18_73, %c0_74] : memref<27x128xbf16, #tpu.memory_space<vmem>>, vector<3x128xbf16>
    %cst_75 = arith.constant dense<0.000000e+00> : vector<128x128xf32>
    %80 = tpu.matmul %78, %79, %cst_75 {dimension_numbers = #tpu.dot_dimension_numbers<[1], [0], [0], [1], [0, 0, 1, 1], [], []>} : vector<128x3xbf16>, vector<3x128xbf16>, vector<128x128xf32> -> vector<128x128xf32>
    %81 = arith.addf %76, %80 : vector<128x128xf32>
    %c0_76 = arith.constant 0 : index
    %c177 = arith.constant 177 : index
    %c0_77 = arith.constant 0 : index
    %82 = vector.load %arg1[%c0_76, %c177, %c0_77] : memref<1x456x3xbf16, #tpu.memory_space<vmem>>, vector<1x128x3xbf16>
    %83 = vector.shape_cast %82 : vector<1x128x3xbf16> to vector<128x3xbf16>
    %c21_78 = arith.constant 21 : index
    %c0_79 = arith.constant 0 : index
    %84 = vector.load %arg2[%c21_78, %c0_79] : memref<27x128xbf16, #tpu.memory_space<vmem>>, vector<3x128xbf16>
    %cst_80 = arith.constant dense<0.000000e+00> : vector<128x128xf32>
    %85 = tpu.matmul %83, %84, %cst_80 {dimension_numbers = #tpu.dot_dimension_numbers<[1], [0], [0], [1], [0, 0, 1, 1], [], []>} : vector<128x3xbf16>, vector<3x128xbf16>, vector<128x128xf32> -> vector<128x128xf32>
    %86 = arith.addf %81, %85 : vector<128x128xf32>
    %c0_81 = arith.constant 0 : index
    %c178 = arith.constant 178 : index
    %c0_82 = arith.constant 0 : index
    %87 = vector.load %arg1[%c0_81, %c178, %c0_82] : memref<1x456x3xbf16, #tpu.memory_space<vmem>>, vector<1x128x3xbf16>
    %88 = vector.shape_cast %87 : vector<1x128x3xbf16> to vector<128x3xbf16>
    %c24_83 = arith.constant 24 : index
    %c0_84 = arith.constant 0 : index
    %89 = vector.load %arg2[%c24_83, %c0_84] : memref<27x128xbf16, #tpu.memory_space<vmem>>, vector<3x128xbf16>
    %cst_85 = arith.constant dense<0.000000e+00> : vector<128x128xf32>
    %90 = tpu.matmul %88, %89, %cst_85 {dimension_numbers = #tpu.dot_dimension_numbers<[1], [0], [0], [1], [0, 0, 1, 1], [], []>} : vector<128x3xbf16>, vector<3x128xbf16>, vector<128x128xf32> -> vector<128x128xf32>
    %91 = arith.addf %86, %90 : vector<128x128xf32>
    %c0_86 = arith.constant 0 : index
    %c0_87 = arith.constant 0 : index
    %92 = vector.load %arg3[%c0_86, %c0_87] : memref<1x128xf32, #tpu.memory_space<vmem>>, vector<1x128xf32>
    %93 = vector.broadcast %92 : vector<1x128xf32> to vector<128x128xf32>
    %94 = arith.addf %91, %93 : vector<128x128xf32>
    %c128_88 = arith.constant 128 : index
    %c0_89 = arith.constant 0 : index
    %95 = vector.load %arg13[%c128_88, %c0_89] : memref<384x128xf32, #tpu.memory_space<vmem>>, vector<128x128xf32>
    tpu.vector_store %arg13[%c128_88, %c0_89], %94 {strides = array<i32>} : memref<384x128xf32, #tpu.memory_space<vmem>>, vector<128x128xf32>,
    %c0_90 = arith.constant 0 : index
    %c256 = arith.constant 256 : index
    %c0_91 = arith.constant 0 : index
    %96 = vector.load %arg1[%c0_90, %c256, %c0_91] : memref<1x456x3xbf16, #tpu.memory_space<vmem>>, vector<1x128x3xbf16>
    %97 = vector.shape_cast %96 : vector<1x128x3xbf16> to vector<128x3xbf16>
    %c0_92 = arith.constant 0 : index
    %c0_93 = arith.constant 0 : index
    %98 = vector.load %arg2[%c0_92, %c0_93] : memref<27x128xbf16, #tpu.memory_space<vmem>>, vector<3x128xbf16>
    %cst_94 = arith.constant dense<0.000000e+00> : vector<128x128xf32>
    %99 = tpu.matmul %97, %98, %cst_94 {dimension_numbers = #tpu.dot_dimension_numbers<[1], [0], [0], [1], [0, 0, 1, 1], [], []>} : vector<128x3xbf16>, vector<3x128xbf16>, vector<128x128xf32> -> vector<128x128xf32>
    %c0_95 = arith.constant 0 : index
    %c257 = arith.constant 257 : index
    %c0_96 = arith.constant 0 : index
    %100 = vector.load %arg1[%c0_95, %c257, %c0_96] : memref<1x456x3xbf16, #tpu.memory_space<vmem>>, vector<1x128x3xbf16>
    %101 = vector.shape_cast %100 : vector<1x128x3xbf16> to vector<128x3xbf16>
    %c3_97 = arith.constant 3 : index
    %c0_98 = arith.constant 0 : index
    %102 = vector.load %arg2[%c3_97, %c0_98] : memref<27x128xbf16, #tpu.memory_space<vmem>>, vector<3x128xbf16>
    %cst_99 = arith.constant dense<0.000000e+00> : vector<128x128xf32>
    %103 = tpu.matmul %101, %102, %cst_99 {dimension_numbers = #tpu.dot_dimension_numbers<[1], [0], [0], [1], [0, 0, 1, 1], [], []>} : vector<128x3xbf16>, vector<3x128xbf16>, vector<128x128xf32> -> vector<128x128xf32>
    %104 = arith.addf %99, %103 : vector<128x128xf32>
    %c0_100 = arith.constant 0 : index
    %c258 = arith.constant 258 : index
    %c0_101 = arith.constant 0 : index
    %105 = vector.load %arg1[%c0_100, %c258, %c0_101] : memref<1x456x3xbf16, #tpu.memory_space<vmem>>, vector<1x128x3xbf16>
    %106 = vector.shape_cast %105 : vector<1x128x3xbf16> to vector<128x3xbf16>
    %c6_102 = arith.constant 6 : index
    %c0_103 = arith.constant 0 : index
    %107 = vector.load %arg2[%c6_102, %c0_103] : memref<27x128xbf16, #tpu.memory_space<vmem>>, vector<3x128xbf16>
    %cst_104 = arith.constant dense<0.000000e+00> : vector<128x128xf32>
    %108 = tpu.matmul %106, %107, %cst_104 {dimension_numbers = #tpu.dot_dimension_numbers<[1], [0], [0], [1], [0, 0, 1, 1], [], []>} : vector<128x3xbf16>, vector<3x128xbf16>, vector<128x128xf32> -> vector<128x128xf32>
    %109 = arith.addf %104, %108 : vector<128x128xf32>
    %c0_105 = arith.constant 0 : index
    %c280 = arith.constant 280 : index
    %c0_106 = arith.constant 0 : index
    %110 = vector.load %arg1[%c0_105, %c280, %c0_106] : memref<1x456x3xbf16, #tpu.memory_space<vmem>>, vector<1x128x3xbf16>
    %111 = vector.shape_cast %110 : vector<1x128x3xbf16> to vector<128x3xbf16>
    %c9_107 = arith.constant 9 : index
    %c0_108 = arith.constant 0 : index
    %112 = vector.load %arg2[%c9_107, %c0_108] : memref<27x128xbf16, #tpu.memory_space<vmem>>, vector<3x128xbf16>
    %cst_109 = arith.constant dense<0.000000e+00> : vector<128x128xf32>
    %113 = tpu.matmul %111, %112, %cst_109 {dimension_numbers = #tpu.dot_dimension_numbers<[1], [0], [0], [1], [0, 0, 1, 1], [], []>} : vector<128x3xbf16>, vector<3x128xbf16>, vector<128x128xf32> -> vector<128x128xf32>
    %114 = arith.addf %109, %113 : vector<128x128xf32>
    %c0_110 = arith.constant 0 : index
    %c281 = arith.constant 281 : index
    %c0_111 = arith.constant 0 : index
    %115 = vector.load %arg1[%c0_110, %c281, %c0_111] : memref<1x456x3xbf16, #tpu.memory_space<vmem>>, vector<1x128x3xbf16>
    %116 = vector.shape_cast %115 : vector<1x128x3xbf16> to vector<128x3xbf16>
    %c12_112 = arith.constant 12 : index
    %c0_113 = arith.constant 0 : index
    %117 = vector.load %arg2[%c12_112, %c0_113] : memref<27x128xbf16, #tpu.memory_space<vmem>>, vector<3x128xbf16>
    %cst_114 = arith.constant dense<0.000000e+00> : vector<128x128xf32>
    %118 = tpu.matmul %116, %117, %cst_114 {dimension_numbers = #tpu.dot_dimension_numbers<[1], [0], [0], [1], [0, 0, 1, 1], [], []>} : vector<128x3xbf16>, vector<3x128xbf16>, vector<128x128xf32> -> vector<128x128xf32>
    %119 = arith.addf %114, %118 : vector<128x128xf32>
    %c0_115 = arith.constant 0 : index
    %c282 = arith.constant 282 : index
    %c0_116 = arith.constant 0 : index
    %120 = vector.load %arg1[%c0_115, %c282, %c0_116] : memref<1x456x3xbf16, #tpu.memory_space<vmem>>, vector<1x128x3xbf16>
    %121 = vector.shape_cast %120 : vector<1x128x3xbf16> to vector<128x3xbf16>
    %c15_117 = arith.constant 15 : index
    %c0_118 = arith.constant 0 : index
    %122 = vector.load %arg2[%c15_117, %c0_118] : memref<27x128xbf16, #tpu.memory_space<vmem>>, vector<3x128xbf16>
    %cst_119 = arith.constant dense<0.000000e+00> : vector<128x128xf32>
    %123 = tpu.matmul %121, %122, %cst_119 {dimension_numbers = #tpu.dot_dimension_numbers<[1], [0], [0], [1], [0, 0, 1, 1], [], []>} : vector<128x3xbf16>, vector<3x128xbf16>, vector<128x128xf32> -> vector<128x128xf32>
    %124 = arith.addf %119, %123 : vector<128x128xf32>
    %c0_120 = arith.constant 0 : index
    %c304 = arith.constant 304 : index
    %c0_121 = arith.constant 0 : index
    %125 = vector.load %arg1[%c0_120, %c304, %c0_121] : memref<1x456x3xbf16, #tpu.memory_space<vmem>>, vector<1x128x3xbf16>
    %126 = vector.shape_cast %125 : vector<1x128x3xbf16> to vector<128x3xbf16>
    %c18_122 = arith.constant 18 : index
    %c0_123 = arith.constant 0 : index
    %127 = vector.load %arg2[%c18_122, %c0_123] : memref<27x128xbf16, #tpu.memory_space<vmem>>, vector<3x128xbf16>
    %cst_124 = arith.constant dense<0.000000e+00> : vector<128x128xf32>
    %128 = tpu.matmul %126, %127, %cst_124 {dimension_numbers = #tpu.dot_dimension_numbers<[1], [0], [0], [1], [0, 0, 1, 1], [], []>} : vector<128x3xbf16>, vector<3x128xbf16>, vector<128x128xf32> -> vector<128x128xf32>
    %129 = arith.addf %124, %128 : vector<128x128xf32>
    %c0_125 = arith.constant 0 : index
    %c305 = arith.constant 305 : index
    %c0_126 = arith.constant 0 : index
    %130 = vector.load %arg1[%c0_125, %c305, %c0_126] : memref<1x456x3xbf16, #tpu.memory_space<vmem>>, vector<1x128x3xbf16>
    %131 = vector.shape_cast %130 : vector<1x128x3xbf16> to vector<128x3xbf16>
    %c21_127 = arith.constant 21 : index
    %c0_128 = arith.constant 0 : index
    %132 = vector.load %arg2[%c21_127, %c0_128] : memref<27x128xbf16, #tpu.memory_space<vmem>>, vector<3x128xbf16>
    %cst_129 = arith.constant dense<0.000000e+00> : vector<128x128xf32>
    %133 = tpu.matmul %131, %132, %cst_129 {dimension_numbers = #tpu.dot_dimension_numbers<[1], [0], [0], [1], [0, 0, 1, 1], [], []>} : vector<128x3xbf16>, vector<3x128xbf16>, vector<128x128xf32> -> vector<128x128xf32>
    %134 = arith.addf %129, %133 : vector<128x128xf32>
    %c0_130 = arith.constant 0 : index
    %c306 = arith.constant 306 : index
    %c0_131 = arith.constant 0 : index
    %135 = vector.load %arg1[%c0_130, %c306, %c0_131] : memref<1x456x3xbf16, #tpu.memory_space<vmem>>, vector<1x128x3xbf16>
    %136 = vector.shape_cast %135 : vector<1x128x3xbf16> to vector<128x3xbf16>
    %c24_132 = arith.constant 24 : index
    %c0_133 = arith.constant 0 : index
    %137 = vector.load %arg2[%c24_132, %c0_133] : memref<27x128xbf16, #tpu.memory_space<vmem>>, vector<3x128xbf16>
    %cst_134 = arith.constant dense<0.000000e+00> : vector<128x128xf32>
    %138 = tpu.matmul %136, %137, %cst_134 {dimension_numbers = #tpu.dot_dimension_numbers<[1], [0], [0], [1], [0, 0, 1, 1], [], []>} : vector<128x3xbf16>, vector<3x128xbf16>, vector<128x128xf32> -> vector<128x128xf32>
    %139 = arith.addf %134, %138 : vector<128x128xf32>
    %c0_135 = arith.constant 0 : index
    %c0_136 = arith.constant 0 : index
    %140 = vector.load %arg3[%c0_135, %c0_136] : memref<1x128xf32, #tpu.memory_space<vmem>>, vector<1x128xf32>
    %141 = vector.broadcast %140 : vector<1x128xf32> to vector<128x128xf32>
    %142 = arith.addf %139, %141 : vector<128x128xf32>
    %c256_137 = arith.constant 256 : index
    %c0_138 = arith.constant 0 : index
    %143 = vector.load %arg13[%c256_137, %c0_138] : memref<384x128xf32, #tpu.memory_space<vmem>>, vector<128x128xf32>
    tpu.vector_store %arg13[%c256_137, %c0_138], %142 {strides = array<i32>} : memref<384x128xf32, #tpu.memory_space<vmem>>, vector<128x128xf32>,
    %cst_139 = arith.constant 0.000000e+00 : bf16
    %144 = vector.broadcast %cst_139 : bf16 to vector<192x128xbf16>
    %c0_140 = arith.constant 0 : index
    %c0_141 = arith.constant 0 : index
    %145 = vector.load %arg14[%c0_140, %c0_141] : memref<192x128xbf16, #tpu.memory_space<vmem>>, vector<192x128xbf16>
    tpu.vector_store %arg14[%c0_140, %c0_141], %144 {strides = array<i32>} : memref<192x128xbf16, #tpu.memory_space<vmem>>, vector<192x128xbf16>,
    %146 = tpu.iota {dimensions = array<i32: 0>} : vector<24x128xi32>
    %c2_i32 = arith.constant 2 : i32
    %147 = vector.broadcast %c2_i32 : i32 to vector<24x128xi32>
    %148 = arith.cmpi sge, %146, %147 : vector<24x128xi32>
    %c18_i32 = arith.constant 18 : i32
    %149 = vector.broadcast %c18_i32 : i32 to vector<24x128xi32>
    %150 = arith.cmpi slt, %146, %149 : vector<24x128xi32>
    %151 = arith.andi %148, %150 : vector<24x128xi1>
    %152 = tpu.iota {dimensions = array<i32: 0>} : vector<9x17xi32>
    %153 = tpu.iota {dimensions = array<i32: 1>} : vector<9x17xi32>
    %c2_i32_142 = arith.constant 2 : i32
    %154 = vector.broadcast %c2_i32_142 : i32 to vector<9x17xi32>
    %155 = arith.muli %154, %152 : vector<9x17xi32>
    %156 = arith.cmpi eq, %153, %155 : vector<9x17xi32>
    %cst_143 = arith.constant 1.000000e+00 : f32
    %cst_144 = arith.constant 0.000000e+00 : f32
    %157 = vector.broadcast %cst_143 : f32 to vector<9x17xf32>
    %158 = vector.broadcast %cst_144 : f32 to vector<9x17xf32>
    %159 = arith.select %156, %157, %158 : vector<9x17xi1>, vector<9x17xf32>
    %c0_145 = arith.constant 0 : index
    %c0_146 = arith.constant 0 : index
    %160 = vector.load %arg13[%c0_145, %c0_146] : memref<384x128xf32, #tpu.memory_space<vmem>>, vector<24x128xf32>
    %cst_147 = arith.constant -3.40282347E+38 : f32
    %161 = vector.broadcast %cst_147 : f32 to vector<24x128xf32>
    %162 = arith.select %151, %160, %161 : vector<24x128xi1>, vector<24x128xf32>
    %163 = vector.extract_strided_slice %162 {offsets = [0, 0], sizes = [17, 128], strides = [1, 1]} : vector<24x128xf32> to vector<17x128xf32>
    %164 = vector.extract_strided_slice %162 {offsets = [1, 0], sizes = [17, 128], strides = [1, 1]} : vector<24x128xf32> to vector<17x128xf32>
    %165 = arith.maximumf %163, %164 : vector<17x128xf32>
    %166 = vector.extract_strided_slice %162 {offsets = [2, 0], sizes = [17, 128], strides = [1, 1]} : vector<24x128xf32> to vector<17x128xf32>
    %167 = arith.maximumf %165, %166 : vector<17x128xf32>
    %cst_148 = arith.constant dense<0.000000e+00> : vector<9x128xf32>
    %168 = tpu.matmul %159, %167, %cst_148 {dimension_numbers = #tpu.dot_dimension_numbers<[1], [0], [0], [1], [0, 0, 1, 1], [], []>} : vector<9x17xf32>, vector<17x128xf32>, vector<9x128xf32> -> vector<9x128xf32>
    %c0_149 = arith.constant 0 : index
    %c0_150 = arith.constant 0 : index
    %169 = vector.load %arg13[%c0_149, %c0_150] : memref<384x128xf32, #tpu.memory_space<vmem>>, vector<24x128xf32>
    %c24_151 = arith.constant 24 : index
    %c0_152 = arith.constant 0 : index
    %170 = vector.load %arg13[%c24_151, %c0_152] : memref<384x128xf32, #tpu.memory_space<vmem>>, vector<24x128xf32>
    %171 = arith.maximumf %169, %170 : vector<24x128xf32>
    %c48_153 = arith.constant 48 : index
    %c0_154 = arith.constant 0 : index
    %172 = vector.load %arg13[%c48_153, %c0_154] : memref<384x128xf32, #tpu.memory_space<vmem>>, vector<24x128xf32>
    %173 = arith.maximumf %171, %172 : vector<24x128xf32>
    %cst_155 = arith.constant -3.40282347E+38 : f32
    %174 = vector.broadcast %cst_155 : f32 to vector<24x128xf32>
    %175 = arith.select %151, %173, %174 : vector<24x128xi1>, vector<24x128xf32>
    %176 = vector.extract_strided_slice %175 {offsets = [0, 0], sizes = [17, 128], strides = [1, 1]} : vector<24x128xf32> to vector<17x128xf32>
    %177 = vector.extract_strided_slice %175 {offsets = [1, 0], sizes = [17, 128], strides = [1, 1]} : vector<24x128xf32> to vector<17x128xf32>
    %178 = arith.maximumf %176, %177 : vector<17x128xf32>
    %179 = vector.extract_strided_slice %175 {offsets = [2, 0], sizes = [17, 128], strides = [1, 1]} : vector<24x128xf32> to vector<17x128xf32>
    %180 = arith.maximumf %178, %179 : vector<17x128xf32>
    %cst_156 = arith.constant dense<0.000000e+00> : vector<9x128xf32>
    %181 = tpu.matmul %159, %180, %cst_156 {dimension_numbers = #tpu.dot_dimension_numbers<[1], [0], [0], [1], [0, 0, 1, 1], [], []>} : vector<9x17xf32>, vector<17x128xf32>, vector<9x128xf32> -> vector<9x128xf32>
    %c48_157 = arith.constant 48 : index
    %c0_158 = arith.constant 0 : index
    %182 = vector.load %arg13[%c48_157, %c0_158] : memref<384x128xf32, #tpu.memory_space<vmem>>, vector<24x128xf32>
    %c72 = arith.constant 72 : index
    %c0_159 = arith.constant 0 : index
    %183 = vector.load %arg13[%c72, %c0_159] : memref<384x128xf32, #tpu.memory_space<vmem>>, vector<24x128xf32>
    %184 = arith.maximumf %182, %183 : vector<24x128xf32>
    %c96 = arith.constant 96 : index
    %c0_160 = arith.constant 0 : index
    %185 = vector.load %arg13[%c96, %c0_160] : memref<384x128xf32, #tpu.memory_space<vmem>>, vector<24x128xf32>
    %186 = arith.maximumf %184, %185 : vector<24x128xf32>
    %cst_161 = arith.constant -3.40282347E+38 : f32
    %187 = vector.broadcast %cst_161 : f32 to vector<24x128xf32>
    %188 = arith.select %151, %186, %187 : vector<24x128xi1>, vector<24x128xf32>
    %189 = vector.extract_strided_slice %188 {offsets = [0, 0], sizes = [17, 128], strides = [1, 1]} : vector<24x128xf32> to vector<17x128xf32>
    %190 = vector.extract_strided_slice %188 {offsets = [1, 0], sizes = [17, 128], strides = [1, 1]} : vector<24x128xf32> to vector<17x128xf32>
    %191 = arith.maximumf %189, %190 : vector<17x128xf32>
    %192 = vector.extract_strided_slice %188 {offsets = [2, 0], sizes = [17, 128], strides = [1, 1]} : vector<24x128xf32> to vector<17x128xf32>
    %193 = arith.maximumf %191, %192 : vector<17x128xf32>
    %cst_162 = arith.constant dense<0.000000e+00> : vector<9x128xf32>
    %194 = tpu.matmul %159, %193, %cst_162 {dimension_numbers = #tpu.dot_dimension_numbers<[1], [0], [0], [1], [0, 0, 1, 1], [], []>} : vector<9x17xf32>, vector<17x128xf32>, vector<9x128xf32> -> vector<9x128xf32>
    %c96_163 = arith.constant 96 : index
    %c0_164 = arith.constant 0 : index
    %195 = vector.load %arg13[%c96_163, %c0_164] : memref<384x128xf32, #tpu.memory_space<vmem>>, vector<24x128xf32>
    %c120 = arith.constant 120 : index
    %c0_165 = arith.constant 0 : index
    %196 = vector.load %arg13[%c120, %c0_165] : memref<384x128xf32, #tpu.memory_space<vmem>>, vector<24x128xf32>
    %197 = arith.maximumf %195, %196 : vector<24x128xf32>
    %c144 = arith.constant 144 : index
    %c0_166 = arith.constant 0 : index
    %198 = vector.load %arg13[%c144, %c0_166] : memref<384x128xf32, #tpu.memory_space<vmem>>, vector<24x128xf32>
    %199 = arith.maximumf %197, %198 : vector<24x128xf32>
    %cst_167 = arith.constant -3.40282347E+38 : f32
    %200 = vector.broadcast %cst_167 : f32 to vector<24x128xf32>
    %201 = arith.select %151, %199, %200 : vector<24x128xi1>, vector<24x128xf32>
    %202 = vector.extract_strided_slice %201 {offsets = [0, 0], sizes = [17, 128], strides = [1, 1]} : vector<24x128xf32> to vector<17x128xf32>
    %203 = vector.extract_strided_slice %201 {offsets = [1, 0], sizes = [17, 128], strides = [1, 1]} : vector<24x128xf32> to vector<17x128xf32>
    %204 = arith.maximumf %202, %203 : vector<17x128xf32>
    %205 = vector.extract_strided_slice %201 {offsets = [2, 0], sizes = [17, 128], strides = [1, 1]} : vector<24x128xf32> to vector<17x128xf32>
    %206 = arith.maximumf %204, %205 : vector<17x128xf32>
    %cst_168 = arith.constant dense<0.000000e+00> : vector<9x128xf32>
    %207 = tpu.matmul %159, %206, %cst_168 {dimension_numbers = #tpu.dot_dimension_numbers<[1], [0], [0], [1], [0, 0, 1, 1], [], []>} : vector<9x17xf32>, vector<17x128xf32>, vector<9x128xf32> -> vector<9x128xf32>
    %c144_169 = arith.constant 144 : index
    %c0_170 = arith.constant 0 : index
    %208 = vector.load %arg13[%c144_169, %c0_170] : memref<384x128xf32, #tpu.memory_space<vmem>>, vector<24x128xf32>
    %c168 = arith.constant 168 : index
    %c0_171 = arith.constant 0 : index
    %209 = vector.load %arg13[%c168, %c0_171] : memref<384x128xf32, #tpu.memory_space<vmem>>, vector<24x128xf32>
    %210 = arith.maximumf %208, %209 : vector<24x128xf32>
    %c192 = arith.constant 192 : index
    %c0_172 = arith.constant 0 : index
    %211 = vector.load %arg13[%c192, %c0_172] : memref<384x128xf32, #tpu.memory_space<vmem>>, vector<24x128xf32>
    %212 = arith.maximumf %210, %211 : vector<24x128xf32>
    %cst_173 = arith.constant -3.40282347E+38 : f32
    %213 = vector.broadcast %cst_173 : f32 to vector<24x128xf32>
    %214 = arith.select %151, %212, %213 : vector<24x128xi1>, vector<24x128xf32>
    %215 = vector.extract_strided_slice %214 {offsets = [0, 0], sizes = [17, 128], strides = [1, 1]} : vector<24x128xf32> to vector<17x128xf32>
    %216 = vector.extract_strided_slice %214 {offsets = [1, 0], sizes = [17, 128], strides = [1, 1]} : vector<24x128xf32> to vector<17x128xf32>
    %217 = arith.maximumf %215, %216 : vector<17x128xf32>
    %218 = vector.extract_strided_slice %214 {offsets = [2, 0], sizes = [17, 128], strides = [1, 1]} : vector<24x128xf32> to vector<17x128xf32>
    %219 = arith.maximumf %217, %218 : vector<17x128xf32>
    %cst_174 = arith.constant dense<0.000000e+00> : vector<9x128xf32>
    %220 = tpu.matmul %159, %219, %cst_174 {dimension_numbers = #tpu.dot_dimension_numbers<[1], [0], [0], [1], [0, 0, 1, 1], [], []>} : vector<9x17xf32>, vector<17x128xf32>, vector<9x128xf32> -> vector<9x128xf32>
    %c192_175 = arith.constant 192 : index
    %c0_176 = arith.constant 0 : index
    %221 = vector.load %arg13[%c192_175, %c0_176] : memref<384x128xf32, #tpu.memory_space<vmem>>, vector<24x128xf32>
    %c216 = arith.constant 216 : index
    %c0_177 = arith.constant 0 : index
    %222 = vector.load %arg13[%c216, %c0_177] : memref<384x128xf32, #tpu.memory_space<vmem>>, vector<24x128xf32>
    %223 = arith.maximumf %221, %222 : vector<24x128xf32>
    %c240 = arith.constant 240 : index
    %c0_178 = arith.constant 0 : index
    %224 = vector.load %arg13[%c240, %c0_178] : memref<384x128xf32, #tpu.memory_space<vmem>>, vector<24x128xf32>
    %225 = arith.maximumf %223, %224 : vector<24x128xf32>
    %cst_179 = arith.constant -3.40282347E+38 : f32
    %226 = vector.broadcast %cst_179 : f32 to vector<24x128xf32>
    %227 = arith.select %151, %225, %226 : vector<24x128xi1>, vector<24x128xf32>
    %228 = vector.extract_strided_slice %227 {offsets = [0, 0], sizes = [17, 128], strides = [1, 1]} : vector<24x128xf32> to vector<17x128xf32>
    %229 = vector.extract_strided_slice %227 {offsets = [1, 0], sizes = [17, 128], strides = [1, 1]} : vector<24x128xf32> to vector<17x128xf32>
    %230 = arith.maximumf %228, %229 : vector<17x128xf32>
    %231 = vector.extract_strided_slice %227 {offsets = [2, 0], sizes = [17, 128], strides = [1, 1]} : vector<24x128xf32> to vector<17x128xf32>
    %232 = arith.maximumf %230, %231 : vector<17x128xf32>
    %cst_180 = arith.constant dense<0.000000e+00> : vector<9x128xf32>
    %233 = tpu.matmul %159, %232, %cst_180 {dimension_numbers = #tpu.dot_dimension_numbers<[1], [0], [0], [1], [0, 0, 1, 1], [], []>} : vector<9x17xf32>, vector<17x128xf32>, vector<9x128xf32> -> vector<9x128xf32>
    %c240_181 = arith.constant 240 : index
    %c0_182 = arith.constant 0 : index
    %234 = vector.load %arg13[%c240_181, %c0_182] : memref<384x128xf32, #tpu.memory_space<vmem>>, vector<24x128xf32>
    %c264 = arith.constant 264 : index
    %c0_183 = arith.constant 0 : index
    %235 = vector.load %arg13[%c264, %c0_183] : memref<384x128xf32, #tpu.memory_space<vmem>>, vector<24x128xf32>
    %236 = arith.maximumf %234, %235 : vector<24x128xf32>
    %c288 = arith.constant 288 : index
    %c0_184 = arith.constant 0 : index
    %237 = vector.load %arg13[%c288, %c0_184] : memref<384x128xf32, #tpu.memory_space<vmem>>, vector<24x128xf32>
    %238 = arith.maximumf %236, %237 : vector<24x128xf32>
    %cst_185 = arith.constant -3.40282347E+38 : f32
    %239 = vector.broadcast %cst_185 : f32 to vector<24x128xf32>
    %240 = arith.select %151, %238, %239 : vector<24x128xi1>, vector<24x128xf32>
    %241 = vector.extract_strided_slice %240 {offsets = [0, 0], sizes = [17, 128], strides = [1, 1]} : vector<24x128xf32> to vector<17x128xf32>
    %242 = vector.extract_strided_slice %240 {offsets = [1, 0], sizes = [17, 128], strides = [1, 1]} : vector<24x128xf32> to vector<17x128xf32>
    %243 = arith.maximumf %241, %242 : vector<17x128xf32>
    %244 = vector.extract_strided_slice %240 {offsets = [2, 0], sizes = [17, 128], strides = [1, 1]} : vector<24x128xf32> to vector<17x128xf32>
    %245 = arith.maximumf %243, %244 : vector<17x128xf32>
    %cst_186 = arith.constant dense<0.000000e+00> : vector<9x128xf32>
    %246 = tpu.matmul %159, %245, %cst_186 {dimension_numbers = #tpu.dot_dimension_numbers<[1], [0], [0], [1], [0, 0, 1, 1], [], []>} : vector<9x17xf32>, vector<17x128xf32>, vector<9x128xf32> -> vector<9x128xf32>
    %c288_187 = arith.constant 288 : index
    %c0_188 = arith.constant 0 : index
    %247 = vector.load %arg13[%c288_187, %c0_188] : memref<384x128xf32, #tpu.memory_space<vmem>>, vector<24x128xf32>
    %c312 = arith.constant 312 : index
    %c0_189 = arith.constant 0 : index
    %248 = vector.load %arg13[%c312, %c0_189] : memref<384x128xf32, #tpu.memory_space<vmem>>, vector<24x128xf32>
    %249 = arith.maximumf %247, %248 : vector<24x128xf32>
    %c336 = arith.constant 336 : index
    %c0_190 = arith.constant 0 : index
    %250 = vector.load %arg13[%c336, %c0_190] : memref<384x128xf32, #tpu.memory_space<vmem>>, vector<24x128xf32>
    %251 = arith.maximumf %249, %250 : vector<24x128xf32>
    %cst_191 = arith.constant -3.40282347E+38 : f32
    %252 = vector.broadcast %cst_191 : f32 to vector<24x128xf32>
    %253 = arith.select %151, %251, %252 : vector<24x128xi1>, vector<24x128xf32>
    %254 = vector.extract_strided_slice %253 {offsets = [0, 0], sizes = [17, 128], strides = [1, 1]} : vector<24x128xf32> to vector<17x128xf32>
    %255 = vector.extract_strided_slice %253 {offsets = [1, 0], sizes = [17, 128], strides = [1, 1]} : vector<24x128xf32> to vector<17x128xf32>
    %256 = arith.maximumf %254, %255 : vector<17x128xf32>
    %257 = vector.extract_strided_slice %253 {offsets = [2, 0], sizes = [17, 128], strides = [1, 1]} : vector<24x128xf32> to vector<17x128xf32>
    %258 = arith.maximumf %256, %257 : vector<17x128xf32>
    %cst_192 = arith.constant dense<0.000000e+00> : vector<9x128xf32>
    %259 = tpu.matmul %159, %258, %cst_192 {dimension_numbers = #tpu.dot_dimension_numbers<[1], [0], [0], [1], [0, 0, 1, 1], [], []>} : vector<9x17xf32>, vector<17x128xf32>, vector<9x128xf32> -> vector<9x128xf32>
    %c336_193 = arith.constant 336 : index
    %c0_194 = arith.constant 0 : index
    %260 = vector.load %arg13[%c336_193, %c0_194] : memref<384x128xf32, #tpu.memory_space<vmem>>, vector<24x128xf32>
    %c360 = arith.constant 360 : index
    %c0_195 = arith.constant 0 : index
    %261 = vector.load %arg13[%c360, %c0_195] : memref<384x128xf32, #tpu.memory_space<vmem>>, vector<24x128xf32>
    %262 = arith.maximumf %260, %261 : vector<24x128xf32>
    %cst_196 = arith.constant -3.40282347E+38 : f32
    %263 = vector.broadcast %cst_196 : f32 to vector<24x128xf32>
    %264 = arith.select %151, %262, %263 : vector<24x128xi1>, vector<24x128xf32>
    %265 = vector.extract_strided_slice %264 {offsets = [0, 0], sizes = [17, 128], strides = [1, 1]} : vector<24x128xf32> to vector<17x128xf32>
    %266 = vector.extract_strided_slice %264 {offsets = [1, 0], sizes = [17, 128], strides = [1, 1]} : vector<24x128xf32> to vector<17x128xf32>
    %267 = arith.maximumf %265, %266 : vector<17x128xf32>
    %268 = vector.extract_strided_slice %264 {offsets = [2, 0], sizes = [17, 128], strides = [1, 1]} : vector<24x128xf32> to vector<17x128xf32>
    %269 = arith.maximumf %267, %268 : vector<17x128xf32>
    %cst_197 = arith.constant dense<0.000000e+00> : vector<9x128xf32>
    %270 = tpu.matmul %159, %269, %cst_197 {dimension_numbers = #tpu.dot_dimension_numbers<[1], [0], [0], [1], [0, 0, 1, 1], [], []>} : vector<9x17xf32>, vector<17x128xf32>, vector<9x128xf32> -> vector<9x128xf32>
    %271 = arith.truncf %168 : vector<9x128xf32> to vector<9x128xbf16>
    %c19 = arith.constant 19 : index
    %c0_198 = arith.constant 0 : index
    %272 = vector.load %arg14[%c19, %c0_198] : memref<192x128xbf16, #tpu.memory_space<vmem>>, vector<9x128xbf16>
    tpu.vector_store %arg14[%c19, %c0_198], %271 {strides = array<i32>} : memref<192x128xbf16, #tpu.memory_space<vmem>>, vector<9x128xbf16>,
    %273 = arith.truncf %181 : vector<9x128xf32> to vector<9x128xbf16>
    %c35 = arith.constant 35 : index
    %c0_199 = arith.constant 0 : index
    %274 = vector.load %arg14[%c35, %c0_199] : memref<192x128xbf16, #tpu.memory_space<vmem>>, vector<9x128xbf16>
    tpu.vector_store %arg14[%c35, %c0_199], %273 {strides = array<i32>} : memref<192x128xbf16, #tpu.memory_space<vmem>>, vector<9x128xbf16>,
    %275 = arith.truncf %194 : vector<9x128xf32> to vector<9x128xbf16>
    %c51 = arith.constant 51 : index
    %c0_200 = arith.constant 0 : index
    %276 = vector.load %arg14[%c51, %c0_200] : memref<192x128xbf16, #tpu.memory_space<vmem>>, vector<9x128xbf16>
    tpu.vector_store %arg14[%c51, %c0_200], %275 {strides = array<i32>} : memref<192x128xbf16, #tpu.memory_space<vmem>>, vector<9x128xbf16>,
    %277 = arith.truncf %207 : vector<9x128xf32> to vector<9x128xbf16>
    %c67 = arith.constant 67 : index
    %c0_201 = arith.constant 0 : index
    %278 = vector.load %arg14[%c67, %c0_201] : memref<192x128xbf16, #tpu.memory_space<vmem>>, vector<9x128xbf16>
    tpu.vector_store %arg14[%c67, %c0_201], %277 {strides = array<i32>} : memref<192x128xbf16, #tpu.memory_space<vmem>>, vector<9x128xbf16>,
    %279 = arith.truncf %220 : vector<9x128xf32> to vector<9x128xbf16>
    %c83 = arith.constant 83 : index
    %c0_202 = arith.constant 0 : index
    %280 = vector.load %arg14[%c83, %c0_202] : memref<192x128xbf16, #tpu.memory_space<vmem>>, vector<9x128xbf16>
    tpu.vector_store %arg14[%c83, %c0_202], %279 {strides = array<i32>} : memref<192x128xbf16, #tpu.memory_space<vmem>>, vector<9x128xbf16>,
    %281 = arith.truncf %233 : vector<9x128xf32> to vector<9x128xbf16>
    %c99 = arith.constant 99 : index
    %c0_203 = arith.constant 0 : index
    %282 = vector.load %arg14[%c99, %c0_203] : memref<192x128xbf16, #tpu.memory_space<vmem>>, vector<9x128xbf16>
    tpu.vector_store %arg14[%c99, %c0_203], %281 {strides = array<i32>} : memref<192x128xbf16, #tpu.memory_space<vmem>>, vector<9x128xbf16>,
    %283 = arith.truncf %246 : vector<9x128xf32> to vector<9x128xbf16>
    %c115 = arith.constant 115 : index
    %c0_204 = arith.constant 0 : index
    %284 = vector.load %arg14[%c115, %c0_204] : memref<192x128xbf16, #tpu.memory_space<vmem>>, vector<9x128xbf16>
    tpu.vector_store %arg14[%c115, %c0_204], %283 {strides = array<i32>} : memref<192x128xbf16, #tpu.memory_space<vmem>>, vector<9x128xbf16>,
    %285 = arith.truncf %259 : vector<9x128xf32> to vector<9x128xbf16>
    %c131 = arith.constant 131 : index
    %c0_205 = arith.constant 0 : index
    %286 = vector.load %arg14[%c131, %c0_205] : memref<192x128xbf16, #tpu.memory_space<vmem>>, vector<9x128xbf16>
    tpu.vector_store %arg14[%c131, %c0_205], %285 {strides = array<i32>} : memref<192x128xbf16, #tpu.memory_space<vmem>>, vector<9x128xbf16>,
    %287 = arith.truncf %270 : vector<9x128xf32> to vector<9x128xbf16>
    %c147 = arith.constant 147 : index
    %c0_206 = arith.constant 0 : index
    %288 = vector.load %arg14[%c147, %c0_206] : memref<192x128xbf16, #tpu.memory_space<vmem>>, vector<9x128xbf16>
    tpu.vector_store %arg14[%c147, %c0_206], %287 {strides = array<i32>} : memref<192x128xbf16, #tpu.memory_space<vmem>>, vector<9x128xbf16>,
    %c0_207 = arith.constant 0 : index
    %c0_208 = arith.constant 0 : index
    %289 = vector.load %arg14[%c0_207, %c0_208] : memref<192x128xbf16, #tpu.memory_space<vmem>>, vector<128x128xbf16>
    %c1_209 = arith.constant 1 : index
    %c0_210 = arith.constant 0 : index
    %290 = vector.load %arg14[%c1_209, %c0_210] : memref<192x128xbf16, #tpu.memory_space<vmem>>, vector<128x128xbf16>
    %c2_211 = arith.constant 2 : index
    %c0_212 = arith.constant 0 : index
    %291 = vector.load %arg14[%c2_211, %c0_212] : memref<192x128xbf16, #tpu.memory_space<vmem>>, vector<128x128xbf16>
    %c16 = arith.constant 16 : index
    %c0_213 = arith.constant 0 : index
    %292 = vector.load %arg14[%c16, %c0_213] : memref<192x128xbf16, #tpu.memory_space<vmem>>, vector<128x128xbf16>
    %c17 = arith.constant 17 : index
    %c0_214 = arith.constant 0 : index
    %293 = vector.load %arg14[%c17, %c0_214] : memref<192x128xbf16, #tpu.memory_space<vmem>>, vector<128x128xbf16>
    %c18_215 = arith.constant 18 : index
    %c0_216 = arith.constant 0 : index
    %294 = vector.load %arg14[%c18_215, %c0_216] : memref<192x128xbf16, #tpu.memory_space<vmem>>, vector<128x128xbf16>
    %c32 = arith.constant 32 : index
    %c0_217 = arith.constant 0 : index
    %295 = vector.load %arg14[%c32, %c0_217] : memref<192x128xbf16, #tpu.memory_space<vmem>>, vector<128x128xbf16>
    %c33 = arith.constant 33 : index
    %c0_218 = arith.constant 0 : index
    %296 = vector.load %arg14[%c33, %c0_218] : memref<192x128xbf16, #tpu.memory_space<vmem>>, vector<128x128xbf16>
    %c34 = arith.constant 34 : index
    %c0_219 = arith.constant 0 : index
    %297 = vector.load %arg14[%c34, %c0_219] : memref<192x128xbf16, #tpu.memory_space<vmem>>, vector<128x128xbf16>
    %298 = tpu.concatenate %289, %290, %291, %292, %293, %294, %295, %296, %297 in 1 : vector<128x128xbf16>, vector<128x128xbf16>, vector<128x128xbf16>, vector<128x128xbf16>, vector<128x128xbf16>, vector<128x128xbf16>, vector<128x128xbf16>, vector<128x128xbf16>, vector<128x128xbf16> -> vector<128x1152xbf16>
    %c0_220 = arith.constant 0 : index
    %c0_221 = arith.constant 0 : index
    %299 = vector.load %arg4[%c0_220, %c0_221] : memref<1152x128xbf16, #tpu.memory_space<vmem>>, vector<1152x128xbf16>
    %cst_222 = arith.constant dense<0.000000e+00> : vector<128x128xf32>
    %300 = tpu.matmul %298, %299, %cst_222 {dimension_numbers = #tpu.dot_dimension_numbers<[1], [0], [0], [1], [0, 0, 1, 1], [], []>} : vector<128x1152xbf16>, vector<1152x128xbf16>, vector<128x128xf32> -> vector<128x128xf32>
    %c0_223 = arith.constant 0 : index
    %c0_224 = arith.constant 0 : index
    %301 = vector.load %arg5[%c0_223, %c0_224] : memref<1x128xf32, #tpu.memory_space<vmem>>, vector<1x128xf32>
    %302 = vector.broadcast %301 : vector<1x128xf32> to vector<128x128xf32>
    %303 = arith.addf %300, %302 : vector<128x128xf32>
    %c0_225 = arith.constant 0 : index
    %c0_226 = arith.constant 0 : index
    %304 = vector.load %arg13[%c0_225, %c0_226] : memref<384x128xf32, #tpu.memory_space<vmem>>, vector<128x128xf32>
    tpu.vector_store %arg13[%c0_225, %c0_226], %303 {strides = array<i32>} : memref<384x128xf32, #tpu.memory_space<vmem>>, vector<128x128xf32>,
    %c128_227 = arith.constant 128 : index
    %c0_228 = arith.constant 0 : index
    %305 = vector.load %arg14[%c128_227, %c0_228] : memref<192x128xbf16, #tpu.memory_space<vmem>>, vector<16x128xbf16>
    %c129_229 = arith.constant 129 : index
    %c0_230 = arith.constant 0 : index
    %306 = vector.load %arg14[%c129_229, %c0_230] : memref<192x128xbf16, #tpu.memory_space<vmem>>, vector<16x128xbf16>
    %c130_231 = arith.constant 130 : index
    %c0_232 = arith.constant 0 : index
    %307 = vector.load %arg14[%c130_231, %c0_232] : memref<192x128xbf16, #tpu.memory_space<vmem>>, vector<16x128xbf16>
    %c144_233 = arith.constant 144 : index
    %c0_234 = arith.constant 0 : index
    %308 = vector.load %arg14[%c144_233, %c0_234] : memref<192x128xbf16, #tpu.memory_space<vmem>>, vector<16x128xbf16>
    %c145 = arith.constant 145 : index
    %c0_235 = arith.constant 0 : index
    %309 = vector.load %arg14[%c145, %c0_235] : memref<192x128xbf16, #tpu.memory_space<vmem>>, vector<16x128xbf16>
    %c146 = arith.constant 146 : index
    %c0_236 = arith.constant 0 : index
    %310 = vector.load %arg14[%c146, %c0_236] : memref<192x128xbf16, #tpu.memory_space<vmem>>, vector<16x128xbf16>
    %c160 = arith.constant 160 : index
    %c0_237 = arith.constant 0 : index
    %311 = vector.load %arg14[%c160, %c0_237] : memref<192x128xbf16, #tpu.memory_space<vmem>>, vector<16x128xbf16>
    %c161 = arith.constant 161 : index
    %c0_238 = arith.constant 0 : index
    %312 = vector.load %arg14[%c161, %c0_238] : memref<192x128xbf16, #tpu.memory_space<vmem>>, vector<16x128xbf16>
    %c162 = arith.constant 162 : index
    %c0_239 = arith.constant 0 : index
    %313 = vector.load %arg14[%c162, %c0_239] : memref<192x128xbf16, #tpu.memory_space<vmem>>, vector<16x128xbf16>
    %314 = tpu.concatenate %305, %306, %307, %308, %309, %310, %311, %312, %313 in 1 : vector<16x128xbf16>, vector<16x128xbf16>, vector<16x128xbf16>, vector<16x128xbf16>, vector<16x128xbf16>, vector<16x128xbf16>, vector<16x128xbf16>, vector<16x128xbf16>, vector<16x128xbf16> -> vector<16x1152xbf16>
    %c0_240 = arith.constant 0 : index
    %c0_241 = arith.constant 0 : index
    %315 = vector.load %arg4[%c0_240, %c0_241] : memref<1152x128xbf16, #tpu.memory_space<vmem>>, vector<1152x128xbf16>
    %cst_242 = arith.constant dense<0.000000e+00> : vector<16x128xf32>
    %316 = tpu.matmul %314, %315, %cst_242 {dimension_numbers = #tpu.dot_dimension_numbers<[1], [0], [0], [1], [0, 0, 1, 1], [], []>} : vector<16x1152xbf16>, vector<1152x128xbf16>, vector<16x128xf32> -> vector<16x128xf32>
    %c0_243 = arith.constant 0 : index
    %c0_244 = arith.constant 0 : index
    %317 = vector.load %arg5[%c0_243, %c0_244] : memref<1x128xf32, #tpu.memory_space<vmem>>, vector<1x128xf32>
    %318 = vector.broadcast %317 : vector<1x128xf32> to vector<16x128xf32>
    %319 = arith.addf %316, %318 : vector<16x128xf32>
    %c128_245 = arith.constant 128 : index
    %c0_246 = arith.constant 0 : index
    %320 = vector.load %arg13[%c128_245, %c0_246] : memref<384x128xf32, #tpu.memory_space<vmem>>, vector<16x128xf32>
    tpu.vector_store %arg13[%c128_245, %c0_246], %319 {strides = array<i32>} : memref<384x128xf32, #tpu.memory_space<vmem>>, vector<16x128xf32>,
    %cst_247 = arith.constant 0.000000e+00 : bf16
    %321 = vector.broadcast %cst_247 : bf16 to vector<144x128xbf16>
    %c0_248 = arith.constant 0 : index
    %c0_249 = arith.constant 0 : index
    %322 = vector.load %arg15[%c0_248, %c0_249] : memref<144x128xbf16, #tpu.memory_space<vmem>>, vector<144x128xbf16>
    tpu.vector_store %arg15[%c0_248, %c0_249], %321 {strides = array<i32>} : memref<144x128xbf16, #tpu.memory_space<vmem>>, vector<144x128xbf16>,
    %323 = tpu.iota {dimensions = array<i32: 0>} : vector<16x128xi32>
    %c2_i32_250 = arith.constant 2 : i32
    %324 = vector.broadcast %c2_i32_250 : i32 to vector<16x128xi32>
    %325 = arith.cmpi sge, %323, %324 : vector<16x128xi32>
    %c11_i32 = arith.constant 11 : i32
    %326 = vector.broadcast %c11_i32 : i32 to vector<16x128xi32>
    %327 = arith.cmpi slt, %323, %326 : vector<16x128xi32>
    %328 = arith.andi %325, %327 : vector<16x128xi1>
    %329 = tpu.iota {dimensions = array<i32: 0>} : vector<6x11xi32>
    %330 = tpu.iota {dimensions = array<i32: 1>} : vector<6x11xi32>
    %c2_i32_251 = arith.constant 2 : i32
    %331 = vector.broadcast %c2_i32_251 : i32 to vector<6x11xi32>
    %332 = arith.muli %331, %329 : vector<6x11xi32>
    %333 = arith.cmpi eq, %330, %332 : vector<6x11xi32>
    %cst_252 = arith.constant 1.000000e+00 : f32
    %cst_253 = arith.constant 0.000000e+00 : f32
    %334 = vector.broadcast %cst_252 : f32 to vector<6x11xf32>
    %335 = vector.broadcast %cst_253 : f32 to vector<6x11xf32>
    %336 = arith.select %333, %334, %335 : vector<6x11xi1>, vector<6x11xf32>
    %c0_254 = arith.constant 0 : index
    %c0_255 = arith.constant 0 : index
    %337 = vector.load %arg13[%c0_254, %c0_255] : memref<384x128xf32, #tpu.memory_space<vmem>>, vector<16x128xf32>
    %cst_256 = arith.constant -3.40282347E+38 : f32
    %338 = vector.broadcast %cst_256 : f32 to vector<16x128xf32>
    %339 = arith.select %328, %337, %338 : vector<16x128xi1>, vector<16x128xf32>
    %340 = vector.extract_strided_slice %339 {offsets = [0, 0], sizes = [11, 128], strides = [1, 1]} : vector<16x128xf32> to vector<11x128xf32>
    %341 = vector.extract_strided_slice %339 {offsets = [1, 0], sizes = [11, 128], strides = [1, 1]} : vector<16x128xf32> to vector<11x128xf32>
    %342 = arith.maximumf %340, %341 : vector<11x128xf32>
    %343 = vector.extract_strided_slice %339 {offsets = [2, 0], sizes = [11, 128], strides = [1, 1]} : vector<16x128xf32> to vector<11x128xf32>
    %344 = arith.maximumf %342, %343 : vector<11x128xf32>
    %cst_257 = arith.constant dense<0.000000e+00> : vector<6x128xf32>
    %345 = tpu.matmul %336, %344, %cst_257 {dimension_numbers = #tpu.dot_dimension_numbers<[1], [0], [0], [1], [0, 0, 1, 1], [], []>} : vector<6x11xf32>, vector<11x128xf32>, vector<6x128xf32> -> vector<6x128xf32>
    %c0_258 = arith.constant 0 : index
    %c0_259 = arith.constant 0 : index
    %346 = vector.load %arg13[%c0_258, %c0_259] : memref<384x128xf32, #tpu.memory_space<vmem>>, vector<16x128xf32>
    %c16_260 = arith.constant 16 : index
    %c0_261 = arith.constant 0 : index
    %347 = vector.load %arg13[%c16_260, %c0_261] : memref<384x128xf32, #tpu.memory_space<vmem>>, vector<16x128xf32>
    %348 = arith.maximumf %346, %347 : vector<16x128xf32>
    %c32_262 = arith.constant 32 : index
    %c0_263 = arith.constant 0 : index
    %349 = vector.load %arg13[%c32_262, %c0_263] : memref<384x128xf32, #tpu.memory_space<vmem>>, vector<16x128xf32>
    %350 = arith.maximumf %348, %349 : vector<16x128xf32>
    %cst_264 = arith.constant -3.40282347E+38 : f32
    %351 = vector.broadcast %cst_264 : f32 to vector<16x128xf32>
    %352 = arith.select %328, %350, %351 : vector<16x128xi1>, vector<16x128xf32>
    %353 = vector.extract_strided_slice %352 {offsets = [0, 0], sizes = [11, 128], strides = [1, 1]} : vector<16x128xf32> to vector<11x128xf32>
    %354 = vector.extract_strided_slice %352 {offsets = [1, 0], sizes = [11, 128], strides = [1, 1]} : vector<16x128xf32> to vector<11x128xf32>
    %355 = arith.maximumf %353, %354 : vector<11x128xf32>
    %356 = vector.extract_strided_slice %352 {offsets = [2, 0], sizes = [11, 128], strides = [1, 1]} : vector<16x128xf32> to vector<11x128xf32>
    %357 = arith.maximumf %355, %356 : vector<11x128xf32>
    %cst_265 = arith.constant dense<0.000000e+00> : vector<6x128xf32>
    %358 = tpu.matmul %336, %357, %cst_265 {dimension_numbers = #tpu.dot_dimension_numbers<[1], [0], [0], [1], [0, 0, 1, 1], [], []>} : vector<6x11xf32>, vector<11x128xf32>, vector<6x128xf32> -> vector<6x128xf32>
    %c32_266 = arith.constant 32 : index
    %c0_267 = arith.constant 0 : index
    %359 = vector.load %arg13[%c32_266, %c0_267] : memref<384x128xf32, #tpu.memory_space<vmem>>, vector<16x128xf32>
    %c48_268 = arith.constant 48 : index
    %c0_269 = arith.constant 0 : index
    %360 = vector.load %arg13[%c48_268, %c0_269] : memref<384x128xf32, #tpu.memory_space<vmem>>, vector<16x128xf32>
    %361 = arith.maximumf %359, %360 : vector<16x128xf32>
    %c64 = arith.constant 64 : index
    %c0_270 = arith.constant 0 : index
    %362 = vector.load %arg13[%c64, %c0_270] : memref<384x128xf32, #tpu.memory_space<vmem>>, vector<16x128xf32>
    %363 = arith.maximumf %361, %362 : vector<16x128xf32>
    %cst_271 = arith.constant -3.40282347E+38 : f32
    %364 = vector.broadcast %cst_271 : f32 to vector<16x128xf32>
    %365 = arith.select %328, %363, %364 : vector<16x128xi1>, vector<16x128xf32>
    %366 = vector.extract_strided_slice %365 {offsets = [0, 0], sizes = [11, 128], strides = [1, 1]} : vector<16x128xf32> to vector<11x128xf32>
    %367 = vector.extract_strided_slice %365 {offsets = [1, 0], sizes = [11, 128], strides = [1, 1]} : vector<16x128xf32> to vector<11x128xf32>
    %368 = arith.maximumf %366, %367 : vector<11x128xf32>
    %369 = vector.extract_strided_slice %365 {offsets = [2, 0], sizes = [11, 128], strides = [1, 1]} : vector<16x128xf32> to vector<11x128xf32>
    %370 = arith.maximumf %368, %369 : vector<11x128xf32>
    %cst_272 = arith.constant dense<0.000000e+00> : vector<6x128xf32>
    %371 = tpu.matmul %336, %370, %cst_272 {dimension_numbers = #tpu.dot_dimension_numbers<[1], [0], [0], [1], [0, 0, 1, 1], [], []>} : vector<6x11xf32>, vector<11x128xf32>, vector<6x128xf32> -> vector<6x128xf32>
    %c64_273 = arith.constant 64 : index
    %c0_274 = arith.constant 0 : index
    %372 = vector.load %arg13[%c64_273, %c0_274] : memref<384x128xf32, #tpu.memory_space<vmem>>, vector<16x128xf32>
    %c80 = arith.constant 80 : index
    %c0_275 = arith.constant 0 : index
    %373 = vector.load %arg13[%c80, %c0_275] : memref<384x128xf32, #tpu.memory_space<vmem>>, vector<16x128xf32>
    %374 = arith.maximumf %372, %373 : vector<16x128xf32>
    %c96_276 = arith.constant 96 : index
    %c0_277 = arith.constant 0 : index
    %375 = vector.load %arg13[%c96_276, %c0_277] : memref<384x128xf32, #tpu.memory_space<vmem>>, vector<16x128xf32>
    %376 = arith.maximumf %374, %375 : vector<16x128xf32>
    %cst_278 = arith.constant -3.40282347E+38 : f32
    %377 = vector.broadcast %cst_278 : f32 to vector<16x128xf32>
    %378 = arith.select %328, %376, %377 : vector<16x128xi1>, vector<16x128xf32>
    %379 = vector.extract_strided_slice %378 {offsets = [0, 0], sizes = [11, 128], strides = [1, 1]} : vector<16x128xf32> to vector<11x128xf32>
    %380 = vector.extract_strided_slice %378 {offsets = [1, 0], sizes = [11, 128], strides = [1, 1]} : vector<16x128xf32> to vector<11x128xf32>
    %381 = arith.maximumf %379, %380 : vector<11x128xf32>
    %382 = vector.extract_strided_slice %378 {offsets = [2, 0], sizes = [11, 128], strides = [1, 1]} : vector<16x128xf32> to vector<11x128xf32>
    %383 = arith.maximumf %381, %382 : vector<11x128xf32>
    %cst_279 = arith.constant dense<0.000000e+00> : vector<6x128xf32>
    %384 = tpu.matmul %336, %383, %cst_279 {dimension_numbers = #tpu.dot_dimension_numbers<[1], [0], [0], [1], [0, 0, 1, 1], [], []>} : vector<6x11xf32>, vector<11x128xf32>, vector<6x128xf32> -> vector<6x128xf32>
    %c96_280 = arith.constant 96 : index
    %c0_281 = arith.constant 0 : index
    %385 = vector.load %arg13[%c96_280, %c0_281] : memref<384x128xf32, #tpu.memory_space<vmem>>, vector<16x128xf32>
    %c112 = arith.constant 112 : index
    %c0_282 = arith.constant 0 : index
    %386 = vector.load %arg13[%c112, %c0_282] : memref<384x128xf32, #tpu.memory_space<vmem>>, vector<16x128xf32>
    %387 = arith.maximumf %385, %386 : vector<16x128xf32>
    %c128_283 = arith.constant 128 : index
    %c0_284 = arith.constant 0 : index
    %388 = vector.load %arg13[%c128_283, %c0_284] : memref<384x128xf32, #tpu.memory_space<vmem>>, vector<16x128xf32>
    %389 = arith.maximumf %387, %388 : vector<16x128xf32>
    %cst_285 = arith.constant -3.40282347E+38 : f32
    %390 = vector.broadcast %cst_285 : f32 to vector<16x128xf32>
    %391 = arith.select %328, %389, %390 : vector<16x128xi1>, vector<16x128xf32>
    %392 = vector.extract_strided_slice %391 {offsets = [0, 0], sizes = [11, 128], strides = [1, 1]} : vector<16x128xf32> to vector<11x128xf32>
    %393 = vector.extract_strided_slice %391 {offsets = [1, 0], sizes = [11, 128], strides = [1, 1]} : vector<16x128xf32> to vector<11x128xf32>
    %394 = arith.maximumf %392, %393 : vector<11x128xf32>
    %395 = vector.extract_strided_slice %391 {offsets = [2, 0], sizes = [11, 128], strides = [1, 1]} : vector<16x128xf32> to vector<11x128xf32>
    %396 = arith.maximumf %394, %395 : vector<11x128xf32>
    %cst_286 = arith.constant dense<0.000000e+00> : vector<6x128xf32>
    %397 = tpu.matmul %336, %396, %cst_286 {dimension_numbers = #tpu.dot_dimension_numbers<[1], [0], [0], [1], [0, 0, 1, 1], [], []>} : vector<6x11xf32>, vector<11x128xf32>, vector<6x128xf32> -> vector<6x128xf32>
    %c128_287 = arith.constant 128 : index
    %c0_288 = arith.constant 0 : index
    %398 = vector.load %arg13[%c128_287, %c0_288] : memref<384x128xf32, #tpu.memory_space<vmem>>, vector<16x128xf32>
    %cst_289 = arith.constant -3.40282347E+38 : f32
    %399 = vector.broadcast %cst_289 : f32 to vector<16x128xf32>
    %400 = arith.select %328, %398, %399 : vector<16x128xi1>, vector<16x128xf32>
    %401 = vector.extract_strided_slice %400 {offsets = [0, 0], sizes = [11, 128], strides = [1, 1]} : vector<16x128xf32> to vector<11x128xf32>
    %402 = vector.extract_strided_slice %400 {offsets = [1, 0], sizes = [11, 128], strides = [1, 1]} : vector<16x128xf32> to vector<11x128xf32>
    %403 = arith.maximumf %401, %402 : vector<11x128xf32>
    %404 = vector.extract_strided_slice %400 {offsets = [2, 0], sizes = [11, 128], strides = [1, 1]} : vector<16x128xf32> to vector<11x128xf32>
    %405 = arith.maximumf %403, %404 : vector<11x128xf32>
    %cst_290 = arith.constant dense<0.000000e+00> : vector<6x128xf32>
    %406 = tpu.matmul %336, %405, %cst_290 {dimension_numbers = #tpu.dot_dimension_numbers<[1], [0], [0], [1], [0, 0, 1, 1], [], []>} : vector<6x11xf32>, vector<11x128xf32>, vector<6x128xf32> -> vector<6x128xf32>
    %407 = arith.truncf %345 : vector<6x128xf32> to vector<6x128xbf16>
    %c19_291 = arith.constant 19 : index
    %c0_292 = arith.constant 0 : index
    %408 = vector.load %arg15[%c19_291, %c0_292] : memref<144x128xbf16, #tpu.memory_space<vmem>>, vector<6x128xbf16>
    tpu.vector_store %arg15[%c19_291, %c0_292], %407 {strides = array<i32>} : memref<144x128xbf16, #tpu.memory_space<vmem>>, vector<6x128xbf16>,
    %409 = arith.truncf %358 : vector<6x128xf32> to vector<6x128xbf16>
    %c35_293 = arith.constant 35 : index
    %c0_294 = arith.constant 0 : index
    %410 = vector.load %arg15[%c35_293, %c0_294] : memref<144x128xbf16, #tpu.memory_space<vmem>>, vector<6x128xbf16>
    tpu.vector_store %arg15[%c35_293, %c0_294], %409 {strides = array<i32>} : memref<144x128xbf16, #tpu.memory_space<vmem>>, vector<6x128xbf16>,
    %411 = arith.truncf %371 : vector<6x128xf32> to vector<6x128xbf16>
    %c51_295 = arith.constant 51 : index
    %c0_296 = arith.constant 0 : index
    %412 = vector.load %arg15[%c51_295, %c0_296] : memref<144x128xbf16, #tpu.memory_space<vmem>>, vector<6x128xbf16>
    tpu.vector_store %arg15[%c51_295, %c0_296], %411 {strides = array<i32>} : memref<144x128xbf16, #tpu.memory_space<vmem>>, vector<6x128xbf16>,
    %413 = arith.truncf %384 : vector<6x128xf32> to vector<6x128xbf16>
    %c67_297 = arith.constant 67 : index
    %c0_298 = arith.constant 0 : index
    %414 = vector.load %arg15[%c67_297, %c0_298] : memref<144x128xbf16, #tpu.memory_space<vmem>>, vector<6x128xbf16>
    tpu.vector_store %arg15[%c67_297, %c0_298], %413 {strides = array<i32>} : memref<144x128xbf16, #tpu.memory_space<vmem>>, vector<6x128xbf16>,
    %415 = arith.truncf %397 : vector<6x128xf32> to vector<6x128xbf16>
    %c83_299 = arith.constant 83 : index
    %c0_300 = arith.constant 0 : index
    %416 = vector.load %arg15[%c83_299, %c0_300] : memref<144x128xbf16, #tpu.memory_space<vmem>>, vector<6x128xbf16>
    tpu.vector_store %arg15[%c83_299, %c0_300], %415 {strides = array<i32>} : memref<144x128xbf16, #tpu.memory_space<vmem>>, vector<6x128xbf16>,
    %417 = arith.truncf %406 : vector<6x128xf32> to vector<6x128xbf16>
    %c99_301 = arith.constant 99 : index
    %c0_302 = arith.constant 0 : index
    %418 = vector.load %arg15[%c99_301, %c0_302] : memref<144x128xbf16, #tpu.memory_space<vmem>>, vector<6x128xbf16>
    tpu.vector_store %arg15[%c99_301, %c0_302], %417 {strides = array<i32>} : memref<144x128xbf16, #tpu.memory_space<vmem>>, vector<6x128xbf16>,
    %c0_303 = arith.constant 0 : index
    %c0_304 = arith.constant 0 : index
    %419 = vector.load %arg15[%c0_303, %c0_304] : memref<144x128xbf16, #tpu.memory_space<vmem>>, vector<96x128xbf16>
    %c1_305 = arith.constant 1 : index
    %c0_306 = arith.constant 0 : index
    %420 = vector.load %arg15[%c1_305, %c0_306] : memref<144x128xbf16, #tpu.memory_space<vmem>>, vector<96x128xbf16>
    %c2_307 = arith.constant 2 : index
    %c0_308 = arith.constant 0 : index
    %421 = vector.load %arg15[%c2_307, %c0_308] : memref<144x128xbf16, #tpu.memory_space<vmem>>, vector<96x128xbf16>
    %c16_309 = arith.constant 16 : index
    %c0_310 = arith.constant 0 : index
    %422 = vector.load %arg15[%c16_309, %c0_310] : memref<144x128xbf16, #tpu.memory_space<vmem>>, vector<96x128xbf16>
    %c17_311 = arith.constant 17 : index
    %c0_312 = arith.constant 0 : index
    %423 = vector.load %arg15[%c17_311, %c0_312] : memref<144x128xbf16, #tpu.memory_space<vmem>>, vector<96x128xbf16>
    %c18_313 = arith.constant 18 : index
    %c0_314 = arith.constant 0 : index
    %424 = vector.load %arg15[%c18_313, %c0_314] : memref<144x128xbf16, #tpu.memory_space<vmem>>, vector<96x128xbf16>
    %c32_315 = arith.constant 32 : index
    %c0_316 = arith.constant 0 : index
    %425 = vector.load %arg15[%c32_315, %c0_316] : memref<144x128xbf16, #tpu.memory_space<vmem>>, vector<96x128xbf16>
    %c33_317 = arith.constant 33 : index
    %c0_318 = arith.constant 0 : index
    %426 = vector.load %arg15[%c33_317, %c0_318] : memref<144x128xbf16, #tpu.memory_space<vmem>>, vector<96x128xbf16>
    %c34_319 = arith.constant 34 : index
    %c0_320 = arith.constant 0 : index
    %427 = vector.load %arg15[%c34_319, %c0_320] : memref<144x128xbf16, #tpu.memory_space<vmem>>, vector<96x128xbf16>
    %428 = tpu.concatenate %419, %420, %421, %422, %423, %424, %425, %426, %427 in 1 : vector<96x128xbf16>, vector<96x128xbf16>, vector<96x128xbf16>, vector<96x128xbf16>, vector<96x128xbf16>, vector<96x128xbf16>, vector<96x128xbf16>, vector<96x128xbf16>, vector<96x128xbf16> -> vector<96x1152xbf16>
    %c0_321 = arith.constant 0 : index
    %c0_322 = arith.constant 0 : index
    %429 = vector.load %arg6[%c0_321, %c0_322] : memref<1152x128xbf16, #tpu.memory_space<vmem>>, vector<1152x128xbf16>
    %cst_323 = arith.constant dense<0.000000e+00> : vector<96x128xf32>
    %430 = tpu.matmul %428, %429, %cst_323 {dimension_numbers = #tpu.dot_dimension_numbers<[1], [0], [0], [1], [0, 0, 1, 1], [], []>} : vector<96x1152xbf16>, vector<1152x128xbf16>, vector<96x128xf32> -> vector<96x128xf32>
    %c0_324 = arith.constant 0 : index
    %c0_325 = arith.constant 0 : index
    %431 = vector.load %arg7[%c0_324, %c0_325] : memref<1x128xf32, #tpu.memory_space<vmem>>, vector<1x128xf32>
    %432 = vector.broadcast %431 : vector<1x128xf32> to vector<96x128xf32>
    %433 = arith.addf %430, %432 : vector<96x128xf32>
    %c0_326 = arith.constant 0 : index
    %c0_327 = arith.constant 0 : index
    %434 = vector.load %arg13[%c0_326, %c0_327] : memref<384x128xf32, #tpu.memory_space<vmem>>, vector<96x128xf32>
    tpu.vector_store %arg13[%c0_326, %c0_327], %433 {strides = array<i32>} : memref<384x128xf32, #tpu.memory_space<vmem>>, vector<96x128xf32>,
    %cst_328 = arith.constant 0.000000e+00 : bf16
    %435 = vector.broadcast %cst_328 : bf16 to vector<144x128xbf16>
    %c0_329 = arith.constant 0 : index
    %c0_330 = arith.constant 0 : index
    %436 = vector.load %arg16[%c0_329, %c0_330] : memref<144x128xbf16, #tpu.memory_space<vmem>>, vector<144x128xbf16>
    tpu.vector_store %arg16[%c0_329, %c0_330], %435 {strides = array<i32>} : memref<144x128xbf16, #tpu.memory_space<vmem>>, vector<144x128xbf16>,
    %c2_331 = arith.constant 2 : index
    %c0_332 = arith.constant 0 : index
    %437 = vector.load %arg13[%c2_331, %c0_332] : memref<384x128xf32, #tpu.memory_space<vmem>>, vector<6x128xf32>
    %438 = arith.truncf %437 : vector<6x128xf32> to vector<6x128xbf16>
    %c19_333 = arith.constant 19 : index
    %c0_334 = arith.constant 0 : index
    %439 = vector.load %arg16[%c19_333, %c0_334] : memref<144x128xbf16, #tpu.memory_space<vmem>>, vector<6x128xbf16>
    tpu.vector_store %arg16[%c19_333, %c0_334], %438 {strides = array<i32>} : memref<144x128xbf16, #tpu.memory_space<vmem>>, vector<6x128xbf16>,
    %c18_335 = arith.constant 18 : index
    %c0_336 = arith.constant 0 : index
    %440 = vector.load %arg13[%c18_335, %c0_336] : memref<384x128xf32, #tpu.memory_space<vmem>>, vector<6x128xf32>
    %441 = arith.truncf %440 : vector<6x128xf32> to vector<6x128xbf16>
    %c35_337 = arith.constant 35 : index
    %c0_338 = arith.constant 0 : index
    %442 = vector.load %arg16[%c35_337, %c0_338] : memref<144x128xbf16, #tpu.memory_space<vmem>>, vector<6x128xbf16>
    tpu.vector_store %arg16[%c35_337, %c0_338], %441 {strides = array<i32>} : memref<144x128xbf16, #tpu.memory_space<vmem>>, vector<6x128xbf16>,
    %c34_339 = arith.constant 34 : index
    %c0_340 = arith.constant 0 : index
    %443 = vector.load %arg13[%c34_339, %c0_340] : memref<384x128xf32, #tpu.memory_space<vmem>>, vector<6x128xf32>
    %444 = arith.truncf %443 : vector<6x128xf32> to vector<6x128xbf16>
    %c51_341 = arith.constant 51 : index
    %c0_342 = arith.constant 0 : index
    %445 = vector.load %arg16[%c51_341, %c0_342] : memref<144x128xbf16, #tpu.memory_space<vmem>>, vector<6x128xbf16>
    tpu.vector_store %arg16[%c51_341, %c0_342], %444 {strides = array<i32>} : memref<144x128xbf16, #tpu.memory_space<vmem>>, vector<6x128xbf16>,
    %c50_343 = arith.constant 50 : index
    %c0_344 = arith.constant 0 : index
    %446 = vector.load %arg13[%c50_343, %c0_344] : memref<384x128xf32, #tpu.memory_space<vmem>>, vector<6x128xf32>
    %447 = arith.truncf %446 : vector<6x128xf32> to vector<6x128xbf16>
    %c67_345 = arith.constant 67 : index
    %c0_346 = arith.constant 0 : index
    %448 = vector.load %arg16[%c67_345, %c0_346] : memref<144x128xbf16, #tpu.memory_space<vmem>>, vector<6x128xbf16>
    tpu.vector_store %arg16[%c67_345, %c0_346], %447 {strides = array<i32>} : memref<144x128xbf16, #tpu.memory_space<vmem>>, vector<6x128xbf16>,
    %c66 = arith.constant 66 : index
    %c0_347 = arith.constant 0 : index
    %449 = vector.load %arg13[%c66, %c0_347] : memref<384x128xf32, #tpu.memory_space<vmem>>, vector<6x128xf32>
    %450 = arith.truncf %449 : vector<6x128xf32> to vector<6x128xbf16>
    %c83_348 = arith.constant 83 : index
    %c0_349 = arith.constant 0 : index
    %451 = vector.load %arg16[%c83_348, %c0_349] : memref<144x128xbf16, #tpu.memory_space<vmem>>, vector<6x128xbf16>
    tpu.vector_store %arg16[%c83_348, %c0_349], %450 {strides = array<i32>} : memref<144x128xbf16, #tpu.memory_space<vmem>>, vector<6x128xbf16>,
    %c82 = arith.constant 82 : index
    %c0_350 = arith.constant 0 : index
    %452 = vector.load %arg13[%c82, %c0_350] : memref<384x128xf32, #tpu.memory_space<vmem>>, vector<6x128xf32>
    %453 = arith.truncf %452 : vector<6x128xf32> to vector<6x128xbf16>
    %c99_351 = arith.constant 99 : index
    %c0_352 = arith.constant 0 : index
    %454 = vector.load %arg16[%c99_351, %c0_352] : memref<144x128xbf16, #tpu.memory_space<vmem>>, vector<6x128xbf16>
    tpu.vector_store %arg16[%c99_351, %c0_352], %453 {strides = array<i32>} : memref<144x128xbf16, #tpu.memory_space<vmem>>, vector<6x128xbf16>,
    %c0_353 = arith.constant 0 : index
    %c0_354 = arith.constant 0 : index
    %455 = vector.load %arg16[%c0_353, %c0_354] : memref<144x128xbf16, #tpu.memory_space<vmem>>, vector<96x128xbf16>
    %c1_355 = arith.constant 1 : index
    %c0_356 = arith.constant 0 : index
    %456 = vector.load %arg16[%c1_355, %c0_356] : memref<144x128xbf16, #tpu.memory_space<vmem>>, vector<96x128xbf16>
    %c2_357 = arith.constant 2 : index
    %c0_358 = arith.constant 0 : index
    %457 = vector.load %arg16[%c2_357, %c0_358] : memref<144x128xbf16, #tpu.memory_space<vmem>>, vector<96x128xbf16>
    %c16_359 = arith.constant 16 : index
    %c0_360 = arith.constant 0 : index
    %458 = vector.load %arg16[%c16_359, %c0_360] : memref<144x128xbf16, #tpu.memory_space<vmem>>, vector<96x128xbf16>
    %c17_361 = arith.constant 17 : index
    %c0_362 = arith.constant 0 : index
    %459 = vector.load %arg16[%c17_361, %c0_362] : memref<144x128xbf16, #tpu.memory_space<vmem>>, vector<96x128xbf16>
    %c18_363 = arith.constant 18 : index
    %c0_364 = arith.constant 0 : index
    %460 = vector.load %arg16[%c18_363, %c0_364] : memref<144x128xbf16, #tpu.memory_space<vmem>>, vector<96x128xbf16>
    %c32_365 = arith.constant 32 : index
    %c0_366 = arith.constant 0 : index
    %461 = vector.load %arg16[%c32_365, %c0_366] : memref<144x128xbf16, #tpu.memory_space<vmem>>, vector<96x128xbf16>
    %c33_367 = arith.constant 33 : index
    %c0_368 = arith.constant 0 : index
    %462 = vector.load %arg16[%c33_367, %c0_368] : memref<144x128xbf16, #tpu.memory_space<vmem>>, vector<96x128xbf16>
    %c34_369 = arith.constant 34 : index
    %c0_370 = arith.constant 0 : index
    %463 = vector.load %arg16[%c34_369, %c0_370] : memref<144x128xbf16, #tpu.memory_space<vmem>>, vector<96x128xbf16>
    %464 = tpu.concatenate %455, %456, %457, %458, %459, %460, %461, %462, %463 in 1 : vector<96x128xbf16>, vector<96x128xbf16>, vector<96x128xbf16>, vector<96x128xbf16>, vector<96x128xbf16>, vector<96x128xbf16>, vector<96x128xbf16>, vector<96x128xbf16>, vector<96x128xbf16> -> vector<96x1152xbf16>
    %c0_371 = arith.constant 0 : index
    %c0_372 = arith.constant 0 : index
    %465 = vector.load %arg8[%c0_371, %c0_372] : memref<1152x128xbf16, #tpu.memory_space<vmem>>, vector<1152x128xbf16>
    %cst_373 = arith.constant dense<0.000000e+00> : vector<96x128xf32>
    %466 = tpu.matmul %464, %465, %cst_373 {dimension_numbers = #tpu.dot_dimension_numbers<[1], [0], [0], [1], [0, 0, 1, 1], [], []>} : vector<96x1152xbf16>, vector<1152x128xbf16>, vector<96x128xf32> -> vector<96x128xf32>
    %c0_374 = arith.constant 0 : index
    %c0_375 = arith.constant 0 : index
    %467 = vector.load %arg9[%c0_374, %c0_375] : memref<1x128xf32, #tpu.memory_space<vmem>>, vector<1x128xf32>
    %468 = vector.broadcast %467 : vector<1x128xf32> to vector<96x128xf32>
    %469 = arith.addf %466, %468 : vector<96x128xf32>
    %c0_376 = arith.constant 0 : index
    %c0_377 = arith.constant 0 : index
    %470 = vector.load %arg13[%c0_376, %c0_377] : memref<384x128xf32, #tpu.memory_space<vmem>>, vector<96x128xf32>
    tpu.vector_store %arg13[%c0_376, %c0_377], %469 {strides = array<i32>} : memref<384x128xf32, #tpu.memory_space<vmem>>, vector<96x128xf32>,
    %471 = tpu.iota {dimensions = array<i32: 0>} : vector<16x128xi32>
    %c2_i32_378 = arith.constant 2 : i32
    %472 = vector.broadcast %c2_i32_378 : i32 to vector<16x128xi32>
    %473 = arith.cmpi sge, %471, %472 : vector<16x128xi32>
    %c8_i32 = arith.constant 8 : i32
    %474 = vector.broadcast %c8_i32 : i32 to vector<16x128xi32>
    %475 = arith.cmpi slt, %471, %474 : vector<16x128xi32>
    %476 = arith.andi %473, %475 : vector<16x128xi1>
    %477 = tpu.iota {dimensions = array<i32: 0>} : vector<4x7xi32>
    %478 = tpu.iota {dimensions = array<i32: 1>} : vector<4x7xi32>
    %c2_i32_379 = arith.constant 2 : i32
    %479 = vector.broadcast %c2_i32_379 : i32 to vector<4x7xi32>
    %480 = arith.muli %479, %477 : vector<4x7xi32>
    %481 = arith.cmpi eq, %478, %480 : vector<4x7xi32>
    %cst_380 = arith.constant 1.000000e+00 : f32
    %cst_381 = arith.constant 0.000000e+00 : f32
    %482 = vector.broadcast %cst_380 : f32 to vector<4x7xf32>
    %483 = vector.broadcast %cst_381 : f32 to vector<4x7xf32>
    %484 = arith.select %481, %482, %483 : vector<4x7xi1>, vector<4x7xf32>
    %c0_382 = arith.constant 0 : index
    %c0_383 = arith.constant 0 : index
    %485 = vector.load %arg13[%c0_382, %c0_383] : memref<384x128xf32, #tpu.memory_space<vmem>>, vector<16x128xf32>
    %cst_384 = arith.constant -3.40282347E+38 : f32
    %486 = vector.broadcast %cst_384 : f32 to vector<16x128xf32>
    %487 = arith.select %476, %485, %486 : vector<16x128xi1>, vector<16x128xf32>
    %488 = vector.extract_strided_slice %487 {offsets = [0, 0], sizes = [7, 128], strides = [1, 1]} : vector<16x128xf32> to vector<7x128xf32>
    %489 = vector.extract_strided_slice %487 {offsets = [1, 0], sizes = [7, 128], strides = [1, 1]} : vector<16x128xf32> to vector<7x128xf32>
    %490 = arith.maximumf %488, %489 : vector<7x128xf32>
    %491 = vector.extract_strided_slice %487 {offsets = [2, 0], sizes = [7, 128], strides = [1, 1]} : vector<16x128xf32> to vector<7x128xf32>
    %492 = arith.maximumf %490, %491 : vector<7x128xf32>
    %cst_385 = arith.constant dense<0.000000e+00> : vector<4x128xf32>
    %493 = tpu.matmul %484, %492, %cst_385 {dimension_numbers = #tpu.dot_dimension_numbers<[1], [0], [0], [1], [0, 0, 1, 1], [], []>} : vector<4x7xf32>, vector<7x128xf32>, vector<4x128xf32> -> vector<4x128xf32>
    %c0_386 = arith.constant 0 : index
    %c0_387 = arith.constant 0 : index
    %494 = vector.load %arg13[%c0_386, %c0_387] : memref<384x128xf32, #tpu.memory_space<vmem>>, vector<16x128xf32>
    %c16_388 = arith.constant 16 : index
    %c0_389 = arith.constant 0 : index
    %495 = vector.load %arg13[%c16_388, %c0_389] : memref<384x128xf32, #tpu.memory_space<vmem>>, vector<16x128xf32>
    %496 = arith.maximumf %494, %495 : vector<16x128xf32>
    %c32_390 = arith.constant 32 : index
    %c0_391 = arith.constant 0 : index
    %497 = vector.load %arg13[%c32_390, %c0_391] : memref<384x128xf32, #tpu.memory_space<vmem>>, vector<16x128xf32>
    %498 = arith.maximumf %496, %497 : vector<16x128xf32>
    %cst_392 = arith.constant -3.40282347E+38 : f32
    %499 = vector.broadcast %cst_392 : f32 to vector<16x128xf32>
    %500 = arith.select %476, %498, %499 : vector<16x128xi1>, vector<16x128xf32>
    %501 = vector.extract_strided_slice %500 {offsets = [0, 0], sizes = [7, 128], strides = [1, 1]} : vector<16x128xf32> to vector<7x128xf32>
    %502 = vector.extract_strided_slice %500 {offsets = [1, 0], sizes = [7, 128], strides = [1, 1]} : vector<16x128xf32> to vector<7x128xf32>
    %503 = arith.maximumf %501, %502 : vector<7x128xf32>
    %504 = vector.extract_strided_slice %500 {offsets = [2, 0], sizes = [7, 128], strides = [1, 1]} : vector<16x128xf32> to vector<7x128xf32>
    %505 = arith.maximumf %503, %504 : vector<7x128xf32>
    %cst_393 = arith.constant dense<0.000000e+00> : vector<4x128xf32>
    %506 = tpu.matmul %484, %505, %cst_393 {dimension_numbers = #tpu.dot_dimension_numbers<[1], [0], [0], [1], [0, 0, 1, 1], [], []>} : vector<4x7xf32>, vector<7x128xf32>, vector<4x128xf32> -> vector<4x128xf32>
    %c32_394 = arith.constant 32 : index
    %c0_395 = arith.constant 0 : index
    %507 = vector.load %arg13[%c32_394, %c0_395] : memref<384x128xf32, #tpu.memory_space<vmem>>, vector<16x128xf32>
    %c48_396 = arith.constant 48 : index
    %c0_397 = arith.constant 0 : index
    %508 = vector.load %arg13[%c48_396, %c0_397] : memref<384x128xf32, #tpu.memory_space<vmem>>, vector<16x128xf32>
    %509 = arith.maximumf %507, %508 : vector<16x128xf32>
    %c64_398 = arith.constant 64 : index
    %c0_399 = arith.constant 0 : index
    %510 = vector.load %arg13[%c64_398, %c0_399] : memref<384x128xf32, #tpu.memory_space<vmem>>, vector<16x128xf32>
    %511 = arith.maximumf %509, %510 : vector<16x128xf32>
    %cst_400 = arith.constant -3.40282347E+38 : f32
    %512 = vector.broadcast %cst_400 : f32 to vector<16x128xf32>
    %513 = arith.select %476, %511, %512 : vector<16x128xi1>, vector<16x128xf32>
    %514 = vector.extract_strided_slice %513 {offsets = [0, 0], sizes = [7, 128], strides = [1, 1]} : vector<16x128xf32> to vector<7x128xf32>
    %515 = vector.extract_strided_slice %513 {offsets = [1, 0], sizes = [7, 128], strides = [1, 1]} : vector<16x128xf32> to vector<7x128xf32>
    %516 = arith.maximumf %514, %515 : vector<7x128xf32>
    %517 = vector.extract_strided_slice %513 {offsets = [2, 0], sizes = [7, 128], strides = [1, 1]} : vector<16x128xf32> to vector<7x128xf32>
    %518 = arith.maximumf %516, %517 : vector<7x128xf32>
    %cst_401 = arith.constant dense<0.000000e+00> : vector<4x128xf32>
    %519 = tpu.matmul %484, %518, %cst_401 {dimension_numbers = #tpu.dot_dimension_numbers<[1], [0], [0], [1], [0, 0, 1, 1], [], []>} : vector<4x7xf32>, vector<7x128xf32>, vector<4x128xf32> -> vector<4x128xf32>
    %c64_402 = arith.constant 64 : index
    %c0_403 = arith.constant 0 : index
    %520 = vector.load %arg13[%c64_402, %c0_403] : memref<384x128xf32, #tpu.memory_space<vmem>>, vector<16x128xf32>
    %c80_404 = arith.constant 80 : index
    %c0_405 = arith.constant 0 : index
    %521 = vector.load %arg13[%c80_404, %c0_405] : memref<384x128xf32, #tpu.memory_space<vmem>>, vector<16x128xf32>
    %522 = arith.maximumf %520, %521 : vector<16x128xf32>
    %cst_406 = arith.constant -3.40282347E+38 : f32
    %523 = vector.broadcast %cst_406 : f32 to vector<16x128xf32>
    %524 = arith.select %476, %522, %523 : vector<16x128xi1>, vector<16x128xf32>
    %525 = vector.extract_strided_slice %524 {offsets = [0, 0], sizes = [7, 128], strides = [1, 1]} : vector<16x128xf32> to vector<7x128xf32>
    %526 = vector.extract_strided_slice %524 {offsets = [1, 0], sizes = [7, 128], strides = [1, 1]} : vector<16x128xf32> to vector<7x128xf32>
    %527 = arith.maximumf %525, %526 : vector<7x128xf32>
    %528 = vector.extract_strided_slice %524 {offsets = [2, 0], sizes = [7, 128], strides = [1, 1]} : vector<16x128xf32> to vector<7x128xf32>
    %529 = arith.maximumf %527, %528 : vector<7x128xf32>
    %cst_407 = arith.constant dense<0.000000e+00> : vector<4x128xf32>
    %530 = tpu.matmul %484, %529, %cst_407 {dimension_numbers = #tpu.dot_dimension_numbers<[1], [0], [0], [1], [0, 0, 1, 1], [], []>} : vector<4x7xf32>, vector<7x128xf32>, vector<4x128xf32> -> vector<4x128xf32>
    %531 = vector.extract_strided_slice %493 {offsets = [0, 0], sizes = [1, 128], strides = [1, 1]} : vector<4x128xf32> to vector<1x128xf32>
    %532 = arith.truncf %531 : vector<1x128xf32> to vector<1x128xbf16>
    %533 = vector.extract_strided_slice %493 {offsets = [1, 0], sizes = [1, 128], strides = [1, 1]} : vector<4x128xf32> to vector<1x128xf32>
    %534 = arith.truncf %533 : vector<1x128xf32> to vector<1x128xbf16>
    %535 = vector.extract_strided_slice %493 {offsets = [2, 0], sizes = [1, 128], strides = [1, 1]} : vector<4x128xf32> to vector<1x128xf32>
    %536 = arith.truncf %535 : vector<1x128xf32> to vector<1x128xbf16>
    %537 = vector.extract_strided_slice %493 {offsets = [3, 0], sizes = [1, 128], strides = [1, 1]} : vector<4x128xf32> to vector<1x128xf32>
    %538 = arith.truncf %537 : vector<1x128xf32> to vector<1x128xbf16>
    %539 = vector.extract_strided_slice %506 {offsets = [0, 0], sizes = [1, 128], strides = [1, 1]} : vector<4x128xf32> to vector<1x128xf32>
    %540 = arith.truncf %539 : vector<1x128xf32> to vector<1x128xbf16>
    %541 = vector.extract_strided_slice %506 {offsets = [1, 0], sizes = [1, 128], strides = [1, 1]} : vector<4x128xf32> to vector<1x128xf32>
    %542 = arith.truncf %541 : vector<1x128xf32> to vector<1x128xbf16>
    %543 = vector.extract_strided_slice %506 {offsets = [2, 0], sizes = [1, 128], strides = [1, 1]} : vector<4x128xf32> to vector<1x128xf32>
    %544 = arith.truncf %543 : vector<1x128xf32> to vector<1x128xbf16>
    %545 = vector.extract_strided_slice %506 {offsets = [3, 0], sizes = [1, 128], strides = [1, 1]} : vector<4x128xf32> to vector<1x128xf32>
    %546 = arith.truncf %545 : vector<1x128xf32> to vector<1x128xbf16>
    %547 = vector.extract_strided_slice %519 {offsets = [0, 0], sizes = [1, 128], strides = [1, 1]} : vector<4x128xf32> to vector<1x128xf32>
    %548 = arith.truncf %547 : vector<1x128xf32> to vector<1x128xbf16>
    %549 = vector.extract_strided_slice %519 {offsets = [1, 0], sizes = [1, 128], strides = [1, 1]} : vector<4x128xf32> to vector<1x128xf32>
    %550 = arith.truncf %549 : vector<1x128xf32> to vector<1x128xbf16>
    %551 = vector.extract_strided_slice %519 {offsets = [2, 0], sizes = [1, 128], strides = [1, 1]} : vector<4x128xf32> to vector<1x128xf32>
    %552 = arith.truncf %551 : vector<1x128xf32> to vector<1x128xbf16>
    %553 = vector.extract_strided_slice %519 {offsets = [3, 0], sizes = [1, 128], strides = [1, 1]} : vector<4x128xf32> to vector<1x128xf32>
    %554 = arith.truncf %553 : vector<1x128xf32> to vector<1x128xbf16>
    %555 = vector.extract_strided_slice %530 {offsets = [0, 0], sizes = [1, 128], strides = [1, 1]} : vector<4x128xf32> to vector<1x128xf32>
    %556 = arith.truncf %555 : vector<1x128xf32> to vector<1x128xbf16>
    %557 = vector.extract_strided_slice %530 {offsets = [1, 0], sizes = [1, 128], strides = [1, 1]} : vector<4x128xf32> to vector<1x128xf32>
    %558 = arith.truncf %557 : vector<1x128xf32> to vector<1x128xbf16>
    %559 = vector.extract_strided_slice %530 {offsets = [2, 0], sizes = [1, 128], strides = [1, 1]} : vector<4x128xf32> to vector<1x128xf32>
    %560 = arith.truncf %559 : vector<1x128xf32> to vector<1x128xbf16>
    %561 = vector.extract_strided_slice %530 {offsets = [3, 0], sizes = [1, 128], strides = [1, 1]} : vector<4x128xf32> to vector<1x128xf32>
    %562 = arith.truncf %561 : vector<1x128xf32> to vector<1x128xbf16>
    %563 = tpu.concatenate %532, %534, %536, %538, %540, %542, %544, %546, %548, %550, %552, %554, %556, %558, %560, %562 in 1 : vector<1x128xbf16>, vector<1x128xbf16>, vector<1x128xbf16>, vector<1x128xbf16>, vector<1x128xbf16>, vector<1x128xbf16>, vector<1x128xbf16>, vector<1x128xbf16>, vector<1x128xbf16>, vector<1x128xbf16>, vector<1x128xbf16>, vector<1x128xbf16>, vector<1x128xbf16>, vector<1x128xbf16>, vector<1x128xbf16>, vector<1x128xbf16> -> vector<1x2048xbf16>
    %c0_408 = arith.constant 0 : index
    %c0_409 = arith.constant 0 : index
    %564 = vector.load %arg10[%c0_408, %c0_409] : memref<2048x128xbf16, #tpu.memory_space<vmem>>, vector<2048x128xbf16>
    %cst_410 = arith.constant dense<0.000000e+00> : vector<1x128xf32>
    %565 = tpu.matmul %563, %564, %cst_410 {dimension_numbers = #tpu.dot_dimension_numbers<[1], [0], [0], [1], [0, 0, 1, 1], [], []>} : vector<1x2048xbf16>, vector<2048x128xbf16>, vector<1x128xf32> -> vector<1x128xf32>
    %c0_411 = arith.constant 0 : index
    %c0_412 = arith.constant 0 : index
    %566 = vector.load %arg11[%c0_411, %c0_412] : memref<1x128xf32, #tpu.memory_space<vmem>>, vector<1x128xf32>
    %567 = arith.addf %565, %566 : vector<1x128xf32>
    %c0_413 = arith.constant 0 : index
    %c0_414 = arith.constant 0 : index
    %c0_415 = arith.constant 0 : index
    %568 = vector.load %arg12[%c0_413, %c0_414, %c0_415] : memref<1x1x128xf32, #tpu.memory_space<vmem>>, vector<1x1x128xf32>
    %569 = vector.shape_cast %568 : vector<1x1x128xf32> to vector<1x128xf32>
    %570 = vector.shape_cast %567 : vector<1x128xf32> to vector<1x1x128xf32>
    tpu.vector_store %arg12[%c0_413, %c0_414, %c0_415], %570 {strides = array<i32>} : memref<1x1x128xf32, #tpu.memory_space<vmem>>, vector<1x1x128xf32>,
    return
  }
  func.func @transform_0(%arg0: i32) -> (i32, i32, i32) {
    %c0_i32 = arith.constant 0 : i32
    %c0_i32_0 = arith.constant 0 : i32
    %c0_i32_1 = arith.constant 0 : i32
    return %arg0, %c0_i32, %c0_i32_0 : i32, i32, i32
  }
  func.func @transform_1(%arg0: i32) -> (i32, i32) {
    %c0_i32 = arith.constant 0 : i32
    %c0_i32_0 = arith.constant 0 : i32
    %c0_i32_1 = arith.constant 0 : i32
    return %c0_i32, %c0_i32_0 : i32, i32
  }
  func.func @transform_2(%arg0: i32) -> (i32, i32) {
    %c0_i32 = arith.constant 0 : i32
    %c0_i32_0 = arith.constant 0 : i32
    %c0_i32_1 = arith.constant 0 : i32
    return %c0_i32, %c0_i32_0 : i32, i32
  }
  func.func @transform_3(%arg0: i32) -> (i32, i32) {
    %c0_i32 = arith.constant 0 : i32
    %c0_i32_0 = arith.constant 0 : i32
    %c0_i32_1 = arith.constant 0 : i32
    return %c0_i32, %c0_i32_0 : i32, i32
  }
  func.func @transform_4(%arg0: i32) -> (i32, i32) {
    %c0_i32 = arith.constant 0 : i32
    %c0_i32_0 = arith.constant 0 : i32
    %c0_i32_1 = arith.constant 0 : i32
    return %c0_i32, %c0_i32_0 : i32, i32
  }
  func.func @transform_5(%arg0: i32) -> (i32, i32) {
    %c0_i32 = arith.constant 0 : i32
    %c0_i32_0 = arith.constant 0 : i32
    %c0_i32_1 = arith.constant 0 : i32
    return %c0_i32, %c0_i32_0 : i32, i32
  }
  func.func @transform_6(%arg0: i32) -> (i32, i32) {
    %c0_i32 = arith.constant 0 : i32
    %c0_i32_0 = arith.constant 0 : i32
    %c0_i32_1 = arith.constant 0 : i32
    return %c0_i32, %c0_i32_0 : i32, i32
  }
  func.func @transform_7(%arg0: i32) -> (i32, i32) {
    %c0_i32 = arith.constant 0 : i32
    %c0_i32_0 = arith.constant 0 : i32
    %c0_i32_1 = arith.constant 0 : i32
    return %c0_i32, %c0_i32_0 : i32, i32
  }
  func.func @transform_8(%arg0: i32) -> (i32, i32) {
    %c0_i32 = arith.constant 0 : i32
    %c0_i32_0 = arith.constant 0 : i32
    %c0_i32_1 = arith.constant 0 : i32
    return %c0_i32, %c0_i32_0 : i32, i32
  }
  func.func @transform_9(%arg0: i32) -> (i32, i32) {
    %c0_i32 = arith.constant 0 : i32
    %c0_i32_0 = arith.constant 0 : i32
    %c0_i32_1 = arith.constant 0 : i32
    return %c0_i32, %c0_i32_0 : i32, i32
  }
  func.func @transform_10(%arg0: i32) -> (i32, i32) {
    %c0_i32 = arith.constant 0 : i32
    %c0_i32_0 = arith.constant 0 : i32
    %c0_i32_1 = arith.constant 0 : i32
    return %c0_i32, %c0_i32_0 : i32, i32
  }
  func.func @transform_11(%arg0: i32) -> (i32, i32, i32) {
    %c0_i32 = arith.constant 0 : i32
    %c0_i32_0 = arith.constant 0 : i32
    %c0_i32_1 = arith.constant 0 : i32
    return %arg0, %c0_i32, %c0_i32_0 : i32, i32, i32
  }
}

</mosaic_0001>

<bundles_post_ra>
// kernel: forward.1
= control target key start
LH: loop header
LB: loop body
LE: loop exit
PB: predicated region body
PF: predicated region fallthrough
CT: control target
= control target key end

     0   :  { %s22636_s0 = inlined_call_operand.vmem [shape: bf16[2,456,3], index: 0, kind: input, shape index: {}]   ;;  %s22637_s1 = inlined_call_operand.vmem [shape: bf16[27,128], index: 1, kind: input, shape index: {}]   ;;  %s22638_s2 = inlined_call_operand.vmem [shape: f32[1,128], index: 2, kind: input, shape index: {}]   ;;  %s22639_s3 = inlined_call_operand.vmem [shape: bf16[1152,128], index: 3, kind: input, shape index: {}]   ;;  %s22640_s4 = inlined_call_operand.vmem [shape: f32[1,128], index: 4, kind: input, shape index: {}]   ;;  %s22641_s5 = inlined_call_operand.vmem [shape: bf16[1152,128], index: 5, kind: input, shape index: {}]   ;;  %s22642_s6 = inlined_call_operand.vmem [shape: f32[1,128], index: 6, kind: input, shape index: {}]   ;;  %s22643_s7 = inlined_call_operand.vmem [shape: bf16[1152,128], index: 7, kind: input, shape index: {}]   ;;  %s22644_s8 = inlined_call_operand.vmem [shape: f32[1,128], index: 8, kind: input, shape index: {}]   ;;  %s22645_s9 = inlined_call_operand.vmem [shape: bf16[2048,128], index: 9, kind: input, shape index: {}]   ;;  %s22646_s10 = inlined_call_operand.vmem [shape: f32[1,128], index: 10, kind: input, shape index: {}]   ;;  %s22647_s11 = inlined_call_operand.hbm [shape: f32[2,1,128], index: 11, kind: output, shape index: {}]  }
   0x1   :  { %22650 = sst [smem:[#allocation9_spill]] %s22636_s0 }
   0x2   :  { %16 = vsyncpa [#allocation7], 0 }
   0x3   :  { %18 = vsyncpa [#allocation7 + $0x1], 0  ;;  %s18507_s17 = smov 0   ;;  %s18509_s18 = smov 0  }
   0x4   :  { %s18511_s19 = smov 0   ;;  %s18513_s20 = smov 0  }
   0x5 LB: > { %s18528_s21 = sadd.s32 4294967295, %s18437_s20   ;;  %s14410_s22 = sadd.s32 4294967294, %s18437_s20   ;;  %s18437_s20 = sphi %s18513_s20, %s22666_s20   ;;  %s18433_s19 = sphi %s18511_s19, %s22665_s19   ;;  %s18429_s18 = sphi %s18509_s18, %s22664_s18   ;;  %s18425_s17 = sphi %s18507_s17, %s22663_s17  }
   0x6   : > { %s18532_s23 = sadd.s32 1, %s18437_s20   ;;  %s267_s24 = sadd.s32 1, %s18433_s19 }
   0x7   : > { %s264_s25 = ssub.s32 %s18437_s20, %s18532_s23  ;;  %p277_p0 = scmp.ne.s32.totalorder %s18433_s19, %s18429_s18 }
   0x8   : > { %p265_p1 = scmp.eq.s32.totalorder %s264_s25, 0  ;;  %p278_p2 = scmp.eq.s32.totalorder %s18528_s21, 1 }
   0x9   : > { %p283_p3 = scmp.ne.s32.totalorder %s18429_s18, %s18425_s17  ;;  %p284_p4 = scmp.eq.s32.totalorder %s14410_s22, 1 }
   0xa   : > { %s18543_s26 = scalar_select %p265_p1, %s18433_s19, %s267_s24  }
   0xb   : > { %p18545_p5 = por %p278_p2, %p277_p0  ;;  %p18549_p6 = por %p284_p4, %p283_p3 }
   0xc   : > { %p14413_p7 = scmp.ge.s32.totalorder %s18437_s20, 1  ;;  %p340_p8 = scmp.lt.s32.totalorder %s18437_s20, 3 }
   0xe   : > { %p341_p9 = pnand %p14413_p7, %p340_p8 }
   0xf   : > { %v17794_v0 = vld [vmem:[%s22637_s1] ss:$0 sps:$4 sm:$0x66] (!%p341_p9)   ;;  %vm552_vm0 = vcmask (!%p341_p9), 1040384   ;;  %vm553_vm1 = vcmask (!%p341_p9), 1041408   ;;  %p379_p10 = scmp.lt.s32.totalorder (!%p341_p9), %s18528_s21, 1 }
  0x10   : > { %344 = sbr.rel (%p341_p9) target bundleno = 2947 (0xb83), region = 64  ;;  %v520_v1 = vshrl.u32 (!%p341_p9), %v17794_v0, 16  ;;  %v523_v2 = vshll.u32 (!%p341_p9), %v17794_v0, 16  ;;  %v18439_v3 = vmov (!%p341_p9), 65535   ;;  %v401_v10 = vld [vmem:[%s22637_s1] sm:$0x3] (!%p341_p9) }
  0x11   : > { %v554_v4 = vsel (!%p341_p9), %vm552_vm0, 4294967295, %v18439_v3  ;;  %v17795_v5 = vld [vmem:[%s22637_s1] ss:$0 sps:$4 sm:$0x66] (!%p341_p9)   ;;  %vm447_vm2 = vsmask.f32 (!%p341_p9), 7424 }
  0x12   : > { %v522_v6 = vrot.slane (!%p341_p9), %v520_v1, 1  ;;  %v525_v7 = vrot.slane (!%p341_p9), %v523_v2, 2  ;;  %v2414_v8 = vshrl.u32 (!%p341_p9), %v17795_v5, 16  ;;  %v2417_v9 = vshll.u32 (!%p341_p9), %v17795_v5, 16  ;;  %v17814_v15 = vld [vmem:[%s22637_s1] sm:$0x18] (!%p341_p9)  }
  0x13   : > { %v18567_v11 = vsel (!%p341_p9), %vm553_vm1, %v554_v4, 0  ;;  %s22653_s0 = sld [smem:[#allocation9_spill]] (!%p341_p9)  ;;  %vm527_vm3 = vcmask (!%p341_p9), 23552   ;;  %v2296_v16 = vld [vmem:[%s22637_s1] sm:$0x3] (!%p341_p9)  ;;  %v801_v25 = vrot.slane (!%p341_p9), %v17814_v15, 3 }
  0x14   : > { %v526_v12 = vor.u32 (!%p341_p9), %v525_v7, %v522_v6  ;;  %v2416_v13 = vrot.slane (!%p341_p9), %v2414_v8, 1  ;;  %v2419_v14 = vrot.slane (!%p341_p9), %v2417_v9, 2  ;;  %v673_v21 = vand.u32 (!%p341_p9), %v18567_v11, %v401_v10  ;;  %s15260_s24 = sshll.u32 (!%p341_p9), %s18528_s21, 4 }
  0x15   : > { %v18598_v28 = vand.u32 (!%p341_p9), %v2296_v16, %v18567_v11  ;;  %v18623_v44 = vand.u32 (!%p341_p9), %v801_v25, %v18567_v11  ;;  %vm778_vm4 = vcmask (!%p341_p9), 1046528   ;;  %vm6122_vm6 = vcmask (!%p341_p9), 138240  }
  0x16   : > { %v557_v17 = vand.u32 (!%p341_p9), %v18567_v11, %v526_v12  ;;  %v2420_v18 = vor.u32 (!%p341_p9), %v2419_v14, %v2416_v13  ;;  %vm6110_vm10 = vcmask (!%p341_p9), 1045504   ;;  %vm7155_vm11 = vcmask (!%p341_p9), 1045505  }
  0x17   : > { %s380_s14 = scalar_select %p379_p10, %s18528_s21, 1  ;;  %vm7156_vm12 = vsmask.f32 7942  ;;  %vm18442_vm14 = vmmov 0   ;;  %vm18444_vm1 = vmmov 1  }
  0x18   : > { %16566 = vmatprep.subr.bf16.mxu0 %v557_v17  ;;  %v2446_v26 = vand.u32 %v2420_v18, %v18567_v11  ;;  %vm20271_vm13 = vmand %vm7155_vm11, %vm7156_vm12 }
  0x19   : > { %s17747_s22 = smul.u32 228, %s380_s14  ;;  %16567 = vmatpush3.bf16.msra.mxu0 %v557_v17  ;;  %s22594_s14 = scalar_lea.hbm %s22647_s11, %s15260_s24 }
  0x1a   : > { %16728 = vmatprep.subr.bf16.mxu1 %v2446_v26  ;;  %16584 = vmatprep.subr.bf16.mxu0 %v673_v21 }
  0x1b   : > { %s18575_s12 = scalar_lea.vmem %s22653_s0, %s17747_s22  ;;  %16729 = vmatpush3.bf16.msra.mxu1 %v2446_v26  ;;  %s377_s22 = sand.u32 1, %s18429_s18  }
  0x1c   : > { %v385_v19 = vld [vmem:[%s18575_s12] sm:$0xf]  ;;  %v18583_v20 = vld [vmem:[%s18575_s12 + $0x4] sm:$0xf]  ;;  %v18590_v23 = vld [vmem:[%s18575_s12 + $0x8] sm:$0xff]   ;;  %16746 = vmatprep.subr.bf16.mxu1 %v18598_v28  ;;  %s378_s25 = scalar_lea.vmem [#allocation6], %s377_s22 }
  0x1d   : > { %v18587_v22 = vcombine.low %v385_v19, %v18583_v20  ;;  %v2280_v24 = vld [vmem:[%s18575_s12 + $0x40] sm:$0xf]  ;;  %v18595_v27 = vld [vmem:[%s18575_s12 + $0x44] sm:$0xf]  ;;  %v456_v31 = vshll.u32 %v18590_v23, 16  ;;  %v460_v32 = vshrl.u32 %v18590_v23, 16 }
  0x1e   : > { %v18605_v33 = vld [vmem:[%s18575_s12 + $0x48] sm:$0xff]   ;;  %v18608_v34 = vld [vmem:[%s18575_s12 + $0x10] sm:$0xff]   ;;  %v18611_v35 = vcombine.low %v2280_v24, %v18595_v27  ;;  %v18626_v48 = vld [vmem:[%s18575_s12 + $0x18] sm:$0xff]   ;;  %s14355_s29 = sshll.u32 %s378_s25, 4  ;;  %s14343_s15 = scalar_lea.sflag [#allocation7], %s377_s22  ;;  %s22596_s29 = int_to_ptr.vmem [resolvable:$true] %s14355_s29 }
  0x1f   : > { %v449_v29 = vshrl.u32 %v18587_v22, 16  ;;  %v451_v30 = vshll.u32 %v18587_v22, 16  ;;  %v458_v37 = vrot.slane %v456_v31, 1  ;;  %v2350_v38 = vshll.u32 %v18605_v33, 16  ;;  %v18619_v43 = vld [vmem:[%s18575_s12 + $0x50] sm:$0xff]   ;;  %v18630_v50 = vld [vmem:[%s18575_s12 + $0x58] sm:$0xff]  }
  0x20   : > { %v2354_v39 = vshrl.u32 %v18605_v33, 16  ;;  %v2343_v40 = vshrl.u32 %v18611_v35, 16  ;;  %v2345_v41 = vshll.u32 %v18611_v35, 16  ;;  %v464_v42 = vshll.u32 %v18608_v34, 16  ;;  %v18640_v63 = vld [vmem:[%s18575_s12 + $0x20] sm:$0xff]   ;;  %v18651_v8 = vld [vmem:[%s18575_s12 + $0x28] sm:$0xff]  }
  0x21   : > { %v453_v36 = vrot.slane %v451_v30, 1  ;;  %v462_v46 = vor.u32 %v460_v32, %v458_v37  ;;  %v2352_v47 = vrot.slane %v2350_v38, 1  ;;  %v468_v49 = vshrl.u32 %v18608_v34, 16  ;;  %v18645_v3 = vld [vmem:[%s18575_s12 + $0x60] sm:$0xff]   ;;  %v18664_v18 = vld [vmem:[%s18575_s12 + $0x68] sm:$0xff]   ;;  %v18669_v25 = vld [vmem:[%s18575_s12 + $0x30] sm:$0xff]  }
  0x22   : > { %v2347_v51 = vrot.slane %v2345_v41, 1  ;;  %v466_v52 = vrot.slane %v464_v42, 1  ;;  %v2358_v53 = vshll.u32 %v18619_v43, 16  ;;  %v2362_v54 = vshrl.u32 %v18619_v43, 16  ;;  %v18677_v38 = vld [vmem:[%s18575_s12 + $0x70] sm:$0xff]   ;;  %s18375_s21 = scalar_lea.vmem %s22596_s29, 16 }
  0x23   : > { %v454_v45 = vor.u32 %v453_v36, %v449_v29  ;;  %v2356_v56 = vor.u32 %v2354_v39, %v2352_v47  ;;  %v472_v57 = vshll.u32 %v18626_v48, 16  ;;  %v2366_v58 = vshll.u32 %v18630_v50, 16  ;;  %p18376_p11 = scmp.ne.s32.totalorder %s22596_s29, %s18375_s21 }
  0x24   : > { %v2348_v59 = vor.u32 %v2347_v51, %v2343_v40  ;;  %v467_v60 = vsel %vm447_vm2, %v462_v46, %v466_v52  ;;  %v2360_v61 = vrot.slane %v2358_v53, 1  ;;  %v470_v62 = vor.u32 %v468_v49, %v466_v52  ;;  %v18681_v40 = vld [vmem:[%s18575_s12 + $0x38] sm:$0xff]  }
  0x25   : > { %v459_v55 = vsel %vm447_vm2, %v454_v45, %v458_v37  ;;  %v474_v0 = vrot.slane %v472_v57, 1  ;;  %v2368_v1 = vrot.slane %v2366_v58, 1  ;;  %v476_v2 = vshrl.u32 %v18626_v48, 16  ;;  %v18690_v52 = vld [vmem:[%s18575_s12 + $0x78] sm:$0xff]   ;;  %p18377_p12 = pnand %p18376_p11, %p18545_p5 }
  0x26   : > { %16568 = vmatprep.mubr.msk.bf16.mxu0 %vm527_vm3, %v459_v55  ;;  %v2353_v4 = vsel %vm447_vm2, %v2348_v59, %v2352_v47  ;;  %v2361_v5 = vsel %vm447_vm2, %v2356_v56, %v2360_v61  ;;  %v2364_v6 = vor.u32 %v2362_v54, %v2360_v61  ;;  %v480_v7 = vshll.u32 %v18640_v63, 16  ;;  %v18696_v55 = vld [vmem:[%s18575_s12 + $0x40] ss:$0 sps:$4 sm:$0x11]   ;;  %v17815_v59 = vld [vmem:[%s22637_s1] sm:$0x18]  }
  0x27   : > { %16569 = vmatmul.mubr.msk.bf16.vlgmr.msra.gmra.mrb[0].mxu0 %vm527_vm3, %v467_v60  ;;  %16730 = vmatprep.mubr.msk.bf16.mxu1 %vm527_vm3, %v2353_v4  ;;  %v475_v9 = vsel %vm447_vm2, %v470_v62, %v474_v0  ;;  %v478_v10 = vor.u32 %v476_v2, %v474_v0  ;;  %v2370_v12 = vshrl.u32 %v18630_v50, 16  ;;  %v2374_v13 = vshll.u32 %v18645_v3, 16  ;;  %v17813_v0 = vld [vmem:[%s18575_s12 + $0x80] ss:$0 sps:$4 sm:$0x11]   ;;  %p18378_p13 = pneg %p18377_p12 }
  0x28   : > { %16585 = vmatpush3.bf16.msra.mxu0 %v673_v21  ;;  %16731 = vmatmul.mubr.msk.bf16.vlgmr.msra.gmra.mrb[0].mxu1 %vm527_vm3, %v2361_v5  ;;  %v2369_v14 = vsel %vm447_vm2, %v2364_v6, %v2368_v1  ;;  %v482_v15 = vrot.slane %v480_v7, 1  ;;  %v484_v16 = vshrl.u32 %v18640_v63, 16  ;;  %v488_v17 = vshll.u32 %v18651_v8, 16 }
  0x29   : > { %16602 = vmatprep.subr.bf16.mxu0 %v18623_v44  ;;  %16572 = vmatprep.mubr.msk.bf16.mxu0 %vm527_vm3, %v475_v9  ;;  %v2372_v19 = vor.u32 %v2370_v12, %v2368_v1  ;;  %v2376_v21 = vrot.slane %v2374_v13, 1  ;;  %v2378_v24 = vshrl.u32 %v18645_v3, 16  ;;  %v492_v26 = vshrl.u32 %v18651_v8, 16 }
  0x2a   : > { %16734 = vmatprep.mubr.msk.bf16.mxu1 %vm527_vm3, %v2369_v14  ;;  %16747 = vmatpush3.bf16.msra.mxu1 %v18598_v28  ;;  %v483_v29 = vsel %vm447_vm2, %v478_v10, %v482_v15  ;;  %v486_v30 = vor.u32 %v484_v16, %v482_v15  ;;  %v490_v31 = vrot.slane %v488_v17, 1  ;;  %v2382_v32 = vshll.u32 %v18664_v18, 16  ;;  %v17818_v16 = vld [vmem:[%s22637_s1 + $0x4] ss:$0 sps:$4 sm:$0x33]  }
  0x2b   : > { %v2380_v36 = vor.u32 %v2378_v24, %v2376_v21  ;;  %v496_v37 = vshll.u32 %v18669_v25, 16  ;;  %v2386_v39 = vshrl.u32 %v18664_v18, 16  ;;  %v2377_v41 = vsel %vm447_vm2, %v2372_v19, %v2376_v21 }
  0x2c   : > { %v491_v28 = vsel %vm447_vm2, %v486_v30, %v490_v31  ;;  %v2384_v42 = vrot.slane %v2382_v32, 1  ;;  %v500_v45 = vshrl.u32 %v18669_v25, 16  ;;  %v494_v46 = vor.u32 %v492_v26, %v490_v31 }
  0x2d   : > { %v498_v47 = vrot.slane %v496_v37, 1  ;;  %v2390_v49 = vshll.u32 %v18677_v38, 16  ;;  %v504_v51 = vshll.u32 %v18681_v40, 16  ;;  %v2394_v54 = vshrl.u32 %v18677_v38, 16 }
  0x2e   : > { %v2385_v53 = vsel %vm447_vm2, %v2380_v36, %v2384_v42  ;;  %v2398_v60 = vshll.u32 %v18690_v52, 16  ;;  %v508_v61 = vshrl.u32 %v18681_v40, 16  ;;  %v512_v62 = vshll.u32 %v18696_v55, 16 }
  0x2f   : > { %16573 = vmatmul.mubr.msk.bf16.gmra.mrb[4].mxu0 %vm527_vm3, %v483_v29  ;;  %v2392_v56 = vrot.slane %v2390_v49, 1  ;;  %v502_v57 = vor.u32 %v500_v45, %v498_v47  ;;  %v506_v58 = vrot.slane %v504_v51, 1  ;;  %v499_v1 = vsel %vm447_vm2, %v494_v46, %v498_v47 }
  0x30   : > { %16576 = vmatprep.mubr.msk.bf16.mxu0 %vm527_vm3, %v491_v28  ;;  %16735 = vmatmul.mubr.msk.bf16.gmra.mrb[4].mxu1 %vm527_vm3, %v2377_v41  ;;  %v2388_v2 = vor.u32 %v2386_v39, %v2384_v42  ;;  %v2400_v5 = vrot.slane %v2398_v60, 1  ;;  %v514_v7 = vrot.slane %v512_v62, 1  ;;  %v2689_v10 = vrot.slane %v17815_v59, 3  ;;  %v17819_v41 = vld [vmem:[%s22637_s1 + $0x4] ss:$0 sps:$4 sm:$0x33]  }
  0x31   : > { %16738 = vmatprep.mubr.msk.bf16.mxu1 %vm527_vm3, %v2385_v53  ;;  %v2396_v4 = vor.u32 %v2394_v54, %v2392_v56  ;;  %v510_v6 = vor.u32 %v508_v61, %v506_v58  ;;  %v507_v9 = vsel %vm447_vm2, %v502_v57, %v506_v58  ;;  %v2402_v12 = vshrl.u32 %v18690_v52, 16 }
  0x32   : > { %v2406_v13 = vshll.u32 %v17813_v0, 16  ;;  %v2393_v14 = vsel %vm447_vm2, %v2388_v2, %v2392_v56  ;;  %v2715_v15 = vand.u32 %v2689_v10, %v18567_v11  ;;  %v782_v21 = vrot.slane %v18608_v34, 1 }
  0x33   : > { %v2401_v17 = vsel %vm447_vm2, %v2396_v4, %v2400_v5  ;;  %v515_v19 = vsel %vm447_vm2, %v510_v6, %v514_v7  ;;  %v784_v24 = vrot.slane %v18626_v48, 1  ;;  %v2670_v26 = vrot.slane %v18619_v43, 1 }
  0x34   : > { %16764 = vmatprep.subr.bf16.mxu1 %v2715_v15  ;;  %v2672_v29 = vrot.slane %v18630_v50, 1  ;;  %v786_v30 = vrot.slane %v18640_v63, 1  ;;  %v2674_v31 = vrot.slane %v18645_v3, 1  ;;  %v2404_v32 = vor.u32 %v2402_v12, %v2400_v5 }
  0x35   : > { %v2408_v36 = vrot.slane %v2406_v13, 1  ;;  %v18729_v37 = vsel %vm778_vm4, %v782_v21, %v784_v24  ;;  %v788_v39 = vrot.slane %v18651_v8, 1  ;;  %v2676_v46 = vrot.slane %v18664_v18, 1 }
  0x36   : > { %v18739_v28 = vsel %vm778_vm4, %v2670_v26, %v2672_v29  ;;  %v18742_v42 = vsel %vm778_vm4, %v784_v24, %v786_v30  ;;  %v18745_v45 = vsel %vm778_vm4, %v2672_v29, %v2674_v31  ;;  %v790_v49 = vrot.slane %v18669_v25, 1 }
  0x37   : > { %16577 = vmatmul.mubr.msk.bf16.gmra.mrb[8].mxu0 %vm527_vm3, %v499_v1  ;;  %v18749_v47 = vsel %vm778_vm4, %v786_v30, %v788_v39  ;;  %v2678_v51 = vrot.slane %v18677_v38, 1  ;;  %v1003_v53 = vshrl.u32 %v17818_v16, 16  ;;  %v18754_v54 = vsel %vm778_vm4, %v2674_v31, %v2676_v46  ;;  %v17821_v30 = vld [vmem:[%s18575_s12 + $0x4c] sm:$0xff]  }
  0x38   : > { %16580 = vmatprep.mubr.msk.bf16.mxu0 %vm527_vm3, %v507_v9  ;;  %16739 = vmatmul.mubr.msk.bf16.gmra.mrb[8].mxu1 %vm527_vm3, %v2393_v14  ;;  %v1005_v56 = vshll.u32 %v17818_v16, 16  ;;  %v792_v57 = vrot.slane %v18681_v40, 1  ;;  %v2680_v58 = vrot.slane %v18690_v52, 1  ;;  %v18759_v59 = vsel %vm778_vm4, %v788_v39, %v790_v49  ;;  %v1149_v31 = vld [vmem:[%s18575_s12 + $0xc] sm:$0xf]  ;;  %v18880_v39 = vld [vmem:[%s18575_s12 + $0x14] sm:$0xff]  }
  0x39   : > { %16742 = vmatprep.mubr.msk.bf16.mxu1 %vm527_vm3, %v2401_v17  ;;  %v18762_v60 = vsel %vm778_vm4, %v2676_v46, %v2678_v51  ;;  %v794_v61 = vrot.slane %v18696_v55, 1  ;;  %v2682_v62 = vrot.slane %v17813_v0, 1  ;;  %v2409_v1 = vsel %vm447_vm2, %v2404_v32, %v2408_v36  ;;  %v17857_v17 = vld [vmem:[%s22637_s1 + $0x4] sm:$0x18]   ;;  %v18877_v32 = vld [vmem:[%s18575_s12 + $0x10] sm:$0xf] }
  0x3a   : > { %v1007_v2 = vrot.slane %v1005_v56, 1  ;;  %v18768_v4 = vsel %vm778_vm4, %v790_v49, %v792_v57  ;;  %v18771_v5 = vsel %vm778_vm4, %v2678_v51, %v2680_v58  ;;  %v2891_v0 = vshrl.u32 %v17819_v41, 16  ;;  %v17823_v46 = vld [vmem:[%s18575_s12 + $0x54] sm:$0xff]   ;;  %v18893_v49 = vld [vmem:[%s18575_s12 + $0x50] sm:$0xf] }
  0x3b   : > { %v18776_v6 = vsel %vm778_vm4, %v792_v57, %v794_v61  ;;  %v18779_v55 = vsel %vm778_vm4, %v2680_v58, %v2682_v62  ;;  %v2893_v7 = vshll.u32 %v17819_v41, 16  ;;  %v3342_v29 = vshll.u32 %v17857_v17, 16  ;;  %v18898_v56 = vld [vmem:[%s18575_s12 + $0x54] sm:$0xff]   ;;  %v18904_v58 = vld [vmem:[%s18575_s12 + $0x1c] sm:$0xff]  }
  0x3c   : > { %v1008_v9 = vor.u32 %v1007_v2, %v1003_v53  ;;  %v17825_v53 = vld [vmem:[%s18575_s12 + $0x5c] sm:$0xff]  }
  0x3d   : > { %v2895_v10 = vrot.slane %v2893_v7, 1  ;;  %v17828_v7 = vld [vmem:[%s18575_s12 + $0x2c] sm:$0xff]  }
  0x3f   : > { %16581 = vmatmul.mubr.msk.bf16.gmra.mrb[12].mxu0 %vm527_vm3, %v515_v19  ;;  %v2896_v12 = vor.u32 %v2895_v10, %v2891_v0  ;;  %v17820_v19 = vld [vmem:[%s18575_s12 + $0xc] sm:$0xff]   ;;  %v18928_v0 = vld [vmem:[%s18575_s12 + $0x24] sm:$0xff]  }
  0x40   : > { %16586 = vmatprep.mubr.msk.bf16.mxu0 %vm527_vm3, %v18587_v22  ;;  %16743 = vmatmul.mubr.msk.bf16.gmra.mrb[12].mxu1 %vm527_vm3, %v2409_v1  ;;  %v1034_v22 = vand.u32 %v1008_v9, %v18567_v11  ;;  %v17826_v1 = vld [vmem:[%s18575_s12 + $0x24] sm:$0xff]  }
  0x41   : > { %16748 = vmatprep.mubr.msk.bf16.mxu1 %vm527_vm3, %v18611_v35  ;;  %v2922_v13 = vand.u32 %v2896_v12, %v18567_v11  ;;  %v772_v35 = vld [vmem:[%s18575_s12] sm:$0xe] }
  0x42   : > { %v14441_v14 = vcombine.low %v772_v35, %v18583_v20  ;;  %v2668_v20 = vrot.slane %v18605_v33, 1  ;;  %v17827_v35 = vld [vmem:[%s18575_s12 + $0x64] sm:$0xff]  }
  0x47   : > { %16587 = vmatmul.mubr.msk.bf16.vlgmr.msra.gmra.mrb[0].mxu0 %vm527_vm3, %v18590_v23 }
  0x48   : > { %16590 = vmatprep.mubr.msk.bf16.mxu0 %vm527_vm3, %v18608_v34  ;;  %16603 = vmatpush3.bf16.msra.mxu0 %v18623_v44  ;;  %v2661_v44 = vld [vmem:[%s18575_s12 + $0x40] sm:$0xe]  ;;  %v17852_v34 = vld [vmem:[%s22637_s1 + $0x4] sm:$0x18]  }
  0x49   : > { %16620 = vmatprep.subr.bf16.mxu0 %v1034_v22  ;;  %16749 = vmatmul.mubr.msk.bf16.vlgmr.msra.gmra.mrb[0].mxu1 %vm527_vm3, %v18605_v33  ;;  %v1454_v16 = vshll.u32 %v17852_v34, 16 }
  0x4a   : > { %16752 = vmatprep.mubr.msk.bf16.mxu1 %vm527_vm3, %v18619_v43  ;;  %16765 = vmatpush3.bf16.msra.mxu1 %v2715_v15  ;;  %v14567_v15 = vcombine.low %v2661_v44, %v18595_v27  ;;  %v1451_v43 = vshrl.u32 %v17852_v34, 16  ;;  %v17829_v44 = vld [vmem:[%s18575_s12 + $0x6c] sm:$0xff]  }
  0x4b   : > { %16782 = vmatprep.subr.bf16.mxu1 %v2922_v13  ;;  %v1456_v24 = vrot.slane %v1454_v16, 4 }
  0x4f   : > { %16591 = vmatmul.mubr.msk.bf16.gmra.mrb[4].mxu0 %vm527_vm3, %v18626_v48  ;;  %v779_v48 = vrot.slane %v14441_v14, 1 }
  0x50   : > { %16594 = vmatprep.mubr.msk.bf16.mxu0 %vm527_vm3, %v18640_v63  ;;  %v780_v63 = vrot.slane %v18590_v23, 1 }
  0x51   : > { %16753 = vmatmul.mubr.msk.bf16.gmra.mrb[4].mxu1 %vm527_vm3, %v18630_v50  ;;  %v2667_v50 = vrot.slane %v14567_v15, 1 }
  0x52   : > { %16756 = vmatprep.mubr.msk.bf16.mxu1 %vm527_vm3, %v18645_v3  ;;  %v17832_v3 = vld [vmem:[%s22637_s1 + $0x4] ss:$0 sps:$4 sm:$0xcc]   ;;  %v781_v27 = vsel %vm778_vm4, %v779_v48, %v780_v63  ;;  %v783_v33 = vsel %vm778_vm4, %v780_v63, %v782_v21  ;;  %v1453_v21 = vrot.slane %v1451_v43, 3  ;;  %v1230_v48 = vshrl.u32 %v18904_v58, 16  ;;  %v18947_v63 = vld [vmem:[%s18575_s12 + $0x2c] sm:$0xff]  }
  0x53   : > { %v2669_v23 = vsel %vm778_vm4, %v2667_v50, %v2668_v20  ;;  %v18974_v43 = vld [vmem:[%s18575_s12 + $0x3c] sm:$0xff]  }
  0x54   : > { %v1457_v41 = vor.u32 %v1456_v24, %v1453_v21  ;;  %v18983_v24 = vld [vmem:[%s18575_s12 + $0x7c] sm:$0xff]  }
  0x56   : > { %v18901_v57 = vand.u32 %v1457_v41, %v18567_v11 }
  0x57   : > { %16595 = vmatmul.mubr.msk.bf16.gmra.mrb[8].mxu0 %vm527_vm3, %v18651_v8  ;;  %v17837_v8 = vld [vmem:[%s22637_s1 + $0x4] ss:$0 sps:$4 sm:$0xcc]  }
  0x58   : > { %16598 = vmatprep.mubr.msk.bf16.mxu0 %vm527_vm3, %v18669_v25  ;;  %v3169_v25 = vrot.slane %v17837_v8, 2 }
  0x59   : > { %16757 = vmatmul.mubr.msk.bf16.gmra.mrb[8].mxu1 %vm527_vm3, %v18664_v18  ;;  %v1281_v18 = vrot.slane %v17832_v3, 2 }
  0x5a   : > { %16760 = vmatprep.mubr.msk.bf16.mxu1 %vm527_vm3, %v18677_v38 }
  0x5b   : > { %v1307_v38 = vand.u32 %v1281_v18, %v18567_v11  ;;  %v17830_v18 = vld [vmem:[%s18575_s12 + $0x34] sm:$0xff]  }
  0x5f   : > { %16599 = vmatmul.mubr.msk.bf16.gmra.mrb[12].mxu0 %vm527_vm3, %v18681_v40  ;;  %v2671_v40 = vsel %vm778_vm4, %v2668_v20, %v2670_v26  ;;  %v3339_v26 = vshrl.u32 %v17857_v17, 16  ;;  %v1234_v20 = vshll.u32 %v18928_v0, 16  ;;  %v1238_v17 = vshrl.u32 %v18928_v0, 16 }
  0x60   : > { %16604 = vmatprep.mubr.msk.bf16.mxu0 %vm527_vm3, %v781_v27  ;;  %v18955_v27 = vld [vmem:[%s18575_s12 + $0x6c] sm:$0xff]  }
  0x61   : > { %16761 = vmatmul.mubr.msk.bf16.gmra.mrb[12].mxu1 %vm527_vm3, %v18690_v52  ;;  %v18842_v52 = vand.u32 %v3169_v25, %v18567_v11  ;;  %v3341_v36 = vrot.slane %v3339_v26, 3  ;;  %v1242_v25 = vshll.u32 %v18947_v63, 16  ;;  %v18971_v34 = vrot.slane %v1234_v20, 1  ;;  %v18986_v26 = vld [vmem:[%s18575_s12 + $0x44] sm:$0xff]  }
  0x62   : > { %16766 = vmatprep.mubr.msk.bf16.mxu1 %vm527_vm3, %v2669_v23  ;;  %v3130_v21 = vshll.u32 %v18955_v27, 16  ;;  %v3134_v41 = vshrl.u32 %v18955_v27, 16 }
  0x67   : > { %16605 = vmatmul.mubr.msk.bf16.vlgmr.msra.gmra.mrb[0].mxu0 %vm527_vm3, %v783_v33 }
  0x68   : > { %16608 = vmatprep.mubr.msk.bf16.mxu0 %vm527_vm3, %v18729_v37  ;;  %16621 = vmatpush3.bf16.msra.mxu0 %v1034_v22  ;;  %v3344_v37 = vrot.slane %v3342_v29, 4  ;;  %v3110_v22 = vshrl.u32 %v18898_v56, 16  ;;  %v17831_v29 = vld [vmem:[%s18575_s12 + $0x74] sm:$0xff]  }
  0x69   : > { %16638 = vmatprep.subr.bf16.mxu0 %v1307_v38  ;;  %16767 = vmatmul.mubr.msk.bf16.vlgmr.msra.gmra.mrb[0].mxu1 %vm527_vm3, %v2671_v40  ;;  %v18967_v40 = vld [vmem:[%s18575_s12 + $0x74] sm:$0xff]  }
  0x6a   : > { %16770 = vmatprep.mubr.msk.bf16.mxu1 %vm527_vm3, %v18739_v28  ;;  %16783 = vmatpush3.bf16.msra.mxu1 %v2922_v13  ;;  %v17822_v28 = vld [vmem:[%s18575_s12 + $0x14] sm:$0xff]   ;;  %v3345_v51 = vor.u32 %v3344_v37, %v3341_v36  ;;  %v18937_v13 = vld [vmem:[%s18575_s12 + $0x64] sm:$0xff]   ;;  %v1246_v36 = vshrl.u32 %v18947_v63, 16 }
  0x6b   : > { %16800 = vmatprep.subr.bf16.mxu1 %v18842_v52  ;;  %v3122_v3 = vshll.u32 %v18937_v13, 16 }
  0x6c   : > { %v18914_v62 = vand.u32 %v3345_v51, %v18567_v11  ;;  %v19004_v51 = vld [vmem:[%s18575_s12 + $0x84] sm:$0xff]  }
  0x6d   : > { %v18977_v16 = vrot.slane %v3122_v3, 1  ;;  %v3154_v3 = vshll.u32 %v19004_v51, 16 }
  0x6f   : > { %16609 = vmatmul.mubr.msk.bf16.gmra.mrb[4].mxu0 %vm527_vm3, %v18742_v42  ;;  %v17824_v42 = vld [vmem:[%s18575_s12 + $0x1c] sm:$0xff]  }
  0x70   : > { %16612 = vmatprep.mubr.msk.bf16.mxu0 %vm527_vm3, %v18749_v47  ;;  %v3037_v47 = vld [vmem:[%s18575_s12 + $0x4c] sm:$0xf] }
  0x71   : > { %16771 = vmatmul.mubr.msk.bf16.gmra.mrb[4].mxu1 %vm527_vm3, %v18745_v45  ;;  %v18888_v45 = vcombine.low %v1149_v31, %v18877_v32  ;;  %v18910_v61 = vcombine.low %v3037_v47, %v18893_v49  ;;  %v18990_v31 = vrot.slane %v1242_v25, 1  ;;  %v19001_v47 = vrot.slane %v3130_v21, 1  ;;  %v17861_v21 = vld [vmem:[%s22637_s1 + $0x8] ss:$0 sps:$4 sm:$0x66]  }
  0x72   : > { %16774 = vmatprep.mubr.msk.bf16.mxu1 %vm527_vm3, %v18754_v54  ;;  %v1218_v54 = vshll.u32 %v18880_v39, 16 }
  0x73   : > { %v1211_v2 = vshrl.u32 %v18888_v45, 16  ;;  %v3099_v10 = vshrl.u32 %v18910_v61, 16  ;;  %v3101_v12 = vshll.u32 %v18910_v61, 16  ;;  %v3310_v61 = vld [vmem:[%s18575_s12 + $0x4c] sm:$0xe] }
  0x75   : > { %v3103_v23 = vrot.slane %v3101_v12, 1  ;;  %v1262_v12 = vshrl.u32 %v18974_v43, 16 }
  0x77   : > { %16613 = vmatmul.mubr.msk.bf16.gmra.mrb[8].mxu0 %vm527_vm3, %v18759_v59  ;;  %v1213_v59 = vshll.u32 %v18888_v45, 16  ;;  %v3146_v45 = vshll.u32 %v18983_v24, 16  ;;  %v3104_v20 = vor.u32 %v3103_v23, %v3099_v10 }
  0x78   : > { %16616 = vmatprep.mubr.msk.bf16.mxu0 %vm527_vm3, %v18768_v4  ;;  %v18918_v4 = vrot.slane %v1218_v54, 1 }
  0x79   : > { %16775 = vmatmul.mubr.msk.bf16.gmra.mrb[8].mxu1 %vm527_vm3, %v18762_v60  ;;  %v1222_v60 = vshrl.u32 %v18880_v39, 16  ;;  %v1215_v9 = vrot.slane %v1213_v59, 1 }
  0x7a   : > { %16778 = vmatprep.mubr.msk.bf16.mxu1 %vm527_vm3, %v18771_v5  ;;  %v3106_v5 = vshll.u32 %v18898_v56, 16 }
  0x7b   : > { %v1216_v54 = vor.u32 %v1215_v9, %v1211_v2  ;;  %v19021_v2 = vrot.slane %v3146_v45, 1  ;;  %v1224_v10 = vor.u32 %v1222_v60, %v18918_v4  ;;  %v3150_v60 = vshrl.u32 %v18983_v24, 16 }
  0x7c   : > { %v18942_v14 = vrot.slane %v3106_v5, 1  ;;  %v1270_v45 = vshrl.u32 %v18986_v26, 16 }
  0x7d   : > { %v1221_v25 = vsel %vm447_vm2, %v1216_v54, %v18918_v4  ;;  %v19059_v4 = vrot.slane %v3154_v3, 1  ;;  %v3546_v54 = vrot.slane %v17861_v21, 1 }
  0x7e   : > { %v3109_v23 = vsel %vm447_vm2, %v3104_v20, %v18942_v14 }
  0x7f   : > { %16617 = vmatmul.mubr.msk.bf16.gmra.mrb[12].mxu0 %vm527_vm3, %v18776_v6  ;;  %v18922_v6 = vld [vmem:[%s18575_s12 + $0x5c] sm:$0xff]  }
  0x80   : > { %16622 = vmatprep.mubr.msk.bf16.mxu0 %vm527_vm3, %v17820_v19  ;;  %v3114_v15 = vshll.u32 %v18922_v6, 16  ;;  %v3118_v8 = vshrl.u32 %v18922_v6, 16  ;;  %v3126_v19 = vshrl.u32 %v18937_v13, 16 }
  0x81   : > { %16779 = vmatmul.mubr.msk.bf16.gmra.mrb[12].mxu1 %vm527_vm3, %v18779_v55  ;;  %v1226_v55 = vshll.u32 %v18904_v58, 16 }
  0x82   : > { %16784 = vmatprep.mubr.msk.bf16.mxu1 %vm527_vm3, %v17821_v30  ;;  %v18960_v33 = vrot.slane %v3114_v15, 1  ;;  %v17834_v30 = vld [vmem:[%s18575_s12 + $0x7c] sm:$0xff]   ;;  %v17836_v15 = vld [vmem:[%s18575_s12 + $0x84] sm:$0xff]  }
  0x83   : > { %v18949_v50 = vrot.slane %v1226_v55, 1 }
  0x87   : > { %16623 = vmatmul.mubr.msk.bf16.vlgmr.msra.gmra.mrb[0].mxu0 %vm527_vm3, %v17822_v28  ;;  %v3138_v28 = vshll.u32 %v18967_v40, 16 }
  0x88   : > { %16626 = vmatprep.mubr.msk.bf16.mxu0 %vm527_vm3, %v17824_v42  ;;  %16639 = vmatpush3.bf16.msra.mxu0 %v1307_v38  ;;  %v18964_v38 = vld [vmem:[%s18575_s12 + $0x34] sm:$0xff]   ;;  %v1258_v42 = vshll.u32 %v18974_v43, 16 }
  0x89   : > { %16656 = vmatprep.subr.bf16.mxu0 %v18901_v57  ;;  %16785 = vmatmul.mubr.msk.bf16.vlgmr.msra.gmra.mrb[0].mxu1 %vm527_vm3, %v17823_v46  ;;  %v1250_v37 = vshll.u32 %v18964_v38, 16  ;;  %v1266_v46 = vshll.u32 %v18986_v26, 16  ;;  %v19013_v5 = vrot.slane %v3138_v28, 1  ;;  %v1254_v55 = vshrl.u32 %v18964_v38, 16 }
  0x8a   : > { %16788 = vmatprep.mubr.msk.bf16.mxu1 %vm527_vm3, %v17825_v53  ;;  %16801 = vmatpush3.bf16.msra.mxu1 %v18842_v52  ;;  %v17833_v52 = vld [vmem:[%s18575_s12 + $0x3c] sm:$0xff]   ;;  %v17835_v53 = vld [vmem:[%s18575_s12 + $0x44] sm:$0xff]   ;;  %v3112_v28 = vor.u32 %v3110_v22, %v18942_v14  ;;  %v1429_v22 = vrot.slane %v18880_v39, 1  ;;  %v14612_v14 = vcombine.low %v3310_v61, %v18893_v49  ;;  %v3317_v49 = vrot.slane %v18898_v56, 1 }
  0x8b   : > { %16818 = vmatprep.subr.bf16.mxu1 %v18914_v62  ;;  %v19007_v59 = vrot.slane %v1250_v37, 1  ;;  %v19023_v9 = vrot.slane %v1266_v46, 1  ;;  %v3158_v46 = vshrl.u32 %v19004_v51, 16  ;;  %v19096_v61 = vand.u32 %v3546_v54, %v18567_v11 }
  0x8c   : > { %v19086_v21 = vrot.slane %v14612_v14, 1 }
  0x8f   : > { %16627 = vmatmul.mubr.msk.bf16.gmra.mrb[4].mxu0 %vm527_vm3, %v17826_v1  ;;  %v19010_v1 = vld [vmem:[%s18575_s12 + $0x4c] ss:$0 sps:$4 sm:$0x11]  }
  0x90   : > { %16630 = vmatprep.mubr.msk.bf16.mxu0 %vm527_vm3, %v17828_v7  ;;  %v3142_v7 = vshrl.u32 %v18967_v40, 16 }
  0x91   : > { %16789 = vmatmul.mubr.msk.bf16.gmra.mrb[4].mxu1 %vm527_vm3, %v17827_v35  ;;  %v19019_v35 = vrot.slane %v1258_v42, 1  ;;  %v1232_v42 = vor.u32 %v1230_v48, %v18949_v50  ;;  %v1229_v48 = vsel %vm447_vm2, %v1224_v10, %v18949_v50  ;;  %v3117_v50 = vsel %vm447_vm2, %v3112_v28, %v18960_v33 }
  0x92   : > { %16792 = vmatprep.mubr.msk.bf16.mxu1 %vm527_vm3, %v17829_v44  ;;  %v19026_v44 = vld [vmem:[%s18575_s12 + $0x8c] ss:$0 sps:$4 sm:$0x11]   ;;  %v3319_v10 = vrot.slane %v18922_v6, 1  ;;  %v1256_v28 = vor.u32 %v1254_v55, %v19007_v59  ;;  %v3144_v14 = vor.u32 %v3142_v7, %v19013_v5  ;;  %v3152_v55 = vor.u32 %v3150_v60, %v19021_v2 }
  0x93   : > { %v1237_v20 = vsel %vm447_vm2, %v1232_v42, %v18971_v34  ;;  %v1264_v42 = vor.u32 %v1262_v12, %v19019_v35  ;;  %v17879_v12 = vld [vmem:[%s22637_s1 + $0x8] ss:$0 sps:$4 sm:$0xcc]   ;;  %v1272_v60 = vor.u32 %v1270_v45, %v19023_v9 }
  0x97   : > { %16631 = vmatmul.mubr.msk.bf16.gmra.mrb[8].mxu0 %vm527_vm3, %v17830_v18  ;;  %v17860_v18 = vld [vmem:[%s22637_s1 + $0x8] ss:$0 sps:$4 sm:$0x66]  }
  0x98   : > { %16634 = vmatprep.mubr.msk.bf16.mxu0 %vm527_vm3, %v17833_v52  ;;  %v1274_v52 = vshll.u32 %v19010_v1, 16  ;;  %v1658_v37 = vrot.slane %v17860_v18, 1 }
  0x99   : > { %16793 = vmatmul.mubr.msk.bf16.gmra.mrb[8].mxu1 %vm527_vm3, %v17831_v29  ;;  %v1422_v29 = vld [vmem:[%s18575_s12 + $0xc] sm:$0xe] }
  0x9a   : > { %16796 = vmatprep.mubr.msk.bf16.mxu1 %vm527_vm3, %v17834_v30  ;;  %v3162_v30 = vshll.u32 %v19026_v44, 16  ;;  %v19074_v3 = vrot.slane %v1274_v52, 1 }
  0x9c   : > { %v19076_v18 = vrot.slane %v3162_v30, 1  ;;  %v3136_v30 = vor.u32 %v3134_v41, %v19001_v47 }
  0x9e   : > { %v3141_v41 = vsel %vm447_vm2, %v3136_v30, %v19013_v5  ;;  %v3149_v5 = vsel %vm447_vm2, %v3144_v14, %v19021_v2  ;;  %v1799_v2 = vld [vmem:[%s18575_s12 + $0x18] sm:$0xf]  ;;  %v19174_v30 = vld [vmem:[%s18575_s12 + $0x5c] sm:$0xf] }
  0x9f   : > { %16635 = vmatmul.mubr.msk.bf16.gmra.mrb[12].mxu0 %vm527_vm3, %v17835_v53  ;;  %v14486_v53 = vcombine.low %v1422_v29, %v18877_v32  ;;  %v19079_v32 = vand.u32 %v1658_v37, %v18567_v11  ;;  %v1240_v29 = vor.u32 %v1238_v17, %v18971_v34  ;;  %v3321_v34 = vrot.slane %v18937_v13, 1 }
  0xa0   : > { %16640 = vmatprep.mubr.msk.bf16.mxu0 %vm527_vm3, %v1221_v25  ;;  %v1431_v25 = vrot.slane %v18904_v58, 1  ;;  %v1435_v17 = vrot.slane %v18947_v63, 1  ;;  %v3320_v58 = vsel %vm778_vm4, %v3317_v49, %v3319_v10 }
  0xa1   : > { %16797 = vmatmul.mubr.msk.bf16.gmra.mrb[12].mxu1 %vm527_vm3, %v17836_v15  ;;  %v3120_v15 = vor.u32 %v3118_v8, %v18960_v33  ;;  %v1428_v8 = vrot.slane %v14486_v53, 1  ;;  %v1248_v33 = vor.u32 %v1246_v36, %v18990_v31  ;;  %v1245_v36 = vsel %vm447_vm2, %v1240_v29, %v18990_v31 }
  0xa2   : > { %16802 = vmatprep.mubr.msk.bf16.mxu1 %vm527_vm3, %v3109_v23  ;;  %v1433_v23 = vrot.slane %v18928_v0, 1  ;;  %v1437_v31 = vrot.slane %v18964_v38, 1  ;;  %v1439_v53 = vrot.slane %v18974_v43, 1  ;;  %v3823_v29 = vshll.u32 %v17879_v12, 16 }
  0xa3   : > { %v3125_v52 = vsel %vm447_vm2, %v3120_v15, %v18977_v16  ;;  %v1253_v37 = vsel %vm447_vm2, %v1248_v33, %v19007_v59  ;;  %v1261_v59 = vsel %vm447_vm2, %v1256_v28, %v19019_v35  ;;  %v1269_v15 = vsel %vm447_vm2, %v1264_v42, %v19023_v9  ;;  %v19167_v33 = vld [vmem:[%s18575_s12 + $0x1c] sm:$0xf] }
  0xa4   : > { %v3157_v35 = vsel %vm447_vm2, %v3152_v55, %v19059_v4  ;;  %v1430_v9 = vsel %vm778_vm4, %v1428_v8, %v1429_v22  ;;  %v19208_v55 = vld [vmem:[%s18575_s12 + $0x28] sm:$0xff]  }
  0xa7   : > { %16641 = vmatmul.mubr.msk.bf16.vlgmr.msra.gmra.mrb[0].mxu0 %vm527_vm3, %v1229_v48 }
  0xa8   : > { %16644 = vmatprep.mubr.msk.bf16.mxu0 %vm527_vm3, %v1237_v20  ;;  %16657 = vmatpush3.bf16.msra.mxu0 %v18901_v57  ;;  %v3128_v57 = vor.u32 %v3126_v19, %v18977_v16  ;;  %v3323_v19 = vrot.slane %v18955_v27, 1 }
  0xa9   : > { %16674 = vmatprep.subr.bf16.mxu0 %v19079_v32  ;;  %16803 = vmatmul.mubr.msk.bf16.vlgmr.msra.gmra.mrb[0].mxu1 %vm527_vm3, %v3117_v50  ;;  %v3160_v50 = vor.u32 %v3158_v46, %v19059_v4  ;;  %v19180_v4 = vcombine.low %v1799_v2, %v19167_v33  ;;  %v3327_v46 = vrot.slane %v18983_v24, 1  ;;  %v19244_v2 = vld [vmem:[%s18575_s12 + $0x30] sm:$0xff]  }
  0xaa   : > { %16806 = vmatprep.mubr.msk.bf16.mxu1 %vm527_vm3, %v3125_v52  ;;  %16819 = vmatpush3.bf16.msra.mxu1 %v18914_v62  ;;  %v17874_v62 = vld [vmem:[%s22637_s1 + $0x8] ss:$0 sps:$4 sm:$0xcc]   ;;  %v3133_v16 = vsel %vm447_vm2, %v3128_v57, %v19001_v47  ;;  %v3325_v47 = vrot.slane %v18967_v40, 1  ;;  %v3820_v52 = vshrl.u32 %v17879_v12, 16  ;;  %v3324_v0 = vsel %vm778_vm4, %v3321_v34, %v3323_v19 }
  0xab   : > { %16836 = vmatprep.subr.bf16.mxu1 %v19096_v61  ;;  %v1932_v54 = vshrl.u32 %v17874_v62, 16  ;;  %v1935_v48 = vshll.u32 %v17874_v62, 16  ;;  %v3687_v57 = vld [vmem:[%s18575_s12 + $0x58] sm:$0xf]  ;;  %v3165_v45 = vsel %vm447_vm2, %v3160_v50, %v19076_v18  ;;  %v1443_v62 = vrot.slane %v19010_v1, 1  ;;  %v19211_v12 = vld [vmem:[%s18575_s12 + $0x68] sm:$0xff]  }
  0xac   : > { %v3822_v8 = vrot.slane %v3820_v52, 2  ;;  %v3318_v18 = vsel %vm778_vm4, %v19086_v21, %v3317_v49  ;;  %v19198_v28 = vcombine.low %v3687_v57, %v19174_v30  ;;  %v1863_v14 = vshll.u32 %v19180_v4, 16  ;;  %v19259_v49 = vld [vmem:[%s18575_s12 + $0x70] sm:$0xff]   ;;  %v17864_v1 = vld [vmem:[%s18575_s12 + $0x20] sm:$0xff]  }
  0xad   : > { %v1934_v7 = vrot.slane %v1932_v54, 2  ;;  %v1937_v20 = vrot.slane %v1935_v48, 3  ;;  %v19202_v54 = vld [vmem:[%s18575_s12 + $0x60] sm:$0xff]   ;;  %v3331_v48 = vrot.slane %v19026_v44, 1  ;;  %v3322_v57 = vsel %vm778_vm4, %v3319_v10, %v3321_v34 }
  0xae   : > { %v19231_v52 = vrot.slane %v1863_v14, 1  ;;  %v3756_v39 = vshll.u32 %v19202_v54, 16  ;;  %v1880_v10 = vshrl.u32 %v19208_v55, 16  ;;  %v19291_v14 = vld [vmem:[%s18575_s12 + $0x78] sm:$0xff]   ;;  %v3326_v63 = vsel %vm778_vm4, %v3323_v19, %v3325_v47  ;;  %v17865_v44 = vld [vmem:[%s18575_s12 + $0x60] sm:$0xff]  }
  0xaf   : > { %16645 = vmatmul.mubr.msk.bf16.gmra.mrb[4].mxu0 %vm527_vm3, %v1245_v36  ;;  %v1277_v36 = vsel %vm447_vm2, %v1272_v60, %v19074_v3  ;;  %v3329_v3 = vrot.slane %v19004_v51, 1  ;;  %v1938_v42 = vor.u32 %v1937_v20, %v1934_v7  ;;  %v3749_v20 = vshrl.u32 %v19198_v28, 16  ;;  %v3968_v51 = vld [vmem:[%s22637_s1 + $0xc] sm:$0x3] }
  0xb0   : > { %16648 = vmatprep.mubr.msk.bf16.mxu0 %vm527_vm3, %v1253_v37  ;;  %v1441_v37 = vrot.slane %v18986_v26, 1  ;;  %v1434_v60 = vsel %vm778_vm4, %v1431_v25, %v1433_v23  ;;  %v3780_v27 = vshll.u32 %v19291_v14, 16  ;;  %v3328_v38 = vsel %vm778_vm4, %v3325_v47, %v3327_v46  ;;  %v17900_v47 = vld [vmem:[%s22637_s1] ss:$0 sps:$4 sm:$0x66]  }
  0xb1   : > { %16807 = vmatmul.mubr.msk.bf16.gmra.mrb[4].mxu1 %vm527_vm3, %v3133_v16  ;;  %v3825_v16 = vrot.slane %v3823_v29, 3  ;;  %v19229_v50 = vand.u32 %v1938_v42, %v18567_v11  ;;  %v3764_v29 = vshll.u32 %v19211_v12, 16  ;;  %v19283_v42 = vld [vmem:[%s18575_s12 + $0x38] sm:$0xff]   ;;  %v3330_v43 = vsel %vm778_vm4, %v3327_v46, %v3329_v3  ;;  %v2080_v26 = vld [vmem:[%s22637_s1 + $0xc] sm:$0x3] }
  0xb2   : > { %16810 = vmatprep.mubr.msk.bf16.mxu1 %vm527_vm3, %v3141_v41  ;;  %v19190_v41 = vld [vmem:[%s18575_s12 + $0x20] sm:$0xff]   ;;  %v3784_v40 = vshrl.u32 %v19291_v14, 16 }
  0xb3   : > { %v1868_v21 = vshll.u32 %v19190_v41, 16  ;;  %v3826_v7 = vor.u32 %v3825_v16, %v3822_v8  ;;  %v1884_v8 = vshll.u32 %v19244_v2, 16  ;;  %v1436_v16 = vsel %vm778_vm4, %v1433_v23, %v1435_v17 }
  0xb4   : > { %v3768_v23 = vshrl.u32 %v19211_v12, 16 }
  0xb5   : > { %v19256_v56 = vrot.slane %v1868_v21, 1  ;;  %v19301_v21 = vld [vmem:[%s18575_s12 + $0x40] sm:$0xff]   ;;  %v19313_v13 = vrot.slane %v1884_v8, 1  ;;  %v19349_v8 = vld [vmem:[%s18575_s12 + $0x88] sm:$0xff]  }
  0xb6   : > { %v1900_v19 = vshll.u32 %v19301_v21, 16 }
  0xb7   : > { %16649 = vmatmul.mubr.msk.bf16.gmra.mrb[8].mxu0 %vm527_vm3, %v1261_v59  ;;  %v1861_v59 = vshrl.u32 %v19180_v4, 16 }
  0xb8   : > { %16652 = vmatprep.mubr.msk.bf16.mxu0 %vm527_vm3, %v1269_v15  ;;  %v1872_v15 = vshrl.u32 %v19190_v41, 16 }
  0xb9   : > { %16811 = vmatmul.mubr.msk.bf16.gmra.mrb[8].mxu1 %vm527_vm3, %v3149_v5  ;;  %v1432_v5 = vsel %vm778_vm4, %v1429_v22, %v1431_v25  ;;  %v1876_v22 = vshll.u32 %v19208_v55, 16  ;;  %v3760_v25 = vshrl.u32 %v19202_v54, 16 }
  0xba   : > { %16814 = vmatprep.mubr.msk.bf16.mxu1 %vm527_vm3, %v3157_v35  ;;  %v3751_v35 = vshll.u32 %v19198_v28, 16  ;;  %v1874_v28 = vor.u32 %v1872_v15, %v19256_v56 }
  0xbb   : > { %v19267_v6 = vrot.slane %v1876_v22, 1  ;;  %v19330_v22 = vld [vmem:[%s18575_s12 + $0x48] sm:$0xff]  }
  0xbc   : > { %v1908_v24 = vshll.u32 %v19330_v22, 16 }
  0xbf   : > { %16653 = vmatmul.mubr.msk.bf16.gmra.mrb[12].mxu0 %vm527_vm3, %v1277_v36  ;;  %v19254_v36 = vand.u32 %v3826_v7, %v18567_v11  ;;  %v1892_v7 = vshll.u32 %v19283_v42, 16 }
  0xc0   : > { %16658 = vmatprep.mubr.msk.bf16.mxu0 %vm527_vm3, %v1430_v9  ;;  %v19262_v9 = vrot.slane %v3751_v35, 1  ;;  %v3776_v35 = vshrl.u32 %v19259_v49, 16 }
  0xc1   : > { %16815 = vmatmul.mubr.msk.bf16.gmra.mrb[12].mxu1 %vm527_vm3, %v3165_v45  ;;  %v19264_v45 = vrot.slane %v3756_v39, 1 }
  0xc2   : > { %16820 = vmatprep.mubr.msk.bf16.mxu1 %vm527_vm3, %v3318_v18  ;;  %v3772_v18 = vshll.u32 %v19259_v49, 16 }
  0xc3   : > { %v3762_v15 = vor.u32 %v3760_v25, %v19264_v45 }
  0xc4   : > { %v19315_v34 = vrot.slane %v3772_v18, 1  ;;  %v17862_v18 = vld [vmem:[%s18575_s12 + $0x18] sm:$0xff]  }
  0xc7   : > { %16659 = vmatmul.mubr.msk.bf16.vlgmr.msra.gmra.mrb[0].mxu0 %vm527_vm3, %v1432_v5  ;;  %v19311_v5 = vld [vmem:[%s18575_s12 + $0x80] sm:$0xff]  }
  0xc8   : > { %16662 = vmatprep.mubr.msk.bf16.mxu0 %vm527_vm3, %v1434_v60  ;;  %16675 = vmatpush3.bf16.msra.mxu0 %v19079_v32  ;;  %v19269_v32 = vrot.slane %v3764_v29, 1  ;;  %v1440_v60 = vsel %vm778_vm4, %v1437_v31, %v1439_v53  ;;  %v3788_v39 = vshll.u32 %v19311_v5, 16  ;;  %v1442_v29 = vsel %vm778_vm4, %v1439_v53, %v1441_v37 }
  0xc9   : > { %16692 = vmatprep.subr.bf16.mxu0 %v19229_v50  ;;  %16821 = vmatmul.mubr.msk.bf16.vlgmr.msra.gmra.mrb[0].mxu1 %vm527_vm3, %v3320_v58  ;;  %v19345_v58 = vrot.slane %v3780_v27, 1  ;;  %v19361_v53 = vrot.slane %v1900_v19, 1  ;;  %v3792_v46 = vshrl.u32 %v19311_v5, 16  ;;  %v4305_v27 = vshll.u32 %v17900_v47, 16  ;;  %v17863_v19 = vld [vmem:[%s18575_s12 + $0x58] sm:$0xff]  }
  0xca   : > { %16824 = vmatprep.mubr.msk.bf16.mxu1 %vm527_vm3, %v3322_v57  ;;  %16837 = vmatpush3.bf16.msra.mxu1 %v19096_v61  ;;  %v1438_v61 = vsel %vm778_vm4, %v1435_v17, %v1437_v31  ;;  %v1888_v17 = vshrl.u32 %v19244_v2, 16  ;;  %v19343_v31 = vrot.slane %v1892_v7, 1  ;;  %v1896_v57 = vshrl.u32 %v19283_v42, 16 }
  0xcb   : > { %16854 = vmatprep.subr.bf16.mxu1 %v19254_v36  ;;  %v4302_v7 = vshrl.u32 %v17900_v47, 16  ;;  %v19419_v47 = vld [vmem:[%s18575_s12 + $0x50] sm:$0xff]   ;;  %v3767_v25 = vsel %vm447_vm2, %v3762_v15, %v19269_v32  ;;  %v2095_v15 = vrot.slane %v19330_v22, 1 }
  0xcf   : > { %16663 = vmatmul.mubr.msk.bf16.gmra.mrb[4].mxu0 %vm527_vm3, %v1436_v16  ;;  %v1904_v16 = vshrl.u32 %v19301_v21, 16 }
  0xd0   : > { %16666 = vmatprep.mubr.msk.bf16.mxu0 %vm527_vm3, %v1438_v61  ;;  %v19366_v61 = vrot.slane %v3788_v39, 1  ;;  %v17868_v39 = vld [vmem:[%s18575_s12 + $0x30] sm:$0xff]  }
  0xd1   : > { %16825 = vmatmul.mubr.msk.bf16.gmra.mrb[4].mxu1 %vm527_vm3, %v3324_v0  ;;  %v3796_v0 = vshll.u32 %v19349_v8, 16 }
  0xd2   : > { %16828 = vmatprep.mubr.msk.bf16.mxu1 %vm527_vm3, %v3326_v63  ;;  %v1444_v63 = vsel %vm778_vm4, %v1441_v37, %v1443_v62  ;;  %v17866_v37 = vld [vmem:[%s18575_s12 + $0x28] sm:$0xff]   ;;  %v19398_v62 = vand.u32 %v2080_v26, %v18567_v11  ;;  %v17877_v26 = vld [vmem:[%s18575_s12 + $0x50] sm:$0xff]  }
  0xd7   : > { %16667 = vmatmul.mubr.msk.bf16.gmra.mrb[8].mxu0 %vm527_vm3, %v1440_v60  ;;  %v3332_v60 = vsel %vm778_vm4, %v3329_v3, %v3331_v48  ;;  %v17867_v3 = vld [vmem:[%s18575_s12 + $0x68] sm:$0xff]   ;;  %v19404_v48 = vand.u32 %v3968_v51, %v18567_v11  ;;  %v4304_v51 = vrot.slane %v4302_v7, 1  ;;  %v3800_v7 = vshrl.u32 %v19349_v8, 16 }
  0xd8   : > { %16670 = vmatprep.mubr.msk.bf16.mxu0 %vm527_vm3, %v1442_v29  ;;  %v17870_v29 = vld [vmem:[%s18575_s12 + $0x38] sm:$0xff]  }
  0xd9   : > { %16829 = vmatmul.mubr.msk.bf16.gmra.mrb[8].mxu1 %vm527_vm3, %v3328_v38  ;;  %v17869_v38 = vld [vmem:[%s18575_s12 + $0x70] sm:$0xff]  }
  0xda   : > { %16832 = vmatprep.mubr.msk.bf16.mxu1 %vm527_vm3, %v3330_v43  ;;  %v17872_v43 = vld [vmem:[%s18575_s12 + $0x40] sm:$0xff]  }
  0xdf   : > { %16671 = vmatmul.mubr.msk.bf16.gmra.mrb[12].mxu0 %vm527_vm3, %v1444_v63  ;;  %v17876_v63 = vld [vmem:[%s18575_s12 + $0x88] sm:$0xff]  }
  0xe0   : > { %16676 = vmatprep.mubr.msk.bf16.mxu0 %vm527_vm3, %v17862_v18  ;;  %v17875_v18 = vld [vmem:[%s18575_s12 + $0x48] sm:$0xff]  }
  0xe1   : > { %16833 = vmatmul.mubr.msk.bf16.gmra.mrb[12].mxu1 %vm527_vm3, %v3332_v60  ;;  %v1916_v60 = vshll.u32 %v19419_v47, 16 }
  0xe2   : > { %16838 = vmatprep.mubr.msk.bf16.mxu1 %vm527_vm3, %v17863_v19  ;;  %v19427_v19 = vrot.slane %v1908_v24, 1  ;;  %v3754_v24 = vor.u32 %v19262_v9, %v3749_v20 }
  0xe3   : > { %v1918_v9 = vrot.slane %v1916_v60, 1 }
  0xe4   : > { %v3759_v20 = vsel %vm447_vm2, %v3754_v24, %v19264_v45 }
  0xe7   : > { %16677 = vmatmul.mubr.msk.bf16.vlgmr.msra.gmra.mrb[0].mxu0 %vm527_vm3, %v17864_v1  ;;  %v1866_v1 = vor.u32 %v19231_v52, %v1861_v59  ;;  %v3798_v59 = vrot.slane %v3796_v0, 1  ;;  %v1912_v52 = vshrl.u32 %v19330_v22, 16  ;;  %v1882_v0 = vor.u32 %v1880_v10, %v19267_v6 }
  0xe8   : > { %16680 = vmatprep.mubr.msk.bf16.mxu0 %vm527_vm3, %v17866_v37  ;;  %16693 = vmatpush3.bf16.msra.mxu0 %v19229_v50  ;;  %v17871_v50 = vld [vmem:[%s18575_s12 + $0x78] sm:$0xff]   ;;  %v19436_v37 = vld [vmem:[%s18575_s12 + $0x90] sm:$0xff]   ;;  %v3770_v10 = vor.u32 %v3768_v23, %v19269_v32  ;;  %v1890_v23 = vor.u32 %v1888_v17, %v19313_v13  ;;  %v1898_v32 = vor.u32 %v1896_v57, %v19343_v31 }
  0xe9   : > { %16710 = vmatprep.subr.bf16.mxu0 %v19398_v62  ;;  %16839 = vmatmul.mubr.msk.bf16.vlgmr.msra.gmra.mrb[0].mxu1 %vm527_vm3, %v17865_v44  ;;  %v4307_v44 = vrot.slane %v4305_v27, 2  ;;  %v1871_v4 = vsel %vm447_vm2, %v1866_v1, %v19256_v56  ;;  %v3804_v27 = vshll.u32 %v19436_v37, 16  ;;  %v1879_v56 = vsel %vm447_vm2, %v1874_v28, %v19267_v6 }
  0xea   : > { %16842 = vmatprep.mubr.msk.bf16.mxu1 %vm527_vm3, %v17867_v3  ;;  %16855 = vmatpush3.bf16.msra.mxu1 %v19254_v36  ;;  %v17873_v36 = vld [vmem:[%s18575_s12 + $0x80] sm:$0xff]   ;;  %v17878_v3 = vld [vmem:[%s18575_s12 + $0x90] sm:$0xff]   ;;  %v3808_v60 = vshrl.u32 %v19436_v37, 16  ;;  %v3775_v6 = vsel %vm447_vm2, %v3770_v10, %v19315_v34  ;;  %v1895_v17 = vsel %vm447_vm2, %v1890_v23, %v19343_v31  ;;  %v1903_v57 = vsel %vm447_vm2, %v1898_v32, %v19361_v53  ;;  %v19602_v32 = vld [vmem:[%s18575_s12 + $0x98] sm:$0xff]  }
  0xeb   : > { %16872 = vmatprep.subr.bf16.mxu1 %v19404_v48  ;;  %v3806_v45 = vrot.slane %v3804_v27, 1  ;;  %v3979_v28 = vrot.slane %v19291_v14, 1 }
  0xef   : > { %16681 = vmatmul.mubr.msk.bf16.gmra.mrb[4].mxu0 %vm527_vm3, %v17868_v39  ;;  %v19445_v39 = vld [vmem:[%s18575_s12 + $0x58] ss:$0 sps:$4 sm:$0x11]  }
  0xf0   : > { %16684 = vmatprep.mubr.msk.bf16.mxu0 %vm527_vm3, %v17870_v29  ;;  %v19448_v29 = vld [vmem:[%s18575_s12 + $0x98] ss:$0 sps:$4 sm:$0x11]  }
  0xf1   : > { %16843 = vmatmul.mubr.msk.bf16.gmra.mrb[4].mxu1 %vm527_vm3, %v17869_v38  ;;  %v1920_v38 = vshrl.u32 %v19419_v47, 16 }
  0xf2   : > { %16846 = vmatprep.mubr.msk.bf16.mxu1 %vm527_vm3, %v17871_v50  ;;  %v4308_v50 = vor.u32 %v4307_v44, %v4304_v51  ;;  %v3778_v51 = vor.u32 %v3776_v35, %v19315_v34  ;;  %v2085_v34 = vrot.slane %v19190_v41, 1  ;;  %v3973_v35 = vrot.slane %v19202_v54, 1 }
  0xf3   : > { %v3794_v41 = vor.u32 %v3792_v46, %v19366_v61  ;;  %v3975_v46 = vrot.slane %v19211_v12, 1  ;;  %v2093_v12 = vrot.slane %v19301_v21, 1  ;;  %v4184_v21 = vld [vmem:[%s22637_s1] sm:$0x3] }
  0xf4   : > { %v3783_v44 = vsel %vm447_vm2, %v3778_v51, %v19345_v58 }
  0xf5   : > { %v2096_v51 = vsel %vm778_vm4, %v2093_v12, %v2095_v15 }
  0xf7   : > { %16685 = vmatmul.mubr.msk.bf16.gmra.mrb[8].mxu0 %vm527_vm3, %v17872_v43  ;;  %v1924_v43 = vshll.u32 %v19445_v39, 16 }
  0xf8   : > { %16688 = vmatprep.mubr.msk.bf16.mxu0 %vm527_vm3, %v17875_v18  ;;  %v3812_v18 = vshll.u32 %v19448_v29, 16 }
  0xf9   : > { %16847 = vmatmul.mubr.msk.bf16.gmra.mrb[8].mxu1 %vm527_vm3, %v17873_v36  ;;  %v1887_v36 = vsel %vm447_vm2, %v1882_v0, %v19313_v13  ;;  %v3786_v13 = vor.u32 %v3784_v40, %v19345_v58  ;;  %v1906_v40 = vor.u32 %v1904_v16, %v19361_v53  ;;  %v3799_v16 = vsel %vm447_vm2, %v3794_v41, %v3798_v59 }
  0xfa   : > { %16850 = vmatprep.mubr.msk.bf16.mxu1 %vm527_vm3, %v17876_v63  ;;  %v19481_v63 = vand.u32 %v4308_v50, %v18567_v11  ;;  %v3814_v1 = vrot.slane %v3812_v18, 1  ;;  %v3976_v18 = vsel %vm778_vm4, %v3973_v35, %v3975_v46 }
  0xfb   : > { %v3791_v31 = vsel %vm447_vm2, %v3786_v13, %v19366_v61  ;;  %v1911_v24 = vsel %vm447_vm2, %v1906_v40, %v19427_v19  ;;  %v2087_v61 = vrot.slane %v19208_v55, 1  ;;  %v3810_v55 = vor.u32 %v3808_v60, %v3806_v45 }
  0xfc   : > { %v2099_v13 = vrot.slane %v19445_v39, 1  ;;  %v17910_v39 = vld [vmem:[%s22637_s1] sm:$0x18]  }
  0xff   : > { %16689 = vmatmul.mubr.msk.bf16.gmra.mrb[12].mxu0 %vm527_vm3, %v17877_v26  ;;  %v1926_v26 = vrot.slane %v1924_v43, 1  ;;  %v19570_v43 = vand.u32 %v4184_v21, %v18567_v11 }
 0x100   : > { %16694 = vmatprep.mubr.msk.bf16.mxu0 %vm527_vm3, %v1871_v4  ;;  %v3802_v4 = vor.u32 %v3800_v7, %v3798_v59  ;;  %v3977_v7 = vrot.slane %v19259_v49, 1  ;;  %v2091_v59 = vrot.slane %v19283_v42, 1  ;;  %v4168_v49 = vld [vmem:[%s18575_s12 + $0x80] sm:$0xf]  ;;  %v19555_v42 = vld [vmem:[%s18575_s12 + $0x84] sm:$0xf] }
 0x101   : > { %16851 = vmatmul.mubr.msk.bf16.gmra.mrb[12].mxu1 %vm527_vm3, %v17878_v3  ;;  %v1914_v3 = vor.u32 %v1912_v52, %v19427_v19  ;;  %v2089_v19 = vrot.slane %v19244_v2, 1  ;;  %v3815_v2 = vsel %vm447_vm2, %v3810_v55, %v3814_v1  ;;  %v19598_v1 = vld [vmem:[%s18575_s12 + $0x90] sm:$0xff]  }
 0x102   : > { %16856 = vmatprep.mubr.msk.bf16.mxu1 %vm527_vm3, %v3759_v20  ;;  %v3981_v20 = vrot.slane %v19311_v5, 1  ;;  %v2088_v5 = vsel %vm778_vm4, %v2085_v34, %v2087_v61  ;;  %v3978_v10 = vsel %vm778_vm4, %v3975_v46, %v3977_v7  ;;  %v4250_v40 = vshrl.u32 %v19598_v1, 16 }
 0x103   : > { %v1919_v53 = vsel %vm447_vm2, %v1914_v3, %v1918_v9  ;;  %v2090_v50 = vsel %vm778_vm4, %v2087_v61, %v2089_v19  ;;  %v2092_v22 = vsel %vm778_vm4, %v2089_v19, %v2091_v59 }
 0x107   : > { %16695 = vmatmul.mubr.msk.bf16.vlgmr.msra.gmra.mrb[0].mxu0 %vm527_vm3, %v1879_v56  ;;  %v3983_v56 = vrot.slane %v19349_v8, 1  ;;  %v2094_v8 = vsel %vm778_vm4, %v2091_v59, %v2093_v12  ;;  %v19646_v12 = vld [vmem:[%s18575_s12 + $0xb8] sm:$0xff]  }
 0x108   : > { %16698 = vmatprep.mubr.msk.bf16.mxu0 %vm527_vm3, %v1887_v36  ;;  %16711 = vmatpush3.bf16.msra.mxu0 %v19398_v62  ;;  %v2079_v62 = vld [vmem:[%s18575_s12 + $0x18] sm:$0xe]  ;;  %v2097_v36 = vrot.slane %v19419_v47, 1  ;;  %v3980_v47 = vsel %vm778_vm4, %v3977_v7, %v3979_v28  ;;  %v4286_v21 = vshll.u32 %v19646_v12, 16 }
 0x109   : > { %16890 = vmatprep.subr.bf16.mxu0 %v19481_v63  ;;  %16857 = vmatmul.mubr.msk.bf16.vlgmr.msra.gmra.mrb[0].mxu1 %vm527_vm3, %v3767_v25  ;;  %v14531_v54 = vcombine.low %v2079_v62, %v19167_v33  ;;  %v3807_v33 = vsel %vm447_vm2, %v3802_v4, %v3806_v45  ;;  %v19584_v45 = vld [vmem:[%s18575_s12 + $0x88] sm:$0xff]  }
 0x10a   : > { %16860 = vmatprep.mubr.msk.bf16.mxu1 %vm527_vm3, %v3775_v6  ;;  %16873 = vmatpush3.bf16.msra.mxu1 %v19404_v48  ;;  %v3967_v48 = vld [vmem:[%s18575_s12 + $0x58] sm:$0xe]  ;;  %v3982_v6 = vsel %vm778_vm4, %v3979_v28, %v3981_v20  ;;  %v4242_v62 = vshrl.u32 %v19584_v45, 16  ;;  %v19630_v4 = vld [vmem:[%s18575_s12 + $0xa8] sm:$0xff]   ;;  %v19642_v28 = vld [vmem:[%s18575_s12 + $0xb0] sm:$0xff]  }
 0x10b   : > { %v14657_v58 = vcombine.low %v3967_v48, %v19174_v30  ;;  %v2084_v52 = vrot.slane %v14531_v54, 1  ;;  %v1922_v30 = vor.u32 %v1920_v38, %v1918_v9  ;;  %v19566_v38 = vcombine.low %v4168_v49, %v19555_v42 }
 0x10c   : > { %v4254_v48 = vshll.u32 %v19602_v32, 16 }
 0x10d   : > { %v3972_v27 = vrot.slane %v14657_v58, 1  ;;  %v1927_v0 = vsel %vm447_vm2, %v1922_v30, %v1926_v26  ;;  %v2086_v9 = vsel %vm778_vm4, %v2084_v52, %v2085_v34  ;;  %v4233_v25 = vshll.u32 %v19566_v38, 16  ;;  %v19626_v58 = vld [vmem:[%s18575_s12 + $0xa0] sm:$0xff]  }
 0x10e   : > { %v4231_v60 = vshrl.u32 %v19566_v38, 16  ;;  %v4238_v26 = vshll.u32 %v19584_v45, 16  ;;  %v4577_v52 = vrot.slane %v17910_v39, 3  ;;  %v4262_v61 = vshll.u32 %v19626_v58, 16 }
 0x10f   : > { %16699 = vmatmul.mubr.msk.bf16.gmra.mrb[4].mxu0 %vm527_vm3, %v1895_v17  ;;  %v3974_v14 = vsel %vm778_vm4, %v3972_v27, %v3973_v35  ;;  %v4235_v23 = vrot.slane %v4233_v25, 1  ;;  %v3984_v17 = vsel %vm778_vm4, %v3981_v20, %v3983_v56  ;;  %v4246_v35 = vshll.u32 %v19598_v1, 16 }
 0x110   : > { %16702 = vmatprep.mubr.msk.bf16.mxu0 %vm527_vm3, %v1903_v57  ;;  %v3987_v57 = vrot.slane %v19448_v29, 1  ;;  %v4240_v34 = vrot.slane %v4238_v26, 1  ;;  %v2100_v29 = vsel %vm778_vm4, %v2097_v36, %v2099_v13  ;;  %v4258_v27 = vshrl.u32 %v19602_v32, 16 }
 0x111   : > { %16861 = vmatmul.mubr.msk.bf16.gmra.mrb[4].mxu1 %vm527_vm3, %v3783_v44  ;;  %v4248_v54 = vrot.slane %v4246_v35, 1  ;;  %v4270_v30 = vshll.u32 %v19630_v4, 16  ;;  %v4603_v7 = vand.u32 %v4577_v52, %v18567_v11  ;;  %v4264_v59 = vrot.slane %v4262_v61, 1 }
 0x112   : > { %16864 = vmatprep.mubr.msk.bf16.mxu1 %vm527_vm3, %v3791_v31  ;;  %v4236_v31 = vor.u32 %v4235_v23, %v4231_v60  ;;  %v4290_v25 = vshrl.u32 %v19646_v12, 16  ;;  %v4564_v39 = vrot.slane %v19630_v4, 1 }
 0x114   : > { %v4241_v3 = vsel %vm447_vm2, %v4236_v31, %v4240_v34 }
 0x117   : > { %16703 = vmatmul.mubr.msk.bf16.gmra.mrb[8].mxu0 %vm527_vm3, %v1911_v24  ;;  %v4244_v24 = vor.u32 %v4242_v62, %v4240_v34  ;;  %v17919_v62 = vld [vmem:[%s22637_s1 + $0x4] ss:$0 sps:$4 sm:$0xcc]  }
 0x118   : > { %16706 = vmatprep.mubr.msk.bf16.mxu0 %vm527_vm3, %v1919_v53  ;;  %v4252_v53 = vor.u32 %v4250_v40, %v4248_v54  ;;  %v5057_v34 = vrot.slane %v17919_v62, 2  ;;  %v19784_v62 = vld [vmem:[%s18575_s12 + $0xc4] sm:$0xff]  }
 0x119   : > { %16865 = vmatmul.mubr.msk.bf16.gmra.mrb[8].mxu1 %vm527_vm3, %v3799_v16  ;;  %v4256_v16 = vrot.slane %v4254_v48, 1  ;;  %v4249_v46 = vsel %vm447_vm2, %v4244_v24, %v4248_v54  ;;  %v4562_v48 = vrot.slane %v19626_v58, 1 }
 0x11a   : > { %16868 = vmatprep.mubr.msk.bf16.mxu1 %vm527_vm3, %v3807_v33  ;;  %v4266_v33 = vshrl.u32 %v19626_v58, 16  ;;  %v5083_v40 = vand.u32 %v5057_v34, %v18567_v11 }
 0x11b   : > { %v4257_v19 = vsel %vm447_vm2, %v4252_v53, %v4256_v16  ;;  %v4260_v55 = vor.u32 %v4258_v27, %v4256_v16 }
 0x11c   : > { %v4268_v20 = vor.u32 %v4266_v33, %v4264_v59  ;;  %v22648_v33 = vmov 0.0  }
 0x11d   : > { %v4265_v49 = vsel %vm447_vm2, %v4260_v55, %v4264_v59  ;;  %v17913_v59 = vld [vmem:[%s18575_s12 + $0x8c] sm:$0xff]  }
 0x11f   : > { %16707 = vmatmul.mubr.msk.bf16.gmra.mrb[12].mxu0 %vm527_vm3, %v1927_v0  ;;  %v4272_v0 = vrot.slane %v4270_v30, 1 }
 0x120   : > { %16712 = vmatprep.mubr.msk.bf16.mxu0 %vm527_vm3, %v2086_v9  ;;  %v4274_v9 = vshrl.u32 %v19630_v4, 16 }
 0x121   : > { %16869 = vmatmul.mubr.msk.bf16.gmra.mrb[12].mxu1 %vm527_vm3, %v3815_v2  ;;  %v4278_v2 = vshll.u32 %v19642_v28, 16 }
 0x122   : > { %16874 = vmatprep.mubr.msk.bf16.mxu1 %vm527_vm3, %v3974_v14  ;;  %v4282_v14 = vshrl.u32 %v19642_v28, 16 }
 0x127   : > { %16713 = vmatmul.mubr.msk.bf16.vlgmr.msra.gmra.mrb[0].mxu0 %vm527_vm3, %v2088_v5  ;;  %v4273_v5 = vsel %vm447_vm2, %v4268_v20, %v4272_v0 }
 0x128   : > { %16716 = vmatprep.mubr.msk.bf16.mxu0 %vm527_vm3, %v2090_v50  ;;  %16891 = vmatpush3.bf16.msra.mxu0 %v19481_v63  ;;  %v3985_v63 = vrot.slane %v19436_v37, 1  ;;  %v2098_v37 = vsel %vm778_vm4, %v2095_v15, %v2097_v36  ;;  %v19656_v50 = vld [vmem:[%s18575_s12 + $0xc0] ss:$0 sps:$4 sm:$0x11]  }
 0x129   : > { %16908 = vmatprep.subr.bf16.mxu0 %v19570_v43  ;;  %16875 = vmatmul.mubr.msk.bf16.vlgmr.msra.gmra.mrb[0].mxu1 %vm527_vm3, %v3976_v18  ;;  %v4276_v18 = vor.u32 %v4274_v9, %v4272_v0  ;;  %v4570_v52 = vrot.slane %v19656_v50, 1  ;;  %v17914_v0 = vld [vmem:[%s18575_s12 + $0x94] sm:$0xff]   ;;  %v17915_v9 = vld [vmem:[%s18575_s12 + $0x9c] sm:$0xff]  }
 0x12a   : > { %16878 = vmatprep.mubr.msk.bf16.mxu1 %vm527_vm3, %v3978_v10  ;;  %v3986_v44 = vsel %vm778_vm4, %v3983_v56, %v3985_v63  ;;  %v3988_v41 = vsel %vm778_vm4, %v3985_v63, %v3987_v57  ;;  %v4288_v56 = vrot.slane %v4286_v21, 1  ;;  %v17912_v10 = vld [vmem:[%s22637_s1 + $0x4] ss:$0 sps:$4 sm:$0x33]   ;;  %v4556_v57 = vrot.slane %v19584_v45, 1 }
 0x12b   : > { %v4781_v60 = vshll.u32 %v17912_v10, 16  ;;  %v4779_v23 = vshrl.u32 %v17912_v10, 16 }
 0x12d   : > { %v4783_v26 = vrot.slane %v4781_v60, 1  ;;  %v17918_v60 = vld [vmem:[%s18575_s12 + $0xb4] sm:$0xff]  }
 0x12f   : > { %16717 = vmatmul.mubr.msk.bf16.gmra.mrb[4].mxu0 %vm527_vm3, %v2092_v22  ;;  %v4294_v22 = vshll.u32 %v19656_v50, 16  ;;  %v19752_v50 = vld [vmem:[%s18575_s12 + $0x9c] sm:$0xff]  }
 0x130   : > { %16720 = vmatprep.mubr.msk.bf16.mxu0 %vm527_vm3, %v2094_v8  ;;  %v5002_v10 = vshll.u32 %v19752_v50, 16 }
 0x131   : > { %16879 = vmatmul.mubr.msk.bf16.gmra.mrb[4].mxu1 %vm527_vm3, %v3980_v47  ;;  %v4292_v47 = vor.u32 %v4290_v25, %v4288_v56  ;;  %v4296_v63 = vrot.slane %v4294_v22, 1  ;;  %v19763_v25 = vld [vmem:[%s18575_s12 + $0xac] sm:$0xff]  }
 0x132   : > { %16882 = vmatprep.mubr.msk.bf16.mxu1 %vm527_vm3, %v3982_v6 }
 0x133   : > { %v4297_v6 = vsel %vm447_vm2, %v4292_v47, %v4296_v63  ;;  %v19772_v63 = vld [vmem:[%s18575_s12 + $0xbc] sm:$0xff]  }
 0x137   : > { %16721 = vmatmul.mubr.msk.bf16.gmra.mrb[8].mxu0 %vm527_vm3, %v2096_v51  ;;  %v4784_v51 = vor.u32 %v4783_v26, %v4779_v23  ;;  %v17920_v26 = vld [vmem:[%s18575_s12 + $0xbc] sm:$0xff]  }
 0x138   : > { %16724 = vmatprep.mubr.msk.bf16.mxu0 %vm527_vm3, %v2098_v37 }
 0x139   : > { %16883 = vmatmul.mubr.msk.bf16.gmra.mrb[8].mxu1 %vm527_vm3, %v3984_v17  ;;  %v4810_v37 = vand.u32 %v4784_v51, %v18567_v11  ;;  %v4549_v17 = vld [vmem:[%s18575_s12 + $0x80] sm:$0xe]  ;;  %v5004_v51 = vrot.slane %v5002_v10, 1 }
 0x13a   : > { %16886 = vmatprep.mubr.msk.bf16.mxu1 %vm527_vm3, %v3986_v44  ;;  %v14693_v13 = vcombine.low %v4549_v17, %v19555_v42  ;;  %v4558_v44 = vrot.slane %v19598_v1, 1  ;;  %v19778_v17 = vld [vmem:[%s18575_s12 + $0xcc] ss:$0 sps:$4 sm:$0x11]  }
 0x13c   : > { %v4559_v35 = vsel %vm778_vm4, %v4556_v57, %v4558_v44 }
 0x13f   : > { %16725 = vmatmul.mubr.msk.bf16.gmra.mrb[12].mxu0 %vm527_vm3, %v2100_v29  ;;  %v4565_v29 = vsel %vm778_vm4, %v4562_v48, %v4564_v39 }
 0x140   : > { %16892 = vmatprep.mubr.msk.bf16.mxu0 %vm527_vm3, %v4241_v3  ;;  %v4566_v3 = vrot.slane %v19642_v28, 1 }
 0x141   : > { %16887 = vmatmul.mubr.msk.bf16.gmra.mrb[12].mxu1 %vm527_vm3, %v3988_v41  ;;  %v4568_v41 = vrot.slane %v19646_v12, 1 }
 0x142   : > { %v4567_v53 = vsel %vm778_vm4, %v4564_v39, %v4566_v3 }
 0x143   : > { %v4569_v16 = vsel %vm778_vm4, %v4566_v3, %v4568_v41 }
 0x147   : > { %16893 = vmatmul.mubr.msk.bf16.vlgmr.msra.gmra.mrb[16].mxu0 %vm527_vm3, %v4249_v46 }
 0x148   : > { %16896 = vmatprep.mubr.msk.bf16.mxu0 %vm527_vm3, %v4257_v19  ;;  %16909 = vmatpush3.bf16.msra.mxu0 %v19570_v43  ;;  %v4280_v43 = vrot.slane %v4278_v2, 1  ;;  %v4925_v2 = vld [vmem:[%s18575_s12 + $0x8c] sm:$0xf] }
 0x149   : > { %16926 = vmatprep.subr.bf16.mxu0 %v4603_v7 }
 0x14a   : > { %v4284_v15 = vor.u32 %v4282_v14, %v4280_v43  ;;  %v4281_v36 = vsel %vm447_vm2, %v4276_v18, %v4280_v43  ;;  %v17916_v43 = vld [vmem:[%s18575_s12 + $0xa4] sm:$0xff]   ;;  %v17917_v18 = vld [vmem:[%s18575_s12 + $0xac] sm:$0xff]  }
 0x14c   : > { %v4289_v8 = vsel %vm447_vm2, %v4284_v15, %v4288_v56 }
 0x14f   : > { %16897 = vmatmul.mubr.msk.bf16.gmra.mrb[20].mxu0 %vm527_vm3, %v4265_v49  ;;  %v4926_v49 = vld [vmem:[%s18575_s12 + $0x90] sm:$0xf] }
 0x150   : > { %16900 = vmatprep.mubr.msk.bf16.mxu0 %vm527_vm3, %v4273_v5  ;;  %v14720_v21 = vcombine.low %v4925_v2, %v4926_v49  ;;  %v19748_v5 = vld [vmem:[%s18575_s12 + $0x94] sm:$0xff]   ;;  %v17940_v2 = vld [vmem:[%s22637_s1 + $0x8] ss:$0 sps:$4 sm:$0xcc]  }
 0x151   : > { %v4994_v56 = vshll.u32 %v19748_v5, 16  ;;  %v4998_v22 = vshrl.u32 %v19748_v5, 16 }
 0x152   : > { %v4989_v15 = vshll.u32 %v14720_v21, 16  ;;  %v4987_v47 = vshrl.u32 %v14720_v21, 16 }
 0x153   : > { %v4996_v23 = vrot.slane %v4994_v56, 1  ;;  %v5711_v56 = vshll.u32 %v17940_v2, 16 }
 0x157   : > { %16901 = vmatmul.mubr.msk.bf16.gmra.mrb[24].mxu0 %vm527_vm3, %v4281_v36  ;;  %v19760_v36 = vld [vmem:[%s18575_s12 + $0xa4] sm:$0xff]  }
 0x158   : > { %16904 = vmatprep.mubr.msk.bf16.mxu0 %vm527_vm3, %v4289_v8  ;;  %v19768_v8 = vld [vmem:[%s18575_s12 + $0xb4] sm:$0xff]  }
 0x15f   : > { %16905 = vmatmul.mubr.msk.bf16.gmra.mrb[28].mxu0 %vm527_vm3, %v4297_v6  ;;  %v4991_v6 = vrot.slane %v4989_v15, 1  ;;  %v5708_v15 = vshrl.u32 %v17940_v2, 16 }
 0x160   : > { %16910 = vmatprep.mubr.msk.bf16.mxu0 %vm527_vm3, %v19566_v38  ;;  %v4555_v38 = vrot.slane %v14693_v13, 1  ;;  %v5018_v13 = vshll.u32 %v19763_v25, 16 }
 0x161   : > { %v4992_v39 = vor.u32 %v4991_v6, %v4987_v47  ;;  %v5710_v47 = vrot.slane %v5708_v15, 2  ;;  %v5575_v6 = vld [vmem:[%s18575_s12 + $0x98] sm:$0xf]  ;;  %v5856_v15 = vld [vmem:[%s22637_s1 + $0xc] sm:$0x3] }
 0x162   : > { %v4557_v42 = vsel %vm778_vm4, %v4555_v38, %v4556_v57  ;;  %v5026_v38 = vshll.u32 %v19768_v8, 16  ;;  %v5034_v57 = vshll.u32 %v19772_v63, 16  ;;  %v5020_v34 = vrot.slane %v5018_v13, 1 }
 0x164   : > { %v5036_v3 = vrot.slane %v5034_v57, 1 }
 0x167   : > { %16911 = vmatmul.mubr.msk.bf16.vlgmr.msra.gmra.mrb[16].mxu0 %vm527_vm3, %v19584_v45  ;;  %v4560_v45 = vrot.slane %v19602_v32, 1 }
 0x168   : > { %16914 = vmatprep.mubr.msk.bf16.mxu0 %vm527_vm3, %v19598_v1  ;;  %16927 = vmatpush3.bf16.msra.mxu0 %v4603_v7  ;;  %v4571_v7 = vsel %vm778_vm4, %v4568_v41, %v4570_v52  ;;  %v17933_v41 = vld [vmem:[%s22637_s1 + $0x8] ss:$0 sps:$4 sm:$0x66]   ;;  %v4997_v52 = vsel %vm447_vm2, %v4992_v39, %v4996_v23 }
 0x169   : > { %16944 = vmatprep.subr.bf16.mxu0 %v4810_v37  ;;  %v4561_v31 = vsel %vm778_vm4, %v4558_v44, %v4560_v45  ;;  %v4563_v1 = vsel %vm778_vm4, %v4560_v45, %v4562_v48  ;;  %v5014_v45 = vshrl.u32 %v19760_v36, 16  ;;  %v17921_v48 = vld [vmem:[%s18575_s12 + $0xc4] sm:$0xff]  }
 0x16f   : > { %16915 = vmatmul.mubr.msk.bf16.gmra.mrb[20].mxu0 %vm527_vm3, %v19602_v32  ;;  %v6068_v32 = vlaneseq }
 0x170   : > { %16918 = vmatprep.mubr.msk.bf16.mxu0 %vm527_vm3, %v19626_v58  ;;  %v17929_v58 = vld [vmem:[%s22637_s1 + $0x4] sm:$0x18]  }
 0x171   : > { %v19711_v54 = vshrl.u32 %v6068_v32, 7  ;;  %v6082_v24 = vand.u32 127, %v6068_v32  ;;  %v5227_v27 = vshrl.u32 %v17929_v58, 16  ;;  %v5230_v61 = vshll.u32 %v17929_v58, 16 }
 0x172   : > { %v5030_v32 = vshrl.u32 %v19768_v8, 16  ;;  %v5038_v58 = vshrl.u32 %v19772_v63, 16 }
 0x173   : > { %v19723_v46 = vadd.s32 8, %v19711_v54  ;;  %v5229_v55 = vrot.slane %v5227_v27, 3  ;;  %vm6072_vm9 = vcmp.ge.s32.totalorder %v19711_v54, 2 }
 0x175   : > { %v6084_v19 = vmul.u32 2, %v19723_v46  ;;  %vm9396_vm15 = vcmp.lt.s32.totalorder %v19723_v46, 11 }
 0x177   : > { %16919 = vmatmul.mubr.msk.bf16.gmra.mrb[24].mxu0 %vm527_vm3, %v19630_v4  ;;  %v6083_v4 = vmul.u32 2, %v19711_v54  ;;  %vm19731_vm7 = vcmp.eq.s32.totalorder %v6082_v24, %v6084_v19  ;;  %v5207_v19 = vrot.slane %v19752_v50, 1 }
 0x178   : > { %16922 = vmatprep.mubr.msk.bf16.mxu0 %vm527_vm3, %v19642_v28 }
 0x179   : > { %vm6085_vm5 = vcmp.eq.s32.totalorder %v6082_v24, %v6083_v4  ;;  %v5046_v24 = vshrl.u32 %v19784_v62, 16 }
 0x17a   : > { %v19726_v30 = vsel %vm6085_vm5, 1.0, %v22648_v33  ;;  %vm9419_vm5 = vcmask 89088  }
 0x17b   : > { %17058 = vmatprep.mubr.msk.f32.mxu1 %vm6122_vm6, %v19726_v30 }
 0x17f   : > { %16923 = vmatmul.mubr.msk.bf16.gmra.mrb[28].mxu0 %vm527_vm3, %v19646_v12  ;;  %v5232_v12 = vrot.slane %v5230_v61, 4  ;;  %v5205_v61 = vrot.slane %v19748_v5, 1 }
 0x180   : > { %16928 = vmatprep.mubr.msk.bf16.mxu0 %vm527_vm3, %v4557_v42  ;;  %v5006_v42 = vshrl.u32 %v19752_v50, 16  ;;  %v5217_v50 = vrot.slane %v19784_v62, 1 }
 0x181   : > { %v5233_v20 = vor.u32 %v5232_v12, %v5229_v55  ;;  %v5211_v55 = vrot.slane %v19763_v25, 1  ;;  %v5434_v12 = vrot.slane %v17933_v41, 1 }
 0x183   : > { %v19744_v14 = vand.u32 %v5233_v20, %v18567_v11  ;;  %v5008_v20 = vor.u32 %v5006_v42, %v5004_v51  ;;  %v5460_v5 = vand.u32 %v5434_v12, %v18567_v11 }
 0x187   : > { %16929 = vmatmul.mubr.msk.bf16.vlgmr.msra.gmra.mrb[16].mxu0 %vm527_vm3, %v4559_v35  ;;  %v5042_v35 = vshll.u32 %v19784_v62, 16 }
 0x188   : > { %16932 = vmatprep.mubr.msk.bf16.mxu0 %vm527_vm3, %v4561_v31  ;;  %16945 = vmatpush3.bf16.msra.mxu0 %v4810_v37  ;;  %v5010_v37 = vshll.u32 %v19760_v36, 16  ;;  %v5050_v31 = vshll.u32 %v19778_v17, 16 }
 0x189   : > { %16962 = vmatprep.subr.bf16.mxu0 %v5083_v40 }
 0x18a   : > { %v5012_v44 = vrot.slane %v5010_v37, 1 }
 0x18c   : > { %v5013_v21 = vsel %vm447_vm2, %v5008_v20, %v5012_v44 }
 0x18f   : > { %16933 = vmatmul.mubr.msk.bf16.gmra.mrb[20].mxu0 %vm527_vm3, %v4563_v1  ;;  %v5022_v1 = vshrl.u32 %v19763_v25, 16 }
 0x190   : > { %16936 = vmatprep.mubr.msk.bf16.mxu0 %vm527_vm3, %v4565_v29  ;;  %v5028_v29 = vrot.slane %v5026_v38, 1 }
 0x191   : > { %v5024_v10 = vor.u32 %v5022_v1, %v5020_v34 }
 0x193   : > { %v5029_v25 = vsel %vm447_vm2, %v5024_v10, %v5028_v29 }
 0x197   : > { %16937 = vmatmul.mubr.msk.bf16.gmra.mrb[24].mxu0 %vm527_vm3, %v4567_v53  ;;  %v5044_v53 = vrot.slane %v5042_v35, 1 }
 0x198   : > { %16940 = vmatprep.mubr.msk.bf16.mxu0 %vm527_vm3, %v4569_v16  ;;  %v5052_v16 = vrot.slane %v5050_v31, 1  ;;  %v5208_v31 = vsel %vm778_vm4, %v5205_v61, %v5207_v19 }
 0x199   : > { %v5048_v57 = vor.u32 %v5046_v24, %v5044_v53 }
 0x19f   : > { %16941 = vmatmul.mubr.msk.bf16.gmra.mrb[28].mxu0 %vm527_vm3, %v4571_v7  ;;  %v5209_v7 = vrot.slane %v19760_v36, 1 }
 0x1a0   : > { %16946 = vmatprep.mubr.msk.bf16.mxu0 %vm527_vm3, %v17913_v59  ;;  %v5000_v59 = vor.u32 %v4998_v22, %v4996_v23  ;;  %v5219_v22 = vrot.slane %v19778_v17, 1  ;;  %v19835_v23 = vld [vmem:[%s18575_s12 + $0x9c] sm:$0xf] }
 0x1a1   : > { %v19846_v28 = vcombine.low %v5575_v6, %v19835_v23  ;;  %v5212_v39 = vsel %vm778_vm4, %v5209_v7, %v5211_v55 }
 0x1a3   : > { %v5637_v42 = vshrl.u32 %v19846_v28, 16  ;;  %v5639_v24 = vshll.u32 %v19846_v28, 16 }
 0x1a5   : > { %v5641_v2 = vrot.slane %v5639_v24, 1 }
 0x1a7   : > { %16947 = vmatmul.mubr.msk.bf16.vlgmr.msra.gmra.mrb[16].mxu0 %vm527_vm3, %v17914_v0  ;;  %v5213_v0 = vrot.slane %v19768_v8, 1  ;;  %v19830_v8 = vsel %vm19731_vm7, 1.0, %v22648_v33  ;;  %vm9994_vm7 = vsmask.f32 4358 }
 0x1a8   : > { %16950 = vmatprep.mubr.msk.bf16.mxu0 %vm527_vm3, %v17915_v9  ;;  %16963 = vmatpush3.bf16.msra.mxu0 %v5083_v40  ;;  %v5198_v40 = vld [vmem:[%s18575_s12 + $0x8c] sm:$0xe]  ;;  %v5215_v9 = vrot.slane %v19772_v63, 1  ;;  %v5713_v63 = vrot.slane %v5711_v56, 3 }
 0x1a9   : > { %16980 = vmatprep.subr.bf16.mxu0 %v19744_v14  ;;  %v14738_v4 = vcombine.low %v5198_v40, %v4926_v49  ;;  %v5005_v49 = vsel %vm447_vm2, %v5000_v59, %v5004_v51  ;;  %v19841_v51 = vld [vmem:[%s18575_s12 + $0xa8] sm:$0xff]   ;;  %v5210_v40 = vsel %vm778_vm4, %v5207_v19, %v5209_v7  ;;  %v5214_v1 = vsel %vm778_vm4, %v5211_v55, %v5213_v0 }
 0x1aa   : > { %v5714_v35 = vor.u32 %v5713_v63, %v5710_v47 }
 0x1ab   : > { %v5204_v27 = vrot.slane %v14738_v4, 1 }
 0x1af   : > { %16951 = vmatmul.mubr.msk.bf16.gmra.mrb[20].mxu0 %vm527_vm3, %v17916_v43  ;;  %v19819_v43 = vadd.s32 16, %v19711_v54  ;;  %v18241_v54 = vld [vmem:[%s22645_s9 + $0x40] sm:$0xff]  }
 0x1b0   : > { %16954 = vmatprep.mubr.msk.bf16.mxu0 %vm527_vm3, %v17917_v18  ;;  %v5016_v18 = vor.u32 %v5014_v45, %v5012_v44  ;;  %v5652_v44 = vshll.u32 %v19841_v51, 16  ;;  %v5053_v45 = vsel %vm447_vm2, %v5048_v57, %v5052_v16 }
 0x1b1   : > { %vm6077_vm8 = vcmp.lt.s32.totalorder %v19819_v43, 18 }
 0x1b2   : > { %v5021_v36 = vsel %vm447_vm2, %v5016_v18, %v5020_v34  ;;  %v5206_v34 = vsel %vm778_vm4, %v5204_v27, %v5205_v61  ;;  %v5220_v61 = vsel %vm778_vm4, %v5217_v50, %v5219_v22  ;;  %v19894_v19 = vrot.slane %v5652_v44, 1 }
 0x1b7   : > { %16955 = vmatmul.mubr.msk.bf16.gmra.mrb[24].mxu0 %vm527_vm3, %v17918_v60  ;;  %v5040_v60 = vor.u32 %v5038_v58, %v5036_v3  ;;  %v17934_v58 = vld [vmem:[%s18575_s12 + $0x98] sm:$0xff]  }
 0x1b8   : > { %16958 = vmatprep.mubr.msk.bf16.mxu0 %vm527_vm3, %v17920_v26  ;;  %v19838_v26 = vld [vmem:[%s18575_s12 + $0xa0] sm:$0xff]  }
 0x1b9   : > { %v5045_v17 = vsel %vm447_vm2, %v5040_v60, %v5044_v53  ;;  %v5644_v13 = vshll.u32 %v19838_v26, 16  ;;  %v5648_v38 = vshrl.u32 %v19838_v26, 16  ;;  %v17936_v60 = vld [vmem:[%s18575_s12 + $0xa8] sm:$0xff]  }
 0x1bb   : > { %v19888_v16 = vrot.slane %v5644_v13, 1 }
 0x1bd   : > { %v5650_v18 = vor.u32 %v5648_v38, %v19888_v16 }
 0x1bf   : > { %16959 = vmatmul.mubr.msk.bf16.gmra.mrb[28].mxu0 %vm527_vm3, %v17921_v48  ;;  %v19861_v48 = vand.u32 %v5714_v35, %v18567_v11  ;;  %v19935_v35 = vld [vmem:[%s18575_s12 + $0xb0] sm:$0xff]  }
 0x1c0   : > { %16964 = vmatprep.mubr.msk.bf16.mxu0 %vm527_vm3, %v4997_v52 }
 0x1c7   : > { %16965 = vmatmul.mubr.msk.bf16.vlgmr.msra.gmra.mrb[16].mxu0 %vm527_vm3, %v5005_v49 }
 0x1c8   : > { %16968 = vmatprep.mubr.msk.bf16.mxu0 %vm527_vm3, %v5013_v21  ;;  %16981 = vmatpush3.bf16.msra.mxu0 %v19744_v14  ;;  %v5032_v14 = vor.u32 %v5030_v32, %v5028_v29  ;;  %v5216_v32 = vsel %vm778_vm4, %v5213_v0, %v5215_v9  ;;  %v5218_v29 = vsel %vm778_vm4, %v5215_v9, %v5217_v50 }
 0x1c9   : > { %16998 = vmatprep.subr.bf16.mxu0 %v5460_v5 }
 0x1ca   : > { %v5037_v37 = vsel %vm447_vm2, %v5032_v14, %v5036_v3  ;;  %v19879_v3 = vld [vmem:[%s22638_s2] ss:$0 sm:$0xff] }
 0x1cb   : > { %v17935_v14 = vld [vmem:[%s18575_s12 + $0xa0] sm:$0xff]  }
 0x1cf   : > { %16969 = vmatmul.mubr.msk.bf16.gmra.mrb[20].mxu0 %vm527_vm3, %v5021_v36 }
 0x1d0   : > { %16972 = vmatprep.mubr.msk.bf16.mxu0 %vm527_vm3, %v5029_v25 }
 0x1d7   : > { %16973 = vmatmul.mubr.msk.bf16.gmra.mrb[24].mxu0 %vm527_vm3, %v5037_v37 }
 0x1d8   : > { %16976 = vmatprep.mubr.msk.bf16.mxu0 %vm527_vm3, %v5045_v17 }
 0x1df   : > { %16977 = vmatmul.mubr.msk.bf16.gmra.mrb[28].mxu0 %vm527_vm3, %v5053_v45 }
 0x1e0   : > { %16982 = vmatprep.mubr.msk.bf16.mxu0 %vm527_vm3, %v5206_v34  ;;  %v5642_v34 = vor.u32 %v5641_v2, %v5637_v42  ;;  %v5660_v2 = vshll.u32 %v19935_v35, 16 }
 0x1e7   : > { %16983 = vmatmul.mubr.msk.bf16.vlgmr.msra.gmra.mrb[16].mxu0 %vm527_vm3, %v5208_v31 }
 0x1e8   : > { %16986 = vmatprep.mubr.msk.bf16.mxu0 %vm527_vm3, %v5210_v40  ;;  %16999 = vmatpush3.bf16.msra.mxu0 %v5460_v5 }
 0x1e9   : > { %17016 = vmatprep.subr.bf16.mxu0 %v19861_v48 }
 0x1ef   : > { %16987 = vmatmul.mubr.msk.bf16.gmra.mrb[20].mxu0 %vm527_vm3, %v5212_v39 }
 0x1f0   : > { %16990 = vmatprep.mubr.msk.bf16.mxu0 %vm527_vm3, %v5214_v1  ;;  %v19941_v1 = vsel %vm447_vm2, %v5650_v18, %v19894_v19 }
 0x1f7   : > { %16991 = vmatmul.mubr.msk.bf16.gmra.mrb[24].mxu0 %vm527_vm3, %v5216_v32  ;;  %v19944_v32 = vld [vmem:[%s18575_s12 + $0xb8] sm:$0xff]  }
 0x1f8   : > { %16994 = vmatprep.mubr.msk.bf16.mxu0 %vm527_vm3, %v5218_v29  ;;  %v19947_v29 = vand.u32 %v5856_v15, %v18567_v11  ;;  %v5656_v11 = vshrl.u32 %v19841_v51, 16  ;;  %v17937_v15 = vld [vmem:[%s18575_s12 + $0xb0] sm:$0xff]  }
 0x1fa   : > { %v16714_v41 = vpop.f32.mrb[0].mxu0 }
 0x1fb   : > { %v19886_v4 = vadd.f32 %v16714_v41, %v19879_v3  ;;  %v2162_v53 = vpop.f32.mrb[1].mxu0 }
 0x1fc   : > { %v2248_v52 = vadd.f32 %v19879_v3, %v2162_v53  ;;  %v16715_v27 = vpop.f32.mrb[2].mxu0  ;;  %v16876_v59 = vpop.f32.mrb[0].mxu1 }
 0x1fd   : > { %v2251_v7 = vadd.f32 %v16715_v27, %v19879_v3  ;;  %v2165_v55 = vpop.f32.mrb[3].mxu0  ;;  %v19900_v12 = vsel %vm6077_vm8, %v19886_v4, -3.4028235e+38  ;;  %v19903_v20 = vadd.f32 %v16876_v59, %v19879_v3  ;;  %v19906_v9 = vpop.f32.mrb[1].mxu1 }
 0x1fe   : > { %v2249_v0 = vadd.f32 %v19879_v3, %v2165_v55  ;;  %v6092_v62 = vsel %vm6072_vm9, %v2248_v52, -3.4028235e+38  ;;  %v16877_v49 = vpop.f32.mrb[2].mxu1  ;;  %v6102_v5 = vrot.slane %v19900_v12, 1  ;;  %v6114_v22 = vrot.slane %v19900_v12, 2 }
 0x1ff   : > { %16995 = vmatmul.mubr.msk.bf16.gmra.mrb[28].mxu0 %vm527_vm3, %v5220_v61  ;;  %v6099_v21 = vrot.slane %v6092_v62, 1  ;;  %v6111_v50 = vrot.slane %v6092_v62, 2  ;;  %v19917_v56 = vadd.f32 %v16877_v49, %v19879_v3  ;;  %v19919_v10 = vpop.f32.mrb[3].mxu1  ;;  %v6210_v47 = vmax.f32 %v2248_v52, %v2251_v7 }
 0x200   : > { %17000 = vmatprep.mubr.msk.bf16.mxu0 %vm527_vm3, %v17934_v58  ;;  %v6100_v36 = vrot.slane %v2249_v0, 1  ;;  %v6112_v25 = vrot.slane %v2249_v0, 2  ;;  %v6109_v39 = vmax.f32 %v19900_v12, %v6102_v5 }
 0x202   : > { %v16718_v63 = vpop.f32.mrb[4].mxu0  ;;  %v6101_v6 = vsel %vm778_vm4, %v6099_v21, %v6100_v36  ;;  %v6103_v37 = vsel %vm778_vm4, %v6100_v36, %v6102_v5  ;;  %v6113_v17 = vsel %vm6110_vm10, %v6111_v50, %v6112_v25  ;;  %v6115_v13 = vsel %vm6110_vm10, %v6112_v25, %v6114_v22 }
 0x203   : > { %v19930_v38 = vadd.f32 %v16718_v63, %v19879_v3  ;;  %v2178_v57 = vpop.f32.mrb[5].mxu0  ;;  %v6107_v44 = vmax.f32 %v6092_v62, %v6101_v6  ;;  %v6108_v45 = vmax.f32 %v2249_v0, %v6103_v37  ;;  %v5668_v50 = vshll.u32 %v19944_v32, 16 }
 0x204   : > { %v2252_v31 = vadd.f32 %v19879_v3, %v2178_v57  ;;  %v16719_v40 = vpop.f32.mrb[6].mxu0  ;;  %v16880_v41 = vpop.f32.mrb[4].mxu1  ;;  %v6121_v36 = vmax.f32 %v6109_v39, %v6114_v22  ;;  %v17938_v22 = vld [vmem:[%s18575_s12 + $0xb8] sm:$0xff]   ;;  %v5664_v39 = vshrl.u32 %v19935_v35, 16 }
 0x205   : > { %v19950_v28 = vadd.f32 %v16719_v40, %v19879_v3  ;;  %v2181_v42 = vpop.f32.mrb[7].mxu0  ;;  %v6119_v58 = vmax.f32 %v6107_v44, %v6113_v17  ;;  %v6120_v24 = vmax.f32 %v6108_v45, %v6115_v13  ;;  %v6216_v53 = vmax.f32 %v6210_v47, %v19930_v38  ;;  %v4066_v27 = vpop.f32.mrb[5].mxu1 }
 0x206   : > { %v19954_v52 = vadd.f32 %v16880_v41, %v19879_v3  ;;  %v2253_v61 = vadd.f32 %v19879_v3, %v2181_v42  ;;  %v6211_v7 = vmax.f32 %v2249_v0, %v2252_v31  ;;  %v19959_v59 = vadd.f32 %v19879_v3, %v4066_v27  ;;  %v16881_v55 = vpop.f32.mrb[6].mxu1 }
 0x207   : > { %17001 = vmatmul.mubr.msk.bf16.vlgmr.msra.gmra.mrb[16].mxu0 %vm527_vm3, %v17935_v14  ;;  %v17303_v12 = vpack.c.bf16 %v6120_v24, %v6119_v58  ;;  %v6219_v62 = vsel %vm6072_vm9, %v6216_v53, -3.4028235e+38  ;;  %v4143_v49 = vadd.f32 %v16881_v55, %v19879_v3  ;;  %v4069_v21 = vpop.f32.mrb[7].mxu1  ;;  %v19988_v17 = vsel %vm447_vm2, %v5642_v34, %v19888_v16 }
 0x208   : > { %17004 = vmatprep.mubr.msk.bf16.mxu0 %vm527_vm3, %v17936_v60  ;;  %17017 = vmatpush3.bf16.msra.mxu0 %v19861_v48  ;;  %v6212_v0 = vmax.f32 %v19886_v4, %v2253_v61  ;;  %v19970_v5 = vmax.f32 %v6211_v7, %v19950_v28  ;;  %v4141_v18 = vadd.f32 %v19879_v3, %v4069_v21  ;;  %v6225_v25 = vrot.slane %v6219_v62, 1 }
 0x209   : > { %17304 = vmatprep.subr.bf16.mxu1 %v17303_v12  ;;  %v6565_v14 = vmax.f32 %v19917_v56, %v19954_v52  ;;  %17034 = vmatprep.subr.bf16.mxu0 %v19947_v29  ;;  %v6236_v47 = vrot.slane %v6219_v62, 2  ;;  %v6566_v60 = vmax.f32 %v19959_v59, %v4143_v49  ;;  %v19991_v13 = vor.u32 %v5656_v11, %v19894_v19  ;;  %v20011_v11 = vld [vmem:[%s18575_s12 + $0xc0] sm:$0xff]  }
 0x20a   : > { %v16722_v48 = vpop.f32.mrb[8].mxu0  ;;  %17306 = vmatpush3.bf16.msra.mxu1 %v17303_v12  ;;  %v6226_v4 = vrot.slane %v19970_v5, 1  ;;  %v6237_v63 = vrot.slane %v19970_v5, 2  ;;  %v6564_v57 = vmax.f32 %v19903_v20, %v4141_v18  ;;  %v20001_v58 = vrot.slane %v5660_v2, 1 }
 0x20b   : > { %v19982_v6 = vadd.f32 %v16722_v48, %v19879_v3  ;;  %v2194_v37 = vpop.f32.mrb[9].mxu0  ;;  %17056 = vmatprep.subr.msk.mxu1 %vm552_vm0, %v6121_v36  ;;  %v20008_v7 = vrot.slane %v5668_v50, 1  ;;  %v5672_v49 = vshrl.u32 %v19944_v32, 16 }
 0x20c   : > { %v2256_v44 = vadd.f32 %v19879_v3, %v2194_v37  ;;  %v16723_v45 = vpop.f32.mrb[10].mxu0  ;;  %v6227_v31 = vsel %vm778_vm4, %v6225_v25, %v6226_v4  ;;  %v6238_v40 = vsel %vm6110_vm10, %v6236_v47, %v6237_v63  ;;  %v16884_v41 = vpop.f32.mrb[8].mxu1  ;;  %v20038_v37 = vadd.f32 %v19879_v3, %v19906_v9 }
 0x20d   : > { %v2259_v42 = vadd.f32 %v16723_v45, %v19879_v3  ;;  %v2197_v16 = vpop.f32.mrb[11].mxu0  ;;  %v6233_v34 = vmax.f32 %v6219_v62, %v6227_v31  ;;  %v6329_v19 = vmax.f32 %v19950_v28, %v19982_v6  ;;  %v20004_v24 = vadd.f32 %v16884_v41, %v19879_v3  ;;  %v4082_v53 = vpop.f32.mrb[9].mxu1 }
 0x20e   : > { %v2257_v27 = vadd.f32 %v19879_v3, %v2197_v16  ;;  %17057 = vmatpush3.msk.msra.mxu1 %vm552_vm0, %v6121_v36  ;;  %v6218_v61 = vmax.f32 %v6212_v0, %v2256_v44  ;;  %v20014_v55 = vadd.f32 %v19879_v3, %v4082_v53  ;;  %v16885_v12 = vpop.f32.mrb[10].mxu1 }
 0x20f   : > { %17005 = vmatmul.mubr.msk.bf16.gmra.mrb[20].mxu0 %vm527_vm3, %v17937_v15  ;;  %v6244_v62 = vmax.f32 %v6233_v34, %v6238_v40  ;;  %17059 = vmatmul.mubr.msk.f32.vlgmr.msra.gmra.mrb[16].mxu1 %vm6122_vm6, %v19830_v8  ;;  %v6330_v2 = vmax.f32 %v2256_v44, %v2259_v42  ;;  %v20021_v21 = vadd.f32 %v16885_v12, %v19879_v3  ;;  %v4085_v0 = vpop.f32.mrb[11].mxu1  ;;  %v17939_v40 = vld [vmem:[%s18575_s12 + $0xc0] sm:$0xff]   ;;  %v17941_v34 = vld [vmem:[%s18575_s12 + $0xc8] sm:$0xff]  }
 0x210   : > { %17008 = vmatprep.mubr.msk.bf16.mxu0 %vm527_vm3, %v17938_v22  ;;  %v6221_v50 = vsel %vm6077_vm8, %v6218_v61, -3.4028235e+38  ;;  %17067 = vmatprep.mubr.msk.f32.mxu1 %vm6122_vm6, %v19726_v30  ;;  %v6328_v18 = vmax.f32 %v19930_v38, %v2257_v27  ;;  %v20030_v15 = vmax.f32 %v6566_v60, %v20004_v24  ;;  %v20033_v36 = vadd.f32 %v19879_v3, %v4085_v0 }
 0x211   : > { %v6228_v25 = vrot.slane %v6221_v50, 1  ;;  %v6239_v48 = vrot.slane %v6221_v50, 2  ;;  %v6570_v47 = vmax.f32 %v6564_v57, %v20014_v55  ;;  %v4137_v22 = vadd.f32 %v19879_v3, %v19919_v10 }
 0x212   : > { %v16726_v44 = vpop.f32.mrb[12].mxu0  ;;  %v5676_v38 = vshll.u32 %v20011_v11, 16  ;;  %v6682_v60 = vmax.f32 %v20014_v55, %v20021_v21  ;;  %v20056_v53 = vmax.f32 %v6565_v14, %v20033_v36 }
 0x213   : > { %v2262_v45 = vadd.f32 %v16726_v44, %v19879_v3  ;;  %v2210_v31 = vpop.f32.mrb[13].mxu0  ;;  %v6229_v41 = vsel %vm778_vm4, %v6226_v4, %v6228_v25  ;;  %v6240_v57 = vsel %vm6110_vm10, %v6237_v63, %v6239_v48  ;;  %v6235_v42 = vmax.f32 %v6221_v50, %v6228_v25 }
 0x214   : > { %v2260_v9 = vadd.f32 %v19879_v3, %v2210_v31  ;;  %v16727_v16 = vpop.f32.mrb[14].mxu0  ;;  %v6234_v10 = vmax.f32 %v19970_v5, %v6229_v41  ;;  %v20060_v27 = vsel %vm6072_vm9, %v6570_v47, -3.4028235e+38  ;;  %v16888_v4 = vpop.f32.mrb[12].mxu1 }
 0x215   : > { %v2263_v63 = vadd.f32 %v16727_v16, %v19879_v3  ;;  %v2213_v61 = vpop.f32.mrb[15].mxu0  ;;  %v6246_v12 = vmax.f32 %v6235_v42, %v6239_v48  ;;  %v6336_v0 = vmax.f32 %v6330_v2, %v2262_v45  ;;  %v6448_v50 = vmax.f32 %v2262_v45, %v4137_v22  ;;  %v4098_v5 = vpop.f32.mrb[13].mxu1 }
 0x216   : > { %v20064_v25 = vadd.f32 %v16888_v4, %v19879_v3  ;;  %v2261_v44 = vadd.f32 %v19879_v3, %v2213_v61  ;;  %v6245_v52 = vmax.f32 %v6234_v10, %v6240_v57  ;;  %v6334_v14 = vmax.f32 %v6328_v18, %v2260_v9  ;;  %v16889_v47 = vpop.f32.mrb[14].mxu1 }
 0x217   : > { %v20068_v31 = vadd.f32 %v19879_v3, %v4098_v5  ;;  %17009 = vmatmul.mubr.msk.bf16.gmra.mrb[24].mxu0 %vm527_vm3, %v17939_v40  ;;  %v6339_v41 = vsel %vm6077_vm8, %v6336_v0, -3.4028235e+38  ;;  %v6446_v48 = vmax.f32 %v2260_v9, %v2263_v63  ;;  %v6454_v2 = vmax.f32 %v6448_v50, %v19959_v59  ;;  %v4101_v45 = vpop.f32.mrb[15].mxu1 }
 0x218   : > { %v20075_v22 = vadd.f32 %v16889_v47, %v19879_v3  ;;  %17012 = vmatprep.mubr.msk.bf16.mxu0 %vm527_vm3, %v17941_v34  ;;  %v17307_v18 = vpack.c.bf16 %v6245_v52, %v6244_v62  ;;  %v6335_v57 = vmax.f32 %v6329_v19, %v2261_v44  ;;  %v6337_v40 = vsel %vm6072_vm9, %v6334_v14, -3.4028235e+38  ;;  %v17942_v62 = vld [vmem:[%s18575_s12 + $0xd0] sm:$0xff]  }
 0x219   : > { %v20084_v42 = vadd.f32 %v19879_v3, %v4101_v45  ;;  %v6343_v9 = vrot.slane %v6337_v40, 1  ;;  %v6346_v59 = vrot.slane %v6339_v41, 1  ;;  %v6354_v16 = vrot.slane %v6337_v40, 2 }
 0x21a   : > { %17308 = vmatprep.subr.bf16.mxu1 %v17307_v18  ;;  %v6344_v10 = vrot.slane %v6335_v57, 1  ;;  %v6355_v4 = vrot.slane %v6335_v57, 2  ;;  %v6357_v63 = vrot.slane %v6339_v41, 2  ;;  %v6447_v34 = vmax.f32 %v2261_v44, %v20038_v37 }
 0x21b   : > { %17310 = vmatpush3.bf16.msra.mxu1 %v17307_v18  ;;  %v6353_v61 = vmax.f32 %v6339_v41, %v6346_v59  ;;  %v6452_v28 = vmax.f32 %v6446_v48, %v19903_v20  ;;  %v20091_v6 = vsel %vm6077_vm8, %v6454_v2, -3.4028235e+38  ;;  %v6579_v3 = vrot.slane %v20060_v27, 1 }
 0x21c   : > { %17065 = vmatprep.subr.msk.mxu1 %vm552_vm0, %v6246_v12  ;;  %v6345_v19 = vsel %vm778_vm4, %v6343_v9, %v6344_v10  ;;  %v6347_v0 = vsel %vm778_vm4, %v6344_v10, %v6346_v59  ;;  %v6356_v50 = vsel %vm6110_vm10, %v6354_v16, %v6355_v4  ;;  %v6358_v37 = vsel %vm6110_vm10, %v6355_v4, %v6357_v63 }
 0x21d   : > { %v6351_v5 = vmax.f32 %v6337_v40, %v6345_v19  ;;  %v6352_v44 = vmax.f32 %v6335_v57, %v6347_v0  ;;  %v6453_v20 = vmax.f32 %v6447_v34, %v19917_v56  ;;  %v20103_v52 = vsel %vm6077_vm8, %v20030_v15, -3.4028235e+38 }
 0x21e   : > { %v6364_v14 = vmax.f32 %v6353_v61, %v6357_v63  ;;  %v6455_v47 = vsel %vm6072_vm9, %v6452_v28, -3.4028235e+38  ;;  %v6464_v41 = vrot.slane %v20091_v6, 1  ;;  %v6580_v48 = vrot.slane %v20056_v53, 1 }
 0x21f   : > { %17013 = vmatmul.mubr.msk.bf16.gmra.mrb[28].mxu0 %vm527_vm3, %v17942_v62  ;;  %17066 = vmatpush3.msk.msra.mxu1 %vm552_vm0, %v6246_v12  ;;  %v6362_v2 = vmax.f32 %v6351_v5, %v6356_v50  ;;  %v6363_v45 = vmax.f32 %v6352_v44, %v6358_v37  ;;  %v6461_v56 = vrot.slane %v6455_v47, 1  ;;  %v6462_v18 = vrot.slane %v6453_v20, 1 }
 0x220   : > { %17018 = vmatprep.mubr.msk.bf16.mxu0 %vm527_vm3, %v19988_v17  ;;  %17068 = vmatmul.mubr.msk.f32.vlgmr.msra.gmra.mrb[18].mxu1 %vm6122_vm6, %v19830_v8  ;;  %v6472_v15 = vrot.slane %v6455_v47, 2  ;;  %v6473_v57 = vrot.slane %v6453_v20, 2  ;;  %v6475_v40 = vrot.slane %v20091_v6, 2  ;;  %v6581_v9 = vsel %vm778_vm4, %v6579_v3, %v6580_v48 }
 0x221   : > { %v17311_v59 = vpack.c.bf16 %v6363_v45, %v6362_v2  ;;  %17076 = vmatprep.mubr.msk.f32.mxu1 %vm6122_vm6, %v19726_v30  ;;  %v6463_v12 = vsel %vm778_vm4, %v6461_v56, %v6462_v18  ;;  %v6465_v16 = vsel %vm778_vm4, %v6462_v18, %v6464_v41  ;;  %v6582_v10 = vrot.slane %v20103_v52, 1 }
 0x222   : > { %v6469_v17 = vmax.f32 %v6455_v47, %v6463_v12  ;;  %v6470_v4 = vmax.f32 %v6453_v20, %v6465_v16  ;;  %v6474_v63 = vsel %vm6110_vm10, %v6472_v15, %v6473_v57  ;;  %v6476_v34 = vsel %vm6110_vm10, %v6473_v57, %v6475_v40 }
 0x223   : > { %17312 = vmatprep.subr.bf16.mxu1 %v17311_v59  ;;  %v6471_v62 = vmax.f32 %v20091_v6, %v6464_v41  ;;  %v6583_v61 = vsel %vm778_vm4, %v6580_v48, %v6582_v10  ;;  %v6587_v28 = vmax.f32 %v20060_v27, %v6581_v9  ;;  %v6590_v3 = vrot.slane %v20060_v27, 2 }
 0x224   : > { %17314 = vmatpush3.bf16.msra.mxu1 %v17311_v59  ;;  %v6480_v19 = vmax.f32 %v6469_v17, %v6474_v63  ;;  %v6481_v0 = vmax.f32 %v6470_v4, %v6476_v34  ;;  %v6588_v50 = vmax.f32 %v20056_v53, %v6583_v61  ;;  %v6591_v37 = vrot.slane %v20056_v53, 2 }
 0x225   : > { %17074 = vmatprep.subr.msk.mxu1 %vm552_vm0, %v6364_v14  ;;  %v5663_v6 = vsel %vm447_vm2, %v19991_v13, %v20001_v58  ;;  %v6593_v5 = vrot.slane %v20103_v52, 2  ;;  %v6683_v44 = vmax.f32 %v20033_v36, %v20068_v31  ;;  %v6684_v27 = vmax.f32 %v20004_v24, %v20084_v42  ;;  %v20153_v31 = vld [vmem:[%s18575_s12 + $0xc8] sm:$0xff]  }
 0x226   : > { %v5666_v20 = vor.u32 %v5664_v39, %v20001_v58  ;;  %v17315_v47 = vpack.c.bf16 %v6481_v0, %v6480_v19  ;;  %v6592_v53 = vsel %vm6110_vm10, %v6590_v3, %v6591_v37  ;;  %v6688_v13 = vmax.f32 %v6682_v60, %v20064_v25  ;;  %v20168_v60 = vld [vmem:[%s18575_s12 + $0xd0] sm:$0xff]  }
 0x227   : > { %17019 = vmatmul.mubr.msk.bf16.vlgmr.msra.gmra.mrb[16].mxu0 %vm527_vm3, %v19941_v1  ;;  %v5674_v36 = vor.u32 %v5672_v49, %v20008_v7  ;;  %v6594_v39 = vsel %vm6110_vm10, %v6591_v37, %v6593_v5  ;;  %v6598_v58 = vmax.f32 %v6587_v28, %v6592_v53  ;;  %v20157_v41 = vmax.f32 %v6683_v44, %v20075_v22 }
 0x228   : > { %17022 = vmatprep.mubr.msk.bf16.mxu0 %vm527_vm3, %v5663_v6  ;;  %17075 = vmatpush3.msk.msra.mxu1 %vm552_vm0, %v6364_v14  ;;  %v6482_v55 = vmax.f32 %v6471_v62, %v6475_v40  ;;  %v5678_v1 = vrot.slane %v5676_v38, 1  ;;  %v6599_v21 = vmax.f32 %v6588_v50, %v6594_v39  ;;  %v6691_v49 = vsel %vm6072_vm9, %v6688_v13, -3.4028235e+38  ;;  %v5855_v62 = vld [vmem:[%s18575_s12 + $0x98] sm:$0xe] }
 0x229   : > { %17316 = vmatprep.subr.bf16.mxu1 %v17315_v47  ;;  %17077 = vmatmul.mubr.msk.f32.vlgmr.msra.gmra.mrb[20].mxu1 %vm6122_vm6, %v19830_v8  ;;  %v6697_v48 = vrot.slane %v6691_v49, 1  ;;  %v6698_v2 = vrot.slane %v20157_v41, 1  ;;  %v6708_v45 = vrot.slane %v6691_v49, 2  ;;  %v6709_v14 = vrot.slane %v20157_v41, 2 }
 0x22a   : > { %17318 = vmatpush3.bf16.msra.mxu1 %v17315_v47  ;;  %17085 = vmatprep.mubr.msk.f32.mxu1 %vm6122_vm6, %v19726_v30  ;;  %v17319_v38 = vpack.c.bf16 %v6599_v21, %v6598_v58  ;;  %v5684_v56 = vshll.u32 %v20153_v31, 16  ;;  %v5671_v57 = vsel %vm447_vm2, %v5666_v20, %v20008_v7  ;;  %v5680_v40 = vshrl.u32 %v20011_v11, 16 }
 0x22b   : > { %17083 = vmatprep.subr.msk.mxu1 %vm552_vm0, %v6482_v55  ;;  %17035 = vmatpush3.bf16.msra.mxu0 %v19947_v29  ;;  %v6699_v18 = vsel %vm778_vm4, %v6697_v48, %v6698_v2  ;;  %v6710_v15 = vsel %vm6110_vm10, %v6708_v45, %v6709_v14  ;;  %v6589_v9 = vmax.f32 %v20103_v52, %v6582_v10  ;;  %v5688_v29 = vshrl.u32 %v20153_v31, 16  ;;  %v17951_v10 = vld [vmem:[%s18575_s12 + $0xd8] ss:$0 sps:$4 sm:$0x11]   ;;  %s18446_s12 = smov [#allocation6]  }
 0x22c   : > { %v6705_v59 = vmax.f32 %v6691_v49, %v6699_v18  ;;  %v5679_v12 = vsel %vm447_vm2, %v5674_v36, %v5678_v1  ;;  %v5692_v16 = vshll.u32 %v20168_v60, 16  ;;  %v5686_v7 = vrot.slane %v5684_v56, 1  ;;  %s18379_s16 = sshll.u32 %s18446_s12, 4  ;;  %s18380_s16 = int_to_ptr.vmem [resolvable:$false] %s18379_s16 }
 0x22d   : > { %v5682_v4 = vor.u32 %v5680_v40, %v5678_v1  ;;  %v6600_v52 = vmax.f32 %v6589_v9, %v6593_v5  ;;  %v5696_v28 = vshrl.u32 %v20168_v60, 16  ;;  %v5700_v3 = vshll.u32 %v17951_v10, 16  ;;  %v17970_v9 = vld [vmem:[%s22639_s3 + $0x208] sm:$0xff]   ;;  %s18381_s0 = scalar_lea.vmem %s18380_s16, 32  ;;  %p18382_p0 = scmp.lt.s32.totalorder %s22596_s29, %s18380_s16 }
 0x22e   : > { %17084 = vmatpush3.msk.msra.mxu1 %vm552_vm0, %v6482_v55  ;;  %v20191_v17 = vmax.f32 %v6705_v59, %v6710_v15  ;;  %v5690_v63 = vor.u32 %v5688_v29, %v5686_v7  ;;  %v5694_v34 = vrot.slane %v5692_v16, 1  ;;  %v14783_v0 = vcombine.low %v5855_v62, %v19835_v23  ;;  %v17972_v29 = vld [vmem:[%s22639_s3 + $0x218] sm:$0xff]   ;;  %p18383_p1 = scmp.lt.s32.totalorder %s18381_s0, %s18375_s21 }
 0x22f   : > { %17023 = vmatmul.mubr.msk.bf16.gmra.mrb[20].mxu0 %vm527_vm3, %v5671_v57  ;;  %17320 = vmatprep.subr.bf16.mxu1 %v17319_v38  ;;  %v5687_v61 = vsel %vm447_vm2, %v5682_v4, %v5686_v7  ;;  %v5702_v37 = vrot.slane %v5700_v3, 1  ;;  %v5861_v5 = vrot.slane %v19838_v26, 1  ;;  %v5863_v23 = vrot.slane %v19841_v51, 1 }
 0x230   : > { %17026 = vmatprep.mubr.msk.bf16.mxu0 %vm527_vm3, %v5679_v12  ;;  %17086 = vmatmul.mubr.msk.f32.vlgmr.msra.gmra.mrb[22].mxu1 %vm6122_vm6, %v19830_v8  ;;  %v5695_v19 = vsel %vm447_vm2, %v5690_v63, %v5694_v34  ;;  %v5698_v50 = vor.u32 %v5696_v28, %v5694_v34  ;;  %v5860_v6 = vrot.slane %v14783_v0, 1  ;;  %v5865_v47 = vrot.slane %v19935_v35, 1  ;;  %v17971_v12 = vld [vmem:[%s22639_s3 + $0x210] sm:$0xff]   ;;  %v17974_v34 = vld [vmem:[%s22639_s3 + $0x228] sm:$0xff]   ;;  %p18384_p2 = por %p18383_p1, %p18382_p0 }
 0x231   : > { %17322 = vmatpush3.bf16.msra.mxu1 %v17319_v38  ;;  %17094 = vmatprep.mubr.msk.f32.mxu1 %vm6122_vm6, %v19726_v30  ;;  %v5864_v53 = vsel %vm778_vm4, %v5861_v5, %v5863_v23  ;;  %v5867_v26 = vrot.slane %v19944_v32, 1  ;;  %v5869_v36 = vrot.slane %v20011_v11, 1  ;;  %v5871_v51 = vrot.slane %v20153_v31, 1  ;;  %v17967_v38 = vld [vmem:[%s22639_s3 + $0x200] sm:$0xff]  }
 0x232   : > { %17092 = vmatprep.subr.msk.mxu1 %vm552_vm0, %v6600_v52  ;;  %v5703_v44 = vsel %vm447_vm2, %v5698_v50, %v5702_v37  ;;  %v5862_v20 = vsel %vm778_vm4, %v5860_v6, %v5861_v5  ;;  %v5866_v13 = vsel %vm778_vm4, %v5863_v23, %v5865_v47  ;;  %v5873_v35 = vrot.slane %v20168_v60, 1  ;;  %17133 = vmatprep.subr.bf16.mxu0 %v17967_v38  ;;  %v17975_v6 = vld [vmem:[%s22639_s3 + $0x230] sm:$0xff]   ;;  %v17976_v5 = vld [vmem:[%s22639_s3 + $0x238] sm:$0xff]   ;;  %p18385_p3 = pnand %p18384_p2, %p18378_p13 }
 0x233   : > { %v5868_v39 = vsel %vm778_vm4, %v5865_v47, %v5867_v26  ;;  %v5870_v58 = vsel %vm778_vm4, %v5867_v26, %v5869_v36  ;;  %v5872_v55 = vsel %vm778_vm4, %v5869_v36, %v5871_v51  ;;  %v5875_v32 = vrot.slane %v17951_v10, 1 }
 0x234   : > { %v5874_v1 = vsel %vm778_vm4, %v5871_v51, %v5873_v35  ;;  %v18441_v21 = vmov 0  }
 0x235   : > { %17093 = vmatpush3.msk.msra.mxu1 %vm552_vm0, %v6600_v52  ;;  %v5876_v11 = vsel %vm778_vm4, %v5873_v35, %v5875_v32  ;;  %6057 = vst [vmem:[#allocation3 + $0x8] sm:$0xff] %v18441_v21  ;;  %6056 = vst [vmem:[#allocation3] sm:$0xff] %v18441_v21  ;;  %v17973_v52 = vld [vmem:[%s22639_s3 + $0x220] sm:$0xff]  }
 0x236   : > { %17095 = vmatmul.mubr.msk.f32.vlgmr.msra.gmra.mrb[24].mxu1 %vm6122_vm6, %v19830_v8  ;;  %6058 = vst [vmem:[#allocation3 + $0x10] sm:$0xff] %v18441_v21  ;;  %6059 = vst [vmem:[#allocation3 + $0x18] sm:$0xff] %v18441_v21 }
 0x237   : > { %17027 = vmatmul.mubr.msk.bf16.gmra.mrb[24].mxu0 %vm527_vm3, %v5687_v61  ;;  %17103 = vmatprep.mubr.msk.f32.mxu1 %vm6122_vm6, %v19726_v30  ;;  %6060 = vst [vmem:[#allocation3 + $0x20] sm:$0xff] %v18441_v21  ;;  %6061 = vst [vmem:[#allocation3 + $0x28] sm:$0xff] %v18441_v21 }
 0x238   : > { %17030 = vmatprep.mubr.msk.bf16.mxu0 %vm527_vm3, %v5695_v19  ;;  %6062 = vst [vmem:[#allocation3 + $0x30] sm:$0xff] %v18441_v21  ;;  %6063 = vst [vmem:[#allocation3 + $0x38] sm:$0xff] %v18441_v21 }
 0x239   : > { %6064 = vst [vmem:[#allocation3 + $0x40] sm:$0xff] %v18441_v21  ;;  %6065 = vst [vmem:[#allocation3 + $0x48] sm:$0xff] %v18441_v21 }
 0x23a   : > { %6066 = vst [vmem:[#allocation3 + $0x50] sm:$0xff] %v18441_v21  ;;  %6067 = vst [vmem:[#allocation3 + $0x58] sm:$0xff] %v18441_v21 }
 0x23b   : > { %9386 = vst [vmem:[#allocation4] sm:$0xff] %v18441_v21  ;;  %9387 = vst [vmem:[#allocation4 + $0x8] sm:$0xff] %v18441_v21 }
 0x23c   : > { %9388 = vst [vmem:[#allocation4 + $0x10] sm:$0xff] %v18441_v21  ;;  %9389 = vst [vmem:[#allocation4 + $0x18] sm:$0xff] %v18441_v21  ;;  %v7158_v57 = vld [vmem:[#allocation3 + $0x8] sm:$0x3e] }
 0x23d   : > { %9390 = vst [vmem:[#allocation4 + $0x20] sm:$0xff] %v18441_v21  ;;  %9391 = vst [vmem:[#allocation4 + $0x28] sm:$0xff] %v18441_v21  ;;  %v7171_v28 = vld [vmem:[#allocation3 + $0x10] sm:$0x3e] }
 0x23e   : > { %9392 = vst [vmem:[#allocation4 + $0x30] sm:$0xff] %v18441_v21  ;;  %9393 = vst [vmem:[#allocation4 + $0x38] sm:$0xff] %v18441_v21 }
 0x23f   : > { %17031 = vmatmul.mubr.msk.bf16.gmra.mrb[28].mxu0 %vm527_vm3, %v5703_v44  ;;  %9394 = vst [vmem:[#allocation4 + $0x40] sm:$0xff] %v18441_v21  ;;  %11279 = vst [vmem:[#allocation5] sm:$0xff] %v18441_v21 }
 0x240   : > { %17036 = vmatprep.mubr.msk.bf16.mxu0 %vm527_vm3, %v5862_v20  ;;  %11280 = vst [vmem:[#allocation5 + $0x8] sm:$0xff] %v18441_v21  ;;  %11281 = vst [vmem:[#allocation5 + $0x10] sm:$0xff] %v18441_v21 }
 0x241   : > { %11282 = vst [vmem:[#allocation5 + $0x18] sm:$0xff] %v18441_v21  ;;  %11283 = vst [vmem:[#allocation5 + $0x20] sm:$0xff] %v18441_v21 }
 0x242   : > { %11284 = vst [vmem:[#allocation5 + $0x28] sm:$0xff] %v18441_v21  ;;  %11285 = vst [vmem:[#allocation5 + $0x30] sm:$0xff] %v18441_v21 }
 0x243   : > { %11286 = vst [vmem:[#allocation5 + $0x38] sm:$0xff] %v18441_v21  ;;  %11287 = vst [vmem:[#allocation5 + $0x40] sm:$0xff] %v18441_v21 }
 0x247   : > { %17037 = vmatmul.mubr.msk.bf16.vlgmr.msra.gmra.mrb[16].mxu0 %vm527_vm3, %v5864_v53  ;;  %v7184_v53 = vld [vmem:[#allocation3 + $0x18] sm:$0x3e] }
 0x248   : > { %17040 = vmatprep.mubr.msk.bf16.mxu0 %vm527_vm3, %v5866_v13  ;;  %17134 = vmatpush3.bf16.msra.mxu0 %v17967_v38 }
 0x249   : > { %17135 = vmatprep.subr.bf16.mxu0 %v17970_v9 }
 0x24c   : > { %17136 = vmatpush3.bf16.msra.mxu0 %v17970_v9 }
 0x24d   : > { %17137 = vmatprep.subr.bf16.mxu0 %v17971_v12 }
 0x24f   : > { %17041 = vmatmul.mubr.msk.bf16.gmra.mrb[20].mxu0 %vm527_vm3, %v5868_v39 }
 0x250   : > { %17044 = vmatprep.mubr.msk.bf16.mxu0 %vm527_vm3, %v5870_v58  ;;  %17138 = vmatpush3.bf16.msra.mxu0 %v17971_v12  ;;  %v7210_v12 = vld [vmem:[#allocation3 + $0x28] sm:$0x3e] }
 0x251   : > { %17139 = vmatprep.subr.bf16.mxu0 %v17972_v29 }
 0x254   : > { %17140 = vmatpush3.bf16.msra.mxu0 %v17972_v29 }
 0x255   : > { %17141 = vmatprep.subr.bf16.mxu0 %v17973_v52 }
 0x257   : > { %17045 = vmatmul.mubr.msk.bf16.gmra.mrb[24].mxu0 %vm527_vm3, %v5872_v55 }
 0x258   : > { %17048 = vmatprep.mubr.msk.bf16.mxu0 %vm527_vm3, %v5874_v1  ;;  %17142 = vmatpush3.bf16.msra.mxu0 %v17973_v52 }
 0x259   : > { %17143 = vmatprep.subr.bf16.mxu0 %v17974_v34 }
 0x25c   : > { %17144 = vmatpush3.bf16.msra.mxu0 %v17974_v34  ;;  %v20326_v34 = vld [vmem:[%s22638_s2] ss:$0 sm:$0xff] }
 0x25d   : > { %17145 = vmatprep.subr.bf16.mxu0 %v17975_v6 }
 0x25f   : > { %17049 = vmatmul.mubr.msk.bf16.gmra.mrb[28].mxu0 %vm527_vm3, %v5876_v11  ;;  %v7197_v11 = vld [vmem:[#allocation3 + $0x20] sm:$0x3e] }
 0x260   : > { %17146 = vmatpush3.bf16.msra.mxu0 %v17975_v6 }
 0x261   : > { %17147 = vmatprep.subr.bf16.mxu0 %v17976_v5 }
 0x264   : > { %17148 = vmatpush3.bf16.msra.mxu0 %v17976_v5 }
 0x2e2   : > { %v17060_v31 = vpop.f32.mrb[16].mxu1 }
 0x2e3   : > { %v6198_v49 = vpop.f32.mrb[17].mxu1 }
 0x2e4   : > { %v7145_v60 = vpack.c.bf16 %v17060_v31, %v6198_v49 }
 0x2e6   : > { %v7147_v48 = vshrl.u32 %v7145_v60, 16  ;;  %v7150_v45 = vshll.u32 %v7145_v60, 16 }
 0x2e8   : > { %v7149_v56 = vrot.slane %v7147_v48, 6  ;;  %v7152_v18 = vrot.slane %v7150_v45, 7 }
 0x2ea   : > { %v7153_v40 = vor.u32 %v7152_v18, %v7149_v56 }
 0x2ec   : > { %v7159_v59 = vsel %vm20271_vm13, %v7153_v40, %v7158_v57 }
 0x2ed   : > { %7160 = vst [vmem:[#allocation3 + $0x8] sm:$0x3e] %v7159_v59 }
 0x2f3   : > { %v17069_v16 = vpop.f32.mrb[18].mxu1 }
 0x2f4   : > { %v6316_v7 = vpop.f32.mrb[19].mxu1 }
 0x2f5   : > { %v7161_v4 = vpack.c.bf16 %v17069_v16, %v6316_v7 }
 0x2f7   : > { %v7163_v10 = vshrl.u32 %v7161_v4, 16  ;;  %v7166_v63 = vshll.u32 %v7161_v4, 16 }
 0x2f9   : > { %v7165_v62 = vrot.slane %v7163_v10, 6  ;;  %v7168_v61 = vrot.slane %v7166_v63, 7 }
 0x2fb   : > { %v7169_v3 = vor.u32 %v7168_v61, %v7165_v62 }
 0x2fc   : > { %v17078_v19 = vpop.f32.mrb[20].mxu1 }
 0x2fd   : > { %v7172_v0 = vsel %vm20271_vm13, %v7169_v3, %v7171_v28  ;;  %v6434_v50 = vpop.f32.mrb[21].mxu1 }
 0x2fe   : > { %7173 = vst [vmem:[#allocation3 + $0x10] sm:$0x3e] %v7172_v0  ;;  %v7174_v37 = vpack.c.bf16 %v17078_v19, %v6434_v50 }
 0x300   : > { %v7176_v44 = vshrl.u32 %v7174_v37, 16  ;;  %v7179_v20 = vshll.u32 %v7174_v37, 16 }
 0x302   : > { %v7178_v23 = vrot.slane %v7176_v44, 6  ;;  %v7181_v47 = vrot.slane %v7179_v20, 7 }
 0x303   : > { %v17087_v13 = vpop.f32.mrb[22].mxu1 }
 0x304   : > { %v7182_v26 = vor.u32 %v7181_v47, %v7178_v23  ;;  %v6552_v36 = vpop.f32.mrb[23].mxu1 }
 0x305   : > { %v7187_v39 = vpack.c.bf16 %v17087_v13, %v6552_v36  ;;  %v7280_v49 = vld [vmem:[#allocation3 + $0x10] sm:$0xfe] }
 0x306   : > { %v7185_v58 = vsel %vm20271_vm13, %v7182_v26, %v7184_v53  ;;  %v7436_v18 = vrot.slane %v7280_v49, 1 }
 0x307   : > { %7186 = vst [vmem:[#allocation3 + $0x18] sm:$0x3e] %v7185_v58  ;;  %v7189_v51 = vshrl.u32 %v7187_v39, 16  ;;  %v7192_v35 = vshll.u32 %v7187_v39, 16 }
 0x309   : > { %v7191_v55 = vrot.slane %v7189_v51, 6  ;;  %v7194_v1 = vrot.slane %v7192_v35, 7  ;;  %v17096_v32 = vpop.f32.mrb[24].mxu1 }
 0x30a   : > { %v6670_v31 = vpop.f32.mrb[25].mxu1 }
 0x30b   : > { %v7195_v60 = vor.u32 %v7194_v1, %v7191_v55  ;;  %v7200_v48 = vpack.c.bf16 %v17096_v32, %v6670_v31 }
 0x30d   : > { %v7198_v45 = vsel %vm20271_vm13, %v7195_v60, %v7197_v11  ;;  %v7202_v38 = vshrl.u32 %v7200_v48, 16  ;;  %v7205_v56 = vshll.u32 %v7200_v48, 16 }
 0x30e   : > { %7199 = vst [vmem:[#allocation3 + $0x20] sm:$0x3e] %v7198_v45  ;;  %v20304_v57 = vld [vmem:[#allocation3 + $0x18] sm:$0xff] }
 0x30f   : > { %v7204_v40 = vrot.slane %v7202_v38, 6  ;;  %v7207_v9 = vrot.slane %v7205_v56, 7  ;;  %v20307_v59 = vrot.slane %v20304_v57, 1 }
 0x311   : > { %v7208_v29 = vor.u32 %v7207_v9, %v7204_v40  ;;  %v7437_v16 = vsel %vm778_vm4, %v7436_v18, %v20307_v59 }
 0x312   : > { %17149 = vmatprep.mubr.bf16.mxu0 %v7437_v16 }
 0x313   : > { %v7211_v7 = vsel %vm20271_vm13, %v7208_v29, %v7210_v12 }
 0x314   : > { %7212 = vst [vmem:[#allocation3 + $0x28] sm:$0x3e] %v7211_v7 }
 0x315   : > { %v20313_v4 = vld [vmem:[#allocation3 + $0x20] sm:$0xff] }
 0x316   : > { %v7373_v52 = vrot.slane %v20313_v4, 1 }
 0x318   : > { %v20320_v10 = vsel %vm778_vm4, %v20307_v59, %v7373_v52 }
 0x319   : > { %17150 = vmatmul.mubr.bf16.vlgmr.msra.gmra.mrb[32].mxu0 %v20320_v10 }
 0x31a   : > { %v17038_v63 = vpop.f32.mrb[16].mxu0 }
 0x31b   : > { %v6026_v62 = vadd.f32 %v20326_v34, %v17038_v63  ;;  %v5938_v61 = vpop.f32.mrb[17].mxu0 }
 0x31c   : > { %v6024_v28 = vadd.f32 %v20326_v34, %v5938_v61  ;;  %v17039_v3 = vpop.f32.mrb[18].mxu0 }
 0x31d   : > { %v6027_v19 = vadd.f32 %v20326_v34, %v17039_v3  ;;  %v5941_v0 = vpop.f32.mrb[19].mxu0  ;;  %v6801_v51 = vmax.f32 %v20075_v22, %v6026_v62 }
 0x31e   : > { %v6025_v50 = vadd.f32 %v20326_v34, %v5941_v0  ;;  %v6690_v37 = vmax.f32 %v6684_v27, %v6024_v28 }
 0x31f   : > { %v6802_v6 = vmax.f32 %v6024_v28, %v6027_v19 }
 0x320   : > { %v6693_v5 = vsel %vm6077_vm8, %v6690_v37, -3.4028235e+38  ;;  %v6800_v36 = vmax.f32 %v20064_v25, %v6025_v50 }
 0x321   : > { %v6700_v44 = vrot.slane %v6693_v5, 1  ;;  %v6711_v20 = vrot.slane %v6693_v5, 2 }
 0x322   : > { %v17042_v23 = vpop.f32.mrb[20].mxu0 }
 0x323   : > { %v20338_v47 = vadd.f32 %v20326_v34, %v17042_v23  ;;  %v5954_v53 = vpop.f32.mrb[21].mxu0  ;;  %v6701_v13 = vsel %vm778_vm4, %v6698_v2, %v6700_v44  ;;  %v6712_v24 = vsel %vm6110_vm10, %v6709_v14, %v6711_v20  ;;  %v6707_v1 = vmax.f32 %v6693_v5, %v6700_v44 }
 0x324   : > { %v6028_v42 = vadd.f32 %v20326_v34, %v5954_v53  ;;  %v17043_v27 = vpop.f32.mrb[22].mxu0  ;;  %v6706_v26 = vmax.f32 %v20157_v41, %v6701_v13 }
 0x325   : > { %v6031_v39 = vadd.f32 %v20326_v34, %v17043_v27  ;;  %v5957_v58 = vpop.f32.mrb[23].mxu0  ;;  %v6808_v35 = vmax.f32 %v6802_v6, %v20338_v47  ;;  %v6718_v48 = vmax.f32 %v6707_v1, %v6711_v20 }
 0x326   : > { %v6029_v2 = vadd.f32 %v20326_v34, %v5957_v58  ;;  %v6717_v55 = vmax.f32 %v6706_v26, %v6712_v24  ;;  %v6806_v32 = vmax.f32 %v6800_v36, %v6028_v42 }
 0x327   : > { %v6811_v14 = vsel %vm6077_vm8, %v6808_v35, -3.4028235e+38  ;;  %v6918_v11 = vmax.f32 %v6028_v42, %v6031_v39 }
 0x328   : > { %v17323_v41 = vpack.c.bf16 %v6717_v55, %v20191_v17  ;;  %v6807_v31 = vmax.f32 %v6801_v51, %v6029_v2  ;;  %v6809_v25 = vsel %vm6072_vm9, %v6806_v32, -3.4028235e+38  ;;  %v6818_v38 = vrot.slane %v6811_v14, 1 }
 0x329   : > { %v6815_v49 = vrot.slane %v6809_v25, 1  ;;  %v6826_v60 = vrot.slane %v6809_v25, 2  ;;  %v6829_v9 = vrot.slane %v6811_v14, 2 }
 0x32a   : > { %v17046_v22 = vpop.f32.mrb[24].mxu0  ;;  %17324 = vmatprep.subr.bf16.mxu1 %v17323_v41  ;;  %v6816_v45 = vrot.slane %v6807_v31, 1  ;;  %v6827_v56 = vrot.slane %v6807_v31, 2  ;;  %v6825_v5 = vmax.f32 %v6811_v14, %v6818_v38 }
 0x32b   : > { %v6034_v18 = vadd.f32 %v20326_v34, %v17046_v22  ;;  %v5970_v40 = vpop.f32.mrb[25].mxu0  ;;  %17326 = vmatpush3.bf16.msra.mxu1 %v17323_v41 }
 0x32c   : > { %v6032_v12 = vadd.f32 %v20326_v34, %v5970_v40  ;;  %v17047_v17 = vpop.f32.mrb[26].mxu0  ;;  %17101 = vmatprep.subr.msk.mxu1 %vm552_vm0, %v6718_v48  ;;  %v6817_v29 = vsel %vm778_vm4, %v6815_v49, %v6816_v45  ;;  %v6819_v16 = vsel %vm778_vm4, %v6816_v45, %v6818_v38  ;;  %v6828_v7 = vsel %vm6110_vm10, %v6826_v60, %v6827_v56 }
 0x32d   : > { %v6035_v63 = vadd.f32 %v20326_v34, %v17047_v17  ;;  %v5973_v62 = vpop.f32.mrb[27].mxu0  ;;  %v6823_v61 = vmax.f32 %v6809_v25, %v6817_v29  ;;  %v6824_v28 = vmax.f32 %v6807_v31, %v6819_v16  ;;  %v6830_v3 = vsel %vm6110_vm10, %v6827_v56, %v6829_v9 }
 0x32e   : > { %v6033_v19 = vadd.f32 %v20326_v34, %v5973_v62  ;;  %v6919_v0 = vmax.f32 %v6029_v2, %v6032_v12  ;;  %v6924_v50 = vmax.f32 %v6918_v11, %v6034_v18  ;;  %v6836_v58 = vmax.f32 %v6825_v5, %v6829_v9 }
 0x32f   : > { %17102 = vmatpush3.msk.msra.mxu1 %vm552_vm0, %v6718_v48  ;;  %v6834_v37 = vmax.f32 %v6823_v61, %v6828_v7  ;;  %v6835_v6 = vmax.f32 %v6824_v28, %v6830_v3 }
 0x330   : > { %17104 = vmatmul.mubr.msk.f32.vlgmr.msra.gmra.mrb[26].mxu1 %vm6122_vm6, %v19830_v8  ;;  %v6920_v44 = vmax.f32 %v20338_v47, %v6033_v19  ;;  %v6925_v20 = vmax.f32 %v6919_v0, %v6035_v63  ;;  %v6927_v23 = vsel %vm6072_vm9, %v6924_v50, -3.4028235e+38 }
 0x331   : > { %v17327_v53 = vpack.c.bf16 %v6835_v6, %v6834_v37  ;;  %17112 = vmatprep.mubr.msk.f32.mxu1 %vm6122_vm6, %v19726_v30  ;;  %v6933_v24 = vrot.slane %v6927_v23, 1  ;;  %v6944_v27 = vrot.slane %v6927_v23, 2  ;;  %v20399_v6 = vld [vmem:[#allocation3 + $0x8] sm:$0xff] }
 0x332   : > { %v17050_v13 = vpop.f32.mrb[28].mxu0  ;;  %v6934_v42 = vrot.slane %v6925_v20, 1  ;;  %v6945_v26 = vrot.slane %v6925_v20, 2 }
 0x333   : > { %v6038_v36 = vadd.f32 %v20326_v34, %v17050_v13  ;;  %v5986_v39 = vpop.f32.mrb[29].mxu0  ;;  %17328 = vmatprep.subr.bf16.mxu1 %v17327_v53 }
 0x334   : > { %v6036_v47 = vadd.f32 %v20326_v34, %v5986_v39  ;;  %v17051_v51 = vpop.f32.mrb[30].mxu0  ;;  %17330 = vmatpush3.bf16.msra.mxu1 %v17327_v53  ;;  %v6935_v35 = vsel %vm778_vm4, %v6933_v24, %v6934_v42  ;;  %v6946_v2 = vsel %vm6110_vm10, %v6944_v27, %v6945_v26  ;;  %v7289_v53 = vshll.u32 %v20399_v6, 16  ;;  %v17954_v27 = vld [vmem:[%s22639_s3] sm:$0xff]   ;;  %v17956_v39 = vld [vmem:[%s22639_s3 + $0x8] sm:$0xff]  }
 0x335   : > { %v6039_v55 = vadd.f32 %v20326_v34, %v17051_v51  ;;  %v5989_v1 = vpop.f32.mrb[31].mxu0  ;;  %17110 = vmatprep.subr.msk.mxu1 %vm552_vm0, %v6836_v58  ;;  %v6941_v32 = vmax.f32 %v6927_v23, %v6935_v35  ;;  %v7037_v14 = vmax.f32 %v6035_v63, %v6038_v36  ;;  %v7286_v23 = vrot.slane %v18441_v21, 1  ;;  %v17960_v51 = vld [vmem:[%s22639_s3 + $0x18] sm:$0xff]   ;;  %v17961_v35 = vld [vmem:[%s22639_s3 + $0x60] sm:$0xff]  }
 0x336   : > { %v6037_v11 = vadd.f32 %v20326_v34, %v5989_v1  ;;  %v6926_v41 = vmax.f32 %v6920_v44, %v6036_v47  ;;  %v7291_v24 = vrot.slane %v7289_v53, 1  ;;  %v17964_v1 = vld [vmem:[%s22639_s3 + $0x28] sm:$0xff]  }
 0x337   : > { %v6952_v31 = vmax.f32 %v6941_v32, %v6946_v2  ;;  %v7038_v25 = vmax.f32 %v6036_v47, %v6039_v55  ;;  %v7046_v38 = vrot.slane %v7037_v14, 1  ;;  %v7057_v40 = vrot.slane %v7037_v14, 2  ;;  %v17958_v47 = vld [vmem:[%s22639_s3 + $0x10] sm:$0xff]   ;;  %v17962_v2 = vld [vmem:[%s22639_s3 + $0x20] sm:$0xff]   ;;  %v17963_v55 = vld [vmem:[%s22639_s3 + $0x68] sm:$0xff]  }
 0x338   : > { %17111 = vmatpush3.msk.msra.mxu1 %vm552_vm0, %v6836_v58  ;;  %v6929_v49 = vsel %vm6077_vm8, %v6926_v41, -3.4028235e+38  ;;  %v7036_v60 = vmax.f32 %v6034_v18, %v6037_v11  ;;  %v7292_v36 = vsel %vm447_vm2, %v7286_v23, %v7291_v24  ;;  %v17957_v58 = vld [vmem:[%s22639_s3 + $0x50] sm:$0xff]   ;;  %v17968_v41 = vld [vmem:[%s22639_s3 + $0x78] sm:$0xff]   ;;  %v17986_v23 = vld [vmem:[%s22639_s3 + $0xa0] sm:$0xff]  }
 0x339   : > { %17113 = vmatmul.mubr.msk.f32.vlgmr.msra.gmra.mrb[28].mxu1 %vm6122_vm6, %v19830_v8  ;;  %v6936_v22 = vrot.slane %v6929_v49, 1  ;;  %v6947_v48 = vrot.slane %v6929_v49, 2  ;;  %v7041_v45 = vsel %vm6077_vm8, %v7038_v25, -3.4028235e+38  ;;  %v17965_v32 = vld [vmem:[%s22639_s3 + $0x70] sm:$0xff]   ;;  %v17987_v53 = vld [vmem:[%s22639_s3 + $0xe8] sm:$0xff]  }
 0x33a   : > { %17121 = vmatprep.mubr.msk.f32.mxu1 %vm6122_vm6, %v19726_v30  ;;  %v7039_v34 = vsel %vm6072_vm9, %v7036_v60, -3.4028235e+38  ;;  %v7048_v56 = vrot.slane %v7041_v45, 1  ;;  %v7059_v9 = vrot.slane %v7041_v45, 2  ;;  %v17966_v11 = vld [vmem:[%s22639_s3 + $0x30] sm:$0xff]  }
 0x33b   : > { %v6937_v18 = vsel %vm778_vm4, %v6934_v42, %v6936_v22  ;;  %v6948_v12 = vsel %vm6110_vm10, %v6945_v26, %v6947_v48  ;;  %v7045_v17 = vrot.slane %v7039_v34, 1  ;;  %v7056_v43 = vrot.slane %v7039_v34, 2  ;;  %v17953_v42 = vld [vmem:[%s22639_s3 + $0x40] sm:$0xff]   ;;  %v17955_v26 = vld [vmem:[%s22639_s3 + $0x48] sm:$0xff]  }
 0x33c   : > { %v6942_v29 = vmax.f32 %v6925_v20, %v6937_v18  ;;  %v7049_v16 = vsel %vm778_vm4, %v7046_v38, %v7048_v56  ;;  %v7060_v7 = vsel %vm6110_vm10, %v7057_v40, %v7059_v9  ;;  %v6943_v28 = vmax.f32 %v6929_v49, %v6936_v22  ;;  %v17969_v49 = vld [vmem:[%s22639_s3 + $0x38] sm:$0xff]  }
 0x33d   : > { %v7047_v63 = vsel %vm778_vm4, %v7045_v17, %v7046_v38  ;;  %v7054_v62 = vmax.f32 %v7037_v14, %v7049_v16  ;;  %v7058_v19 = vsel %vm6110_vm10, %v7056_v43, %v7057_v40  ;;  %v7055_v20 = vmax.f32 %v7041_v45, %v7048_v56  ;;  %v20453_v14 = vld [vmem:[#allocation3 + $0x10] sm:$0xff] }
 0x33e   : > { %v6953_v61 = vmax.f32 %v6942_v29, %v6948_v12  ;;  %v7053_v3 = vmax.f32 %v7039_v34, %v7047_v63  ;;  %v6954_v5 = vmax.f32 %v6943_v28, %v6947_v48  ;;  %v7297_v25 = vshll.u32 %v20453_v14, 16  ;;  %v20480_v29 = vld [vmem:[#allocation3 + $0x28] sm:$0xff]  ;;  %v17977_v28 = vld [vmem:[%s22639_s3 + $0xc0] sm:$0xff]  }
 0x33f   : > { %v7065_v0 = vmax.f32 %v7054_v62, %v7060_v7  ;;  %v7066_v13 = vmax.f32 %v7055_v20, %v7059_v9  ;;  %v7301_v45 = vshrl.u32 %v20453_v14, 16  ;;  %v7305_v38 = vshll.u32 %v20304_v57, 16  ;;  %v17985_v20 = vld [vmem:[%s22639_s3 + $0xe0] sm:$0xff]  }
 0x340   : > { %v17331_v50 = vpack.c.bf16 %v6953_v61, %v6952_v31  ;;  %v7064_v37 = vmax.f32 %v7053_v3, %v7058_v19  ;;  %v7293_v31 = vshrl.u32 %v20399_v6, 16  ;;  %v7299_v22 = vrot.slane %v7297_v25, 1  ;;  %v17978_v3 = vld [vmem:[%s22639_s3 + $0x80] sm:$0xff]   ;;  %v18013_v25 = vld [vmem:[%s22639_s3 + $0x30] sm:$0xff]  }
 0x341   : > { %v7307_v56 = vrot.slane %v7305_v38, 1  ;;  %v7309_v9 = vshrl.u32 %v20304_v57, 16  ;;  %v7313_v18 = vshll.u32 %v20313_v4, 16  ;;  %v7317_v16 = vshrl.u32 %v20313_v4, 16 }
 0x342   : > { %17332 = vmatprep.subr.bf16.mxu1 %v17331_v50  ;;  %v17335_v44 = vpack.c.bf16 %v7065_v0, %v7064_v37  ;;  %v7295_v60 = vor.u32 %v7293_v31, %v7291_v24  ;;  %v7303_v34 = vor.u32 %v7301_v45, %v7299_v22  ;;  %v7321_v43 = vshll.u32 %v20480_v29, 16  ;;  %v17979_v0 = vld [vmem:[%s22639_s3 + $0xc8] sm:$0xff]   ;;  %v17981_v37 = vld [vmem:[%s22639_s3 + $0xd0] sm:$0xff]  }
 0x343   : > { %17334 = vmatpush3.bf16.msra.mxu1 %v17331_v50  ;;  %v7311_v12 = vor.u32 %v7309_v9, %v7307_v56  ;;  %v7315_v17 = vrot.slane %v7313_v18, 1  ;;  %v7375_v61 = vrot.slane %v20480_v29, 1  ;;  %v17980_v50 = vld [vmem:[%s22639_s3 + $0x88] sm:$0xff]   ;;  %v17989_v24 = vld [vmem:[%s22639_s3 + $0xf0] sm:$0xff]  }
 0x344   : > { %17119 = vmatprep.subr.msk.mxu1 %vm552_vm0, %v6954_v5  ;;  %v20467_v48 = vsel %vm447_vm2, %v7295_v60, %v7299_v22  ;;  %v20474_v40 = vsel %vm447_vm2, %v7303_v34, %v7307_v56  ;;  %v20489_v63 = vrot.slane %v7321_v43, 1  ;;  %v18011_v31 = vld [vmem:[%s22639_s3 + $0x70] sm:$0xff]   ;;  %v18017_v60 = vld [vmem:[%s22639_s3 + $0x38] sm:$0xff]  }
 0x345   : > { %v7319_v7 = vor.u32 %v7317_v16, %v7315_v17  ;;  %v20510_v19 = vsel %vm778_vm4, %v7373_v52, %v7375_v61  ;;  %v17982_v52 = vld [vmem:[%s22639_s3 + $0x90] sm:$0xff]  }
 0x346   : > { %17153 = vmatprep.mubr.bf16.mxu0 %v20510_v19 }
 0x347   : > { %17120 = vmatpush3.msk.msra.mxu1 %vm552_vm0, %v6954_v5  ;;  %v20493_v62 = vsel %vm447_vm2, %v7319_v7, %v20489_v63  ;;  %v17983_v5 = vld [vmem:[%s22639_s3 + $0xd8] sm:$0xff]  }
 0x348   : > { %17122 = vmatmul.mubr.msk.f32.vlgmr.msra.gmra.mrb[30].mxu1 %vm6122_vm6, %v19830_v8  ;;  %17336 = vmatprep.subr.bf16.mxu1 %v17335_v44 }
 0x349   : > { %17338 = vmatpush3.bf16.msra.mxu1 %v17335_v44  ;;  %17130 = vmatprep.mubr.msk.f32.mxu1 %vm6122_vm6, %v19726_v30  ;;  %v17984_v44 = vld [vmem:[%s22639_s3 + $0x98] sm:$0xff]  }
 0x34a   : > { %17128 = vmatprep.subr.msk.mxu1 %vm552_vm0, %v7066_v13 }
 0x34d   : > { %17129 = vmatpush3.msk.msra.mxu1 %vm552_vm0, %v7066_v13  ;;  %v17988_v13 = vld [vmem:[%s22639_s3 + $0xa8] sm:$0xff]   ;;  %vm9422_vm0 = vcmask 1042432  }
 0x34e   : > { %17131 = vmatmul.mubr.msk.f32.vlgmr.msra.gmra.mrb[32].mxu1 %vm6122_vm6, %v19830_v8  ;;  %15551 = vmatprep.subr.bf16.mxu1 %v17953_v42  ;;  %v17959_v8 = vld [vmem:[%s22639_s3 + $0x58] sm:$0xff]   ;;  %v17990_v42 = vld [vmem:[%s22639_s3 + $0xb0] sm:$0xff]   ;;  %vm21262_vm3 = vmpackc.low %vm9422_vm0, %vm18444_vm1  ;;  %vm9993_vm6 = vcmask 1044481  }
 0x34f   : > { %15552 = vmatpush3.bf16.msra.mxu1 %v17954_v27  ;;  %8060 = vmatprep.mubr.bf16.mxu1 %v7292_v36  ;;  %v17991_v27 = vld [vmem:[%s22639_s3 + $0xf8] sm:$0xff]   ;;  %v17993_v36 = vld [vmem:[%s22639_s3 + $0x40] sm:$0xff]   ;;  %vm21466_vm8 = vmand %vm9993_vm6, %vm9994_vm7 }
 0x350   : > { %15553 = vmatprep.subr.bf16.mxu1 %v17955_v26  ;;  %v17992_v26 = vld [vmem:[%s22639_s3 + $0xb8] sm:$0xff]   ;;  %15823 = vmatprep.subr.bf16.mxu0 %v17993_v36 }
 0x353   : > { %15554 = vmatpush3.bf16.msra.mxu1 %v17956_v39  ;;  %v17994_v39 = vld [vmem:[%s22639_s3] sm:$0xff]  }
 0x354   : > { %15555 = vmatprep.subr.bf16.mxu1 %v17957_v58  ;;  %v17995_v58 = vld [vmem:[%s22639_s3 + $0x140] sm:$0xff]   ;;  %15824 = vmatpush3.bf16.msra.mxu0 %v17994_v39 }
 0x355   : > { %v7273_v39 = vld [vmem:[#allocation3 + $0x40] sm:$0x1] }
 0x357   : > { %15556 = vmatpush3.bf16.msra.mxu1 %v17958_v47  ;;  %v17997_v47 = vld [vmem:[%s22639_s3 + $0x48] sm:$0xff]  }
 0x358   : > { %15557 = vmatprep.subr.bf16.mxu1 %v17959_v8  ;;  %15825 = vmatprep.subr.bf16.mxu0 %v17997_v47  ;;  %v17998_v8 = vld [vmem:[%s22639_s3 + $0x8] sm:$0xff]   ;;  %v7345_v47 = vshll.u32 %v7273_v39, 16 }
 0x359   : > { %15826 = vmatpush3.bf16.msra.mxu0 %v17998_v8 }
 0x35b   : > { %15558 = vmatpush3.bf16.msra.mxu1 %v17960_v51  ;;  %v17999_v51 = vld [vmem:[%s22639_s3 + $0x50] sm:$0xff]  }
 0x35c   : > { %15559 = vmatprep.subr.bf16.mxu1 %v17961_v35  ;;  %v18000_v35 = vld [vmem:[%s22639_s3 + $0x10] sm:$0xff]   ;;  %15827 = vmatprep.subr.bf16.mxu0 %v17999_v51 }
 0x35d   : > { %15828 = vmatpush3.bf16.msra.mxu0 %v18000_v35  ;;  %v7381_v35 = vrot.slane %v7273_v39, 1 }
 0x35f   : > { %15560 = vmatpush3.bf16.msra.mxu1 %v17962_v2  ;;  %v18003_v2 = vld [vmem:[%s22639_s3 + $0x58] sm:$0xff]  }
 0x360   : > { %15561 = vmatprep.subr.bf16.mxu1 %v17963_v55  ;;  %15829 = vmatprep.subr.bf16.mxu0 %v18003_v2  ;;  %v18004_v55 = vld [vmem:[%s22639_s3 + $0x18] sm:$0xff]  }
 0x361   : > { %15830 = vmatpush3.bf16.msra.mxu0 %v18004_v55 }
 0x363   : > { %15562 = vmatpush3.bf16.msra.mxu1 %v17964_v1  ;;  %v18005_v1 = vld [vmem:[%s22639_s3 + $0x60] sm:$0xff]  }
 0x364   : > { %15563 = vmatprep.subr.bf16.mxu1 %v17965_v32  ;;  %v18006_v32 = vld [vmem:[%s22639_s3 + $0x20] sm:$0xff]   ;;  %15831 = vmatprep.subr.bf16.mxu0 %v18005_v1 }
 0x365   : > { %15832 = vmatpush3.bf16.msra.mxu0 %v18006_v32 }
 0x367   : > { %15564 = vmatpush3.bf16.msra.mxu1 %v17966_v11  ;;  %v18009_v11 = vld [vmem:[%s22639_s3 + $0x68] sm:$0xff]  }
 0x368   : > { %15565 = vmatprep.subr.bf16.mxu1 %v17968_v41  ;;  %15833 = vmatprep.subr.bf16.mxu0 %v18009_v11  ;;  %v18010_v41 = vld [vmem:[%s22639_s3 + $0x28] sm:$0xff]  }
 0x369   : > { %15834 = vmatpush3.bf16.msra.mxu0 %v18010_v41 }
 0x36a   : > { %15835 = vmatprep.subr.bf16.mxu0 %v18011_v31  ;;  %v7347_v31 = vrot.slane %v7345_v47, 1 }
 0x36b   : > { %15566 = vmatpush3.bf16.msra.mxu1 %v17969_v49  ;;  %v18015_v49 = vld [vmem:[%s22639_s3 + $0x78] sm:$0xff]  }
 0x36c   : > { %15615 = vmatprep.subr.bf16.mxu1 %v17977_v28 }
 0x36d   : > { %15836 = vmatpush3.bf16.msra.mxu0 %v18013_v25 }
 0x36e   : > { %8061 = vmatmul.mubr.bf16.vlgmr.msra.gmra.mrb[36].mxu1 %v18441_v21  ;;  %v20483_v21 = vsel %vm447_vm2, %v7311_v12, %v7315_v17  ;;  %15837 = vmatprep.subr.bf16.mxu0 %v18015_v49  ;;  %v7223_v12 = vld [vmem:[#allocation3 + $0x30] sm:$0x3e] }
 0x36f   : > { %8068 = vmatprep.mubr.bf16.mxu1 %v20467_v48  ;;  %15616 = vmatpush3.bf16.msra.mxu1 %v17978_v3 }
 0x370   : > { %15617 = vmatprep.subr.bf16.mxu1 %v17979_v0 }
 0x371   : > { %15838 = vmatpush3.bf16.msra.mxu0 %v18017_v60 }
 0x373   : > { %15618 = vmatpush3.bf16.msra.mxu1 %v17980_v50 }
 0x374   : > { %15619 = vmatprep.subr.bf16.mxu1 %v17981_v37 }
 0x376   : > { %8069 = vmatmul.mubr.bf16.gmra.mrb[40].mxu1 %v20399_v6 }
 0x377   : > { %8076 = vmatprep.mubr.bf16.mxu1 %v20474_v40  ;;  %15620 = vmatpush3.bf16.msra.mxu1 %v17982_v52  ;;  %v7236_v52 = vld [vmem:[#allocation3 + $0x38] sm:$0x3e] }
 0x378   : > { %15621 = vmatprep.subr.bf16.mxu1 %v17983_v5 }
 0x37b   : > { %15622 = vmatpush3.bf16.msra.mxu1 %v17984_v44  ;;  %v7325_v44 = vshrl.u32 %v20480_v29, 16 }
 0x37c   : > { %15623 = vmatprep.subr.bf16.mxu1 %v17985_v20 }
 0x37e   : > { %8077 = vmatmul.mubr.bf16.gmra.mrb[44].mxu1 %v20453_v14 }
 0x37f   : > { %8084 = vmatprep.mubr.bf16.mxu1 %v20483_v21  ;;  %15624 = vmatpush3.bf16.msra.mxu1 %v17986_v23 }
 0x380   : > { %15625 = vmatprep.subr.bf16.mxu1 %v17987_v53 }
 0x383   : > { %15626 = vmatpush3.bf16.msra.mxu1 %v17988_v13 }
 0x384   : > { %15627 = vmatprep.subr.bf16.mxu1 %v17989_v24 }
 0x386   : > { %8085 = vmatmul.mubr.bf16.gmra.mrb[48].mxu1 %v20304_v57 }
 0x387   : > { %8092 = vmatprep.mubr.bf16.mxu1 %v20493_v62  ;;  %15628 = vmatpush3.bf16.msra.mxu1 %v17990_v42  ;;  %v7327_v42 = vor.u32 %v7325_v44, %v20489_v63 }
 0x388   : > { %15629 = vmatprep.subr.bf16.mxu1 %v17991_v27 }
 0x38b   : > { %15630 = vmatpush3.bf16.msra.mxu1 %v17992_v26 }
 0x38c   : > { %15679 = vmatprep.subr.bf16.mxu1 %v17995_v58 }
 0x38e   : > { %8093 = vmatmul.mubr.bf16.gmra.mrb[52].mxu1 %v20313_v4 }
 0x403   : > { %v17105_v22 = vpop.f32.mrb[26].mxu1 }
 0x404   : > { %v6788_v45 = vpop.f32.mrb[27].mxu1 }
 0x405   : > { %v7213_v38 = vpack.c.bf16 %v17105_v22, %v6788_v45 }
 0x407   : > { %v7215_v34 = vshrl.u32 %v7213_v38, 16  ;;  %v7218_v56 = vshll.u32 %v7213_v38, 16  ;;  %v7249_v38 = vld [vmem:[#allocation3 + $0x40] sm:$0x3e] }
 0x409   : > { %v7217_v9 = vrot.slane %v7215_v34, 6  ;;  %v7220_v18 = vrot.slane %v7218_v56, 7 }
 0x40b   : > { %v7221_v17 = vor.u32 %v7220_v18, %v7217_v9 }
 0x40c   : > { %v17114_v16 = vpop.f32.mrb[28].mxu1 }
 0x40d   : > { %v7224_v43 = vsel %vm20271_vm13, %v7221_v17, %v7223_v12  ;;  %v6906_v7 = vpop.f32.mrb[29].mxu1 }
 0x40e   : > { %7225 = vst [vmem:[#allocation3 + $0x30] sm:$0x3e] %v7224_v43  ;;  %v7226_v28 = vpack.c.bf16 %v17114_v16, %v6906_v7 }
 0x410   : > { %v7228_v3 = vshrl.u32 %v7226_v28, 16  ;;  %v7231_v0 = vshll.u32 %v7226_v28, 16 }
 0x412   : > { %v7230_v50 = vrot.slane %v7228_v3, 6  ;;  %v7233_v37 = vrot.slane %v7231_v0, 7 }
 0x414   : > { %v7234_v5 = vor.u32 %v7233_v37, %v7230_v50  ;;  %v7262_v50 = vld [vmem:[#allocation3 + $0x48] sm:$0x3e] }
 0x415   : > { %v20609_v20 = vld [vmem:[#allocation3 + $0x30] sm:$0xff] }
 0x416   : > { %v7237_v23 = vsel %vm20271_vm13, %v7234_v5, %v7236_v52  ;;  %v7377_v53 = vrot.slane %v20609_v20, 1  ;;  %v7329_v13 = vshll.u32 %v20609_v20, 16  ;;  %v7333_v51 = vshrl.u32 %v20609_v20, 16  ;;  %v20653_v5 = vld [vmem:[#allocation3 + $0x48] sm:$0x1] }
 0x417   : > { %7238 = vst [vmem:[#allocation3 + $0x38] sm:$0x3e] %v7237_v23  ;;  %v7274_v23 = vld [vmem:[#allocation3] sm:$0xfe] }
 0x418   : > { %v20618_v24 = vsel %vm778_vm4, %v7375_v61, %v7377_v53  ;;  %v7331_v27 = vrot.slane %v7329_v13, 1  ;;  %v18031_v61 = vld [vmem:[%s22639_s3 + $0x140] sm:$0xff]   ;;  %v7366_v39 = vrot.slane %v7274_v23, 1 }
 0x419   : > { %17154 = vmatmul.mubr.bf16.gmra.mrb[36].mxu0 %v20618_v24  ;;  %15867 = vmatprep.subr.bf16.mxu0 %v18031_v61  ;;  %v18018_v23 = vld [vmem:[%s22639_s3 + $0x120] sm:$0xff]  }
 0x41a   : > { %v20623_v26 = vsel %vm447_vm2, %v7327_v42, %v7331_v27  ;;  %v7335_v11 = vor.u32 %v7333_v51, %v7331_v27  ;;  %v20663_v42 = vld [vmem:[#allocation3 + $0x50] sm:$0x1]  ;;  %v8547_v27 = vshll.u32 %v20653_v5, 16 }
 0x41b   : > { %v17123_v36 = vpop.f32.mrb[30].mxu1  ;;  %8100 = vmatprep.mubr.bf16.mxu1 %v20623_v26  ;;  %v7440_v61 = vrot.slane %v20663_v42, 1 }
 0x41c   : > { %v7024_v58 = vpop.f32.mrb[31].mxu1  ;;  %8101 = vmatmul.mubr.bf16.gmra.mrb[56].mxu1 %v20480_v29 }
 0x41d   : > { %v7239_v8 = vpack.c.bf16 %v17123_v36, %v7024_v58  ;;  %v7367_v58 = vrot.slane %v20399_v6, 1 }
 0x41e   : > { %v20630_v63 = vld [vmem:[#allocation3 + $0x38] sm:$0xff] }
 0x41f   : > { %v7241_v2 = vshrl.u32 %v7239_v8, 16  ;;  %v7244_v55 = vshll.u32 %v7239_v8, 16  ;;  %v7379_v1 = vrot.slane %v20630_v63, 1  ;;  %v7337_v32 = vshll.u32 %v20630_v63, 16  ;;  %v17996_v8 = vld [vmem:[%s22639_s3 + $0x100] sm:$0xff]  }
 0x420   : > { %v7341_v41 = vshrl.u32 %v20630_v63, 16 }
 0x421   : > { %v7243_v25 = vrot.slane %v7241_v2, 6  ;;  %v7246_v49 = vrot.slane %v7244_v55, 7  ;;  %v20637_v60 = vsel %vm778_vm4, %v7377_v53, %v7379_v1  ;;  %v7339_v22 = vrot.slane %v7337_v32, 1  ;;  %v17132_v45 = vpop.f32.mrb[32].mxu1  ;;  %v18001_v2 = vld [vmem:[%s22639_s3 + $0x148] sm:$0xff]  }
 0x422   : > { %17157 = vmatprep.mubr.bf16.mxu0 %v20637_v60  ;;  %v7136_v34 = vpop.f32.mrb[33].mxu1  ;;  %v20641_v56 = vsel %vm778_vm4, %v7379_v1, %v7381_v35 }
 0x423   : > { %v7247_v9 = vor.u32 %v7246_v49, %v7243_v25  ;;  %v20644_v18 = vsel %vm447_vm2, %v7335_v11, %v7339_v22  ;;  %v7343_v12 = vor.u32 %v7341_v41, %v7339_v22  ;;  %v7252_v17 = vpack.c.bf16 %v17132_v45, %v7136_v34  ;;  %v18002_v41 = vld [vmem:[%s22639_s3 + $0x108] sm:$0xff]   ;;  %v18007_v22 = vld [vmem:[%s22639_s3 + $0x150] sm:$0xff]  }
 0x424   : > { %8108 = vmatprep.mubr.bf16.mxu1 %v20644_v18 }
 0x425   : > { %v7250_v16 = vsel %vm20271_vm13, %v7247_v9, %v7249_v38  ;;  %8109 = vmatmul.mubr.bf16.gmra.mrb[60].mxu1 %v20609_v20  ;;  %v7348_v43 = vsel %vm447_vm2, %v7343_v12, %v7347_v31  ;;  %v7254_v7 = vshrl.u32 %v7252_v17, 16  ;;  %v7257_v28 = vshll.u32 %v7252_v17, 16  ;;  %v18008_v9 = vld [vmem:[%s22639_s3 + $0x110] sm:$0xff]  }
 0x426   : > { %7251 = vst [vmem:[#allocation3 + $0x40] sm:$0x3e] %v7250_v16  ;;  %8116 = vmatprep.mubr.bf16.mxu1 %v7348_v43  ;;  %v20705_v38 = vrot.slane %v20453_v14, 1  ;;  %v18012_v16 = vld [vmem:[%s22639_s3 + $0x158] sm:$0xff]  }
 0x427   : > { %v7256_v3 = vrot.slane %v7254_v7, 6  ;;  %v7259_v0 = vrot.slane %v7257_v28, 7 }
 0x428   : > { %v7370_v43 = vsel %vm778_vm4, %v7367_v58, %v20705_v38 }
 0x429   : > { %v7260_v37 = vor.u32 %v7259_v0, %v7256_v3  ;;  %v18014_v3 = vld [vmem:[%s22639_s3 + $0x118] sm:$0xff]   ;;  %v18032_v0 = vld [vmem:[%s22639_s3 + $0x100] sm:$0xff]  }
 0x42b   : > { %v7263_v52 = vsel %vm20271_vm13, %v7260_v37, %v7262_v50  ;;  %v18016_v50 = vld [vmem:[%s22639_s3 + $0x160] sm:$0xff]   ;;  %v18034_v37 = vld [vmem:[%s22639_s3 + $0x148] sm:$0xff]  }
 0x42c   : > { %7264 = vst [vmem:[#allocation3 + $0x48] sm:$0x3e] %v7263_v52 }
 0x42d   : > { %8117 = vmatmul.mubr.bf16.gmra.mrb[64].mxu1 %v20630_v63  ;;  %v20656_v44 = vld [vmem:[#allocation3 + $0x40] sm:$0xff] }
 0x42e   : > { %8157 = vmatprep.mubr.bf16.mxu1 %v20399_v6  ;;  %v20660_v53 = vrot.slane %v20656_v44, 1  ;;  %v8542_v13 = vshll.u32 %v20656_v44, 16  ;;  %v8540_v15 = vshrl.u32 %v20656_v44, 16  ;;  %v8549_v6 = vrot.slane %v8547_v27, 1  ;;  %v18036_v27 = vld [vmem:[%s22639_s3 + $0x108] sm:$0xff]  }
 0x430   : > { %v20669_v36 = vsel %vm778_vm4, %v7379_v1, %v20660_v53  ;;  %v8544_v47 = vrot.slane %v8542_v13, 1  ;;  %v7368_v1 = vsel %vm778_vm4, %v7366_v39, %v7367_v58 }
 0x431   : > { %17158 = vmatmul.mubr.bf16.gmra.mrb[40].mxu0 %v20669_v36 }
 0x432   : > { %v20678_v51 = vsel %vm447_vm2, %v7343_v12, %v8544_v47  ;;  %v20680_v35 = vor.u32 %v8544_v47, %v8540_v15  ;;  %v20715_v12 = vld [vmem:[#allocation3 + $0x50] sm:$0x1]  ;;  %v18019_v15 = vld [vmem:[%s22639_s3 + $0x168] sm:$0xff]   ;;  %v20752_v47 = vsel %vm778_vm4, %v20705_v38, %v20307_v59 }
 0x433   : > { %v20685_v55 = vld [vmem:[#allocation3 + $0x48] sm:$0xff]  ;;  %v8574_v28 = vrot.slane %v20715_v12, 1  ;;  %v18021_v59 = vld [vmem:[%s22639_s3 + $0x170] sm:$0xff]  }
 0x434   : > { %v7438_v32 = vrot.slane %v20685_v55, 1  ;;  %v8561_v11 = vshll.u32 %v20685_v55, 16  ;;  %v8550_v45 = vsel %vm447_vm2, %v20680_v35, %v8549_v6  ;;  %v8534_v17 = vld [vmem:[#allocation3 + $0x48] sm:$0xfe] }
 0x435   : > { %8158 = vmatmul.mubr.bf16.vlgmr.msra.gmra.mrb[68].mxu1 %v7368_v1  ;;  %v8573_v7 = vrot.slane %v8534_v17, 1  ;;  %v18020_v6 = vld [vmem:[%s22639_s3 + $0x128] sm:$0xff]   ;;  %v18040_v1 = vld [vmem:[%s22639_s3 + $0x110] sm:$0xff]  }
 0x436   : > { %8165 = vmatprep.mubr.bf16.mxu1 %v20453_v14  ;;  %15680 = vmatpush3.bf16.msra.mxu1 %v17996_v8  ;;  %v7439_v31 = vsel %vm778_vm4, %v20660_v53, %v7438_v32  ;;  %v7441_v25 = vsel %vm778_vm4, %v7438_v32, %v7440_v61  ;;  %v20697_v49 = vrot.slane %v8561_v11, 1  ;;  %v18038_v8 = vld [vmem:[%s22639_s3 + $0x150] sm:$0xff]  }
 0x437   : > { %15681 = vmatprep.subr.bf16.mxu1 %v18001_v2  ;;  %17161 = vmatprep.mubr.bf16.mxu0 %v7439_v31  ;;  %v8575_v52 = vsel %vm778_vm4, %v8573_v7, %v8574_v28  ;;  %v18022_v11 = vld [vmem:[%s22639_s3 + $0x130] sm:$0xff]   ;;  %v18023_v31 = vld [vmem:[%s22639_s3 + $0x178] sm:$0xff]   ;;  %v20794_v7 = vpop.f32.mrb[32].mxu0  ;;  %v18025_v28 = vld [vmem:[%s22639_s3 + $0x1c0] sm:$0xff]  }
 0x438   : > { %v20710_v34 = vsel %vm447_vm2, %v20680_v35, %v20697_v49 }
 0x439   : > { %17162 = vmatmul.mubr.bf16.gmra.mrb[44].mxu0 %v7441_v25  ;;  %v18044_v25 = vld [vmem:[%s22639_s3 + $0x118] sm:$0xff]  }
 0x43a   : > { %15682 = vmatpush3.bf16.msra.mxu1 %v18002_v41  ;;  %9211 = vmatprep.mubr.bf16.mxu0 %v8550_v45 }
 0x43b   : > { %15683 = vmatprep.subr.bf16.mxu1 %v18007_v22 }
 0x43d   : > { %8166 = vmatmul.mubr.bf16.gmra.mrb[72].mxu1 %v7370_v43  ;;  %v18024_v43 = vld [vmem:[%s22639_s3 + $0x138] sm:$0xff]  }
 0x43e   : > { %8173 = vmatprep.mubr.bf16.mxu1 %v20304_v57  ;;  %15684 = vmatpush3.bf16.msra.mxu1 %v18008_v9  ;;  %v18046_v9 = vld [vmem:[%s22639_s3 + $0x160] sm:$0xff]  }
 0x43f   : > { %15685 = vmatprep.subr.bf16.mxu1 %v18012_v16 }
 0x441   : > { %9212 = vmatmul.mubr.bf16.vlgmr.msra.gmra.mrb[48].mxu0 %v20656_v44  ;;  %v15567_v57 = vpop.f32.mrb[36].mxu1 }
 0x442   : > { %15686 = vmatpush3.bf16.msra.mxu1 %v18014_v3  ;;  %15868 = vmatpush3.bf16.msra.mxu0 %v18032_v0  ;;  %v15568_v13 = vpop.f32.mrb[37].mxu1  ;;  %v18048_v3 = vld [vmem:[%s22639_s3 + $0x120] sm:$0xff]   ;;  %v20802_v0 = vpop.f32.mrb[33].mxu0 }
 0x443   : > { %15687 = vmatprep.subr.bf16.mxu1 %v18016_v50  ;;  %15869 = vmatprep.subr.bf16.mxu0 %v18034_v37  ;;  %v20747_v39 = vadd.f32 %v15568_v13, %v15567_v57  ;;  %v15570_v58 = vpop.f32.mrb[38].mxu1  ;;  %v18050_v50 = vld [vmem:[%s22639_s3 + $0x168] sm:$0xff]   ;;  %v8559_v37 = vshrl.u32 %v20685_v55, 16  ;;  %v20808_v57 = vpop.f32.mrb[34].mxu0 }
 0x444   : > { %9293 = vmatprep.mubr.bf16.mxu0 %v8575_v52  ;;  %v15571_v61 = vpop.f32.mrb[39].mxu1 }
 0x445   : > { %8174 = vmatmul.mubr.bf16.gmra.mrb[76].mxu1 %v20752_v47  ;;  %v20758_v2 = vadd.f32 %v15571_v61, %v15570_v58  ;;  %v18053_v61 = vld [vmem:[%s22639_s3 + $0x170] sm:$0xff]  }
 0x446   : > { %8181 = vmatprep.mubr.bf16.mxu1 %v20313_v4  ;;  %15688 = vmatpush3.bf16.msra.mxu1 %v18018_v23  ;;  %v18042_v4 = vld [vmem:[%s22639_s3 + $0x158] sm:$0xff]   ;;  %v20810_v23 = vpop.f32.mrb[35].mxu0 }
 0x447   : > { %15689 = vmatprep.subr.bf16.mxu1 %v18019_v15  ;;  %15870 = vmatpush3.bf16.msra.mxu0 %v18036_v27  ;;  %v20813_v15 = vor.u32 %v20697_v49, %v8559_v37  ;;  %v18052_v27 = vld [vmem:[%s22639_s3 + $0x128] sm:$0xff]   ;;  %v18054_v49 = vld [vmem:[%s22639_s3 + $0x130] sm:$0xff]  }
 0x448   : > { %15871 = vmatprep.subr.bf16.mxu0 %v18038_v8 }
 0x449   : > { %v15573_v32 = vpop.f32.mrb[40].mxu1 }
 0x44a   : > { %15690 = vmatpush3.bf16.msra.mxu1 %v18020_v6  ;;  %v15574_v41 = vpop.f32.mrb[41].mxu1 }
 0x44b   : > { %15691 = vmatprep.subr.bf16.mxu1 %v18021_v59  ;;  %15872 = vmatpush3.bf16.msra.mxu0 %v18040_v1  ;;  %v20782_v22 = vadd.f32 %v15574_v41, %v15573_v32  ;;  %v15576_v45 = vpop.f32.mrb[42].mxu1  ;;  %v8566_v1 = vshll.u32 %v20715_v12, 16  ;;  %v18056_v41 = vld [vmem:[%s22639_s3 + $0x138] sm:$0xff]  }
 0x44c   : > { %15873 = vmatprep.subr.bf16.mxu0 %v18042_v4  ;;  %v15577_v17 = vpop.f32.mrb[43].mxu1  ;;  %v18055_v4 = vld [vmem:[%s22639_s3 + $0x178] sm:$0xff]  }
 0x44d   : > { %8182 = vmatmul.mubr.bf16.gmra.mrb[80].mxu1 %v20320_v10  ;;  %v20788_v16 = vadd.f32 %v15577_v17, %v15576_v45 }
 0x44e   : > { %8189 = vmatprep.mubr.bf16.mxu1 %v20480_v29  ;;  %15692 = vmatpush3.bf16.msra.mxu1 %v18022_v11 }
 0x44f   : > { %15693 = vmatprep.subr.bf16.mxu1 %v18023_v31  ;;  %15874 = vmatpush3.bf16.msra.mxu0 %v18044_v25  ;;  %v8568_v31 = vrot.slane %v8566_v1, 1  ;;  %v18035_v1 = vld [vmem:[%s22639_s3 + $0x198] sm:$0xff]  }
 0x450   : > { %15875 = vmatprep.subr.bf16.mxu0 %v18046_v9 }
 0x451   : > { %v15579_v52 = vpop.f32.mrb[44].mxu1  ;;  %v8569_v17 = vsel %vm447_vm2, %v20813_v15, %v8568_v31  ;;  %v18043_v31 = vld [vmem:[%s22639_s3 + $0x1a8] sm:$0xff]  }
 0x452   : > { %15694 = vmatpush3.bf16.msra.mxu1 %v18024_v43  ;;  %v15580_v13 = vpop.f32.mrb[45].mxu1 }
 0x453   : > { %15743 = vmatprep.subr.bf16.mxu1 %v18025_v28  ;;  %15876 = vmatpush3.bf16.msra.mxu0 %v18048_v3  ;;  %v20818_v58 = vadd.f32 %v15580_v13, %v15579_v52  ;;  %v15582_v8 = vpop.f32.mrb[46].mxu1  ;;  %v7277_v13 = vld [vmem:[#allocation3 + $0x8] sm:$0xfe] }
 0x454   : > { %15877 = vmatprep.subr.bf16.mxu0 %v18050_v50  ;;  %v15583_v6 = vpop.f32.mrb[47].mxu1 }
 0x455   : > { %8190 = vmatmul.mubr.bf16.gmra.mrb[84].mxu1 %v20510_v19  ;;  %v20824_v59 = vadd.f32 %v15583_v6, %v15582_v8  ;;  %v18027_v6 = vld [vmem:[%s22639_s3 + $0x1c8] sm:$0xff]  }
 0x456   : > { %8197 = vmatprep.mubr.bf16.mxu1 %v20609_v20 }
 0x457   : > { %15878 = vmatpush3.bf16.msra.mxu0 %v18052_v27  ;;  %v7409_v27 = vrot.slane %v7277_v13, 1  ;;  %v18093_v13 = vld [vmem:[%s22639_s3 + $0x230] sm:$0xff]  }
 0x458   : > { %15879 = vmatprep.subr.bf16.mxu0 %v18053_v61  ;;  %v18026_v61 = vld [vmem:[%s22639_s3 + $0x180] sm:$0xff]  }
 0x459   : > { %v15585_v32 = vpop.f32.mrb[48].mxu1  ;;  %v7410_v8 = vsel %vm778_vm4, %v7409_v27, %v20705_v38  ;;  %v18075_v38 = vld [vmem:[%s22639_s3 + $0x200] sm:$0xff]   ;;  %v18096_v27 = vld [vmem:[%s22639_s3 + $0x238] sm:$0xff]  }
 0x45a   : > { %v15586_v11 = vpop.f32.mrb[49].mxu1 }
 0x45b   : > { %15880 = vmatpush3.bf16.msra.mxu0 %v18054_v49  ;;  %v20837_v25 = vadd.f32 %v15586_v11, %v15585_v32  ;;  %v15588_v45 = vpop.f32.mrb[50].mxu1  ;;  %v18029_v49 = vld [vmem:[%s22639_s3 + $0x1d0] sm:$0xff]   ;;  %v18037_v32 = vld [vmem:[%s22639_s3 + $0x1e0] sm:$0xff]  }
 0x45c   : > { %15881 = vmatprep.subr.bf16.mxu0 %v18055_v4  ;;  %v15589_v9 = vpop.f32.mrb[51].mxu1  ;;  %v18078_v4 = vld [vmem:[%s22639_s3 + $0x208] sm:$0xff]   ;;  %v18081_v11 = vld [vmem:[%s22639_s3 + $0x210] sm:$0xff]  }
 0x45d   : > { %8198 = vmatmul.mubr.bf16.gmra.mrb[88].mxu1 %v20618_v24  ;;  %v20840_v12 = vadd.f32 %v15589_v9, %v15588_v45  ;;  %v18084_v45 = vld [vmem:[%s22639_s3 + $0x218] sm:$0xff]   ;;  %v18045_v9 = vld [vmem:[%s22639_s3 + $0x1f0] sm:$0xff]  }
 0x45e   : > { %8205 = vmatprep.mubr.bf16.mxu1 %v20630_v63 }
 0x45f   : > { %15882 = vmatpush3.bf16.msra.mxu0 %v18056_v41  ;;  %v18041_v41 = vld [vmem:[%s22639_s3 + $0x1e8] sm:$0xff]  }
 0x460   : > { %17165 = vmatprep.subr.bf16.mxu0 %v22648_v33 }
 0x461   : > { %v15591_v43 = vpop.f32.mrb[52].mxu1 }
 0x462   : > { %9294 = vmatmul.mubr.bf16.vlgmr.msra.gmra.mrb[52].mxu0 %v8569_v17  ;;  %v15592_v28 = vpop.f32.mrb[53].mxu1  ;;  %v18087_v17 = vld [vmem:[%s22639_s3 + $0x220] sm:$0xff]  }
 0x463   : > { %v20846_v3 = vadd.f32 %v15592_v28, %v15591_v43  ;;  %v15594_v50 = vpop.f32.mrb[54].mxu1  ;;  %17166 = vmatpush3.bf16.msra.mxu0 %v18075_v38  ;;  %v18049_v43 = vld [vmem:[%s22639_s3 + $0x1f8] sm:$0xff]   ;;  %17181 = vmatprep.mubr.msk.bf16.mxu0 %vm18442_vm14, %v22648_v33 }
 0x464   : > { %v15595_v37 = vpop.f32.mrb[55].mxu1  ;;  %17167 = vmatprep.subr.bf16.mxu0 %v22648_v33  ;;  %v18051_v28 = vld [vmem:[%s22639_s3 + $0x1b8] sm:$0xff]  }
 0x465   : > { %8206 = vmatmul.mubr.bf16.gmra.mrb[92].mxu1 %v20637_v60  ;;  %v20849_v52 = vadd.f32 %v15595_v37, %v15594_v50  ;;  %v18090_v50 = vld [vmem:[%s22639_s3 + $0x228] sm:$0xff]   ;;  %v18057_v37 = vld [vmem:[%s22639_s3 + $0xc0] sm:$0xff]  }
 0x466   : > { %8213 = vmatprep.mubr.bf16.mxu1 %v20656_v44 }
 0x467   : > { %17168 = vmatpush3.bf16.msra.mxu0 %v18078_v4  ;;  %v18059_v4 = vld [vmem:[%s22639_s3 + $0xc8] sm:$0xff]  }
 0x468   : > { %17169 = vmatprep.subr.bf16.mxu0 %v22648_v33 }
 0x46b   : > { %17170 = vmatpush3.bf16.msra.mxu0 %v18081_v11  ;;  %v18065_v11 = vld [vmem:[%s22639_s3 + $0xe0] sm:$0xff]  }
 0x46c   : > { %17171 = vmatprep.subr.bf16.mxu0 %v22648_v33 }
 0x46d   : > { %8214 = vmatmul.mubr.bf16.gmra.mrb[96].mxu1 %v20641_v56  ;;  %v18028_v56 = vld [vmem:[%s22639_s3 + $0x188] sm:$0xff]  }
 0x46e   : > { %8254 = vmatprep.mubr.bf16.mxu1 %v7410_v8  ;;  %v8538_v8 = vld [vmem:[#allocation3 + $0x50] sm:$0xfe] }
 0x46f   : > { %17172 = vmatpush3.bf16.msra.mxu0 %v18084_v45  ;;  %v18069_v45 = vld [vmem:[%s22639_s3 + $0xf0] sm:$0xff]  }
 0x470   : > { %17173 = vmatprep.subr.bf16.mxu0 %v22648_v33 }
 0x473   : > { %17174 = vmatpush3.bf16.msra.mxu0 %v18087_v17  ;;  %v18072_v17 = vld [vmem:[%s22639_s3 + $0xb8] sm:$0xff]  }
 0x474   : > { %17175 = vmatprep.subr.bf16.mxu0 %v22648_v33 }
 0x475   : > { %8255 = vmatmul.mubr.bf16.vlgmr.msra.gmra.mrb[100].mxu1 %v20467_v48  ;;  %v18030_v48 = vld [vmem:[%s22639_s3 + $0x190] sm:$0xff]  }
 0x476   : > { %8262 = vmatprep.mubr.bf16.mxu1 %v20752_v47  ;;  %15744 = vmatpush3.bf16.msra.mxu1 %v18026_v61  ;;  %v18033_v47 = vld [vmem:[%s22639_s3 + $0x1d8] sm:$0xff]  }
 0x477   : > { %15745 = vmatprep.subr.bf16.mxu1 %v18027_v6  ;;  %17176 = vmatpush3.bf16.msra.mxu0 %v18090_v50  ;;  %v8592_v6 = vrot.slane %v8538_v8, 1 }
 0x478   : > { %17177 = vmatprep.subr.bf16.mxu0 %v22648_v33 }
 0x47a   : > { %15746 = vmatpush3.bf16.msra.mxu1 %v18028_v56 }
 0x47b   : > { %15747 = vmatprep.subr.bf16.mxu1 %v18029_v49  ;;  %17178 = vmatpush3.bf16.msra.mxu0 %v18093_v13 }
 0x47c   : > { %17179 = vmatprep.subr.bf16.mxu0 %v22648_v33 }
 0x47d   : > { %8263 = vmatmul.mubr.bf16.gmra.mrb[104].mxu1 %v20474_v40 }
 0x47e   : > { %8270 = vmatprep.mubr.bf16.mxu1 %v20320_v10  ;;  %15748 = vmatpush3.bf16.msra.mxu1 %v18030_v48  ;;  %v18039_v10 = vld [vmem:[%s22639_s3 + $0x1a0] sm:$0xff]  }
 0x47f   : > { %15749 = vmatprep.subr.bf16.mxu1 %v18033_v47  ;;  %17180 = vmatpush3.bf16.msra.mxu0 %v18096_v27 }
 0x482   : > { %15750 = vmatpush3.bf16.msra.mxu1 %v18035_v1 }
 0x483   : > { %15751 = vmatprep.subr.bf16.mxu1 %v18037_v32  ;;  %v18064_v32 = vld [vmem:[%s22639_s3 + $0x98] sm:$0xff]  }
 0x485   : > { %8271 = vmatmul.mubr.bf16.gmra.mrb[108].mxu1 %v20483_v21 }
 0x486   : > { %8278 = vmatprep.mubr.bf16.mxu1 %v20510_v19  ;;  %15752 = vmatpush3.bf16.msra.mxu1 %v18039_v10  ;;  %v18047_v19 = vld [vmem:[%s22639_s3 + $0x1b0] sm:$0xff]   ;;  %v18066_v10 = vld [vmem:[%s22639_s3 + $0xa0] sm:$0xff]  }
 0x487   : > { %15753 = vmatprep.subr.bf16.mxu1 %v18041_v41  ;;  %v18371_v41 = vld [vmem:[#allocation3 + $0x20] sm:$0xff] }
 0x48a   : > { %15754 = vmatpush3.bf16.msra.mxu1 %v18043_v31  ;;  %v18068_v31 = vld [vmem:[%s22639_s3 + $0xa8] sm:$0xff]  }
 0x48b   : > { %15755 = vmatprep.subr.bf16.mxu1 %v18045_v9  ;;  %v18070_v9 = vld [vmem:[%s22639_s3 + $0xb0] sm:$0xff]  }
 0x48d   : > { %8279 = vmatmul.mubr.bf16.gmra.mrb[112].mxu1 %v20493_v62 }
 0x48e   : > { %8286 = vmatprep.mubr.bf16.mxu1 %v20618_v24  ;;  %15756 = vmatpush3.bf16.msra.mxu1 %v18047_v19  ;;  %v20941_v24 = vld [vmem:[#allocation3 + $0x58] sm:$0x1]  ;;  %v18073_v19 = vld [vmem:[%s22639_s3 + $0x1c0] sm:$0xff]  }
 0x48f   : > { %15757 = vmatprep.subr.bf16.mxu1 %v18049_v43  ;;  %v8593_v61 = vrot.slane %v20941_v24, 1 }
 0x491   : > { %v8594_v56 = vsel %vm778_vm4, %v8592_v6, %v8593_v61  ;;  %v8555_v61 = vrot.slane %v20653_v5, 1 }
 0x492   : > { %15758 = vmatpush3.bf16.msra.mxu1 %v18051_v28  ;;  %17182 = vmatmul.mubr.bf16.vlgmr.msra.gmra.mrb[56].mxu0 %v8594_v56  ;;  %v21022_v28 = vld [vmem:[#allocation3] sm:$0xff] }
 0x493   : > { %15845 = vmatprep.subr.bf16.mxu1 %v18057_v37  ;;  %17217 = vmatprep.mubr.msk.f32.mxu0 %vm18442_vm14, %v22648_v33  ;;  %v8580_v50 = vshll.u32 %v21022_v28, 16 }
 0x495   : > { %8287 = vmatmul.mubr.bf16.gmra.mrb[116].mxu1 %v20623_v26 }
 0x496   : > { %8294 = vmatprep.mubr.bf16.mxu1 %v20637_v60  ;;  %v7276_v60 = vld [vmem:[#allocation3 + $0x48] sm:$0x1] }
 0x497   : > { %v7413_v38 = vrot.slane %v7276_v60, 1  ;;  %v7400_v49 = vshll.u32 %v7276_v60, 16 }
 0x499   : > { %v7414_v48 = vsel %vm778_vm4, %v20660_v53, %v7413_v38  ;;  %v7402_v47 = vrot.slane %v7400_v49, 1  ;;  %v18060_v53 = vld [vmem:[%s22639_s3 + $0x88] sm:$0xff]   ;;  %v18074_v49 = vld [vmem:[%s22639_s3 + $0x180] sm:$0xff]  }
 0x49b   : > { %v7403_v1 = vsel %vm447_vm2, %v20680_v35, %v7402_v47  ;;  %v18062_v35 = vld [vmem:[%s22639_s3 + $0x90] sm:$0xff]  }
 0x49d   : > { %8295 = vmatmul.mubr.bf16.gmra.mrb[120].mxu1 %v20644_v18 }
 0x49e   : > { %8302 = vmatprep.mubr.bf16.mxu1 %v20669_v36  ;;  %v18058_v36 = vld [vmem:[%s22639_s3 + $0x80] sm:$0xff]  }
 0x4a5   : > { %8303 = vmatmul.mubr.bf16.gmra.mrb[124].mxu1 %v20678_v51 }
 0x4a6   : > { %8310 = vmatprep.mubr.bf16.mxu1 %v7414_v48 }
 0x4ad   : > { %8311 = vmatmul.mubr.bf16.gmra.mrb[128].mxu1 %v7403_v1  ;;  %v18077_v1 = vld [vmem:[%s22639_s3 + $0x188] sm:$0xff]  }
 0x4ae   : > { %8351 = vmatprep.mubr.bf16.mxu1 %v20474_v40  ;;  %v18061_v40 = vld [vmem:[%s22639_s3 + $0xd0] sm:$0xff]  }
 0x4b5   : > { %8352 = vmatmul.mubr.bf16.vlgmr.msra.gmra.mrb[132].mxu1 %v20453_v14  ;;  %v18063_v14 = vld [vmem:[%s22639_s3 + $0xd8] sm:$0xff]  }
 0x4b6   : > { %8359 = vmatprep.mubr.bf16.mxu1 %v20483_v21  ;;  %15846 = vmatpush3.bf16.msra.mxu1 %v18058_v36  ;;  %v18370_v21 = vld [vmem:[#allocation3 + $0x18] sm:$0xff]  ;;  %v18079_v36 = vld [vmem:[%s22639_s3 + $0x1d0] sm:$0xff]  }
 0x4b7   : > { %15847 = vmatprep.subr.bf16.mxu1 %v18059_v4 }
 0x4ba   : > { %15848 = vmatpush3.bf16.msra.mxu1 %v18060_v53 }
 0x4bb   : > { %15849 = vmatprep.subr.bf16.mxu1 %v18061_v40 }
 0x4bd   : > { %8360 = vmatmul.mubr.bf16.gmra.mrb[136].mxu1 %v18370_v21 }
 0x4be   : > { %8367 = vmatprep.mubr.bf16.mxu1 %v20493_v62  ;;  %15850 = vmatpush3.bf16.msra.mxu1 %v18062_v35  ;;  %v18067_v62 = vld [vmem:[%s22639_s3 + $0xe8] sm:$0xff]  }
 0x4bf   : > { %15851 = vmatprep.subr.bf16.mxu1 %v18063_v14  ;;  %v18080_v14 = vld [vmem:[%s22639_s3 + $0x190] sm:$0xff]  }
 0x4c2   : > { %15852 = vmatpush3.bf16.msra.mxu1 %v18064_v32  ;;  %v18082_v32 = vld [vmem:[%s22639_s3 + $0x1d8] sm:$0xff]  }
 0x4c3   : > { %15853 = vmatprep.subr.bf16.mxu1 %v18065_v11 }
 0x4c5   : > { %8368 = vmatmul.mubr.bf16.gmra.mrb[140].mxu1 %v18371_v41 }
 0x4c6   : > { %8375 = vmatprep.mubr.bf16.mxu1 %v20623_v26  ;;  %15854 = vmatpush3.bf16.msra.mxu1 %v18066_v10  ;;  %v18071_v26 = vld [vmem:[%s22639_s3 + $0xf8] sm:$0xff]  }
 0x4c7   : > { %15855 = vmatprep.subr.bf16.mxu1 %v18067_v62  ;;  %v18083_v10 = vld [vmem:[%s22639_s3 + $0x198] sm:$0xff]   ;;  %v18085_v62 = vld [vmem:[%s22639_s3 + $0x1e0] sm:$0xff]  }
 0x4ca   : > { %15856 = vmatpush3.bf16.msra.mxu1 %v18068_v31 }
 0x4cb   : > { %15857 = vmatprep.subr.bf16.mxu1 %v18069_v45 }
 0x4cd   : > { %8376 = vmatmul.mubr.bf16.gmra.mrb[144].mxu1 %v20480_v29  ;;  %v7427_v29 = vshll.u32 %v20663_v42, 16 }
 0x4ce   : > { %8383 = vmatprep.mubr.bf16.mxu1 %v20644_v18  ;;  %15858 = vmatpush3.bf16.msra.mxu1 %v18070_v9 }
 0x4cf   : > { %15859 = vmatprep.subr.bf16.mxu1 %v18071_v26  ;;  %v7429_v18 = vrot.slane %v7427_v29, 1  ;;  %v18086_v26 = vld [vmem:[%s22639_s3 + $0x1a0] sm:$0xff]  }
 0x4d1   : > { %v7430_v43 = vsel %vm447_vm2, %v20813_v15, %v7429_v18 }
 0x4d2   : > { %15860 = vmatpush3.bf16.msra.mxu1 %v18072_v17 }
 0x4d3   : > { %15889 = vmatprep.subr.bf16.mxu1 %v18073_v19  ;;  %v18088_v19 = vld [vmem:[%s22639_s3 + $0x1e8] sm:$0xff]  }
 0x4d5   : > { %8384 = vmatmul.mubr.bf16.gmra.mrb[148].mxu1 %v20609_v20  ;;  %v8578_v20 = vshrl.u32 %v21022_v28, 16 }
 0x4d6   : > { %8391 = vmatprep.mubr.bf16.mxu1 %v20678_v51  ;;  %v8582_v51 = vrot.slane %v8580_v50, 1 }
 0x4d8   : > { %v8583_v27 = vor.u32 %v8582_v51, %v8578_v20  ;;  %v18089_v20 = vld [vmem:[%s22639_s3 + $0x1a8] sm:$0xff]  }
 0x4dd   : > { %8392 = vmatmul.mubr.bf16.gmra.mrb[152].mxu1 %v20630_v63  ;;  %v8585_v63 = vshll.u32 %v20941_v24, 16 }
 0x4de   : > { %8399 = vmatprep.mubr.bf16.mxu1 %v20710_v34 }
 0x4df   : > { %v8587_v8 = vrot.slane %v8585_v63, 1  ;;  %v18091_v63 = vld [vmem:[%s22639_s3 + $0x1f0] sm:$0xff]  }
 0x4e1   : > { %v8588_v47 = vsel %vm447_vm2, %v8583_v27, %v8587_v8 }
 0x4e5   : > { %8400 = vmatmul.mubr.bf16.gmra.mrb[156].mxu1 %v20656_v44  ;;  %v8531_v44 = vld [vmem:[#allocation3 + $0x40] sm:$0xfe] }
 0x4e6   : > { %8407 = vmatprep.mubr.bf16.mxu1 %v7430_v43  ;;  %v8554_v24 = vrot.slane %v8531_v44, 1 }
 0x4e8   : > { %v8556_v5 = vsel %vm778_vm4, %v8554_v24, %v8555_v61  ;;  %v18092_v24 = vld [vmem:[%s22639_s3 + $0x1b0] sm:$0xff]  }
 0x4ec   : > { %v21027_v37 = vpop.f32.mrb[36].mxu0 }
 0x4ed   : > { %8408 = vmatmul.mubr.bf16.gmra.mrb[160].mxu1 %v20685_v55  ;;  %v21030_v42 = vpop.f32.mrb[37].mxu0 }
 0x4ee   : > { %v21032_v34 = vpop.f32.mrb[38].mxu0  ;;  %9252 = vmatprep.mubr.bf16.mxu1 %v20685_v55  ;;  %v18076_v55 = vld [vmem:[%s22639_s3 + $0x1c8] sm:$0xff]  }
 0x4ef   : > { %v15597_v15 = vpop.f32.mrb[56].mxu1  ;;  %v21035_v13 = vpop.f32.mrb[39].mxu0 }
 0x4f0   : > { %v15598_v6 = vpop.f32.mrb[57].mxu1 }
 0x4f1   : > { %v21038_v56 = vadd.f32 %v15598_v6, %v15597_v15  ;;  %v15600_v60 = vpop.f32.mrb[58].mxu1  ;;  %v21099_v15 = vld [vmem:[%s22640_s4] ss:$0 sm:$0xff] }
 0x4f2   : > { %v15601_v38 = vpop.f32.mrb[59].mxu1  ;;  %v8063_v8 = vadd.f32 %v20747_v39, %v21099_v15 }
 0x4f3   : > { %v21043_v48 = vadd.f32 %v15601_v38, %v15600_v60  ;;  %v18094_v38 = vld [vmem:[%s22639_s3 + $0x1f8] sm:$0xff]  }
 0x4f5   : > { %9253 = vmatmul.mubr.bf16.vlgmr.msra.gmra.mrb[164].mxu1 %v8556_v5 }
 0x4f6   : > { %15890 = vmatpush3.bf16.msra.mxu1 %v18074_v49  ;;  %9334 = vmatprep.mubr.bf16.mxu1 %v8588_v47 }
 0x4f7   : > { %15891 = vmatprep.subr.bf16.mxu1 %v18076_v55  ;;  %v8066_v55 = vadd.f32 %v20758_v2, %v21099_v15  ;;  %v8071_v2 = vadd.f32 %v20782_v22, %v21099_v15 }
 0x4f8   : > { %v15603_v4 = vpop.f32.mrb[60].mxu1 }
 0x4f9   : > { %v15604_v53 = vpop.f32.mrb[61].mxu1 }
 0x4fa   : > { %v21056_v40 = vadd.f32 %v15604_v53, %v15603_v4  ;;  %15892 = vmatpush3.bf16.msra.mxu1 %v18077_v1  ;;  %v15606_v35 = vpop.f32.mrb[62].mxu1 }
 0x4fb   : > { %v15607_v21 = vpop.f32.mrb[63].mxu1  ;;  %15893 = vmatprep.subr.bf16.mxu1 %v18079_v36  ;;  %v18095_v36 = vld [vmem:[%s22639_s3 + $0x1b8] sm:$0xff]  }
 0x4fc   : > { %v21064_v11 = vadd.f32 %v15607_v21, %v15606_v35 }
 0x4fe   : > { %15894 = vmatpush3.bf16.msra.mxu1 %v18080_v14 }
 0x4ff   : > { %15895 = vmatprep.subr.bf16.mxu1 %v18082_v32 }
 0x500   : > { %v15609_v41 = vpop.f32.mrb[64].mxu1 }
 0x501   : > { %v15610_v31 = vpop.f32.mrb[65].mxu1 }
 0x502   : > { %v21072_v45 = vadd.f32 %v15610_v31, %v15609_v41  ;;  %15896 = vmatpush3.bf16.msra.mxu1 %v18083_v10  ;;  %v15612_v9 = vpop.f32.mrb[66].mxu1  ;;  %v8074_v41 = vadd.f32 %v20788_v16, %v21099_v15  ;;  %v8079_v16 = vadd.f32 %v20818_v58, %v21099_v15 }
 0x503   : > { %v15613_v17 = vpop.f32.mrb[67].mxu1  ;;  %15897 = vmatprep.subr.bf16.mxu1 %v18085_v62 }
 0x504   : > { %v21080_v29 = vadd.f32 %v15613_v17, %v15612_v9  ;;  %v21082_v18 = vpop.f32.mrb[40].mxu0 }
 0x505   : > { %v21084_v43 = vpop.f32.mrb[41].mxu0 }
 0x506   : > { %15898 = vmatpush3.bf16.msra.mxu1 %v18086_v26  ;;  %v21086_v50 = vpop.f32.mrb[42].mxu0 }
 0x507   : > { %v21091_v51 = vpop.f32.mrb[43].mxu0  ;;  %15899 = vmatprep.subr.bf16.mxu1 %v18088_v19 }
 0x508   : > { %v15631_v44 = vpop.f32.mrb[68].mxu1 }
 0x509   : > { %v15632_v27 = vpop.f32.mrb[69].mxu1 }
 0x50a   : > { %v15633_v61 = vadd.f32 %v15632_v27, %v15631_v44  ;;  %15900 = vmatpush3.bf16.msra.mxu1 %v18089_v20  ;;  %v15634_v6 = vpop.f32.mrb[70].mxu1 }
 0x50b   : > { %v15635_v60 = vpop.f32.mrb[71].mxu1  ;;  %15901 = vmatprep.subr.bf16.mxu1 %v18091_v63 }
 0x50c   : > { %v21109_v49 = vadd.f32 %v15633_v61, %v8063_v8  ;;  %v15636_v47 = vadd.f32 %v15635_v60, %v15634_v6  ;;  %v21113_v39 = vpop.f32.mrb[44].mxu0 }
 0x50d   : > { %v21115_v5 = vpop.f32.mrb[45].mxu0 }
 0x50e   : > { %v21117_v1 = vadd.f32 %v15636_v47, %v8066_v55  ;;  %15902 = vmatpush3.bf16.msra.mxu1 %v18092_v24  ;;  %v21122_v4 = vpop.f32.mrb[46].mxu0  ;;  %v8082_v24 = vadd.f32 %v20824_v59, %v21099_v15 }
 0x50f   : > { %15903 = vmatprep.subr.bf16.mxu1 %v18094_v38  ;;  %v21124_v53 = vpop.f32.mrb[47].mxu0 }
 0x510   : > { %v15637_v35 = vpop.f32.mrb[72].mxu1 }
 0x511   : > { %v15638_v14 = vpop.f32.mrb[73].mxu1 }
 0x512   : > { %v15639_v21 = vadd.f32 %v15638_v14, %v15637_v35  ;;  %15904 = vmatpush3.bf16.msra.mxu1 %v18095_v36  ;;  %v15640_v32 = vpop.f32.mrb[74].mxu1  ;;  %v8087_v36 = vadd.f32 %v20837_v25, %v21099_v15  ;;  %v8095_v25 = vadd.f32 %v20846_v3, %v21099_v15  ;;  %v8106_v3 = vadd.f32 %v21043_v48, %v21099_v15 }
 0x513   : > { %v15641_v10 = vpop.f32.mrb[75].mxu1 }
 0x514   : > { %v21128_v62 = vadd.f32 %v15639_v21, %v8071_v2  ;;  %v15642_v31 = vadd.f32 %v15641_v10, %v15640_v32  ;;  %v15839_v9 = vpop.f32.mrb[48].mxu0  ;;  %v8090_v21 = vadd.f32 %v20840_v12, %v21099_v15  ;;  %v8098_v12 = vadd.f32 %v20849_v52, %v21099_v15 }
 0x515   : > { %9335 = vmatmul.mubr.bf16.vlgmr.msra.gmra.mrb[168].mxu1 %v21022_v28  ;;  %v15840_v26 = vpop.f32.mrb[49].mxu0 }
 0x516   : > { %v21133_v17 = vadd.f32 %v15642_v31, %v8074_v41  ;;  %v21135_v19 = vadd.f32 %v15840_v26, %v15839_v9  ;;  %v15842_v20 = vpop.f32.mrb[50].mxu0  ;;  %17189 = vmatprep.mubr.msk.f32.mxu1 %vm18442_vm14, %v22648_v33  ;;  %v18443_v31 = vmov 0.0|0.0  }
 0x517   : > { %v15843_v22 = vpop.f32.mrb[51].mxu0  ;;  %17339 = vmatprep.subr.bf16.mxu1 %v18443_v31  ;;  %17355 = vmatprep.subr.bf16.mxu0 %v18443_v31 }
 0x518   : > { %v15643_v63 = vpop.f32.mrb[76].mxu1  ;;  %v21139_v44 = vadd.f32 %v15843_v22, %v15842_v20 }
 0x519   : > { %v15644_v27 = vpop.f32.mrb[77].mxu1 }
 0x51a   : > { %v15645_v8 = vadd.f32 %v15644_v27, %v15643_v63  ;;  %v15646_v61 = vpop.f32.mrb[78].mxu1 }
 0x51b   : > { %v15647_v28 = vpop.f32.mrb[79].mxu1 }
 0x51c   : > { %v21143_v6 = vadd.f32 %v15645_v8, %v8079_v16  ;;  %v15648_v60 = vadd.f32 %v15647_v28, %v15646_v61  ;;  %v8103_v61 = vadd.f32 %v21038_v56, %v21099_v15 }
 0x51e   : > { %v21147_v38 = vadd.f32 %v15648_v60, %v8082_v24 }
 0x520   : > { %v15649_v55 = vpop.f32.mrb[80].mxu1 }
 0x521   : > { %v15650_v47 = vpop.f32.mrb[81].mxu1 }
 0x522   : > { %v15651_v35 = vadd.f32 %v15650_v47, %v15649_v55  ;;  %v15652_v14 = vpop.f32.mrb[82].mxu1 }
 0x523   : > { %v15653_v2 = vpop.f32.mrb[83].mxu1 }
 0x524   : > { %v21151_v58 = vadd.f32 %v15651_v35, %v8087_v36  ;;  %v15654_v32 = vadd.f32 %v15653_v2, %v15652_v14 }
 0x526   : > { %v21155_v10 = vadd.f32 %v15654_v32, %v8090_v21 }
 0x528   : > { %v15655_v59 = vpop.f32.mrb[84].mxu1 }
 0x529   : > { %v15656_v41 = vpop.f32.mrb[85].mxu1 }
 0x52a   : > { %v15657_v9 = vadd.f32 %v15656_v41, %v15655_v59  ;;  %v15658_v26 = vpop.f32.mrb[86].mxu1  ;;  %v8111_v41 = vadd.f32 %v21056_v40, %v21099_v15  ;;  %v8122_v40 = vadd.f32 %v21080_v29, %v21099_v15 }
 0x52b   : > { %v15659_v20 = vpop.f32.mrb[87].mxu1 }
 0x52c   : > { %v21161_v22 = vadd.f32 %v15657_v9, %v8095_v25  ;;  %v15660_v63 = vadd.f32 %v15659_v20, %v15658_v26  ;;  %v8114_v26 = vadd.f32 %v21064_v11, %v21099_v15 }
 0x52e   : > { %v21165_v27 = vadd.f32 %v15660_v63, %v8098_v12 }
 0x530   : > { %v15661_v16 = vpop.f32.mrb[88].mxu1 }
 0x531   : > { %v15662_v8 = vpop.f32.mrb[89].mxu1 }
 0x532   : > { %v15663_v28 = vadd.f32 %v15662_v8, %v15661_v16  ;;  %v15664_v24 = vpop.f32.mrb[90].mxu1 }
 0x533   : > { %v15665_v60 = vpop.f32.mrb[91].mxu1 }
 0x534   : > { %v21171_v55 = vadd.f32 %v15663_v28, %v8103_v61  ;;  %v15666_v47 = vadd.f32 %v15665_v60, %v15664_v24  ;;  %v8119_v61 = vadd.f32 %v21072_v45, %v21099_v15 }
 0x535   : > { %v15883_v36 = vpop.f32.mrb[52].mxu0 }
 0x536   : > { %v21173_v35 = vadd.f32 %v15666_v47, %v8106_v3  ;;  %v15884_v52 = vpop.f32.mrb[53].mxu0 }
 0x537   : > { %v21175_v14 = vadd.f32 %v15884_v52, %v15883_v36  ;;  %v15886_v2 = vpop.f32.mrb[54].mxu0 }
 0x538   : > { %v15667_v21 = vpop.f32.mrb[92].mxu1  ;;  %v15887_v32 = vpop.f32.mrb[55].mxu0 }
 0x539   : > { %v15668_v59 = vpop.f32.mrb[93].mxu1  ;;  %v21177_v56 = vadd.f32 %v15887_v32, %v15886_v2 }
 0x53a   : > { %v15669_v25 = vadd.f32 %v15668_v59, %v15667_v21  ;;  %v15670_v48 = vpop.f32.mrb[94].mxu1 }
 0x53b   : > { %v15671_v9 = vpop.f32.mrb[95].mxu1 }
 0x53c   : > { %v21183_v20 = vadd.f32 %v15669_v25, %v8111_v41  ;;  %v15672_v12 = vadd.f32 %v15671_v9, %v15670_v48 }
 0x53e   : > { %v21185_v63 = vadd.f32 %v15672_v12, %v8114_v26 }
 0x540   : > { %v15673_v16 = vpop.f32.mrb[96].mxu1 }
 0x541   : > { %v15674_v8 = vpop.f32.mrb[97].mxu1 }
 0x542   : > { %v15675_v28 = vadd.f32 %v15674_v8, %v15673_v16  ;;  %v15676_v24 = vpop.f32.mrb[98].mxu1 }
 0x543   : > { %v15677_v60 = vpop.f32.mrb[99].mxu1 }
 0x544   : > { %v21191_v3 = vadd.f32 %v15675_v28, %v8119_v61  ;;  %v15678_v47 = vadd.f32 %v15677_v60, %v15676_v24 }
 0x546   : > { %v21193_v11 = vadd.f32 %v15678_v47, %v8122_v40 }
 0x548   : > { %v15695_v36 = vpop.f32.mrb[100].mxu1 }
 0x549   : > { %v15696_v52 = vpop.f32.mrb[101].mxu1 }
 0x54a   : > { %v15697_v2 = vadd.f32 %v15696_v52, %v15695_v36  ;;  %v15698_v21 = vpop.f32.mrb[102].mxu1 }
 0x54b   : > { %v15699_v32 = vpop.f32.mrb[103].mxu1 }
 0x54c   : > { %v21196_v59 = vadd.f32 %v15697_v2, %v21109_v49  ;;  %v15700_v45 = vadd.f32 %v15699_v32, %v15698_v21 }
 0x54e   : > { %v21199_v41 = vadd.f32 %v15700_v45, %v21117_v1 }
 0x550   : > { %v15701_v25 = vpop.f32.mrb[104].mxu1 }
 0x551   : > { %v15702_v48 = vpop.f32.mrb[105].mxu1 }
 0x552   : > { %v15703_v29 = vadd.f32 %v15702_v48, %v15701_v25  ;;  %v15704_v9 = vpop.f32.mrb[106].mxu1 }
 0x553   : > { %v15705_v26 = vpop.f32.mrb[107].mxu1 }
 0x554   : > { %v21202_v12 = vadd.f32 %v15703_v29, %v21128_v62  ;;  %v15706_v16 = vadd.f32 %v15705_v26, %v15704_v9 }
 0x556   : > { %v21205_v8 = vadd.f32 %v15706_v16, %v21133_v17 }
 0x558   : > { %v15707_v61 = vpop.f32.mrb[108].mxu1 }
 0x559   : > { %v15708_v28 = vpop.f32.mrb[109].mxu1 }
 0x55a   : > { %v15709_v49 = vadd.f32 %v15708_v28, %v15707_v61  ;;  %v15710_v24 = vpop.f32.mrb[110].mxu1 }
 0x55b   : > { %v15711_v60 = vpop.f32.mrb[111].mxu1 }
 0x55c   : > { %v21208_v1 = vadd.f32 %v15709_v49, %v21143_v6  ;;  %v15712_v40 = vadd.f32 %v15711_v60, %v15710_v24 }
 0x55e   : > { %v21211_v47 = vadd.f32 %v15712_v40, %v21147_v38 }
 0x560   : > { %v15713_v36 = vpop.f32.mrb[112].mxu1 }
 0x561   : > { %v15714_v52 = vpop.f32.mrb[113].mxu1 }
 0x562   : > { %v15715_v62 = vadd.f32 %v15714_v52, %v15713_v36  ;;  %v15716_v2 = vpop.f32.mrb[114].mxu1 }
 0x563   : > { %v15717_v21 = vpop.f32.mrb[115].mxu1 }
 0x564   : > { %v21214_v17 = vadd.f32 %v15715_v62, %v21151_v58  ;;  %v15718_v32 = vadd.f32 %v15717_v21, %v15716_v2 }
 0x565   : > { %v21225_v61 = vpop.f32.mrb[56].mxu0 }
 0x566   : > { %v21217_v45 = vadd.f32 %v15718_v32, %v21155_v10  ;;  %v17183_v58 = vpop.f32.mrb[57].mxu0 }
 0x567   : > { %v21227_v49 = vpop.f32.mrb[58].mxu0 }
 0x568   : > { %v15719_v25 = vpop.f32.mrb[116].mxu1  ;;  %v17184_v24 = vpop.f32.mrb[59].mxu0 }
 0x569   : > { %v15720_v48 = vpop.f32.mrb[117].mxu1 }
 0x56a   : > { %v15721_v6 = vadd.f32 %v15720_v48, %v15719_v25  ;;  %v15722_v29 = vpop.f32.mrb[118].mxu1 }
 0x56b   : > { %v15723_v9 = vpop.f32.mrb[119].mxu1 }
 0x56c   : > { %v21220_v38 = vadd.f32 %v15721_v6, %v21161_v22  ;;  %v15724_v26 = vadd.f32 %v15723_v9, %v15722_v29 }
 0x56e   : > { %v21223_v16 = vadd.f32 %v15724_v26, %v21165_v27 }
 0x570   : > { %v15725_v28 = vpop.f32.mrb[120].mxu1 }
 0x571   : > { %v15726_v10 = vpop.f32.mrb[121].mxu1 }
 0x572   : > { %v15727_v60 = vadd.f32 %v15726_v10, %v15725_v28  ;;  %v15728_v40 = vpop.f32.mrb[122].mxu1 }
 0x573   : > { %v15729_v36 = vpop.f32.mrb[123].mxu1 }
 0x574   : > { %v21230_v52 = vadd.f32 %v15727_v60, %v21171_v55  ;;  %v15730_v22 = vadd.f32 %v15729_v36, %v15728_v40 }
 0x576   : > { %v21233_v62 = vadd.f32 %v15730_v22, %v21173_v35 }
 0x578   : > { %v15731_v27 = vpop.f32.mrb[124].mxu1 }
 0x579   : > { %v15732_v2 = vpop.f32.mrb[125].mxu1 }
 0x57a   : > { %v15733_v21 = vadd.f32 %v15732_v2, %v15731_v27  ;;  %v15734_v32 = vpop.f32.mrb[126].mxu1 }
 0x57b   : > { %v15735_v25 = vpop.f32.mrb[127].mxu1 }
 0x57c   : > { %v21236_v48 = vadd.f32 %v15733_v21, %v21183_v20  ;;  %v15736_v6 = vadd.f32 %v15735_v25, %v15734_v32 }
 0x57e   : > { %v21239_v29 = vadd.f32 %v15736_v6, %v21185_v63 }
 0x580   : > { %v15737_v9 = vpop.f32.mrb[128].mxu1 }
 0x581   : > { %v15738_v26 = vpop.f32.mrb[129].mxu1 }
 0x582   : > { %v15739_v55 = vadd.f32 %v15738_v26, %v15737_v9  ;;  %v15740_v58 = vpop.f32.mrb[130].mxu1 }
 0x583   : > { %v15741_v28 = vpop.f32.mrb[131].mxu1 }
 0x584   : > { %v21242_v35 = vadd.f32 %v15739_v55, %v21191_v3  ;;  %v15742_v10 = vadd.f32 %v15741_v28, %v15740_v58 }
 0x586   : > { %v21245_v24 = vadd.f32 %v15742_v10, %v21193_v11 }
 0x588   : > { %v15759_v60 = vpop.f32.mrb[132].mxu1 }
 0x589   : > { %v15760_v40 = vpop.f32.mrb[133].mxu1 }
 0x58a   : > { %v15761_v20 = vadd.f32 %v15760_v40, %v15759_v60  ;;  %v15762_v36 = vpop.f32.mrb[134].mxu1 }
 0x58b   : > { %v15763_v22 = vpop.f32.mrb[135].mxu1 }
 0x58c   : > { %v8354_v63 = vadd.f32 %v15761_v20, %v21196_v59  ;;  %v15764_v27 = vadd.f32 %v15763_v22, %v15762_v36 }
 0x58e   : > { %v8451_v2 = vadd.f32 %v20802_v0, %v8354_v63  ;;  %v8357_v21 = vadd.f32 %v15764_v27, %v21199_v41 }
 0x590   : > { %v8454_v3 = vadd.f32 %v20810_v23, %v8357_v21  ;;  %v15765_v32 = vpop.f32.mrb[136].mxu1  ;;  %v9401_v11 = vsel %vm6072_vm9, %v8451_v2, -3.4028235e+38 }
 0x591   : > { %v15766_v25 = vpop.f32.mrb[137].mxu1  ;;  %v9405_v55 = vrot.slane %v9401_v11, 1  ;;  %v9412_v0 = vrot.slane %v9401_v11, 2 }
 0x592   : > { %v15767_v6 = vadd.f32 %v15766_v25, %v15765_v32  ;;  %v15768_v9 = vpop.f32.mrb[138].mxu1  ;;  %v9402_v26 = vsel %vm9396_vm15, %v8454_v3, -3.4028235e+38 }
 0x593   : > { %v15769_v59 = vpop.f32.mrb[139].mxu1  ;;  %v9406_v58 = vrot.slane %v9402_v26, 1  ;;  %v9413_v28 = vrot.slane %v9402_v26, 2 }
 0x594   : > { %v8362_v41 = vadd.f32 %v15767_v6, %v21202_v12  ;;  %v15770_v10 = vadd.f32 %v15769_v59, %v15768_v9  ;;  %v18107_v12 = vld [vmem:[%s22641_s5 + $0xd0] sm:$0xff]  }
 0x595   : > { %v9407_v23 = vsel %vm778_vm4, %v9405_v55, %v9406_v58  ;;  %v9411_v60 = vmax.f32 %v9402_v26, %v9406_v58  ;;  %v9414_v40 = vsel %vm6110_vm10, %v9412_v0, %v9413_v28  ;;  %v22660_v58 = vmov 0.0  }
 0x596   : > { %v8459_v20 = vadd.f32 %v20794_v7, %v8362_v41  ;;  %v8365_v36 = vadd.f32 %v15770_v10, %v21205_v8  ;;  %v9410_v22 = vmax.f32 %v9401_v11, %v9407_v23 }
 0x597   : > { %v9418_v63 = vmax.f32 %v9411_v60, %v9413_v28 }
 0x598   : > { %v8462_v27 = vadd.f32 %v20808_v57, %v8365_v36  ;;  %v15771_v21 = vpop.f32.mrb[140].mxu1  ;;  %v9417_v32 = vmax.f32 %v9410_v22, %v9414_v40  ;;  %v9498_v25 = vmax.f32 %v8451_v2, %v8459_v20 }
 0x599   : > { %v15772_v33 = vpop.f32.mrb[141].mxu1 }
 0x59a   : > { %v15773_v6 = vadd.f32 %v15772_v33, %v15771_v21  ;;  %v15774_v9 = vpop.f32.mrb[142].mxu1  ;;  %v17340_v26 = vpack.c.bf16 %v9418_v63, %v9417_v32  ;;  %v9499_v59 = vmax.f32 %v8454_v3, %v8462_v27 }
 0x59b   : > { %v15775_v7 = vpop.f32.mrb[143].mxu1 }
 0x59c   : > { %v8370_v8 = vadd.f32 %v15773_v6, %v21208_v1  ;;  %v15776_v11 = vadd.f32 %v15775_v7, %v15774_v9  ;;  %17342 = vmatpush3.bf16.msk.msra.mxu1 %vm21262_vm3, %v17340_v26 }
 0x59d   : > { %17343 = vmatprep.subr.bf16.mxu1 %v18443_v31 }
 0x59e   : > { %v8467_v57 = vadd.f32 %v21030_v42, %v8370_v8  ;;  %v8373_v2 = vadd.f32 %v15776_v11, %v21211_v47 }
 0x59f   : > { %17190 = vmatmul.mubr.msk.f32.vlgmr.msra.gmra.mrb[34].mxu1 %vm9419_vm5, %v19726_v30 }
 0x5a0   : > { %v8470_v33 = vadd.f32 %v21035_v13, %v8373_v2  ;;  %v15777_v3 = vpop.f32.mrb[144].mxu1  ;;  %v9502_v55 = vmax.f32 %v9498_v25, %v8467_v57  ;;  %17196 = vmatprep.mubr.msk.f32.mxu1 %vm18442_vm14, %v22660_v58 }
 0x5a1   : > { %v15778_v1 = vpop.f32.mrb[145].mxu1 }
 0x5a2   : > { %v15779_v0 = vadd.f32 %v15778_v1, %v15777_v3  ;;  %v15780_v28 = vpop.f32.mrb[146].mxu1  ;;  %v9503_v41 = vmax.f32 %v9499_v59, %v8470_v33  ;;  %v9504_v10 = vsel %vm6072_vm9, %v9502_v55, -3.4028235e+38 }
 0x5a3   : > { %v15781_v42 = vpop.f32.mrb[147].mxu1  ;;  %v9508_v13 = vrot.slane %v9504_v10, 1  ;;  %v9515_v20 = vrot.slane %v9504_v10, 2 }
 0x5a4   : > { %v8378_v47 = vadd.f32 %v15779_v0, %v21214_v17  ;;  %v15782_v23 = vadd.f32 %v15781_v42, %v15780_v28  ;;  %v9505_v60 = vsel %vm9396_vm15, %v9503_v41, -3.4028235e+38 }
 0x5a5   : > { %v9509_v40 = vrot.slane %v9505_v60, 1  ;;  %v9516_v36 = vrot.slane %v9505_v60, 2 }
 0x5a6   : > { %v8475_v22 = vadd.f32 %v21027_v37, %v8378_v47  ;;  %v8381_v63 = vadd.f32 %v15782_v23, %v21217_v45 }
 0x5a7   : > { %v9510_v27 = vsel %vm778_vm4, %v9508_v13, %v9509_v40  ;;  %v9514_v21 = vmax.f32 %v9505_v60, %v9509_v40  ;;  %v9517_v32 = vsel %vm6110_vm10, %v9515_v20, %v9516_v36 }
 0x5a8   : > { %v8478_v25 = vadd.f32 %v21032_v34, %v8381_v63  ;;  %v15783_v17 = vpop.f32.mrb[148].mxu1  ;;  %v9513_v6 = vmax.f32 %v9504_v10, %v9510_v27  ;;  %v9597_v9 = vmax.f32 %v8467_v57, %v8475_v22 }
 0x5a9   : > { %v15784_v26 = vpop.f32.mrb[149].mxu1  ;;  %v9521_v59 = vmax.f32 %v9514_v21, %v9516_v36 }
 0x5aa   : > { %v15785_v7 = vadd.f32 %v15784_v26, %v15783_v17  ;;  %v15786_v8 = vpop.f32.mrb[150].mxu1  ;;  %v9520_v11 = vmax.f32 %v9513_v6, %v9517_v32  ;;  %v9598_v2 = vmax.f32 %v8470_v33, %v8478_v25 }
 0x5ab   : > { %v15787_v3 = vpop.f32.mrb[151].mxu1 }
 0x5ac   : > { %v8386_v37 = vadd.f32 %v15785_v7, %v21220_v38  ;;  %v15788_v45 = vadd.f32 %v15787_v3, %v15786_v8  ;;  %v17344_v55 = vpack.c.bf16 %v9521_v59, %v9520_v11 }
 0x5ae   : > { %v8483_v1 = vadd.f32 %v21084_v43, %v8386_v37  ;;  %v8389_v0 = vadd.f32 %v15788_v45, %v21223_v16  ;;  %17346 = vmatpush3.bf16.msk.msra.mxu1 %vm21262_vm3, %v17344_v55 }
 0x5af   : > { %17347 = vmatprep.subr.bf16.mxu1 %v18443_v31 }
 0x5b0   : > { %v8486_v34 = vadd.f32 %v21091_v51, %v8389_v0  ;;  %v15789_v57 = vpop.f32.mrb[152].mxu1  ;;  %v9601_v28 = vmax.f32 %v9597_v9, %v8483_v1 }
 0x5b1   : > { %v15790_v41 = vpop.f32.mrb[153].mxu1  ;;  %17197 = vmatmul.mubr.msk.f32.vlgmr.msra.gmra.mrb[172].mxu1 %vm9419_vm5, %v19726_v30 }
 0x5b2   : > { %v15791_v38 = vadd.f32 %v15790_v41, %v15789_v57  ;;  %v15792_v33 = vpop.f32.mrb[154].mxu1  ;;  %v9602_v10 = vmax.f32 %v9598_v2, %v8486_v34  ;;  %v9603_v43 = vsel %vm6072_vm9, %v9601_v28, -3.4028235e+38  ;;  %17203 = vmatprep.mubr.msk.f32.mxu1 %vm18442_vm14, %v22660_v58 }
 0x5b3   : > { %v15793_v16 = vpop.f32.mrb[155].mxu1  ;;  %v9607_v23 = vrot.slane %v9603_v43, 1  ;;  %v9614_v13 = vrot.slane %v9603_v43, 2 }
 0x5b4   : > { %v8394_v42 = vadd.f32 %v15791_v38, %v21230_v52  ;;  %v15794_v47 = vadd.f32 %v15793_v16, %v15792_v33  ;;  %v9604_v51 = vsel %vm9396_vm15, %v9602_v10, -3.4028235e+38 }
 0x5b5   : > { %v9608_v60 = vrot.slane %v9604_v51, 1  ;;  %v9615_v40 = vrot.slane %v9604_v51, 2 }
 0x5b6   : > { %v8491_v20 = vadd.f32 %v21082_v18, %v8394_v42  ;;  %v8397_v36 = vadd.f32 %v15794_v47, %v21233_v62 }
 0x5b7   : > { %v9609_v22 = vsel %vm778_vm4, %v9607_v23, %v9608_v60  ;;  %v9613_v63 = vmax.f32 %v9604_v51, %v9608_v60  ;;  %v9616_v27 = vsel %vm6110_vm10, %v9614_v13, %v9615_v40 }
 0x5b8   : > { %v8494_v21 = vadd.f32 %v21086_v50, %v8397_v36  ;;  %v15795_v52 = vpop.f32.mrb[156].mxu1  ;;  %v9612_v32 = vmax.f32 %v9603_v43, %v9609_v22  ;;  %v9696_v25 = vmax.f32 %v8483_v1, %v8491_v20  ;;  %v9214_v20 = vadd.f32 %v21135_v19, %v21099_v15 }
 0x5b9   : > { %v15796_v17 = vpop.f32.mrb[157].mxu1  ;;  %v9620_v6 = vmax.f32 %v9613_v63, %v9615_v40 }
 0x5ba   : > { %v15797_v9 = vadd.f32 %v15796_v17, %v15795_v52  ;;  %v15798_v26 = vpop.f32.mrb[158].mxu1  ;;  %v9619_v59 = vmax.f32 %v9612_v32, %v9616_v27  ;;  %v9697_v7 = vmax.f32 %v8486_v34, %v8494_v21  ;;  %v9217_v27 = vadd.f32 %v21139_v44, %v21099_v15 }
 0x5bb   : > { %v15799_v8 = vpop.f32.mrb[159].mxu1 }
 0x5bc   : > { %v8402_v18 = vadd.f32 %v15797_v9, %v21236_v48  ;;  %v15800_v62 = vadd.f32 %v15799_v8, %v15798_v26  ;;  %v17348_v11 = vpack.c.bf16 %v9620_v6, %v9619_v59 }
 0x5be   : > { %v8499_v2 = vadd.f32 %v21115_v5, %v8402_v18  ;;  %v8405_v3 = vadd.f32 %v15800_v62, %v21239_v29  ;;  %17350 = vmatpush3.bf16.msk.msra.mxu1 %vm21262_vm3, %v17348_v11 }
 0x5bf   : > { %17351 = vmatprep.subr.bf16.mxu1 %v18443_v31 }
 0x5c0   : > { %v8502_v50 = vadd.f32 %v21124_v53, %v8405_v3  ;;  %v15801_v37 = vpop.f32.mrb[160].mxu1  ;;  %v9700_v45 = vmax.f32 %v9696_v25, %v8499_v2 }
 0x5c1   : > { %v15802_v55 = vpop.f32.mrb[161].mxu1  ;;  %17204 = vmatmul.mubr.msk.f32.vlgmr.msra.gmra.mrb[174].mxu1 %vm9419_vm5, %v19726_v30 }
 0x5c2   : > { %v15803_v48 = vadd.f32 %v15802_v55, %v15801_v37  ;;  %v15804_v1 = vpop.f32.mrb[162].mxu1  ;;  %v9701_v0 = vmax.f32 %v9697_v7, %v8502_v50  ;;  %v9702_v5 = vsel %vm6072_vm9, %v9700_v45, -3.4028235e+38  ;;  %17210 = vmatprep.mubr.msk.f32.mxu1 %vm18442_vm14, %v22660_v58 }
 0x5c3   : > { %v15805_v29 = vpop.f32.mrb[163].mxu1  ;;  %v9706_v28 = vrot.slane %v9702_v5, 1  ;;  %v9713_v38 = vrot.slane %v9702_v5, 2 }
 0x5c4   : > { %v8410_v34 = vadd.f32 %v15803_v48, %v21242_v35  ;;  %v15806_v57 = vadd.f32 %v15805_v29, %v15804_v1  ;;  %v9703_v53 = vsel %vm9396_vm15, %v9701_v0, -3.4028235e+38 }
 0x5c5   : > { %v9707_v41 = vrot.slane %v9703_v53, 1  ;;  %v9714_v33 = vrot.slane %v9703_v53, 2 }
 0x5c6   : > { %v8507_v10 = vadd.f32 %v21113_v39, %v8410_v34  ;;  %v8413_v43 = vadd.f32 %v15806_v57, %v21245_v24 }
 0x5c7   : > { %v9708_v16 = vsel %vm778_vm4, %v9706_v28, %v9707_v41  ;;  %v9712_v42 = vmax.f32 %v9703_v53, %v9707_v41  ;;  %v9715_v47 = vsel %vm6110_vm10, %v9713_v38, %v9714_v33 }
 0x5c8   : > { %v8510_v51 = vadd.f32 %v21122_v4, %v8413_v43  ;;  %v15861_v35 = vpop.f32.mrb[164].mxu1  ;;  %v9711_v23 = vmax.f32 %v9702_v5, %v9708_v16  ;;  %v9795_v60 = vmax.f32 %v8499_v2, %v8507_v10  ;;  %v18097_v16 = vld [vmem:[%s22641_s5 + $0x40] sm:$0xff]  }
 0x5c9   : > { %v15862_v13 = vpop.f32.mrb[165].mxu1  ;;  %v9719_v40 = vmax.f32 %v9712_v42, %v9714_v33  ;;  %v18099_v33 = vld [vmem:[%s22641_s5 + $0xc0] sm:$0xff]  }
 0x5ca   : > { %v15863_v36 = vadd.f32 %v15862_v13, %v15861_v35  ;;  %v15864_v22 = vpop.f32.mrb[166].mxu1  ;;  %v9718_v39 = vmax.f32 %v9711_v23, %v9715_v47  ;;  %v9796_v63 = vmax.f32 %v8502_v50, %v8510_v51  ;;  %v18100_v47 = vld [vmem:[%s22641_s5 + $0x80] sm:$0xff]   ;;  %v18103_v51 = vld [vmem:[%s22641_s5 + $0xc8] sm:$0xff]  }
 0x5cb   : > { %v15865_v24 = vpop.f32.mrb[167].mxu1  ;;  %v18098_v35 = vld [vmem:[%s22641_s5] sm:$0xff]   ;;  %v18101_v23 = vld [vmem:[%s22641_s5 + $0x48] sm:$0xff]  }
 0x5cc   : > { %v9255_v21 = vadd.f32 %v15863_v36, %v9214_v20  ;;  %v15866_v52 = vadd.f32 %v15865_v24, %v15864_v22  ;;  %v17352_v32 = vpack.c.bf16 %v9719_v40, %v9718_v39  ;;  %v18102_v13 = vld [vmem:[%s22641_s5 + $0x8] sm:$0xff]   ;;  %v18105_v40 = vld [vmem:[%s22641_s5 + $0x50] sm:$0xff]   ;;  %v18111_v36 = vld [vmem:[%s22641_s5 + $0xd8] sm:$0xff]  }
 0x5cd   : > { %v18108_v20 = vld [vmem:[%s22641_s5 + $0x90] sm:$0xff]   ;;  %v18109_v39 = vld [vmem:[%s22641_s5 + $0x58] sm:$0xff]  }
 0x5ce   : > { %v9258_v4 = vadd.f32 %v15866_v52, %v9217_v27  ;;  %17354 = vmatpush3.bf16.msk.msra.mxu1 %vm21262_vm3, %v17352_v32  ;;  %v9296_v25 = vadd.f32 %v21175_v14, %v9255_v21  ;;  %v18106_v22 = vld [vmem:[%s22641_s5 + $0x10] sm:$0xff]   ;;  %v18110_v24 = vld [vmem:[%s22641_s5 + $0x18] sm:$0xff]   ;;  %v18113_v27 = vld [vmem:[%s22641_s5 + $0x60] sm:$0xff]  }
 0x5cf   : > { %17359 = vmatprep.subr.bf16.mxu1 %v18443_v31  ;;  %v18114_v21 = vld [vmem:[%s22641_s5 + $0x20] sm:$0xff]  }
 0x5d0   : > { %v9299_v19 = vadd.f32 %v21177_v56, %v9258_v4  ;;  %v18115_v52 = vld [vmem:[%s22641_s5 + $0xe0] sm:$0xff]   ;;  %v18117_v4 = vld [vmem:[%s22641_s5 + $0x68] sm:$0xff]  }
 0x5d1   : > { %17211 = vmatmul.mubr.msk.f32.vlgmr.msra.gmra.mrb[176].mxu1 %vm9419_vm5, %v19726_v30  ;;  %v18116_v32 = vld [vmem:[%s22641_s5 + $0xa0] sm:$0xff]  }
 0x5d2   : > { %17224 = vmatprep.mubr.msk.f32.mxu1 %vm18442_vm14, %v22660_v58 }
 0x5e8   : > { %v15905_v15 = vpop.f32.mrb[168].mxu1 }
 0x5e9   : > { %v15906_v44 = vpop.f32.mrb[169].mxu1 }
 0x5ea   : > { %v15907_v17 = vadd.f32 %v15906_v44, %v15905_v15  ;;  %v15908_v6 = vpop.f32.mrb[170].mxu1  ;;  %v18118_v15 = vld [vmem:[%s22641_s5 + $0x28] sm:$0xff]   ;;  %v18121_v44 = vld [vmem:[%s22641_s5 + $0x70] sm:$0xff]  }
 0x5eb   : > { %v15909_v9 = vpop.f32.mrb[171].mxu1 }
 0x5ec   : > { %v9337_v26 = vadd.f32 %v15907_v17, %v9296_v25  ;;  %v15910_v59 = vadd.f32 %v15909_v9, %v15908_v6  ;;  %v18119_v25 = vld [vmem:[%s22641_s5 + $0xe8] sm:$0xff]   ;;  %v18122_v17 = vld [vmem:[%s22641_s5 + $0x30] sm:$0xff]  }
 0x5ed   : > { %v18123_v6 = vld [vmem:[%s22641_s5 + $0xf0] sm:$0xff]  }
 0x5ee   : > { %v9378_v7 = vadd.f32 %v21225_v61, %v9337_v26  ;;  %v9340_v14 = vadd.f32 %v15910_v59, %v9299_v19  ;;  %v18120_v19 = vld [vmem:[%s22641_s5 + $0xa8] sm:$0xff]   ;;  %v18124_v9 = vld [vmem:[%s22641_s5 + $0xb0] sm:$0xff]   ;;  %v18125_v26 = vld [vmem:[%s22641_s5 + $0x78] sm:$0xff]  }
 0x5ef   : > { %v18127_v59 = vld [vmem:[%s22641_s5 + $0xf8] sm:$0xff]  }
 0x5f0   : > { %v9381_v31 = vadd.f32 %v21227_v49, %v9340_v14  ;;  %v9892_v56 = vsel %vm6072_vm9, %v9378_v7, -3.4028235e+38  ;;  %v9799_v8 = vmax.f32 %v9795_v60, %v9378_v7  ;;  %v18104_v60 = vld [vmem:[%s22641_s5 + $0x88] sm:$0xff]   ;;  %v18126_v7 = vld [vmem:[%s22641_s5 + $0x38] sm:$0xff]  }
 0x5f1   : > { %v9896_v2 = vrot.slane %v9892_v56, 1  ;;  %v9903_v50 = vrot.slane %v9892_v56, 2  ;;  %v18128_v14 = vld [vmem:[%s22641_s5 + $0xb8] sm:$0xff]  }
 0x5f2   : > { %v9893_v18 = vsel %vm9396_vm15, %v9381_v31, -3.4028235e+38  ;;  %v9800_v62 = vmax.f32 %v9796_v63, %v9381_v31  ;;  %v9801_v11 = vsel %vm6072_vm9, %v9799_v8, -3.4028235e+38  ;;  %v18112_v63 = vld [vmem:[%s22641_s5 + $0x98] sm:$0xff]   ;;  %v18129_v31 = vld [vmem:[%s22641_s5 + $0x1c0] sm:$0xff]  }
 0x5f3   : > { %v9897_v3 = vrot.slane %v9893_v18, 1  ;;  %v9904_v37 = vrot.slane %v9893_v18, 2  ;;  %v9805_v45 = vrot.slane %v9801_v11, 1  ;;  %v9812_v5 = vrot.slane %v9801_v11, 2 }
 0x5f4   : > { %v9802_v61 = vsel %vm9396_vm15, %v9800_v62, -3.4028235e+38 }
 0x5f5   : > { %v9898_v49 = vsel %vm778_vm4, %v9896_v2, %v9897_v3  ;;  %v9902_v55 = vmax.f32 %v9893_v18, %v9897_v3  ;;  %v9905_v48 = vsel %vm6110_vm10, %v9903_v50, %v9904_v37  ;;  %v9806_v1 = vrot.slane %v9802_v61, 1 }
 0x5f6   : > { %v9901_v0 = vmax.f32 %v9892_v56, %v9898_v49  ;;  %v9813_v29 = vrot.slane %v9802_v61, 2  ;;  %v18131_v56 = vld [vmem:[%s22641_s5 + $0x140] sm:$0xff]  }
 0x5f7   : > { %v9909_v34 = vmax.f32 %v9902_v55, %v9904_v37  ;;  %v9807_v57 = vsel %vm778_vm4, %v9805_v45, %v9806_v1  ;;  %v9811_v53 = vmax.f32 %v9802_v61, %v9806_v1  ;;  %v9996_v61 = vld [vmem:[#allocation4 + $0x8] sm:$0x1e]  ;;  %v21472_v55 = vld [vmem:[#allocation3] sm:$0xff]  ;;  %v18213_v37 = vld [vmem:[%s22643_s7 + $0x1d8] sm:$0xff]  }
 0x5f8   : > { %v9908_v28 = vmax.f32 %v9901_v0, %v9905_v48  ;;  %v9810_v41 = vmax.f32 %v9801_v11, %v9807_v57  ;;  %v9814_v38 = vsel %vm6110_vm10, %v9812_v5, %v9813_v29  ;;  %v10087_v48 = vshll.u32 %v21472_v55, 16  ;;  %v10071_v1 = vld [vmem:[#allocation4] sm:$0xfe] }
 0x5f9   : > { %v9818_v46 = vmax.f32 %v9811_v53, %v9813_v29  ;;  %v10085_v0 = vshrl.u32 %v21472_v55, 16  ;;  %v10149_v29 = vrot.slane %v10071_v1, 1 }
 0x5fa   : > { %v17360_v10 = vpack.c.bf16 %v9909_v34, %v9908_v28  ;;  %v9817_v43 = vmax.f32 %v9810_v41, %v9814_v38  ;;  %v21476_v5 = vrot.slane %v10087_v48, 1  ;;  %v18130_v38 = vld [vmem:[%s22641_s5 + $0x180] sm:$0xff]   ;;  %v10022_v48 = vld [vmem:[#allocation4 + $0x18] sm:$0x1e] }
 0x5fc   : > { %17362 = vmatpush3.bf16.msk.msra.mxu1 %vm21262_vm3, %v17360_v10  ;;  %v17356_v42 = vpack.c.bf16 %v9818_v46, %v9817_v43  ;;  %v21481_v53 = vor.u32 %v21476_v5, %v10085_v0  ;;  %v18133_v10 = vld [vmem:[%s22641_s5 + $0x1c8] sm:$0xff]  }
 0x5fd   : > { %15990 = vmatprep.subr.bf16.mxu1 %v18099_v33 }
 0x5fe   : > { %17358 = vmatpush3.bf16.msk.msra.mxu0 %vm21262_vm3, %v17356_v42 }
 0x5ff   : > { %17225 = vmatmul.mubr.msk.f32.vlgmr.msra.gmra.mrb[178].mxu1 %vm9419_vm5, %v19726_v30  ;;  %15938 = vmatprep.subr.bf16.mxu0 %v18097_v16 }
 0x600   : > { %15991 = vmatpush3.bf16.msra.mxu1 %v18100_v47 }
 0x601   : > { %17218 = vmatmul.mubr.msk.f32.vlgmr.msra.gmra.mrb[60].mxu0 %vm9419_vm5, %v19726_v30  ;;  %15992 = vmatprep.subr.bf16.mxu1 %v18103_v51  ;;  %v18132_v51 = vld [vmem:[%s22641_s5 + $0x100] sm:$0xff]  }
 0x602   : > { %15939 = vmatpush3.bf16.msra.mxu0 %v18098_v35 }
 0x603   : > { %15940 = vmatprep.subr.bf16.mxu0 %v18101_v23  ;;  %v18134_v23 = vld [vmem:[%s22641_s5 + $0x188] sm:$0xff]  }
 0x604   : > { %15993 = vmatpush3.bf16.msra.mxu1 %v18104_v60  ;;  %v18135_v60 = vld [vmem:[%s22641_s5 + $0x148] sm:$0xff]  }
 0x605   : > { %15994 = vmatprep.subr.bf16.mxu1 %v18107_v12 }
 0x606   : > { %15941 = vmatpush3.bf16.msra.mxu0 %v18102_v13 }
 0x607   : > { %15942 = vmatprep.subr.bf16.mxu0 %v18105_v40  ;;  %v18137_v40 = vld [vmem:[%s22641_s5 + $0x1d0] sm:$0xff]  }
 0x608   : > { %15995 = vmatpush3.bf16.msra.mxu1 %v18108_v20  ;;  %v10009_v20 = vld [vmem:[#allocation4 + $0x10] sm:$0x1e] }
 0x609   : > { %15996 = vmatprep.subr.bf16.mxu1 %v18111_v36 }
 0x60a   : > { %15943 = vmatpush3.bf16.msra.mxu0 %v18106_v22  ;;  %v18136_v22 = vld [vmem:[%s22641_s5 + $0x108] sm:$0xff]  }
 0x60b   : > { %15944 = vmatprep.subr.bf16.mxu0 %v18109_v39  ;;  %v18138_v39 = vld [vmem:[%s22641_s5 + $0x190] sm:$0xff]  }
 0x60c   : > { %15997 = vmatpush3.bf16.msra.mxu1 %v18112_v63  ;;  %v18139_v63 = vld [vmem:[%s22641_s5 + $0x150] sm:$0xff]  }
 0x60d   : > { %15998 = vmatprep.subr.bf16.mxu1 %v18115_v52  ;;  %v18142_v52 = vld [vmem:[%s22641_s5 + $0x198] sm:$0xff]  }
 0x60e   : > { %15945 = vmatpush3.bf16.msra.mxu0 %v18110_v24 }
 0x60f   : > { %15946 = vmatprep.subr.bf16.mxu0 %v18113_v27  ;;  %v18141_v27 = vld [vmem:[%s22641_s5 + $0x1d8] sm:$0xff]  }
 0x610   : > { %15999 = vmatpush3.bf16.msra.mxu1 %v18116_v32  ;;  %v18143_v32 = vld [vmem:[%s22641_s5 + $0x158] sm:$0xff]  }
 0x611   : > { %16000 = vmatprep.subr.bf16.mxu1 %v18119_v25 }
 0x612   : > { %15947 = vmatpush3.bf16.msra.mxu0 %v18114_v21  ;;  %v18140_v21 = vld [vmem:[%s22641_s5 + $0x110] sm:$0xff]  }
 0x613   : > { %15948 = vmatprep.subr.bf16.mxu0 %v18117_v4  ;;  %v18145_v4 = vld [vmem:[%s22641_s5 + $0x1e0] sm:$0xff]  }
 0x614   : > { %16001 = vmatpush3.bf16.msra.mxu1 %v18120_v19  ;;  %v18144_v19 = vld [vmem:[%s22641_s5 + $0x118] sm:$0xff]  }
 0x615   : > { %16002 = vmatprep.subr.bf16.mxu1 %v18123_v6 }
 0x616   : > { %15949 = vmatpush3.bf16.msra.mxu0 %v18118_v15 }
 0x617   : > { %15950 = vmatprep.subr.bf16.mxu0 %v18121_v44  ;;  %v18146_v44 = vld [vmem:[%s22641_s5 + $0x1a0] sm:$0xff]  }
 0x618   : > { %16003 = vmatpush3.bf16.msra.mxu1 %v18124_v9 }
 0x619   : > { %16004 = vmatprep.subr.bf16.mxu1 %v18127_v59  ;;  %v18149_v59 = vld [vmem:[%s22641_s5 + $0x1e8] sm:$0xff]  }
 0x61a   : > { %15951 = vmatpush3.bf16.msra.mxu0 %v18122_v17  ;;  %v18147_v17 = vld [vmem:[%s22641_s5 + $0x160] sm:$0xff]  }
 0x61b   : > { %15952 = vmatprep.subr.bf16.mxu0 %v18125_v26 }
 0x61c   : > { %16005 = vmatpush3.bf16.msra.mxu1 %v18128_v14 }
 0x61d   : > { %16094 = vmatprep.subr.bf16.mxu1 %v18129_v31 }
 0x61e   : > { %15953 = vmatpush3.bf16.msra.mxu0 %v18126_v7 }
 0x61f   : > { %16042 = vmatprep.subr.bf16.mxu0 %v18131_v56 }
 0x672   : > { %v9492_v8 = vpop.f32.mrb[34].mxu1 }
 0x673   : > { %v9983_v18 = vpack.c.bf16 %v9492_v8, %v9492_v8  ;;  %v17191_v62 = vpop.f32.mrb[35].mxu1 }
 0x675   : > { %v9985_v11 = vshrl.u32 %v9983_v18, 16  ;;  %v9988_v2 = vshll.u32 %v9983_v18, 16  ;;  %v18148_v18 = vld [vmem:[%s22641_s5 + $0x120] sm:$0xff]  }
 0x677   : > { %v9987_v3 = vrot.slane %v9985_v11, 6  ;;  %v9990_v50 = vrot.slane %v9988_v2, 7 }
 0x679   : > { %v9991_v45 = vor.u32 %v9990_v50, %v9987_v3  ;;  %v18150_v3 = vld [vmem:[%s22641_s5 + $0x1a8] sm:$0xff]  }
 0x67b   : > { %v9997_v49 = vsel %vm21466_vm8, %v9991_v45, %v9996_v61  ;;  %v18151_v45 = vld [vmem:[%s22641_s5 + $0x168] sm:$0xff]  }
 0x67c   : > { %9998 = vst [vmem:[#allocation4 + $0x8] sm:$0x1e] %v9997_v49  ;;  %v18153_v49 = vld [vmem:[%s22641_s5 + $0x1f0] sm:$0xff]  }
 0x683   : > { %v21478_v34 = vld [vmem:[#allocation4 + $0x8] sm:$0xff] }
 0x684   : > { %v9591_v57 = vpop.f32.mrb[172].mxu1  ;;  %v10092_v28 = vshll.u32 %v21478_v34, 16  ;;  %10975 = vmatprep.mubr.bf16.mxu1 %v21478_v34  ;;  %v10150_v41 = vrot.slane %v21478_v34, 1  ;;  %v10096_v25 = vshrl.u32 %v21478_v34, 16 }
 0x685   : > { %v9999_v46 = vpack.c.bf16 %v9591_v57, %v9591_v57  ;;  %v17198_v33 = vpop.f32.mrb[173].mxu1  ;;  %v18152_v57 = vld [vmem:[%s22641_s5 + $0x128] sm:$0xff]  }
 0x686   : > { %v10094_v43 = vrot.slane %v10092_v28, 1  ;;  %v10151_v16 = vsel %vm778_vm4, %v10149_v29, %v10150_v41  ;;  %v18154_v28 = vld [vmem:[%s22641_s5 + $0x1b0] sm:$0xff]   ;;  %v18158_v33 = vld [vmem:[%s22641_s5 + $0x1b8] sm:$0xff]  }
 0x687   : > { %v10001_v42 = vshrl.u32 %v9999_v46, 16  ;;  %v10004_v47 = vshll.u32 %v9999_v46, 16  ;;  %10976 = vmatmul.mubr.bf16.vlgmr.msra.gmra.mrb[180].mxu1 %v10151_v16  ;;  %v18157_v46 = vld [vmem:[%s22641_s5 + $0x1f8] sm:$0xff]  }
 0x688   : > { %v10095_v35 = vsel %vm447_vm2, %v21481_v53, %v10094_v43  ;;  %16095 = vmatpush3.bf16.msra.mxu1 %v18130_v38  ;;  %v10098_v7 = vor.u32 %v10096_v25, %v10094_v43  ;;  %v18160_v43 = vld [vmem:[%s22641_s5 + $0x138] sm:$0xff]  }
 0x689   : > { %v10003_v12 = vrot.slane %v10001_v42, 6  ;;  %v10006_v13 = vrot.slane %v10004_v47, 7  ;;  %10894 = vmatprep.mubr.bf16.mxu0 %v10095_v35  ;;  %16096 = vmatprep.subr.bf16.mxu1 %v18133_v10  ;;  %v18159_v10 = vld [vmem:[%s22641_s5 + $0x178] sm:$0xff]   ;;  %v21607_v42 = vld [vmem:[%s22641_s5 + $0x200] sm:$0xff]  }
 0x68a   : > { %10895 = vmatmul.mubr.bf16.vlgmr.msra.gmra.mrb[64].mxu0 %v21472_v55 }
 0x68b   : > { %v10007_v36 = vor.u32 %v10006_v13, %v10003_v12  ;;  %16043 = vmatpush3.bf16.msra.mxu0 %v18132_v51 }
 0x68c   : > { %16097 = vmatpush3.bf16.msra.mxu1 %v18134_v23  ;;  %16044 = vmatprep.subr.bf16.mxu0 %v18135_v60 }
 0x68d   : > { %v10010_v24 = vsel %vm21466_vm8, %v10007_v36, %v10009_v20  ;;  %16098 = vmatprep.subr.bf16.mxu1 %v18137_v40 }
 0x68e   : > { %10011 = vst [vmem:[#allocation4 + $0x10] sm:$0x1e] %v10010_v24 }
 0x68f   : > { %16045 = vmatpush3.bf16.msra.mxu0 %v18136_v22 }
 0x690   : > { %16099 = vmatpush3.bf16.msra.mxu1 %v18138_v39  ;;  %16046 = vmatprep.subr.bf16.mxu0 %v18139_v63  ;;  %v10035_v39 = vld [vmem:[#allocation4 + $0x20] sm:$0x1e] }
 0x691   : > { %16100 = vmatprep.subr.bf16.mxu1 %v18141_v27 }
 0x693   : > { %16047 = vmatpush3.bf16.msra.mxu0 %v18140_v21 }
 0x694   : > { %v9690_v15 = vpop.f32.mrb[174].mxu1  ;;  %16101 = vmatpush3.bf16.msra.mxu1 %v18142_v52  ;;  %16048 = vmatprep.subr.bf16.mxu0 %v18143_v32 }
 0x695   : > { %v10012_v6 = vpack.c.bf16 %v9690_v15, %v9690_v15  ;;  %v17205_v9 = vpop.f32.mrb[175].mxu1  ;;  %v21546_v26 = vld [vmem:[#allocation4 + $0x10] sm:$0xff]  ;;  %16102 = vmatprep.subr.bf16.mxu1 %v18145_v4 }
 0x696   : > { %v10100_v14 = vshll.u32 %v21546_v26, 16  ;;  %10983 = vmatprep.mubr.bf16.mxu1 %v21546_v26  ;;  %v21554_v31 = vrot.slane %v21546_v26, 1  ;;  %v10104_v2 = vshrl.u32 %v21546_v26, 16 }
 0x697   : > { %v10014_v56 = vshrl.u32 %v10012_v6, 16  ;;  %v10017_v8 = vshll.u32 %v10012_v6, 16  ;;  %16049 = vmatpush3.bf16.msra.mxu0 %v18144_v19 }
 0x698   : > { %v10102_v62 = vrot.slane %v10100_v14, 1  ;;  %v10153_v11 = vsel %vm778_vm4, %v10150_v41, %v21554_v31  ;;  %16103 = vmatpush3.bf16.msra.mxu1 %v18146_v44  ;;  %16050 = vmatprep.subr.bf16.mxu0 %v18147_v17  ;;  %v18155_v41 = vld [vmem:[%s22641_s5 + $0x170] sm:$0xff]  }
 0x699   : > { %v10016_v50 = vrot.slane %v10014_v56, 6  ;;  %v10019_v61 = vrot.slane %v10017_v8, 7  ;;  %10984 = vmatmul.mubr.bf16.gmra.mrb[184].mxu1 %v10153_v11  ;;  %16104 = vmatprep.subr.bf16.mxu1 %v18149_v59 }
 0x69a   : > { %v21574_v1 = vsel %vm447_vm2, %v10098_v7, %v10102_v62  ;;  %v10201_v0 = vor.u32 %v10104_v2, %v10102_v62 }
 0x69b   : > { %v10020_v29 = vor.u32 %v10019_v61, %v10016_v50  ;;  %10902 = vmatprep.mubr.bf16.mxu0 %v21574_v1  ;;  %16051 = vmatpush3.bf16.msra.mxu0 %v18148_v18 }
 0x69c   : > { %10903 = vmatmul.mubr.bf16.gmra.mrb[68].mxu0 %v21478_v34  ;;  %16105 = vmatpush3.bf16.msra.mxu1 %v18150_v3  ;;  %v18156_v34 = vld [vmem:[%s22641_s5 + $0x130] sm:$0xff]  }
 0x69d   : > { %v10023_v38 = vsel %vm21466_vm8, %v10020_v29, %v10022_v48  ;;  %16052 = vmatprep.subr.bf16.mxu0 %v18151_v45  ;;  %16106 = vmatprep.subr.bf16.mxu1 %v18153_v49  ;;  %v10061_v3 = vld [vmem:[#allocation4 + $0x30] sm:$0x1e]  ;;  %v10048_v49 = vld [vmem:[#allocation4 + $0x28] sm:$0x1e] }
 0x69e   : > { %10024 = vst [vmem:[#allocation4 + $0x18] sm:$0x1e] %v10023_v38 }
 0x69f   : > { %16053 = vmatpush3.bf16.msra.mxu0 %v18152_v57  ;;  %v10070_v57 = vld [vmem:[#allocation4 + $0x30] sm:$0x1] }
 0x6a0   : > { %16107 = vmatpush3.bf16.msra.mxu1 %v18154_v28  ;;  %16054 = vmatprep.subr.bf16.mxu0 %v18155_v41  ;;  %v10132_v28 = vshll.u32 %v10070_v57, 16 }
 0x6a1   : > { %16108 = vmatprep.subr.bf16.mxu1 %v18157_v46 }
 0x6a3   : > { %16055 = vmatpush3.bf16.msra.mxu0 %v18156_v34 }
 0x6a4   : > { %v9789_v16 = vpop.f32.mrb[176].mxu1  ;;  %16109 = vmatpush3.bf16.msra.mxu1 %v18158_v33  ;;  %16056 = vmatprep.subr.bf16.mxu0 %v18159_v10  ;;  %v10134_v33 = vrot.slane %v10132_v28, 1 }
 0x6a5   : > { %v10025_v47 = vpack.c.bf16 %v9789_v16, %v9789_v16  ;;  %v21609_v51 = vld [vmem:[#allocation4 + $0x18] sm:$0xff]  ;;  %v17212_v35 = vpop.f32.mrb[177].mxu1 }
 0x6a6   : > { %v10108_v23 = vshll.u32 %v21609_v51, 16  ;;  %10991 = vmatprep.mubr.bf16.mxu1 %v21609_v51  ;;  %v21614_v60 = vrot.slane %v21609_v51, 1  ;;  %v10112_v21 = vshrl.u32 %v21609_v51, 16 }
 0x6a7   : > { %v10027_v12 = vshrl.u32 %v10025_v47, 16  ;;  %v10030_v13 = vshll.u32 %v10025_v47, 16  ;;  %16057 = vmatpush3.bf16.msra.mxu0 %v18160_v43 }
 0x6a8   : > { %v10110_v40 = vrot.slane %v10108_v23, 1  ;;  %v21619_v20 = vsel %vm778_vm4, %v21554_v31, %v21614_v60  ;;  %17227 = vmatprep.subr.bf16.mxu0 %v21607_v42 }
 0x6a9   : > { %v10029_v36 = vrot.slane %v10027_v12, 6  ;;  %v10032_v22 = vrot.slane %v10030_v13, 7  ;;  %10992 = vmatmul.mubr.bf16.gmra.mrb[188].mxu1 %v21619_v20 }
 0x6aa   : > { %v21624_v63 = vsel %vm447_vm2, %v10201_v0, %v10110_v40  ;;  %v10114_v32 = vor.u32 %v10112_v21, %v10110_v40  ;;  %v10160_v40 = vrot.slane %v10070_v57, 1 }
 0x6ab   : > { %v10033_v24 = vor.u32 %v10032_v22, %v10029_v36  ;;  %10910 = vmatprep.mubr.bf16.mxu0 %v21624_v63  ;;  %v10074_v36 = vld [vmem:[#allocation4 + $0x8] sm:$0xfe] }
 0x6ac   : > { %10911 = vmatmul.mubr.bf16.gmra.mrb[72].mxu0 %v21546_v26 }
 0x6ad   : > { %v10036_v27 = vsel %vm21466_vm8, %v10033_v24, %v10035_v39  ;;  %v10186_v39 = vrot.slane %v10074_v36, 1 }
 0x6ae   : > { %10037 = vst [vmem:[#allocation4 + $0x20] sm:$0x1e] %v10036_v27  ;;  %v18162_v27 = vld [vmem:[%s22641_s5 + $0x208] sm:$0xff]  }
 0x6af   : > { %v10187_v24 = vsel %vm778_vm4, %v10186_v39, %v21554_v31  ;;  %v18163_v31 = vld [vmem:[%s22641_s5 + $0x210] sm:$0xff]  }
 0x6b5   : > { %v21631_v52 = vld [vmem:[#allocation4 + $0x20] sm:$0xff] }
 0x6b6   : > { %v10116_v4 = vshll.u32 %v21631_v52, 16  ;;  %10999 = vmatprep.mubr.bf16.mxu1 %v21631_v52  ;;  %v10156_v25 = vrot.slane %v21631_v52, 1  ;;  %v10120_v41 = vshrl.u32 %v21631_v52, 16 }
 0x6b8   : > { %v10118_v19 = vrot.slane %v10116_v4, 1  ;;  %v21638_v15 = vsel %vm778_vm4, %v21614_v60, %v10156_v25  ;;  %v10082_v4 = vld [vmem:[#allocation4 + $0x40] sm:$0x1] }
 0x6b9   : > { %11000 = vmatmul.mubr.bf16.gmra.mrb[192].mxu1 %v21638_v15 }
 0x6ba   : > { %v21642_v44 = vsel %vm447_vm2, %v10114_v32, %v10118_v19  ;;  %v10122_v43 = vor.u32 %v10120_v41, %v10118_v19  ;;  %v10243_v19 = vshll.u32 %v10082_v4, 16 }
 0x6bb   : > { %10918 = vmatprep.mubr.bf16.mxu0 %v21642_v44 }
 0x6bc   : > { %10919 = vmatmul.mubr.bf16.gmra.mrb[76].mxu0 %v21609_v51 }
 0x6d2   : > { %v9979_v17 = vpop.f32.mrb[178].mxu1 }
 0x6d3   : > { %v10051_v6 = vpack.c.bf16 %v9979_v17, %v9979_v17  ;;  %v17226_v9 = vpop.f32.mrb[179].mxu1 }
 0x6d4   : > { %v9888_v59 = vpop.f32.mrb[60].mxu0 }
 0x6d5   : > { %v10038_v7 = vpack.c.bf16 %v9888_v59, %v9888_v59  ;;  %v10053_v14 = vshrl.u32 %v10051_v6, 16  ;;  %v10056_v56 = vshll.u32 %v10051_v6, 16  ;;  %v17219_v8 = vpop.f32.mrb[61].mxu0  ;;  %v10245_v6 = vrot.slane %v10243_v19, 1  ;;  %v10073_v59 = vld [vmem:[#allocation4 + $0x38] sm:$0x1] }
 0x6d6   : > { %v10083_v8 = vld [vmem:[#allocation4 + $0x10] sm:$0xfe] }
 0x6d7   : > { %v10040_v18 = vshrl.u32 %v10038_v7, 16  ;;  %v10043_v62 = vshll.u32 %v10038_v7, 16  ;;  %v10055_v11 = vrot.slane %v10053_v14, 6  ;;  %v10058_v2 = vrot.slane %v10056_v56, 7 }
 0x6d8   : > { %v10190_v7 = vrot.slane %v10073_v59, 1  ;;  %v10177_v14 = vshll.u32 %v10073_v59, 16 }
 0x6d9   : > { %v10042_v50 = vrot.slane %v10040_v18, 6  ;;  %v10045_v61 = vrot.slane %v10043_v62, 7  ;;  %v10059_v45 = vor.u32 %v10058_v2, %v10055_v11  ;;  %v10260_v62 = vrot.slane %v10083_v8, 1  ;;  %v18173_v8 = vld [vmem:[%s22643_s7 + $0xc8] sm:$0xff]  }
 0x6da   : > { %v10179_v18 = vrot.slane %v10177_v14, 1  ;;  %v10269_v2 = vrot.slane %v21472_v55, 1  ;;  %v18172_v14 = vld [vmem:[%s22643_s7] sm:$0xff]  }
 0x6db   : > { %v10046_v48 = vor.u32 %v10045_v61, %v10042_v50  ;;  %v10062_v0 = vsel %vm21466_vm8, %v10059_v45, %v10061_v3  ;;  %v10271_v50 = vrot.slane %v10082_v4, 1 }
 0x6dc   : > { %10063 = vst [vmem:[#allocation4 + $0x30] sm:$0x1e] %v10062_v0 }
 0x6dd   : > { %v10049_v29 = vsel %vm21466_vm8, %v10046_v48, %v10048_v49  ;;  %v10272_v61 = vsel %vm778_vm4, %v10269_v2, %v10271_v50  ;;  %v18178_v50 = vld [vmem:[%s22643_s7 + $0x90] sm:$0xff]  }
 0x6de   : > { %10050 = vst [vmem:[#allocation4 + $0x28] sm:$0x1e] %v10049_v29 }
 0x6e3   : > { %v21664_v35 = vld [vmem:[#allocation4 + $0x30] sm:$0xff] }
 0x6e4   : > { %v10188_v17 = vrot.slane %v21664_v35, 1 }
 0x6e5   : > { %v21651_v38 = vld [vmem:[#allocation4 + $0x28] sm:$0xff] }
 0x6e6   : > { %11007 = vmatprep.mubr.bf16.mxu1 %v21651_v38  ;;  %v21655_v46 = vrot.slane %v21651_v38, 1  ;;  %v10124_v34 = vshll.u32 %v21651_v38, 16  ;;  %v10128_v47 = vshrl.u32 %v21651_v38, 16  ;;  %v10191_v56 = vsel %vm778_vm4, %v10188_v17, %v10190_v7  ;;  %v18171_v7 = vld [vmem:[%s22643_s7 + $0x40] sm:$0xff]  }
 0x6e7   : > { %v10270_v3 = vsel %vm778_vm4, %v10188_v17, %v10269_v2  ;;  %16160 = vmatprep.subr.bf16.mxu1 %v18171_v7  ;;  %v18176_v2 = vld [vmem:[%s22643_s7 + $0x8] sm:$0xff]  }
 0x6e8   : > { %v21660_v10 = vsel %vm778_vm4, %v10156_v25, %v21655_v46  ;;  %v10126_v16 = vrot.slane %v10124_v34, 1  ;;  %v10161_v22 = vsel %vm778_vm4, %v21655_v46, %v10160_v40  ;;  %v10189_v9 = vsel %vm778_vm4, %v21655_v46, %v10188_v17 }
 0x6e9   : > { %11008 = vmatmul.mubr.bf16.gmra.mrb[196].mxu1 %v21660_v10 }
 0x6ea   : > { %v10127_v23 = vsel %vm447_vm2, %v10122_v43, %v10126_v16  ;;  %v10130_v12 = vor.u32 %v10128_v47, %v10126_v16  ;;  %11015 = vmatprep.mubr.bf16.mxu1 %v21664_v35 }
 0x6eb   : > { %10926 = vmatprep.mubr.bf16.mxu0 %v10127_v23 }
 0x6ec   : > { %10927 = vmatmul.mubr.bf16.gmra.mrb[80].mxu0 %v21631_v52  ;;  %v10135_v13 = vsel %vm447_vm2, %v10130_v12, %v10134_v33 }
 0x6ed   : > { %10934 = vmatprep.mubr.bf16.mxu0 %v10135_v13 }
 0x6f1   : > { %11016 = vmatmul.mubr.bf16.gmra.mrb[200].mxu1 %v10161_v22 }
 0x6f2   : > { %11137 = vmatprep.mubr.bf16.mxu1 %v21624_v63 }
 0x6f4   : > { %10935 = vmatmul.mubr.bf16.gmra.mrb[84].mxu0 %v21651_v38 }
 0x6f5   : > { %11056 = vmatprep.mubr.bf16.mxu0 %v10187_v24 }
 0x6f9   : > { %11138 = vmatmul.mubr.bf16.vlgmr.msra.gmra.mrb[204].mxu1 %v21546_v26  ;;  %v10227_v26 = vshll.u32 %v21664_v35, 16 }
 0x6fa   : > { %11145 = vmatprep.mubr.bf16.mxu1 %v21642_v44  ;;  %16161 = vmatpush3.bf16.msra.mxu1 %v18172_v14 }
 0x6fc   : > { %11057 = vmatmul.mubr.bf16.vlgmr.msra.gmra.mrb[88].mxu0 %v21574_v1  ;;  %v18164_v1 = vld [vmem:[%s22641_s5 + $0x218] sm:$0xff]  }
 0x6fd   : > { %11064 = vmatprep.mubr.bf16.mxu0 %v21619_v20  ;;  %17228 = vmatpush3.bf16.msra.mxu0 %v21607_v42  ;;  %v10229_v42 = vrot.slane %v10227_v26, 1  ;;  %v10231_v20 = vshrl.u32 %v21664_v35, 16 }
 0x6fe   : > { %17229 = vmatprep.subr.bf16.mxu0 %v18162_v27 }
 0x6ff   : > { %v10230_v21 = vsel %vm447_vm2, %v10130_v12, %v10229_v42  ;;  %v10233_v32 = vor.u32 %v10231_v20, %v10229_v42 }
 0x701   : > { %11146 = vmatmul.mubr.bf16.gmra.mrb[208].mxu1 %v21609_v51  ;;  %17230 = vmatpush3.bf16.msra.mxu0 %v18162_v27  ;;  %v18165_v51 = vld [vmem:[%s22641_s5 + $0x220] sm:$0xff]   ;;  %v10238_v25 = vsel %vm447_vm2, %v10233_v32, %v21476_v5  ;;  %v10246_v5 = vsel %vm447_vm2, %v21481_v53, %v10245_v6  ;;  %v10180_v11 = vsel %vm447_vm2, %v10233_v32, %v10179_v18  ;;  %v18175_v18 = vld [vmem:[%s22643_s7 + $0x48] sm:$0xff]  }
 0x702   : > { %11153 = vmatprep.mubr.bf16.mxu1 %v10127_v23  ;;  %17231 = vmatprep.subr.bf16.mxu0 %v18163_v31  ;;  %v10262_v53 = vsel %vm778_vm4, %v10260_v62, %v21614_v60  ;;  %v18169_v6 = vld [vmem:[%s22643_s7 + $0xc0] sm:$0xff]  }
 0x703   : > { %16162 = vmatprep.subr.bf16.mxu1 %v18175_v18 }
 0x704   : > { %11065 = vmatmul.mubr.bf16.gmra.mrb[92].mxu0 %v21624_v63  ;;  %v18166_v63 = vld [vmem:[%s22641_s5 + $0x228] sm:$0xff]   ;;  %16163 = vmatpush3.bf16.msra.mxu1 %v18176_v2 }
 0x705   : > { %11072 = vmatprep.mubr.bf16.mxu0 %v21638_v15  ;;  %17232 = vmatpush3.bf16.msra.mxu0 %v18163_v31 }
 0x706   : > { %17233 = vmatprep.subr.bf16.mxu0 %v18164_v1 }
 0x709   : > { %11154 = vmatmul.mubr.bf16.gmra.mrb[212].mxu1 %v21631_v52  ;;  %17234 = vmatpush3.bf16.msra.mxu0 %v18164_v1  ;;  %v18167_v52 = vld [vmem:[%s22641_s5 + $0x230] sm:$0xff]  }
 0x70a   : > { %11161 = vmatprep.mubr.bf16.mxu1 %v10230_v21  ;;  %17235 = vmatprep.subr.bf16.mxu0 %v18165_v51 }
 0x70c   : > { %11073 = vmatmul.mubr.bf16.gmra.mrb[96].mxu0 %v21642_v44  ;;  %v18168_v44 = vld [vmem:[%s22641_s5 + $0x238] sm:$0xff]  }
 0x70d   : > { %11080 = vmatprep.mubr.bf16.mxu0 %v21660_v10  ;;  %17236 = vmatpush3.bf16.msra.mxu0 %v18165_v51 }
 0x70e   : > { %17237 = vmatprep.subr.bf16.mxu0 %v18166_v63 }
 0x711   : > { %11162 = vmatmul.mubr.bf16.gmra.mrb[216].mxu1 %v21651_v38  ;;  %17238 = vmatpush3.bf16.msra.mxu0 %v18166_v63 }
 0x712   : > { %11169 = vmatprep.mubr.bf16.mxu1 %v10238_v25  ;;  %17239 = vmatprep.subr.bf16.mxu0 %v18167_v52 }
 0x714   : > { %11081 = vmatmul.mubr.bf16.gmra.mrb[100].mxu0 %v10127_v23 }
 0x715   : > { %11088 = vmatprep.mubr.bf16.mxu0 %v10189_v9  ;;  %17240 = vmatpush3.bf16.msra.mxu0 %v18167_v52 }
 0x716   : > { %17241 = vmatprep.subr.bf16.mxu0 %v18168_v44 }
 0x719   : > { %11170 = vmatmul.mubr.bf16.gmra.mrb[220].mxu1 %v21664_v35  ;;  %17242 = vmatpush3.bf16.msra.mxu0 %v18168_v44 }
 0x71a   : > { %11177 = vmatprep.mubr.bf16.mxu1 %v10246_v5  ;;  %v18170_v5 = vld [vmem:[%s22643_s7 + $0x80] sm:$0xff]   ;;  %16212 = vmatprep.subr.bf16.mxu0 %v18169_v6 }
 0x71c   : > { %11089 = vmatmul.mubr.bf16.gmra.mrb[104].mxu0 %v10230_v21 }
 0x71d   : > { %11096 = vmatprep.mubr.bf16.mxu0 %v10191_v56 }
 0x721   : > { %11178 = vmatmul.mubr.bf16.gmra.mrb[224].mxu1 %v21472_v55 }
 0x724   : > { %11097 = vmatmul.mubr.bf16.gmra.mrb[108].mxu0 %v10180_v11  ;;  %v18174_v11 = vld [vmem:[%s22643_s7 + $0x88] sm:$0xff]  }
 0x725   : > { %17243 = vmatprep.mubr.bf16.mxu0 %v10262_v53 }
 0x72c   : > { %17244 = vmatmul.mubr.bf16.vlgmr.msra.gmra.mrb[112].mxu0 %v21638_v15  ;;  %v21733_v15 = vld [vmem:[%s22642_s6] ss:$0 sm:$0xff] }
 0x72d   : > { %17247 = vmatprep.mubr.bf16.mxu0 %v21660_v10  ;;  %16213 = vmatpush3.bf16.msra.mxu0 %v18170_v5 }
 0x72e   : > { %16214 = vmatprep.subr.bf16.mxu0 %v18173_v8 }
 0x731   : > { %16215 = vmatpush3.bf16.msra.mxu0 %v18174_v11 }
 0x734   : > { %17248 = vmatmul.mubr.bf16.gmra.mrb[116].mxu0 %v10189_v9 }
 0x735   : > { %17251 = vmatprep.mubr.bf16.mxu0 %v10270_v3  ;;  %v18177_v3 = vld [vmem:[%s22643_s7 + $0xd0] sm:$0xff]  }
 0x736   : > { %16216 = vmatprep.subr.bf16.mxu0 %v18177_v3 }
 0x737   : > { %16217 = vmatpush3.bf16.msra.mxu0 %v18178_v50 }
 0x73c   : > { %17252 = vmatmul.mubr.bf16.gmra.mrb[120].mxu0 %v10272_v61  ;;  %v18179_v61 = vld [vmem:[%s22643_s7 + $0x50] sm:$0xff]  }
 0x73d   : > { %16164 = vmatprep.subr.bf16.mxu1 %v18179_v61 }
 0x75a   : > { %v16006_v45 = vpop.f32.mrb[180].mxu1 }
 0x75b   : > { %v16007_v49 = vpop.f32.mrb[181].mxu1 }
 0x75c   : > { %v16008_v48 = vadd.f32 %v16007_v49, %v16006_v45  ;;  %v16009_v0 = vpop.f32.mrb[182].mxu1  ;;  %v18180_v45 = vld [vmem:[%s22643_s7 + $0x10] sm:$0xff]   ;;  %v18181_v49 = vld [vmem:[%s22643_s7 + $0xd8] sm:$0xff]  }
 0x75d   : > { %v15954_v60 = vpop.f32.mrb[64].mxu0  ;;  %v16010_v29 = vpop.f32.mrb[183].mxu1  ;;  %v18183_v0 = vld [vmem:[%s22643_s7 + $0x58] sm:$0xff]   ;;  %16218 = vmatprep.subr.bf16.mxu0 %v18181_v49  ;;  %16165 = vmatpush3.bf16.msra.mxu1 %v18180_v45 }
 0x75e   : > { %v15955_v55 = vpop.f32.mrb[65].mxu0  ;;  %16166 = vmatprep.subr.bf16.mxu1 %v18183_v0  ;;  %v18185_v29 = vld [vmem:[%s22643_s7 + $0xe0] sm:$0xff]  }
 0x75f   : > { %v15956_v57 = vadd.f32 %v15955_v55, %v15954_v60  ;;  %v15957_v28 = vpop.f32.mrb[66].mxu0  ;;  %v18184_v60 = vld [vmem:[%s22643_s7 + $0x18] sm:$0xff]   ;;  %v18186_v55 = vld [vmem:[%s22643_s7 + $0xa0] sm:$0xff]  }
 0x760   : > { %v15958_v41 = vpop.f32.mrb[67].mxu0  ;;  %v18188_v28 = vld [vmem:[%s22643_s7 + $0x20] sm:$0xff]  }
 0x761   : > { %v10897_v38 = vadd.f32 %v15956_v57, %v21733_v15  ;;  %v18187_v57 = vld [vmem:[%s22643_s7 + $0x60] sm:$0xff]   ;;  %16167 = vmatpush3.bf16.msra.mxu1 %v18184_v60  ;;  %v18189_v41 = vld [vmem:[%s22643_s7 + $0xe8] sm:$0xff]  }
 0x762   : > { %16168 = vmatprep.subr.bf16.mxu1 %v18187_v57 }
 0x763   : > { %v21736_v46 = vadd.f32 %v16008_v48, %v10897_v38  ;;  %v18182_v48 = vld [vmem:[%s22643_s7 + $0x98] sm:$0xff]   ;;  %v18190_v38 = vld [vmem:[%s22643_s7 + $0xa8] sm:$0xff]  }
 0x764   : > { %16219 = vmatpush3.bf16.msra.mxu0 %v18182_v48 }
 0x765   : > { %16220 = vmatprep.subr.bf16.mxu0 %v18185_v29  ;;  %16169 = vmatpush3.bf16.msra.mxu1 %v18188_v28 }
 0x768   : > { %16221 = vmatpush3.bf16.msra.mxu0 %v18186_v55 }
 0x769   : > { %16222 = vmatprep.subr.bf16.mxu0 %v18189_v41 }
 0x76c   : > { %v16012_v34 = vpop.f32.mrb[184].mxu1  ;;  %16223 = vmatpush3.bf16.msra.mxu0 %v18190_v38 }
 0x76d   : > { %v16013_v33 = vpop.f32.mrb[185].mxu1 }
 0x76e   : > { %v16014_v10 = vadd.f32 %v16013_v33, %v16012_v34  ;;  %v16015_v43 = vpop.f32.mrb[186].mxu1  ;;  %v18191_v34 = vld [vmem:[%s22643_s7 + $0x68] sm:$0xff]   ;;  %v18193_v33 = vld [vmem:[%s22643_s7 + $0xf0] sm:$0xff]  }
 0x76f   : > { %v15960_v16 = vpop.f32.mrb[68].mxu0  ;;  %v16016_v47 = vpop.f32.mrb[187].mxu1  ;;  %16170 = vmatprep.subr.bf16.mxu1 %v18191_v34  ;;  %v18194_v43 = vld [vmem:[%s22643_s7 + $0xb0] sm:$0xff]   ;;  %16224 = vmatprep.subr.bf16.mxu0 %v18193_v33 }
 0x770   : > { %v15961_v35 = vpop.f32.mrb[69].mxu0  ;;  %v18197_v47 = vld [vmem:[%s22643_s7 + $0xf8] sm:$0xff]   ;;  %16225 = vmatpush3.bf16.msra.mxu0 %v18194_v43 }
 0x771   : > { %v15962_v23 = vadd.f32 %v15961_v35, %v15960_v16  ;;  %v15963_v12 = vpop.f32.mrb[70].mxu0  ;;  %v18195_v16 = vld [vmem:[%s22643_s7 + $0x70] sm:$0xff]   ;;  %16226 = vmatprep.subr.bf16.mxu0 %v18197_v47 }
 0x772   : > { %v15964_v13 = vpop.f32.mrb[71].mxu0  ;;  %v18196_v35 = vld [vmem:[%s22643_s7 + $0x30] sm:$0xff]   ;;  %v18199_v12 = vld [vmem:[%s22643_s7 + $0x78] sm:$0xff]  }
 0x773   : > { %v10905_v40 = vadd.f32 %v15962_v23, %v21733_v15  ;;  %v18198_v23 = vld [vmem:[%s22643_s7 + $0xb8] sm:$0xff]  }
 0x774   : > { %v18200_v13 = vld [vmem:[%s22643_s7 + $0x38] sm:$0xff]   ;;  %16227 = vmatpush3.bf16.msra.mxu0 %v18198_v23 }
 0x775   : > { %v21739_v36 = vadd.f32 %v16014_v10, %v10905_v40  ;;  %v18192_v10 = vld [vmem:[%s22643_s7 + $0x28] sm:$0xff]   ;;  %v18201_v40 = vld [vmem:[%s22643_s7 + $0x1c0] sm:$0xff]  }
 0x776   : > { %16171 = vmatpush3.bf16.msra.mxu1 %v18192_v10  ;;  %16316 = vmatprep.subr.bf16.mxu0 %v18201_v40 }
 0x777   : > { %16172 = vmatprep.subr.bf16.mxu1 %v18195_v16 }
 0x77a   : > { %16173 = vmatpush3.bf16.msra.mxu1 %v18196_v35 }
 0x77b   : > { %16174 = vmatprep.subr.bf16.mxu1 %v18199_v12 }
 0x77c   : > { %v16018_v22 = vpop.f32.mrb[188].mxu1 }
 0x77d   : > { %v16019_v39 = vpop.f32.mrb[189].mxu1 }
 0x77e   : > { %v16020_v24 = vadd.f32 %v16019_v39, %v16018_v22  ;;  %v16021_v27 = vpop.f32.mrb[190].mxu1  ;;  %16175 = vmatpush3.bf16.msra.mxu1 %v18200_v13  ;;  %v18203_v22 = vld [vmem:[%s22643_s7 + $0x140] sm:$0xff]  }
 0x77f   : > { %v15966_v31 = vpop.f32.mrb[72].mxu0  ;;  %v16022_v26 = vpop.f32.mrb[191].mxu1  ;;  %16264 = vmatprep.subr.bf16.mxu1 %v18203_v22 }
 0x780   : > { %v15967_v1 = vpop.f32.mrb[73].mxu0 }
 0x781   : > { %v15968_v42 = vadd.f32 %v15967_v1, %v15966_v31  ;;  %v15969_v51 = vpop.f32.mrb[74].mxu0 }
 0x782   : > { %v15970_v20 = vpop.f32.mrb[75].mxu0 }
 0x783   : > { %v10913_v21 = vadd.f32 %v15968_v42, %v21733_v15 }
 0x785   : > { %v21742_v63 = vadd.f32 %v16020_v24, %v10913_v21 }
 0x78c   : > { %v16024_v32 = vpop.f32.mrb[192].mxu1 }
 0x78d   : > { %v16025_v4 = vpop.f32.mrb[193].mxu1 }
 0x78e   : > { %v16026_v52 = vadd.f32 %v16025_v4, %v16024_v32  ;;  %v16027_v25 = vpop.f32.mrb[194].mxu1 }
 0x78f   : > { %v15972_v19 = vpop.f32.mrb[76].mxu0  ;;  %v16028_v17 = vpop.f32.mrb[195].mxu1 }
 0x790   : > { %v15973_v44 = vpop.f32.mrb[77].mxu0 }
 0x791   : > { %v15974_v9 = vadd.f32 %v15973_v44, %v15972_v19  ;;  %v15975_v59 = vpop.f32.mrb[78].mxu0 }
 0x792   : > { %v15976_v56 = vpop.f32.mrb[79].mxu0 }
 0x793   : > { %v10921_v62 = vadd.f32 %v15974_v9, %v21733_v15 }
 0x795   : > { %v21766_v53 = vadd.f32 %v16026_v52, %v10921_v62 }
 0x7bc   : > { %v16030_v39 = vpop.f32.mrb[196].mxu1 }
 0x7bd   : > { %v16031_v24 = vpop.f32.mrb[197].mxu1 }
 0x7be   : > { %v16032_v27 = vadd.f32 %v16031_v24, %v16030_v39  ;;  %v16033_v31 = vpop.f32.mrb[198].mxu1 }
 0x7bf   : > { %v15978_v26 = vpop.f32.mrb[80].mxu0  ;;  %v16034_v1 = vpop.f32.mrb[199].mxu1 }
 0x7c0   : > { %v15979_v42 = vpop.f32.mrb[81].mxu0 }
 0x7c1   : > { %v15980_v51 = vadd.f32 %v15979_v42, %v15978_v26  ;;  %v15981_v20 = vpop.f32.mrb[82].mxu0 }
 0x7c2   : > { %v15982_v21 = vpop.f32.mrb[83].mxu0 }
 0x7c3   : > { %v10929_v32 = vadd.f32 %v15980_v51, %v21733_v15 }
 0x7c4   : > { %v16036_v4 = vpop.f32.mrb[200].mxu1 }
 0x7c5   : > { %v16037_v52 = vpop.f32.mrb[201].mxu1  ;;  %v21850_v25 = vadd.f32 %v16032_v27, %v10929_v32 }
 0x7c6   : > { %v16038_v19 = vadd.f32 %v16037_v52, %v16036_v4  ;;  %v16039_v17 = vpop.f32.mrb[202].mxu1 }
 0x7c7   : > { %v15984_v44 = vpop.f32.mrb[84].mxu0  ;;  %v16040_v6 = vpop.f32.mrb[203].mxu1 }
 0x7c8   : > { %v15985_v9 = vpop.f32.mrb[85].mxu0 }
 0x7c9   : > { %v15986_v59 = vadd.f32 %v15985_v9, %v15984_v44  ;;  %v15987_v5 = vpop.f32.mrb[86].mxu0 }
 0x7ca   : > { %v15988_v7 = vpop.f32.mrb[87].mxu0 }
 0x7cb   : > { %v10937_v14 = vadd.f32 %v15986_v59, %v21733_v15 }
 0x7cc   : > { %v16110_v56 = vpop.f32.mrb[204].mxu1 }
 0x7cd   : > { %v16111_v8 = vpop.f32.mrb[205].mxu1  ;;  %v21853_v18 = vadd.f32 %v16038_v19, %v10937_v14 }
 0x7ce   : > { %v16112_v62 = vadd.f32 %v16111_v8, %v16110_v56  ;;  %v16113_v11 = vpop.f32.mrb[206].mxu1 }
 0x7cf   : > { %v16058_v2 = vpop.f32.mrb[88].mxu0  ;;  %v16114_v3 = vpop.f32.mrb[207].mxu1 }
 0x7d0   : > { %v16059_v50 = vpop.f32.mrb[89].mxu0 }
 0x7d1   : > { %v16060_v61 = vadd.f32 %v16059_v50, %v16058_v2  ;;  %v16061_v45 = vpop.f32.mrb[90].mxu0 }
 0x7d2   : > { %v16062_v49 = vpop.f32.mrb[91].mxu0 }
 0x7d3   : > { %v11059_v48 = vadd.f32 %v16060_v61, %v21736_v46 }
 0x7d4   : > { %v16116_v0 = vpop.f32.mrb[208].mxu1 }
 0x7d5   : > { %v16117_v60 = vpop.f32.mrb[209].mxu1  ;;  %v11140_v29 = vadd.f32 %v16112_v62, %v11059_v48 }
 0x7d6   : > { %v16118_v55 = vadd.f32 %v16117_v60, %v16116_v0  ;;  %v16119_v57 = vpop.f32.mrb[210].mxu1 }
 0x7d7   : > { %v16064_v15 = vpop.f32.mrb[92].mxu0  ;;  %v16120_v28 = vpop.f32.mrb[211].mxu1 }
 0x7d8   : > { %v16065_v41 = vpop.f32.mrb[93].mxu0 }
 0x7d9   : > { %v16066_v38 = vadd.f32 %v16065_v41, %v16064_v15  ;;  %v16067_v34 = vpop.f32.mrb[94].mxu0 }
 0x7da   : > { %v16068_v33 = vpop.f32.mrb[95].mxu0 }
 0x7db   : > { %v11067_v10 = vadd.f32 %v16066_v38, %v21739_v36 }
 0x7dc   : > { %v16122_v43 = vpop.f32.mrb[212].mxu1 }
 0x7dd   : > { %v16123_v16 = vpop.f32.mrb[213].mxu1  ;;  %v11148_v47 = vadd.f32 %v16118_v55, %v11067_v10 }
 0x7de   : > { %v16124_v35 = vadd.f32 %v16123_v16, %v16122_v43  ;;  %v16125_v23 = vpop.f32.mrb[214].mxu1 }
 0x7df   : > { %v16070_v12 = vpop.f32.mrb[96].mxu0  ;;  %v16126_v46 = vpop.f32.mrb[215].mxu1 }
 0x7e0   : > { %v16071_v13 = vpop.f32.mrb[97].mxu0 }
 0x7e1   : > { %v16072_v40 = vadd.f32 %v16071_v13, %v16070_v12  ;;  %v16073_v22 = vpop.f32.mrb[98].mxu0 }
 0x7e2   : > { %v16074_v39 = vpop.f32.mrb[99].mxu0 }
 0x7e3   : > { %v11075_v24 = vadd.f32 %v16072_v40, %v21742_v63 }
 0x7e4   : > { %v16128_v27 = vpop.f32.mrb[216].mxu1 }
 0x7e5   : > { %v16129_v31 = vpop.f32.mrb[217].mxu1  ;;  %v11156_v26 = vadd.f32 %v16124_v35, %v11075_v24 }
 0x7e6   : > { %v16130_v1 = vadd.f32 %v16129_v31, %v16128_v27  ;;  %v16131_v42 = vpop.f32.mrb[218].mxu1 }
 0x7e7   : > { %v16076_v51 = vpop.f32.mrb[100].mxu0  ;;  %v16132_v36 = vpop.f32.mrb[219].mxu1 }
 0x7e8   : > { %v16077_v20 = vpop.f32.mrb[101].mxu0  ;;  %v11299_v36 = vld [vmem:[#allocation5 + $0x8] sm:$0x1e] }
 0x7e9   : > { %v16078_v21 = vadd.f32 %v16077_v20, %v16076_v51  ;;  %v16079_v32 = vpop.f32.mrb[102].mxu0 }
 0x7ea   : > { %v16080_v4 = vpop.f32.mrb[103].mxu0 }
 0x7eb   : > { %v11083_v52 = vadd.f32 %v16078_v21, %v21766_v53 }
 0x7ec   : > { %v16134_v19 = vpop.f32.mrb[220].mxu1 }
 0x7ed   : > { %v16135_v17 = vpop.f32.mrb[221].mxu1  ;;  %v11164_v44 = vadd.f32 %v16130_v1, %v11083_v52  ;;  %v11313_v1 = vld [vmem:[#allocation5 + $0x10] sm:$0x1e] }
 0x7ee   : > { %v16136_v6 = vadd.f32 %v16135_v17, %v16134_v19  ;;  %v16137_v9 = vpop.f32.mrb[222].mxu1 }
 0x7ef   : > { %v16082_v59 = vpop.f32.mrb[104].mxu0  ;;  %v16138_v63 = vpop.f32.mrb[223].mxu1 }
 0x7f0   : > { %v16083_v5 = vpop.f32.mrb[105].mxu0 }
 0x7f1   : > { %v16084_v7 = vadd.f32 %v16083_v5, %v16082_v59  ;;  %v16085_v14 = vpop.f32.mrb[106].mxu0 }
 0x7f2   : > { %v16086_v56 = vpop.f32.mrb[107].mxu0 }
 0x7f3   : > { %v11091_v8 = vadd.f32 %v16084_v7, %v21850_v25 }
 0x7f4   : > { %v16140_v62 = vpop.f32.mrb[224].mxu1 }
 0x7f5   : > { %v16141_v11 = vpop.f32.mrb[225].mxu1  ;;  %v11172_v2 = vadd.f32 %v16136_v6, %v11091_v8  ;;  %v21863_v6 = vld [vmem:[#allocation3] sm:$0xff] }
 0x7f6   : > { %v16142_v3 = vadd.f32 %v16141_v11, %v16140_v62  ;;  %v16143_v50 = vpop.f32.mrb[226].mxu1  ;;  %v11395_v9 = vshll.u32 %v21863_v6, 16  ;;  %v11393_v11 = vshrl.u32 %v21863_v6, 16 }
 0x7f7   : > { %v16088_v61 = vpop.f32.mrb[108].mxu0  ;;  %v16144_v53 = vpop.f32.mrb[227].mxu1 }
 0x7f8   : > { %v16089_v45 = vpop.f32.mrb[109].mxu0  ;;  %v11341_v53 = vld [vmem:[#allocation5 + $0x20] sm:$0x1e] }
 0x7f9   : > { %v16090_v49 = vadd.f32 %v16089_v45, %v16088_v61  ;;  %v16091_v48 = vpop.f32.mrb[110].mxu0  ;;  %v11379_v61 = vld [vmem:[#allocation5] sm:$0xfe] }
 0x7fa   : > { %v16092_v0 = vpop.f32.mrb[111].mxu0 }
 0x7fb   : > { %v11099_v60 = vadd.f32 %v16090_v49, %v21853_v18  ;;  %v11327_v49 = vld [vmem:[#allocation5 + $0x18] sm:$0x1e] }
 0x7fd   : > { %v11180_v55 = vadd.f32 %v16142_v3, %v11099_v60 }
 0x7ff   : > { %v17245_v57 = vpop.f32.mrb[112].mxu0 }
 0x800   : > { %v11229_v15 = vadd.f32 %v17245_v57, %v11148_v47  ;;  %v11220_v28 = vpop.f32.mrb[113].mxu0  ;;  %v11457_v57 = vrot.slane %v11379_v61, 1 }
 0x801   : > { %v11221_v41 = vadd.f32 %v11220_v28, %v11140_v29  ;;  %v17246_v38 = vpop.f32.mrb[114].mxu0 }
 0x802   : > { %11269 = vst [vmem:[#allocation2 + $0x10] sm:$0xff] %v11229_v15  ;;  %v11223_v25 = vpop.f32.mrb[115].mxu0 }
 0x803   : > { %11267 = vst [vmem:[#allocation2] sm:$0xff] %v11221_v41 }
 0x807   : > { %v17249_v34 = vpop.f32.mrb[116].mxu0 }
 0x808   : > { %v11245_v33 = vadd.f32 %v17249_v34, %v11164_v44  ;;  %v11236_v10 = vpop.f32.mrb[117].mxu0 }
 0x809   : > { %v11302_v43 = vld [vmem:[#allocation2 + $0x12] sm:$0x3f]  ;;  %v11237_v16 = vadd.f32 %v11236_v10, %v11156_v26  ;;  %v17250_v35 = vpop.f32.mrb[118].mxu0 }
 0x80a   : > { %v11303_v23 = vpack.c.bf16 %v11302_v43, %v11302_v43  ;;  %v11288_v12 = vld [vmem:[#allocation2 + $0x2] sm:$0x3f]  ;;  %11273 = vst [vmem:[#allocation2 + $0x30] sm:$0xff] %v11245_v33  ;;  %v11239_v46 = vpop.f32.mrb[119].mxu0 }
 0x80b   : > { %v11289_v18 = vpack.c.bf16 %v11288_v12, %v11288_v12  ;;  %11271 = vst [vmem:[#allocation2 + $0x20] sm:$0xff] %v11237_v16 }
 0x80c   : > { %v11305_v13 = vshrl.u32 %v11303_v23, 16  ;;  %v11308_v47 = vshll.u32 %v11303_v23, 16  ;;  %v18202_v23 = vld [vmem:[%s22643_s7 + $0x180] sm:$0xff]  }
 0x80d   : > { %v11291_v40 = vshrl.u32 %v11289_v18, 16  ;;  %v11294_v29 = vshll.u32 %v11289_v18, 16 }
 0x80e   : > { %v11307_v22 = vrot.slane %v11305_v13, 6  ;;  %v11310_v39 = vrot.slane %v11308_v47, 7  ;;  %v18205_v13 = vld [vmem:[%s22643_s7 + $0x1c8] sm:$0xff]  }
 0x80f   : > { %v11293_v24 = vrot.slane %v11291_v40, 6  ;;  %v11296_v27 = vrot.slane %v11294_v29, 7  ;;  %v17253_v31 = vpop.f32.mrb[120].mxu0 }
 0x810   : > { %v11311_v42 = vor.u32 %v11310_v39, %v11307_v22  ;;  %v11261_v51 = vadd.f32 %v17253_v31, %v11180_v55  ;;  %v11252_v26 = vpop.f32.mrb[121].mxu0  ;;  %v11369_v31 = vld [vmem:[#allocation5 + $0x30] sm:$0x1e] }
 0x811   : > { %v11297_v20 = vor.u32 %v11296_v27, %v11293_v24  ;;  %v11330_v21 = vld [vmem:[#allocation2 + $0x32] sm:$0x3f]  ;;  %v11253_v32 = vadd.f32 %v11252_v26, %v11172_v2  ;;  %v17254_v4 = vpop.f32.mrb[122].mxu0  ;;  %v21869_v2 = vrot.slane %v11395_v9, 1  ;;  %v18204_v27 = vld [vmem:[%s22643_s7 + $0x100] sm:$0xff]   ;;  %v18208_v9 = vld [vmem:[%s22643_s7 + $0x108] sm:$0xff]  }
 0x812   : > { %v11331_v52 = vpack.c.bf16 %v11330_v21, %v11330_v21  ;;  %v11316_v19 = vld [vmem:[#allocation2 + $0x22] sm:$0x3f]  ;;  %11277 = vst [vmem:[#allocation2 + $0x50] sm:$0xff] %v11261_v51  ;;  %v11255_v17 = vpop.f32.mrb[123].mxu0  ;;  %v11314_v44 = vsel %vm21466_vm8, %v11311_v42, %v11313_v1  ;;  %v11355_v21 = vld [vmem:[#allocation5 + $0x28] sm:$0x1e] }
 0x813   : > { %v11317_v59 = vpack.c.bf16 %v11316_v19, %v11316_v19  ;;  %11275 = vst [vmem:[#allocation2 + $0x40] sm:$0xff] %v11253_v32  ;;  %v11300_v63 = vsel %vm21466_vm8, %v11297_v20, %v11299_v36  ;;  %11315 = vst [vmem:[#allocation5 + $0x10] sm:$0x1e] %v11314_v44  ;;  %v21878_v25 = vor.u32 %v21869_v2, %v11393_v11  ;;  %v18206_v36 = vld [vmem:[%s22643_s7 + $0x188] sm:$0xff]   ;;  %v18209_v4 = vld [vmem:[%s22643_s7 + $0x1d0] sm:$0xff]  }
 0x814   : > { %v11333_v5 = vshrl.u32 %v11331_v52, 16  ;;  %v11336_v7 = vshll.u32 %v11331_v52, 16  ;;  %11301 = vst [vmem:[#allocation5 + $0x8] sm:$0x1e] %v11300_v63  ;;  %v18207_v20 = vld [vmem:[%s22643_s7 + $0x148] sm:$0xff]  }
 0x815   : > { %v11319_v14 = vshrl.u32 %v11317_v59, 16  ;;  %v11322_v56 = vshll.u32 %v11317_v59, 16 }
 0x816   : > { %v11335_v8 = vrot.slane %v11333_v5, 6  ;;  %v11338_v62 = vrot.slane %v11336_v7, 7  ;;  %v18210_v5 = vld [vmem:[%s22643_s7 + $0x190] sm:$0xff]  }
 0x817   : > { %v11321_v3 = vrot.slane %v11319_v14, 6  ;;  %v11324_v50 = vrot.slane %v11322_v56, 7  ;;  %v18211_v7 = vld [vmem:[%s22643_s7 + $0x150] sm:$0xff]  }
 0x818   : > { %v11339_v45 = vor.u32 %v11338_v62, %v11335_v8  ;;  %v18212_v62 = vld [vmem:[%s22643_s7 + $0x110] sm:$0xff]  }
 0x819   : > { %v11325_v48 = vor.u32 %v11324_v50, %v11321_v3  ;;  %v11358_v0 = vld [vmem:[#allocation2 + $0x52] sm:$0x3f]  ;;  %v18214_v3 = vld [vmem:[%s22643_s7 + $0x198] sm:$0xff]  }
 0x81a   : > { %v11359_v60 = vpack.c.bf16 %v11358_v0, %v11358_v0  ;;  %v11344_v55 = vld [vmem:[#allocation2 + $0x42] sm:$0x3f]  ;;  %v21871_v15 = vld [vmem:[#allocation5 + $0x10] sm:$0xff]  ;;  %v11342_v28 = vsel %vm21466_vm8, %v11339_v45, %v11341_v53 }
 0x81b   : > { %v11345_v41 = vpack.c.bf16 %v11344_v55, %v11344_v55  ;;  %v21875_v38 = vld [vmem:[#allocation5 + $0x8] sm:$0xff]  ;;  %v11408_v34 = vshll.u32 %v21871_v15, 16  ;;  %v11328_v33 = vsel %vm21466_vm8, %v11325_v48, %v11327_v49  ;;  %11343 = vst [vmem:[#allocation5 + $0x20] sm:$0x1e] %v11342_v28  ;;  %v21914_v19 = vrot.slane %v21871_v15, 1  ;;  %v18215_v50 = vld [vmem:[%s22643_s7 + $0x158] sm:$0xff]  }
 0x81c   : > { %v11361_v10 = vshrl.u32 %v11359_v60, 16  ;;  %v11364_v43 = vshll.u32 %v11359_v60, 16  ;;  %12283 = vmatprep.mubr.bf16.mxu0 %v21875_v38  ;;  %v11458_v16 = vrot.slane %v21875_v38, 1  ;;  %v11400_v35 = vshll.u32 %v21875_v38, 16  ;;  %11329 = vst [vmem:[#allocation5 + $0x18] sm:$0x1e] %v11328_v33 }
 0x81d   : > { %v11347_v12 = vshrl.u32 %v11345_v41, 16  ;;  %v11350_v46 = vshll.u32 %v11345_v41, 16  ;;  %v11404_v18 = vshrl.u32 %v21875_v38, 16  ;;  %v11410_v26 = vrot.slane %v11408_v34, 1  ;;  %v18217_v53 = vld [vmem:[%s22643_s7 + $0x1e0] sm:$0xff]   ;;  %v18216_v48 = vld [vmem:[%s22643_s7 + $0x118] sm:$0xff]  }
 0x81e   : > { %v11363_v47 = vrot.slane %v11361_v10, 6  ;;  %v11366_v40 = vrot.slane %v11364_v43, 7  ;;  %v11459_v29 = vsel %vm778_vm4, %v11457_v57, %v11458_v16  ;;  %v11402_v22 = vrot.slane %v11400_v35, 1  ;;  %v18218_v55 = vld [vmem:[%s22643_s7 + $0x1a0] sm:$0xff]   ;;  %v18221_v28 = vld [vmem:[%s22643_s7 + $0x1e8] sm:$0xff]   ;;  %v18225_v35 = vld [vmem:[%s22643_s7 + $0x1f0] sm:$0xff]  }
 0x81f   : > { %v11349_v39 = vrot.slane %v11347_v12, 6  ;;  %v11352_v24 = vrot.slane %v11350_v46, 7  ;;  %12284 = vmatmul.mubr.bf16.vlgmr.msra.gmra.mrb[124].mxu0 %v11459_v29  ;;  %v11461_v14 = vsel %vm778_vm4, %v11458_v16, %v21914_v19  ;;  %v11412_v56 = vshrl.u32 %v21871_v15, 16  ;;  %v18219_v57 = vld [vmem:[%s22643_s7 + $0x160] sm:$0xff]   ;;  %v18222_v43 = vld [vmem:[%s22643_s7 + $0x1a8] sm:$0xff]  }
 0x820   : > { %v11367_v1 = vor.u32 %v11366_v40, %v11363_v47  ;;  %12291 = vmatprep.mubr.bf16.mxu0 %v21871_v15  ;;  %v11403_v42 = vsel %vm447_vm2, %v21878_v25, %v11402_v22  ;;  %v11406_v51 = vor.u32 %v11404_v18, %v11402_v22  ;;  %16317 = vmatpush3.bf16.msra.mxu0 %v18202_v23  ;;  %v18220_v33 = vld [vmem:[%s22643_s7 + $0x120] sm:$0xff]   ;;  %v18223_v16 = vld [vmem:[%s22643_s7 + $0x168] sm:$0xff]   ;;  %v18227_v47 = vld [vmem:[%s22643_s7 + $0x170] sm:$0xff]  }
 0x821   : > { %v11353_v32 = vor.u32 %v11352_v24, %v11349_v39  ;;  %12202 = vmatprep.mubr.bf16.mxu1 %v11403_v42  ;;  %16318 = vmatprep.subr.bf16.mxu0 %v18205_v13  ;;  %v11414_v11 = vor.u32 %v11412_v56, %v11410_v26  ;;  %v18224_v18 = vld [vmem:[%s22643_s7 + $0x128] sm:$0xff]   ;;  %v18226_v13 = vld [vmem:[%s22643_s7 + $0x1b0] sm:$0xff]   ;;  %v18229_v40 = vld [vmem:[%s22643_s7 + $0x1f8] sm:$0xff]  }
 0x822   : > { %12203 = vmatmul.mubr.bf16.vlgmr.msra.gmra.mrb[228].mxu1 %v21863_v6  ;;  %v21911_v52 = vsel %vm447_vm2, %v11406_v51, %v11410_v26  ;;  %v11370_v17 = vsel %vm21466_vm8, %v11367_v1, %v11369_v31  ;;  %v21949_v61 = vld [vmem:[#allocation5 + $0x20] sm:$0xff]  ;;  %v18228_v24 = vld [vmem:[%s22643_s7 + $0x130] sm:$0xff]   ;;  %v18230_v31 = vld [vmem:[%s22643_s7 + $0x1b8] sm:$0xff]  }
 0x823   : > { %12210 = vmatprep.mubr.bf16.mxu1 %v21911_v52  ;;  %v21919_v44 = vld [vmem:[#allocation5 + $0x18] sm:$0xff]  ;;  %16265 = vmatpush3.bf16.msra.mxu1 %v18204_v27  ;;  %v11356_v59 = vsel %vm21466_vm8, %v11353_v32, %v11355_v21  ;;  %11371 = vst [vmem:[#allocation5 + $0x30] sm:$0x1e] %v11370_v17  ;;  %v11424_v60 = vshll.u32 %v21949_v61, 16  ;;  %v11464_v12 = vrot.slane %v21949_v61, 1  ;;  %v11428_v22 = vshrl.u32 %v21949_v61, 16 }
 0x824   : > { %v11416_v63 = vshll.u32 %v21919_v44, 16  ;;  %16319 = vmatpush3.bf16.msra.mxu0 %v18206_v36  ;;  %16266 = vmatprep.subr.bf16.mxu1 %v18207_v20  ;;  %11357 = vst [vmem:[#allocation5 + $0x28] sm:$0x1e] %v11356_v59  ;;  %v21959_v49 = vrot.slane %v21919_v44, 1  ;;  %v11420_v0 = vshrl.u32 %v21919_v44, 16  ;;  %v18231_v1 = vld [vmem:[%s22643_s7 + $0x178] sm:$0xff]  }
 0x825   : > { %16320 = vmatprep.subr.bf16.mxu0 %v18209_v4  ;;  %v11426_v10 = vrot.slane %v11424_v60, 1  ;;  %v11378_v42 = vld [vmem:[#allocation5 + $0x30] sm:$0x1]  ;;  %v18233_v32 = vld [vmem:[%s22643_s7 + $0x200] sm:$0xff]  }
 0x826   : > { %v11418_v8 = vrot.slane %v11416_v63, 1  ;;  %v21979_v41 = vsel %vm778_vm4, %v21914_v19, %v21959_v49  ;;  %v22018_v29 = vsel %vm778_vm4, %v21959_v49, %v11464_v12  ;;  %v11440_v36 = vshll.u32 %v11378_v42, 16  ;;  %v18232_v20 = vld [vmem:[%s22643_s7 + $0x138] sm:$0xff]  }
 0x827   : > { %12292 = vmatmul.mubr.bf16.gmra.mrb[128].mxu0 %v11461_v14  ;;  %16267 = vmatpush3.bf16.msra.mxu1 %v18208_v9  ;;  %v11430_v27 = vor.u32 %v11428_v22, %v11426_v10 }
 0x828   : > { %12299 = vmatprep.mubr.bf16.mxu0 %v21919_v44  ;;  %16321 = vmatpush3.bf16.msra.mxu0 %v18210_v5  ;;  %v21956_v45 = vsel %vm447_vm2, %v11414_v11, %v11418_v8  ;;  %v11442_v9 = vrot.slane %v11440_v36, 1  ;;  %v11468_v5 = vrot.slane %v11378_v42, 1 }
 0x829   : > { %16268 = vmatprep.subr.bf16.mxu1 %v18211_v7  ;;  %16322 = vmatprep.subr.bf16.mxu0 %v18213_v37  ;;  %v11382_v7 = vld [vmem:[#allocation5 + $0x8] sm:$0xfe] }
 0x82a   : > { %12211 = vmatmul.mubr.bf16.gmra.mrb[232].mxu1 %v21875_v38  ;;  %v11422_v38 = vor.u32 %v11420_v0, %v11418_v8  ;;  %v22053_v59 = vld [vmem:[#allocation5 + $0x30] sm:$0xff]  ;;  %v11494_v14 = vrot.slane %v11382_v7, 1  ;;  %v18234_v8 = vld [vmem:[%s22643_s7 + $0x208] sm:$0xff]  }
 0x82b   : > { %12218 = vmatprep.mubr.bf16.mxu1 %v21956_v45  ;;  %16269 = vmatpush3.bf16.msra.mxu1 %v18212_v62  ;;  %v21982_v34 = vld [vmem:[#allocation5 + $0x28] sm:$0xff]  ;;  %v11575_v0 = vrot.slane %v22053_v59, 1 }
 0x82c   : > { %16323 = vmatpush3.bf16.msra.mxu0 %v18214_v3  ;;  %16270 = vmatprep.subr.bf16.mxu1 %v18215_v50  ;;  %v21999_v23 = vsel %vm447_vm2, %v11422_v38, %v11426_v10  ;;  %v11432_v46 = vshll.u32 %v21982_v34, 16  ;;  %v22037_v26 = vrot.slane %v21982_v34, 1  ;;  %v11436_v21 = vshrl.u32 %v21982_v34, 16  ;;  %v18235_v62 = vld [vmem:[%s22643_s7 + $0x210] sm:$0xff]   ;;  %v18238_v3 = vld [vmem:[%s22643_s7 + $0x228] sm:$0xff]  }
 0x82d   : > { %16324 = vmatprep.subr.bf16.mxu0 %v18217_v53  ;;  %v11495_v56 = vsel %vm778_vm4, %v11494_v14, %v21914_v19  ;;  %v18237_v19 = vld [vmem:[%s22643_s7 + $0x220] sm:$0xff]   ;;  %v11481_v50 = vshrl.u32 %v22053_v59, 16  ;;  %v11390_v53 = vld [vmem:[#allocation5 + $0x40] sm:$0x1] }
 0x82e   : > { %v11434_v39 = vrot.slane %v11432_v46, 1  ;;  %v22050_v4 = vsel %vm778_vm4, %v11464_v12, %v22037_v26  ;;  %v11469_v37 = vsel %vm778_vm4, %v22037_v26, %v11468_v5  ;;  %v11579_v46 = vrot.slane %v11390_v53, 1 }
 0x82f   : > { %12300 = vmatmul.mubr.bf16.gmra.mrb[132].mxu0 %v21979_v41  ;;  %16271 = vmatpush3.bf16.msra.mxu1 %v18216_v48  ;;  %v11551_v48 = vshll.u32 %v11390_v53, 16 }
 0x830   : > { %12307 = vmatprep.mubr.bf16.mxu0 %v21949_v61  ;;  %16325 = vmatpush3.bf16.msra.mxu0 %v18218_v55  ;;  %v22034_v51 = vsel %vm447_vm2, %v11430_v27, %v11434_v39  ;;  %v11438_v17 = vor.u32 %v11436_v21, %v11434_v39  ;;  %v18240_v55 = vld [vmem:[%s22643_s7 + $0x238] sm:$0xff]  }
 0x831   : > { %16272 = vmatprep.subr.bf16.mxu1 %v18219_v57  ;;  %16326 = vmatprep.subr.bf16.mxu0 %v18221_v28  ;;  %v11553_v57 = vrot.slane %v11551_v48, 1  ;;  %v11497_v28 = vsel %vm778_vm4, %v22037_v26, %v11575_v0 }
 0x832   : > { %12219 = vmatmul.mubr.bf16.gmra.mrb[236].mxu1 %v21871_v15  ;;  %v11443_v63 = vsel %vm447_vm2, %v11438_v17, %v11442_v9 }
 0x833   : > { %12226 = vmatprep.mubr.bf16.mxu1 %v21999_v23  ;;  %16273 = vmatpush3.bf16.msra.mxu1 %v18220_v33 }
 0x834   : > { %16327 = vmatpush3.bf16.msra.mxu0 %v18222_v43  ;;  %16274 = vmatprep.subr.bf16.mxu1 %v18223_v16  ;;  %v11391_v43 = vld [vmem:[#allocation5 + $0x10] sm:$0xfe] }
 0x835   : > { %16328 = vmatprep.subr.bf16.mxu0 %v18225_v35  ;;  %v11568_v16 = vrot.slane %v11391_v43, 1 }
 0x837   : > { %12308 = vmatmul.mubr.bf16.gmra.mrb[136].mxu0 %v22018_v29  ;;  %16275 = vmatpush3.bf16.msra.mxu1 %v18224_v18  ;;  %v11570_v35 = vsel %vm778_vm4, %v11568_v16, %v21959_v49 }
 0x838   : > { %12315 = vmatprep.mubr.bf16.mxu0 %v21982_v34  ;;  %16329 = vmatpush3.bf16.msra.mxu0 %v18226_v13 }
 0x839   : > { %16276 = vmatprep.subr.bf16.mxu1 %v18227_v47  ;;  %16330 = vmatprep.subr.bf16.mxu0 %v18229_v40 }
 0x83a   : > { %12227 = vmatmul.mubr.bf16.gmra.mrb[240].mxu1 %v21919_v44 }
 0x83b   : > { %12234 = vmatprep.mubr.bf16.mxu1 %v22034_v51  ;;  %16277 = vmatpush3.bf16.msra.mxu1 %v18228_v24 }
 0x83c   : > { %16331 = vmatpush3.bf16.msra.mxu0 %v18230_v31  ;;  %16278 = vmatprep.subr.bf16.mxu1 %v18231_v1 }
 0x83d   : > { %17293 = vmatprep.subr.mxu0 %v22660_v58 }
 0x83f   : > { %12316 = vmatmul.mubr.bf16.gmra.mrb[140].mxu0 %v22050_v4  ;;  %16279 = vmatpush3.bf16.msra.mxu1 %v18232_v20 }
 0x840   : > { %12323 = vmatprep.mubr.bf16.mxu0 %v22053_v59  ;;  %17255 = vmatprep.subr.bf16.mxu1 %v18233_v32 }
 0x842   : > { %12235 = vmatmul.mubr.bf16.gmra.mrb[244].mxu1 %v21949_v61 }
 0x843   : > { %12242 = vmatprep.mubr.bf16.mxu1 %v11443_v63 }
 0x847   : > { %12324 = vmatmul.mubr.bf16.gmra.mrb[144].mxu0 %v11469_v37 }
 0x848   : > { %12445 = vmatprep.mubr.bf16.mxu0 %v21956_v45 }
 0x84a   : > { %12243 = vmatmul.mubr.bf16.gmra.mrb[248].mxu1 %v21982_v34 }
 0x84b   : > { %12364 = vmatprep.mubr.bf16.mxu1 %v11495_v56 }
 0x84f   : > { %12446 = vmatmul.mubr.bf16.vlgmr.msra.gmra.mrb[148].mxu0 %v21871_v15  ;;  %v18236_v15 = vld [vmem:[%s22643_s7 + $0x218] sm:$0xff]  }
 0x850   : > { %12453 = vmatprep.mubr.bf16.mxu0 %v21999_v23 }
 0x852   : > { %12365 = vmatmul.mubr.bf16.vlgmr.msra.gmra.mrb[252].mxu1 %v21911_v52  ;;  %v11477_v52 = vshll.u32 %v22053_v59, 16 }
 0x853   : > { %12372 = vmatprep.mubr.bf16.mxu1 %v21979_v41  ;;  %17256 = vmatpush3.bf16.msra.mxu1 %v18233_v32  ;;  %v11381_v41 = vld [vmem:[#allocation5 + $0x38] sm:$0x1] }
 0x854   : > { %17257 = vmatprep.subr.bf16.mxu1 %v18234_v8  ;;  %v11498_v38 = vrot.slane %v11381_v41, 1 }
 0x856   : > { %v11499_v33 = vsel %vm778_vm4, %v11575_v0, %v11498_v38 }
 0x857   : > { %12454 = vmatmul.mubr.bf16.gmra.mrb[152].mxu0 %v21919_v44  ;;  %17258 = vmatpush3.bf16.msra.mxu1 %v18234_v8  ;;  %v11479_v44 = vrot.slane %v11477_v52, 1 }
 0x858   : > { %12461 = vmatprep.mubr.bf16.mxu0 %v22034_v51  ;;  %17259 = vmatprep.subr.bf16.mxu1 %v18235_v62 }
 0x859   : > { %v11480_v11 = vsel %vm447_vm2, %v11438_v17, %v11479_v44 }
 0x85a   : > { %12373 = vmatmul.mubr.bf16.gmra.mrb[0].mxu1 %v21956_v45  ;;  %v11483_v45 = vor.u32 %v11481_v50, %v11479_v44 }
 0x85b   : > { %12380 = vmatprep.mubr.bf16.mxu1 %v22018_v29  ;;  %17260 = vmatpush3.bf16.msra.mxu1 %v18235_v62 }
 0x85c   : > { %17261 = vmatprep.subr.bf16.mxu1 %v18236_v15  ;;  %v11546_v60 = vsel %vm447_vm2, %v11483_v45, %v21869_v2  ;;  %v11554_v2 = vsel %vm447_vm2, %v21878_v25, %v11553_v57 }
 0x85f   : > { %12462 = vmatmul.mubr.bf16.gmra.mrb[156].mxu0 %v21949_v61  ;;  %17262 = vmatpush3.bf16.msra.mxu1 %v18236_v15  ;;  %v18239_v61 = vld [vmem:[%s22643_s7 + $0x230] sm:$0xff]  }
 0x860   : > { %12469 = vmatprep.mubr.bf16.mxu0 %v11480_v11  ;;  %17263 = vmatprep.subr.bf16.mxu1 %v18237_v19 }
 0x862   : > { %12381 = vmatmul.mubr.bf16.gmra.mrb[4].mxu1 %v21999_v23  ;;  %v11577_v23 = vrot.slane %v21863_v6, 1 }
 0x863   : > { %12388 = vmatprep.mubr.bf16.mxu1 %v22050_v4  ;;  %17264 = vmatpush3.bf16.msra.mxu1 %v18237_v19 }
 0x864   : > { %17265 = vmatprep.subr.bf16.mxu1 %v18238_v3  ;;  %v11578_v12 = vsel %vm778_vm4, %v11575_v0, %v11577_v23  ;;  %v11580_v18 = vsel %vm778_vm4, %v11577_v23, %v11579_v46 }
 0x867   : > { %12470 = vmatmul.mubr.bf16.gmra.mrb[160].mxu0 %v21982_v34  ;;  %17266 = vmatpush3.bf16.msra.mxu1 %v18238_v3  ;;  %v11485_v34 = vshll.u32 %v11381_v41, 16 }
 0x868   : > { %12477 = vmatprep.mubr.bf16.mxu0 %v11546_v60  ;;  %17267 = vmatprep.subr.bf16.mxu1 %v18239_v61 }
 0x869   : > { %v11487_v10 = vrot.slane %v11485_v34, 1 }
 0x86a   : > { %12389 = vmatmul.mubr.bf16.gmra.mrb[8].mxu1 %v22034_v51 }
 0x86b   : > { %12396 = vmatprep.mubr.bf16.mxu1 %v11497_v28  ;;  %17268 = vmatpush3.bf16.msra.mxu1 %v18239_v61  ;;  %v11488_v25 = vsel %vm447_vm2, %v11483_v45, %v11487_v10  ;;  %vm12605_vm2 = vcmask 56320  }
 0x86c   : > { %17269 = vmatprep.subr.bf16.mxu1 %v18240_v55 }
 0x86f   : > { %12478 = vmatmul.mubr.bf16.gmra.mrb[164].mxu0 %v22053_v59  ;;  %17270 = vmatpush3.bf16.msra.mxu1 %v18240_v55 }
 0x870   : > { %12485 = vmatprep.mubr.bf16.mxu0 %v11554_v2  ;;  %17283 = vmatprep.subr.mxu1 %v22660_v58 }
 0x872   : > { %12397 = vmatmul.mubr.bf16.gmra.mrb[12].mxu1 %v11480_v11 }
 0x873   : > { %12404 = vmatprep.mubr.bf16.mxu1 %v11499_v33 }
 0x877   : > { %12486 = vmatmul.mubr.bf16.gmra.mrb[168].mxu0 %v21863_v6  ;;  %v22127_v6 = vld [vmem:[%s22644_s8] ss:$0 sm:$0xff] }
 0x878   : > { %17295 = vmatprep.mubr.msk.f32.mxu0 %vm18442_vm14, %v22660_v58 }
 0x87a   : > { %12405 = vmatmul.mubr.bf16.gmra.mrb[16].mxu1 %v11488_v25 }
 0x87b   : > { %17271 = vmatprep.mubr.bf16.mxu1 %v11570_v35 }
 0x882   : > { %17272 = vmatmul.mubr.bf16.vlgmr.msra.gmra.mrb[20].mxu1 %v22018_v29 }
 0x883   : > { %17275 = vmatprep.mubr.bf16.mxu1 %v22050_v4 }
 0x88a   : > { %17276 = vmatmul.mubr.bf16.gmra.mrb[24].mxu1 %v11497_v28 }
 0x88b   : > { %17279 = vmatprep.mubr.bf16.mxu1 %v11578_v12 }
 0x892   : > { %17280 = vmatmul.mubr.bf16.gmra.mrb[28].mxu1 %v11580_v18 }
 0x893   : > { %17285 = vmatprep.mubr.msk.f32.mxu1 %vm18442_vm14, %v22660_v58 }
 0x8f2   : > { %v16228_v13 = vpop.f32.mrb[124].mxu0 }
 0x8f3   : > { %v16229_v49 = vpop.f32.mrb[125].mxu0 }
 0x8f4   : > { %v16230_v47 = vadd.f32 %v16229_v49, %v16228_v13  ;;  %v16231_v40 = vpop.f32.mrb[126].mxu0 }
 0x8f5   : > { %v16176_v29 = vpop.f32.mrb[228].mxu1  ;;  %v16232_v22 = vpop.f32.mrb[127].mxu0 }
 0x8f6   : > { %v16177_v39 = vpop.f32.mrb[229].mxu1 }
 0x8f7   : > { %v16178_v24 = vadd.f32 %v16177_v39, %v16176_v29  ;;  %v16179_v27 = vpop.f32.mrb[230].mxu1 }
 0x8f8   : > { %v16180_v31 = vpop.f32.mrb[231].mxu1 }
 0x8f9   : > { %v12205_v1 = vadd.f32 %v16178_v24, %v22127_v6 }
 0x8fa   : > { %v16234_v42 = vpop.f32.mrb[128].mxu0 }
 0x8fb   : > { %v16235_v51 = vpop.f32.mrb[129].mxu0  ;;  %v22130_v26 = vadd.f32 %v16230_v47, %v12205_v1 }
 0x8fc   : > { %v16236_v36 = vadd.f32 %v16235_v51, %v16234_v42  ;;  %v16237_v20 = vpop.f32.mrb[130].mxu0 }
 0x8fd   : > { %v16182_v21 = vpop.f32.mrb[232].mxu1  ;;  %v16238_v32 = vpop.f32.mrb[131].mxu0 }
 0x8fe   : > { %v16183_v4 = vpop.f32.mrb[233].mxu1 }
 0x8ff   : > { %v16184_v17 = vadd.f32 %v16183_v4, %v16182_v21  ;;  %v16185_v9 = vpop.f32.mrb[234].mxu1 }
 0x900   : > { %v16186_v59 = vpop.f32.mrb[235].mxu1 }
 0x901   : > { %v12213_v63 = vadd.f32 %v16184_v17, %v22127_v6 }
 0x902   : > { %v16240_v5 = vpop.f32.mrb[132].mxu0 }
 0x903   : > { %v16241_v7 = vpop.f32.mrb[133].mxu0  ;;  %v22133_v37 = vadd.f32 %v16236_v36, %v12213_v63 }
 0x904   : > { %v16242_v14 = vadd.f32 %v16241_v7, %v16240_v5  ;;  %v16243_v56 = vpop.f32.mrb[134].mxu0 }
 0x905   : > { %v16188_v8 = vpop.f32.mrb[236].mxu1  ;;  %v16244_v62 = vpop.f32.mrb[135].mxu0 }
 0x906   : > { %v16189_v15 = vpop.f32.mrb[237].mxu1 }
 0x907   : > { %v16190_v52 = vadd.f32 %v16189_v15, %v16188_v8  ;;  %v16191_v19 = vpop.f32.mrb[238].mxu1 }
 0x908   : > { %v16192_v44 = vpop.f32.mrb[239].mxu1 }
 0x909   : > { %v12221_v11 = vadd.f32 %v16190_v52, %v22127_v6 }
 0x90a   : > { %v16246_v3 = vpop.f32.mrb[136].mxu0 }
 0x90b   : > { %v16247_v50 = vpop.f32.mrb[137].mxu0  ;;  %v22136_v53 = vadd.f32 %v16242_v14, %v12221_v11 }
 0x90c   : > { %v16248_v45 = vadd.f32 %v16247_v50, %v16246_v3  ;;  %v16249_v61 = vpop.f32.mrb[138].mxu0 }
 0x90d   : > { %v16194_v48 = vpop.f32.mrb[240].mxu1  ;;  %v16250_v0 = vpop.f32.mrb[139].mxu0 }
 0x90e   : > { %v16195_v60 = vpop.f32.mrb[241].mxu1 }
 0x90f   : > { %v16196_v55 = vadd.f32 %v16195_v60, %v16194_v48  ;;  %v16197_v57 = vpop.f32.mrb[242].mxu1 }
 0x910   : > { %v16198_v28 = vpop.f32.mrb[243].mxu1 }
 0x911   : > { %v12229_v41 = vadd.f32 %v16196_v55, %v22127_v6 }
 0x912   : > { %v16252_v2 = vpop.f32.mrb[140].mxu0 }
 0x913   : > { %v16253_v38 = vpop.f32.mrb[141].mxu0  ;;  %v22139_v34 = vadd.f32 %v16248_v45, %v12229_v41 }
 0x914   : > { %v16254_v33 = vadd.f32 %v16253_v38, %v16252_v2  ;;  %v16255_v10 = vpop.f32.mrb[142].mxu0 }
 0x915   : > { %v16200_v43 = vpop.f32.mrb[244].mxu1  ;;  %v16256_v16 = vpop.f32.mrb[143].mxu0 }
 0x916   : > { %v16201_v25 = vpop.f32.mrb[245].mxu1 }
 0x917   : > { %v16202_v35 = vadd.f32 %v16201_v25, %v16200_v43  ;;  %v16203_v23 = vpop.f32.mrb[246].mxu1 }
 0x918   : > { %v16204_v12 = vpop.f32.mrb[247].mxu1 }
 0x919   : > { %v12237_v46 = vadd.f32 %v16202_v35, %v22127_v6 }
 0x91a   : > { %v16258_v18 = vpop.f32.mrb[144].mxu0 }
 0x91b   : > { %v16259_v13 = vpop.f32.mrb[145].mxu0  ;;  %v22142_v49 = vadd.f32 %v16254_v33, %v12237_v46 }
 0x91c   : > { %v16260_v47 = vadd.f32 %v16259_v13, %v16258_v18  ;;  %v16261_v40 = vpop.f32.mrb[146].mxu0 }
 0x91d   : > { %v16206_v29 = vpop.f32.mrb[248].mxu1  ;;  %v16262_v22 = vpop.f32.mrb[147].mxu0 }
 0x91e   : > { %v16207_v39 = vpop.f32.mrb[249].mxu1 }
 0x91f   : > { %v16208_v24 = vadd.f32 %v16207_v39, %v16206_v29  ;;  %v16209_v27 = vpop.f32.mrb[250].mxu1 }
 0x920   : > { %v16210_v31 = vpop.f32.mrb[251].mxu1 }
 0x921   : > { %v12245_v1 = vadd.f32 %v16208_v24, %v22127_v6 }
 0x922   : > { %v16332_v42 = vpop.f32.mrb[148].mxu0 }
 0x923   : > { %v16333_v51 = vpop.f32.mrb[149].mxu0  ;;  %v22145_v36 = vadd.f32 %v16260_v47, %v12245_v1 }
 0x924   : > { %v16334_v20 = vadd.f32 %v16333_v51, %v16332_v42  ;;  %v16335_v21 = vpop.f32.mrb[150].mxu0 }
 0x925   : > { %v16280_v32 = vpop.f32.mrb[252].mxu1  ;;  %v16336_v4 = vpop.f32.mrb[151].mxu0 }
 0x926   : > { %v16281_v17 = vpop.f32.mrb[253].mxu1 }
 0x927   : > { %v16282_v9 = vadd.f32 %v16281_v17, %v16280_v32  ;;  %v16283_v59 = vpop.f32.mrb[254].mxu1 }
 0x928   : > { %v16284_v63 = vpop.f32.mrb[255].mxu1 }
 0x929   : > { %v12367_v5 = vadd.f32 %v16282_v9, %v22130_v26 }
 0x92a   : > { %v16338_v7 = vpop.f32.mrb[152].mxu0 }
 0x92b   : > { %v16339_v14 = vpop.f32.mrb[153].mxu0  ;;  %v12448_v56 = vadd.f32 %v16334_v20, %v12367_v5 }
 0x92c   : > { %v16340_v8 = vadd.f32 %v16339_v14, %v16338_v7  ;;  %v16341_v62 = vpop.f32.mrb[154].mxu0 }
 0x92d   : > { %v16286_v6 = vpop.f32.mrb[0].mxu1  ;;  %v16342_v15 = vpop.f32.mrb[155].mxu0 }
 0x92e   : > { %v16287_v52 = vpop.f32.mrb[1].mxu1 }
 0x92f   : > { %v16288_v19 = vadd.f32 %v16287_v52, %v16286_v6  ;;  %v16289_v44 = vpop.f32.mrb[2].mxu1 }
 0x930   : > { %v16290_v11 = vpop.f32.mrb[3].mxu1 }
 0x931   : > { %v12375_v3 = vadd.f32 %v16288_v19, %v22133_v37  ;;  %v18445_v19 = vmov -3.4028235e+38  }
 0x932   : > { %v16344_v50 = vpop.f32.mrb[156].mxu0  ;;  %v12601_v44 = vrot.slane %v18445_v19, 2  ;;  %v18263_v19 = vld [vmem:[%s22645_s9 + $0xe8] sm:$0xff]  }
 0x933   : > { %v16345_v45 = vpop.f32.mrb[157].mxu0  ;;  %v12456_v61 = vadd.f32 %v16340_v8, %v12375_v3 }
 0x934   : > { %v16346_v48 = vadd.f32 %v16345_v45, %v16344_v50  ;;  %v16347_v0 = vpop.f32.mrb[158].mxu0 }
 0x935   : > { %v16292_v60 = vpop.f32.mrb[4].mxu1  ;;  %v16348_v26 = vpop.f32.mrb[159].mxu0 }
 0x936   : > { %v16293_v55 = vpop.f32.mrb[5].mxu1 }
 0x937   : > { %v16294_v57 = vadd.f32 %v16293_v55, %v16292_v60  ;;  %v16295_v28 = vpop.f32.mrb[6].mxu1 }
 0x938   : > { %v16296_v41 = vpop.f32.mrb[7].mxu1 }
 0x939   : > { %v12383_v2 = vadd.f32 %v16294_v57, %v22136_v53 }
 0x93a   : > { %v16350_v38 = vpop.f32.mrb[160].mxu0 }
 0x93b   : > { %v16351_v33 = vpop.f32.mrb[161].mxu0  ;;  %v12464_v10 = vadd.f32 %v16346_v48, %v12383_v2 }
 0x93c   : > { %v16352_v43 = vadd.f32 %v16351_v33, %v16350_v38  ;;  %v16353_v16 = vpop.f32.mrb[162].mxu0 }
 0x93d   : > { %v16298_v25 = vpop.f32.mrb[8].mxu1  ;;  %v16354_v37 = vpop.f32.mrb[163].mxu0 }
 0x93e   : > { %v16299_v35 = vpop.f32.mrb[9].mxu1 }
 0x93f   : > { %v16300_v23 = vadd.f32 %v16299_v35, %v16298_v25  ;;  %v16301_v12 = vpop.f32.mrb[10].mxu1 }
 0x940   : > { %v16302_v46 = vpop.f32.mrb[11].mxu1 }
 0x941   : > { %v12391_v18 = vadd.f32 %v16300_v23, %v22139_v34 }
 0x942   : > { %v16356_v13 = vpop.f32.mrb[164].mxu0 }
 0x943   : > { %v16357_v47 = vpop.f32.mrb[165].mxu0  ;;  %v12472_v40 = vadd.f32 %v16352_v43, %v12391_v18 }
 0x944   : > { %v16358_v29 = vadd.f32 %v16357_v47, %v16356_v13  ;;  %v16359_v22 = vpop.f32.mrb[166].mxu0 }
 0x945   : > { %v16304_v39 = vpop.f32.mrb[12].mxu1  ;;  %v16360_v53 = vpop.f32.mrb[167].mxu0 }
 0x946   : > { %v16305_v24 = vpop.f32.mrb[13].mxu1 }
 0x947   : > { %v16306_v27 = vadd.f32 %v16305_v24, %v16304_v39  ;;  %v16307_v31 = vpop.f32.mrb[14].mxu1 }
 0x948   : > { %v16308_v1 = vpop.f32.mrb[15].mxu1 }
 0x949   : > { %v12399_v42 = vadd.f32 %v16306_v27, %v22142_v49 }
 0x94a   : > { %v16362_v51 = vpop.f32.mrb[168].mxu0 }
 0x94b   : > { %v16363_v20 = vpop.f32.mrb[169].mxu0  ;;  %v12480_v21 = vadd.f32 %v16358_v29, %v12399_v42 }
 0x94c   : > { %v16364_v32 = vadd.f32 %v16363_v20, %v16362_v51  ;;  %v16365_v4 = vpop.f32.mrb[170].mxu0  ;;  %v18243_v20 = vld [vmem:[%s22645_s9 + $0xc0] sm:$0xff]  }
 0x94d   : > { %v16310_v17 = vpop.f32.mrb[16].mxu1  ;;  %v16366_v34 = vpop.f32.mrb[171].mxu0  ;;  %v18247_v4 = vld [vmem:[%s22645_s9 + $0xc8] sm:$0xff]  }
 0x94e   : > { %v16311_v9 = vpop.f32.mrb[17].mxu1  ;;  %v18248_v34 = vld [vmem:[%s22645_s9 + $0x88] sm:$0xff]  }
 0x94f   : > { %v16312_v59 = vadd.f32 %v16311_v9, %v16310_v17  ;;  %v16313_v63 = vpop.f32.mrb[18].mxu1  ;;  %v18246_v17 = vld [vmem:[%s22645_s9 + $0x8] sm:$0xff]   ;;  %v18249_v9 = vld [vmem:[%s22645_s9 + $0x50] sm:$0xff]  }
 0x950   : > { %v16314_v5 = vpop.f32.mrb[19].mxu1  ;;  %v18252_v63 = vld [vmem:[%s22645_s9 + $0x90] sm:$0xff]  }
 0x951   : > { %v12407_v7 = vadd.f32 %v16312_v59, %v22145_v36  ;;  %v18250_v59 = vld [vmem:[%s22645_s9 + $0x10] sm:$0xff]   ;;  %v18253_v5 = vld [vmem:[%s22645_s9 + $0x58] sm:$0xff]  }
 0x953   : > { %v12488_v14 = vadd.f32 %v16364_v32, %v12407_v7  ;;  %v18245_v32 = vld [vmem:[%s22645_s9 + $0x48] sm:$0xff]   ;;  %v18255_v7 = vld [vmem:[%s22645_s9 + $0xd8] sm:$0xff]  }
 0x955   : > { %v17273_v8 = vpop.f32.mrb[20].mxu1 }
 0x956   : > { %v12537_v62 = vadd.f32 %v17273_v8, %v12456_v61  ;;  %v12528_v6 = vpop.f32.mrb[21].mxu1  ;;  %v18256_v8 = vld [vmem:[%s22645_s9 + $0x98] sm:$0xff]  }
 0x957   : > { %v12529_v15 = vadd.f32 %v12528_v6, %v12448_v56  ;;  %v17274_v52 = vpop.f32.mrb[22].mxu1  ;;  %v18259_v6 = vld [vmem:[%s22645_s9 + $0xe0] sm:$0xff]  }
 0x958   : > { %12577 = vst [vmem:[#allocation2 + $0x10] sm:$0xff] %v12537_v62  ;;  %v12531_v49 = vpop.f32.mrb[23].mxu1  ;;  %v18260_v52 = vld [vmem:[%s22645_s9 + $0xa0] sm:$0xff]  }
 0x959   : > { %12575 = vst [vmem:[#allocation2] sm:$0xff] %v12529_v15  ;;  %v12593_v11 = vsel %vm6072_vm9, %v12529_v15, -3.4028235e+38  ;;  %v12683_v3 = vmax.f32 %v12529_v15, %v12537_v62  ;;  %v18257_v62 = vld [vmem:[%s22645_s9 + $0x60] sm:$0xff]   ;;  %v18261_v49 = vld [vmem:[%s22645_s9 + $0x68] sm:$0xff]  }
 0x95a   : > { %v12596_v50 = vrot.slane %v12593_v11, 1  ;;  %v12600_v45 = vrot.slane %v12593_v11, 2  ;;  %v18258_v15 = vld [vmem:[%s22645_s9 + $0x20] sm:$0xff]  }
 0x95c   : > { %v12598_v48 = vmax.f32 %v12593_v11, %v12596_v50  ;;  %v12602_v36 = vsel %vm6110_vm10, %v12600_v45, %v12601_v44  ;;  %v18264_v11 = vld [vmem:[%s22645_s9 + $0xa8] sm:$0xff]   ;;  %v18267_v50 = vld [vmem:[%s22645_s9 + $0xf0] sm:$0xff]  }
 0x95d   : > { %v17277_v0 = vpop.f32.mrb[24].mxu1  ;;  %v18266_v45 = vld [vmem:[%s22645_s9 + $0x30] sm:$0xff]  }
 0x95e   : > { %v12553_v60 = vadd.f32 %v17277_v0, %v12472_v40  ;;  %v12544_v61 = vpop.f32.mrb[25].mxu1  ;;  %v12604_v26 = vmax.f32 %v12598_v48, %v12602_v36  ;;  %v18268_v48 = vld [vmem:[%s22645_s9 + $0xb0] sm:$0xff]   ;;  %v18269_v36 = vld [vmem:[%s22645_s9 + $0x78] sm:$0xff]  }
 0x95f   : > { %v12545_v56 = vadd.f32 %v12544_v61, %v12464_v10  ;;  %v17278_v55 = vpop.f32.mrb[26].mxu1  ;;  %v18270_v0 = vld [vmem:[%s22645_s9 + $0x38] sm:$0xff]  }
 0x960   : > { %12581 = vst [vmem:[#allocation2 + $0x30] sm:$0xff] %v12553_v60  ;;  %v12547_v57 = vpop.f32.mrb[27].mxu1  ;;  %17284 = vmatpush3.msk.msra.mxu1 %vm778_vm4, %v12604_v26  ;;  %v18272_v61 = vld [vmem:[%s22645_s9 + $0xb8] sm:$0xff]   ;;  %v18273_v26 = vld [vmem:[%s22645_s9 + $0x140] sm:$0xff]  }
 0x961   : > { %12579 = vst [vmem:[#allocation2 + $0x20] sm:$0xff] %v12545_v56  ;;  %17286 = vmatmul.mubr.msk.f32.vlgmr.msra.gmra.mrb[32].mxu1 %vm12605_vm2, %v19726_v30  ;;  %17288 = vmatprep.subr.mxu1 %v22660_v58  ;;  %v12687_v28 = vmax.f32 %v12683_v3, %v12545_v56  ;;  %v12776_v41 = vmax.f32 %v12545_v56, %v12553_v60  ;;  %v18265_v3 = vld [vmem:[%s22645_s9 + $0x70] sm:$0xff]   ;;  %v18271_v60 = vld [vmem:[%s22645_s9 + $0xf8] sm:$0xff]   ;;  %v18275_v56 = vld [vmem:[%s22645_s9 + $0x1c0] sm:$0xff]  }
 0x962   : > { %17290 = vmatprep.mubr.msk.f32.mxu1 %vm18442_vm14, %v22660_v58 }
 0x963   : > { %v12689_v2 = vsel %vm6072_vm9, %v12687_v28, -3.4028235e+38 }
 0x964   : > { %v12692_v38 = vrot.slane %v12689_v2, 1  ;;  %v12696_v33 = vrot.slane %v12689_v2, 2 }
 0x965   : > { %v17281_v10 = vpop.f32.mrb[28].mxu1 }
 0x966   : > { %v12569_v43 = vadd.f32 %v17281_v10, %v12488_v14  ;;  %v12560_v16 = vpop.f32.mrb[29].mxu1  ;;  %v12694_v25 = vmax.f32 %v12689_v2, %v12692_v38  ;;  %v12698_v37 = vsel %vm6110_vm10, %v12696_v33, %v12601_v44  ;;  %v18254_v14 = vld [vmem:[%s22645_s9 + $0x18] sm:$0xff]   ;;  %v18274_v2 = vld [vmem:[%s22645_s9 + $0x100] sm:$0xff]   ;;  %v18277_v38 = vld [vmem:[%s22645_s9 + $0x148] sm:$0xff]  }
 0x967   : > { %v12561_v35 = vadd.f32 %v12560_v16, %v12480_v21  ;;  %v17282_v23 = vpop.f32.mrb[30].mxu1  ;;  %v18244_v21 = vld [vmem:[%s22645_s9 + $0x80] sm:$0xff]   ;;  %v18279_v16 = vld [vmem:[%s22645_s9 + $0x1c8] sm:$0xff]  }
 0x968   : > { %12585 = vst [vmem:[#allocation2 + $0x50] sm:$0xff] %v12569_v43  ;;  %v12563_v12 = vpop.f32.mrb[31].mxu1  ;;  %v12700_v46 = vmax.f32 %v12694_v25, %v12698_v37  ;;  %v18276_v10 = vld [vmem:[%s22645_s9 + $0x180] sm:$0xff]   ;;  %v18278_v25 = vld [vmem:[%s22645_s9 + $0x108] sm:$0xff]   ;;  %v18281_v37 = vld [vmem:[%s22645_s9 + $0x150] sm:$0xff]  }
 0x969   : > { %12583 = vst [vmem:[#allocation2 + $0x40] sm:$0xff] %v12561_v35  ;;  %v12780_v18 = vmax.f32 %v12776_v41, %v12561_v35  ;;  %v12869_v13 = vmax.f32 %v12561_v35, %v12569_v43  ;;  %v18280_v35 = vld [vmem:[%s22645_s9 + $0x188] sm:$0xff]   ;;  %v18283_v23 = vld [vmem:[%s22645_s9 + $0x1d0] sm:$0xff]  }
 0x96a   : > { %17289 = vmatpush3.msk.msra.mxu1 %vm778_vm4, %v12700_v46  ;;  %v18282_v46 = vld [vmem:[%s22645_s9 + $0x110] sm:$0xff]  }
 0x96b   : > { %17298 = vmatprep.subr.mxu1 %v22660_v58  ;;  %17291 = vmatmul.mubr.msk.f32.vlgmr.msra.gmra.mrb[36].mxu1 %vm12605_vm2, %v19726_v30  ;;  %v12782_v47 = vsel %vm6072_vm9, %v12780_v18, -3.4028235e+38  ;;  %v12871_v40 = vsel %vm6072_vm9, %v12869_v13, -3.4028235e+38 }
 0x96c   : > { %v12785_v29 = vrot.slane %v12782_v47, 1  ;;  %v12789_v22 = vrot.slane %v12782_v47, 2  ;;  %v12874_v39 = vrot.slane %v12871_v40, 1  ;;  %v12878_v53 = vrot.slane %v12871_v40, 2  ;;  %17300 = vmatprep.mubr.msk.f32.mxu1 %vm18442_vm14, %v22660_v58  ;;  %v18242_v58 = vld [vmem:[%s22645_s9] sm:$0xff]  }
 0x96e   : > { %v12787_v24 = vmax.f32 %v12782_v47, %v12785_v29  ;;  %v12791_v27 = vsel %vm6110_vm10, %v12789_v22, %v12601_v44  ;;  %v12876_v31 = vmax.f32 %v12871_v40, %v12874_v39  ;;  %v12880_v1 = vsel %vm6110_vm10, %v12878_v53, %v12601_v44  ;;  %v18262_v44 = vld [vmem:[%s22645_s9 + $0x28] sm:$0xff]   ;;  %v18285_v47 = vld [vmem:[%s22645_s9 + $0x158] sm:$0xff]   ;;  %v18284_v40 = vld [vmem:[%s22645_s9 + $0x190] sm:$0xff]  }
 0x96f   : > { %v18287_v22 = vld [vmem:[%s22645_s9 + $0x1d8] sm:$0xff]  }
 0x970   : > { %v12793_v42 = vmax.f32 %v12787_v24, %v12791_v27  ;;  %v12882_v51 = vmax.f32 %v12876_v31, %v12880_v1  ;;  %v18286_v39 = vld [vmem:[%s22645_s9 + $0x118] sm:$0xff]   ;;  %v18289_v24 = vld [vmem:[%s22645_s9 + $0x160] sm:$0xff]  }
 0x971   : > { %v18288_v27 = vld [vmem:[%s22645_s9 + $0x198] sm:$0xff]   ;;  %v18291_v31 = vld [vmem:[%s22645_s9 + $0x1e0] sm:$0xff]  }
 0x972   : > { %17294 = vmatpush3.msk.msra.mxu0 %vm778_vm4, %v12793_v42  ;;  %17299 = vmatpush3.msk.msra.mxu1 %vm778_vm4, %v12882_v51  ;;  %v18290_v51 = vld [vmem:[%s22645_s9 + $0x120] sm:$0xff]  }
 0x973   : > { %17296 = vmatmul.mubr.msk.f32.vlgmr.msra.gmra.mrb[62].mxu0 %vm12605_vm2, %v19726_v30  ;;  %17301 = vmatmul.mubr.msk.f32.vlgmr.msra.gmra.mrb[38].mxu1 %vm12605_vm2, %v19726_v30  ;;  %v18251_v30 = vld [vmem:[%s22645_s9 + $0xd0] sm:$0xff]  }
 0x974   : > { %16390 = vmatprep.subr.bf16.mxu0 %v18241_v54  ;;  %16412 = vmatprep.subr.bf16.mxu1 %v18243_v20 }
 0x975   : > { %16391 = vmatpush3.bf16.msra.mxu0 %v18242_v58  ;;  %16413 = vmatpush3.bf16.msra.mxu1 %v18244_v21  ;;  %v18293_v58 = vld [vmem:[%s22645_s9 + $0x168] sm:$0xff]   ;;  %v18292_v21 = vld [vmem:[%s22645_s9 + $0x1a0] sm:$0xff]  }
 0x976   : > { %16392 = vmatprep.subr.bf16.mxu0 %v18245_v32  ;;  %16414 = vmatprep.subr.bf16.mxu1 %v18247_v4  ;;  %v18295_v32 = vld [vmem:[%s22645_s9 + $0x1e8] sm:$0xff]  }
 0x977   : > { %v18294_v4 = vld [vmem:[%s22645_s9 + $0x128] sm:$0xff]  }
 0x979   : > { %16393 = vmatpush3.bf16.msra.mxu0 %v18246_v17  ;;  %16415 = vmatpush3.bf16.msra.mxu1 %v18248_v34  ;;  %v18297_v17 = vld [vmem:[%s22645_s9 + $0x170] sm:$0xff]   ;;  %v18296_v34 = vld [vmem:[%s22645_s9 + $0x1a8] sm:$0xff]  }
 0x97a   : > { %16394 = vmatprep.subr.bf16.mxu0 %v18249_v9  ;;  %16416 = vmatprep.subr.bf16.mxu1 %v18251_v30  ;;  %v18299_v9 = vld [vmem:[%s22645_s9 + $0x1f0] sm:$0xff]  }
 0x97b   : > { %v18298_v30 = vld [vmem:[%s22645_s9 + $0x130] sm:$0xff]  }
 0x97d   : > { %16395 = vmatpush3.bf16.msra.mxu0 %v18250_v59  ;;  %16417 = vmatpush3.bf16.msra.mxu1 %v18252_v63  ;;  %v18301_v59 = vld [vmem:[%s22645_s9 + $0x178] sm:$0xff]   ;;  %v18300_v63 = vld [vmem:[%s22645_s9 + $0x1b0] sm:$0xff]  }
 0x97e   : > { %16396 = vmatprep.subr.bf16.mxu0 %v18253_v5  ;;  %16418 = vmatprep.subr.bf16.mxu1 %v18255_v7  ;;  %v18303_v7 = vld [vmem:[%s22645_s9 + $0x1f8] sm:$0xff]  }
 0x981   : > { %16397 = vmatpush3.bf16.msra.mxu0 %v18254_v14  ;;  %16419 = vmatpush3.bf16.msra.mxu1 %v18256_v8  ;;  %v18302_v14 = vld [vmem:[%s22645_s9 + $0x138] sm:$0xff]   ;;  %v18305_v8 = vld [vmem:[%s22645_s9 + $0x240] sm:$0xff]  }
 0x982   : > { %16398 = vmatprep.subr.bf16.mxu0 %v18257_v62  ;;  %16420 = vmatprep.subr.bf16.mxu1 %v18259_v6  ;;  %v18304_v62 = vld [vmem:[%s22645_s9 + $0x1b8] sm:$0xff]  }
 0x985   : > { %16399 = vmatpush3.bf16.msra.mxu0 %v18258_v15  ;;  %16421 = vmatpush3.bf16.msra.mxu1 %v18260_v52  ;;  %v18307_v15 = vld [vmem:[%s22645_s9 + $0x2c0] sm:$0xff]  }
 0x986   : > { %16400 = vmatprep.subr.bf16.mxu0 %v18261_v49  ;;  %16422 = vmatprep.subr.bf16.mxu1 %v18263_v19  ;;  %v18306_v52 = vld [vmem:[%s22645_s9 + $0x200] sm:$0xff]   ;;  %v18309_v49 = vld [vmem:[%s22645_s9 + $0x248] sm:$0xff]  }
 0x987   : > { %v18308_v19 = vld [vmem:[%s22645_s9 + $0x280] sm:$0xff]  }
 0x989   : > { %16401 = vmatpush3.bf16.msra.mxu0 %v18262_v44  ;;  %16423 = vmatpush3.bf16.msra.mxu1 %v18264_v11 }
 0x98a   : > { %16402 = vmatprep.subr.bf16.mxu0 %v18265_v3  ;;  %16424 = vmatprep.subr.bf16.mxu1 %v18267_v50  ;;  %v18311_v3 = vld [vmem:[%s22645_s9 + $0x2c8] sm:$0xff]  }
 0x98b   : > { %v18310_v50 = vld [vmem:[%s22645_s9 + $0x208] sm:$0xff]  }
 0x98d   : > { %16403 = vmatpush3.bf16.msra.mxu0 %v18266_v45  ;;  %16425 = vmatpush3.bf16.msra.mxu1 %v18268_v48  ;;  %v18313_v45 = vld [vmem:[%s22645_s9 + $0x250] sm:$0xff]   ;;  %v18312_v48 = vld [vmem:[%s22645_s9 + $0x288] sm:$0xff]  }
 0x98e   : > { %16404 = vmatprep.subr.bf16.mxu0 %v18269_v36  ;;  %16426 = vmatprep.subr.bf16.mxu1 %v18271_v60  ;;  %v18315_v36 = vld [vmem:[%s22645_s9 + $0x2d0] sm:$0xff]   ;;  %v18317_v60 = vld [vmem:[%s22645_s9 + $0x258] sm:$0xff]  }
 0x991   : > { %16405 = vmatpush3.bf16.msra.mxu0 %v18270_v0  ;;  %16427 = vmatpush3.bf16.msra.mxu1 %v18272_v61  ;;  %v18314_v0 = vld [vmem:[%s22645_s9 + $0x210] sm:$0xff]  }
 0x992   : > { %16434 = vmatprep.subr.bf16.mxu0 %v18273_v26  ;;  %16456 = vmatprep.subr.bf16.mxu1 %v18275_v56  ;;  %v18316_v61 = vld [vmem:[%s22645_s9 + $0x290] sm:$0xff]   ;;  %v18319_v26 = vld [vmem:[%s22645_s9 + $0x2d8] sm:$0xff]  }
 0x993   : > { %v18318_v56 = vld [vmem:[%s22645_s9 + $0x218] sm:$0xff]  }
 0xa34   : > { %v12677_v55 = vpop.f32.mrb[32].mxu1 }
 0xa35   : > { %v12956_v57 = vpack.c.bf16 %v12677_v55, %v12677_v55  ;;  %v17287_v28 = vpop.f32.mrb[33].mxu1  ;;  %v18321_v55 = vld [vmem:[%s22645_s9 + $0x260] sm:$0xff]  }
 0xa36   : > { %v18323_v28 = vld [vmem:[%s22645_s9 + $0x2e0] sm:$0xff]  }
 0xa37   : > { %v12961_v41 = vshrl.u32 %v12956_v57, 16  ;;  %v12965_v43 = vrot.slane %v12956_v57, 1 }
 0xa39   : > { %14053 = vmatprep.mubr.bf16.mxu0 %v12961_v41  ;;  %v12967_v33 = vrot.slane %v12961_v41, 1  ;;  %v18322_v41 = vld [vmem:[%s22645_s9 + $0x220] sm:$0xff]  }
 0xa3a   : > { %14054 = vmatmul.mubr.bf16.vlgmr.msra.gmra.mrb[172].mxu0 %v12956_v57  ;;  %v18320_v57 = vld [vmem:[%s22645_s9 + $0x298] sm:$0xff]  }
 0xa3b   : > { %16435 = vmatpush3.bf16.msra.mxu0 %v18274_v2  ;;  %14093 = vmatprep.mubr.bf16.mxu1 %v12967_v33  ;;  %v18325_v2 = vld [vmem:[%s22645_s9 + $0x268] sm:$0xff]  }
 0xa3c   : > { %14094 = vmatmul.mubr.bf16.vlgmr.msra.gmra.mrb[40].mxu1 %v12965_v43  ;;  %16436 = vmatprep.subr.bf16.mxu0 %v18277_v38  ;;  %v18324_v38 = vld [vmem:[%s22645_s9 + $0x2a0] sm:$0xff]   ;;  %v18327_v33 = vld [vmem:[%s22645_s9 + $0x2e8] sm:$0xff]   ;;  %v18329_v43 = vld [vmem:[%s22645_s9 + $0x270] sm:$0xff]  }
 0xa3d   : > { %16457 = vmatpush3.bf16.msra.mxu1 %v18276_v10  ;;  %v18326_v10 = vld [vmem:[%s22645_s9 + $0x228] sm:$0xff]  }
 0xa3e   : > { %16458 = vmatprep.subr.bf16.mxu1 %v18279_v16  ;;  %v12770_v12 = vpop.f32.mrb[36].mxu1  ;;  %v18328_v16 = vld [vmem:[%s22645_s9 + $0x2a8] sm:$0xff]  }
 0xa3f   : > { %16437 = vmatpush3.bf16.msra.mxu0 %v18278_v25  ;;  %v22312_v18 = vpack.c.bf16 %v12770_v12, %v12770_v12  ;;  %v17292_v13 = vpop.f32.mrb[37].mxu1  ;;  %v18331_v25 = vld [vmem:[%s22645_s9 + $0x2f0] sm:$0xff]  }
 0xa40   : > { %16438 = vmatprep.subr.bf16.mxu0 %v18281_v37  ;;  %v18330_v37 = vld [vmem:[%s22645_s9 + $0x230] sm:$0xff]   ;;  %v18337_v13 = vld [vmem:[%s22645_s9 + $0x340] sm:$0xff]  }
 0xa41   : > { %16459 = vmatpush3.bf16.msra.mxu1 %v18280_v35  ;;  %v12970_v29 = vshrl.u32 %v22312_v18, 16  ;;  %v12974_v11 = vrot.slane %v22312_v18, 1  ;;  %v18333_v35 = vld [vmem:[%s22645_s9 + $0x278] sm:$0xff]  }
 0xa42   : > { %16460 = vmatprep.subr.bf16.mxu1 %v18283_v23  ;;  %v18332_v23 = vld [vmem:[%s22645_s9 + $0x2b0] sm:$0xff]  }
 0xa43   : > { %16439 = vmatpush3.bf16.msra.mxu0 %v18282_v46  ;;  %14133 = vmatprep.mubr.bf16.mxu0 %v12970_v29  ;;  %v12976_v53 = vrot.slane %v12970_v29, 1  ;;  %v18335_v46 = vld [vmem:[%s22645_s9 + $0x2f8] sm:$0xff]   ;;  %v18339_v29 = vld [vmem:[%s22645_s9 + $0x3c0] sm:$0xff]  }
 0xa44   : > { %16440 = vmatprep.subr.bf16.mxu0 %v18285_v47  ;;  %v18336_v47 = vld [vmem:[%s22645_s9 + $0x2b8] sm:$0xff]  }
 0xa45   : > { %16461 = vmatpush3.bf16.msra.mxu1 %v18284_v40  ;;  %14173 = vmatprep.mubr.bf16.mxu1 %v12976_v53  ;;  %v18340_v53 = vld [vmem:[%s22645_s9 + $0x380] sm:$0xff]  }
 0xa46   : > { %16462 = vmatprep.subr.bf16.mxu1 %v18287_v22  ;;  %v12863_v1 = vpop.f32.mrb[62].mxu0  ;;  %v22336_v42 = vpop.f32.mrb[38].mxu1  ;;  %v18338_v22 = vld [vmem:[%s22645_s9 + $0x300] sm:$0xff]  }
 0xa47   : > { %16441 = vmatpush3.bf16.msra.mxu0 %v18286_v39  ;;  %v17297_v54 = vpop.f32.mrb[63].mxu0  ;;  %v17302_v20 = vpop.f32.mrb[39].mxu1  ;;  %v22371_v5 = vpack.c.bf16 %v12863_v1, %v12863_v1  ;;  %v22474_v12 = vpack.c.bf16 %v22336_v42, %v22336_v42  ;;  %v18341_v39 = vld [vmem:[%s22645_s9 + $0x348] sm:$0xff]   ;;  %v18345_v42 = vld [vmem:[%s22645_s9 + $0x350] sm:$0xff]  }
 0xa48   : > { %16442 = vmatprep.subr.bf16.mxu0 %v18289_v24  ;;  %v18342_v1 = vld [vmem:[%s22645_s9 + $0x308] sm:$0xff]   ;;  %v18347_v54 = vld [vmem:[%s22645_s9 + $0x3d0] sm:$0xff]  }
 0xa49   : > { %16463 = vmatpush3.bf16.msra.mxu1 %v18288_v27  ;;  %v12979_v6 = vshrl.u32 %v22371_v5, 16  ;;  %v12988_v40 = vshrl.u32 %v22474_v12, 16  ;;  %v12983_v27 = vrot.slane %v22371_v5, 1  ;;  %v18346_v20 = vld [vmem:[%s22645_s9 + $0x310] sm:$0xff]  }
 0xa4a   : > { %16464 = vmatprep.subr.bf16.mxu1 %v18291_v31  ;;  %v18343_v31 = vld [vmem:[%s22645_s9 + $0x3c8] sm:$0xff]  }
 0xa4b   : > { %16443 = vmatpush3.bf16.msra.mxu0 %v18290_v51  ;;  %v12985_v44 = vrot.slane %v12979_v6, 1  ;;  %v12994_v24 = vrot.slane %v12988_v40, 1  ;;  %v18344_v51 = vld [vmem:[%s22645_s9 + $0x388] sm:$0xff]  }
 0xa4c   : > { %16444 = vmatprep.subr.bf16.mxu0 %v18293_v58  ;;  %v18349_v58 = vld [vmem:[%s22645_s9 + $0x358] sm:$0xff]  }
 0xa4d   : > { %16465 = vmatpush3.bf16.msra.mxu1 %v18292_v21  ;;  %v18348_v21 = vld [vmem:[%s22645_s9 + $0x390] sm:$0xff]  }
 0xa4e   : > { %16466 = vmatprep.subr.bf16.mxu1 %v18295_v32  ;;  %v18351_v32 = vld [vmem:[%s22645_s9 + $0x3d8] sm:$0xff]  }
 0xa4f   : > { %16445 = vmatpush3.bf16.msra.mxu0 %v18294_v4  ;;  %v18350_v4 = vld [vmem:[%s22645_s9 + $0x318] sm:$0xff]  }
 0xa50   : > { %16446 = vmatprep.subr.bf16.mxu0 %v18297_v17  ;;  %v18353_v17 = vld [vmem:[%s22645_s9 + $0x360] sm:$0xff]  }
 0xa51   : > { %16467 = vmatpush3.bf16.msra.mxu1 %v18296_v34  ;;  %v18352_v34 = vld [vmem:[%s22645_s9 + $0x398] sm:$0xff]  }
 0xa52   : > { %16468 = vmatprep.subr.bf16.mxu1 %v18299_v9  ;;  %v18355_v9 = vld [vmem:[%s22645_s9 + $0x3e0] sm:$0xff]  }
 0xa53   : > { %16447 = vmatpush3.bf16.msra.mxu0 %v18298_v30  ;;  %v18354_v30 = vld [vmem:[%s22645_s9 + $0x320] sm:$0xff]  }
 0xa54   : > { %16448 = vmatprep.subr.bf16.mxu0 %v18301_v59  ;;  %v18357_v59 = vld [vmem:[%s22645_s9 + $0x368] sm:$0xff]  }
 0xa55   : > { %16469 = vmatpush3.bf16.msra.mxu1 %v18300_v63  ;;  %v18356_v63 = vld [vmem:[%s22645_s9 + $0x3a0] sm:$0xff]  }
 0xa56   : > { %16470 = vmatprep.subr.bf16.mxu1 %v18303_v7  ;;  %v18358_v7 = vld [vmem:[%s22645_s9 + $0x328] sm:$0xff]  }
 0xa57   : > { %16449 = vmatpush3.bf16.msra.mxu0 %v18302_v14  ;;  %v18361_v14 = vld [vmem:[%s22645_s9 + $0x370] sm:$0xff]  }
 0xa58   : > { %16478 = vmatprep.subr.bf16.mxu0 %v18305_v8  ;;  %v18360_v8 = vld [vmem:[%s22645_s9 + $0x3a8] sm:$0xff]  }
 0xa59   : > { %16471 = vmatpush3.bf16.msra.mxu1 %v18304_v62  ;;  %v18363_v62 = vld [vmem:[%s22645_s9 + $0x3f0] sm:$0xff]  }
 0xa5a   : > { %14134 = vmatmul.mubr.bf16.vlgmr.msra.gmra.mrb[176].mxu0 %v22312_v18  ;;  %16500 = vmatprep.subr.bf16.mxu1 %v18307_v15  ;;  %v18334_v18 = vld [vmem:[%s22645_s9 + $0x238] sm:$0xff]  }
 0xa5b   : > { %16479 = vmatpush3.bf16.msra.mxu0 %v18306_v52  ;;  %14213 = vmatprep.mubr.bf16.mxu0 %v12979_v6  ;;  %v18362_v6 = vld [vmem:[%s22645_s9 + $0x330] sm:$0xff]   ;;  %v18365_v15 = vld [vmem:[%s22645_s9 + $0x378] sm:$0xff]  }
 0xa5c   : > { %14174 = vmatmul.mubr.bf16.vlgmr.msra.gmra.mrb[44].mxu1 %v12974_v11  ;;  %16480 = vmatprep.subr.bf16.mxu0 %v18309_v49  ;;  %v18364_v52 = vld [vmem:[%s22645_s9 + $0x3b0] sm:$0xff]   ;;  %v18367_v49 = vld [vmem:[%s22645_s9 + $0x3f8] sm:$0xff]   ;;  %v12992_v11 = vrot.slane %v22474_v12, 1 }
 0xa5d   : > { %16501 = vmatpush3.bf16.msra.mxu1 %v18308_v19  ;;  %14253 = vmatprep.mubr.bf16.mxu1 %v12985_v44  ;;  %v18366_v19 = vld [vmem:[%s22645_s9 + $0x338] sm:$0xff]  }
 0xa5e   : > { %16502 = vmatprep.subr.bf16.mxu1 %v18311_v3  ;;  %v18368_v44 = vld [vmem:[%s22645_s9 + $0x3b8] sm:$0xff]  }
 0xa5f   : > { %16481 = vmatpush3.bf16.msra.mxu0 %v18310_v50  ;;  %v13252_v50 = vld [vmem:[%s22646_s10] sm:$0x1] }
 0xa60   : > { %16482 = vmatprep.subr.bf16.mxu0 %v18313_v45 }
 0xa61   : > { %16503 = vmatpush3.bf16.msra.mxu1 %v18312_v48 }
 0xa62   : > { %16504 = vmatprep.subr.bf16.mxu1 %v18315_v36 }
 0xa63   : > { %16483 = vmatpush3.bf16.msra.mxu0 %v18314_v0 }
 0xa64   : > { %16484 = vmatprep.subr.bf16.mxu0 %v18317_v60 }
 0xa65   : > { %16505 = vmatpush3.bf16.msra.mxu1 %v18316_v61 }
 0xa66   : > { %16506 = vmatprep.subr.bf16.mxu1 %v18319_v26 }
 0xa67   : > { %16485 = vmatpush3.bf16.msra.mxu0 %v18318_v56 }
 0xa68   : > { %16486 = vmatprep.subr.bf16.mxu0 %v18321_v55 }
 0xa69   : > { %16507 = vmatpush3.bf16.msra.mxu1 %v18320_v57 }
 0xa6a   : > { %16508 = vmatprep.subr.bf16.mxu1 %v18323_v28 }
 0xa6b   : > { %16487 = vmatpush3.bf16.msra.mxu0 %v18322_v41 }
 0xa6c   : > { %16488 = vmatprep.subr.bf16.mxu0 %v18325_v2 }
 0xa6d   : > { %16509 = vmatpush3.bf16.msra.mxu1 %v18324_v38 }
 0xa6e   : > { %16510 = vmatprep.subr.bf16.mxu1 %v18327_v33 }
 0xa6f   : > { %16489 = vmatpush3.bf16.msra.mxu0 %v18326_v10 }
 0xa70   : > { %16490 = vmatprep.subr.bf16.mxu0 %v18329_v43 }
 0xa71   : > { %16511 = vmatpush3.bf16.msra.mxu1 %v18328_v16 }
 0xa72   : > { %16512 = vmatprep.subr.bf16.mxu1 %v18331_v25 }
 0xa73   : > { %16491 = vmatpush3.bf16.msra.mxu0 %v18330_v37 }
 0xa74   : > { %16492 = vmatprep.subr.bf16.mxu0 %v18333_v35 }
 0xa75   : > { %16513 = vmatpush3.bf16.msra.mxu1 %v18332_v23 }
 0xa76   : > { %16514 = vmatprep.subr.bf16.mxu1 %v18335_v46 }
 0xa77   : > { %16493 = vmatpush3.bf16.msra.mxu0 %v18334_v18 }
 0xa78   : > { %16522 = vmatprep.subr.bf16.mxu0 %v18337_v13 }
 0xa79   : > { %16515 = vmatpush3.bf16.msra.mxu1 %v18336_v47 }
 0xa7a   : > { %14214 = vmatmul.mubr.bf16.vlgmr.msra.gmra.mrb[180].mxu0 %v22371_v5  ;;  %16544 = vmatprep.subr.bf16.mxu1 %v18339_v29  ;;  %v18359_v5 = vld [vmem:[%s22645_s9 + $0x3e8] sm:$0xff]  }
 0xa7b   : > { %16523 = vmatpush3.bf16.msra.mxu0 %v18338_v22  ;;  %14293 = vmatprep.mubr.bf16.mxu0 %v12988_v40 }
 0xa7c   : > { %14254 = vmatmul.mubr.bf16.vlgmr.msra.gmra.mrb[48].mxu1 %v12983_v27  ;;  %16524 = vmatprep.subr.bf16.mxu0 %v18341_v39 }
 0xa7d   : > { %16545 = vmatpush3.bf16.msra.mxu1 %v18340_v53  ;;  %14333 = vmatprep.mubr.bf16.mxu1 %v12994_v24 }
 0xa7e   : > { %16546 = vmatprep.subr.bf16.mxu1 %v18343_v31 }
 0xa7f   : > { %16525 = vmatpush3.bf16.msra.mxu0 %v18342_v1 }
 0xa80   : > { %16526 = vmatprep.subr.bf16.mxu0 %v18345_v42 }
 0xa81   : > { %16547 = vmatpush3.bf16.msra.mxu1 %v18344_v51 }
 0xa82   : > { %16548 = vmatprep.subr.bf16.mxu1 %v18347_v54 }
 0xa83   : > { %16527 = vmatpush3.bf16.msra.mxu0 %v18346_v20 }
 0xa84   : > { %16528 = vmatprep.subr.bf16.mxu0 %v18349_v58 }
 0xa85   : > { %16549 = vmatpush3.bf16.msra.mxu1 %v18348_v21 }
 0xa86   : > { %16550 = vmatprep.subr.bf16.mxu1 %v18351_v32 }
 0xa87   : > { %16529 = vmatpush3.bf16.msra.mxu0 %v18350_v4 }
 0xa88   : > { %16530 = vmatprep.subr.bf16.mxu0 %v18353_v17 }
 0xa89   : > { %16551 = vmatpush3.bf16.msra.mxu1 %v18352_v34 }
 0xa8a   : > { %16552 = vmatprep.subr.bf16.mxu1 %v18355_v9 }
 0xa8b   : > { %16531 = vmatpush3.bf16.msra.mxu0 %v18354_v30 }
 0xa8c   : > { %16532 = vmatprep.subr.bf16.mxu0 %v18357_v59 }
 0xa8d   : > { %16553 = vmatpush3.bf16.msra.mxu1 %v18356_v63 }
 0xa8e   : > { %16554 = vmatprep.subr.bf16.mxu1 %v18359_v5 }
 0xa8f   : > { %16533 = vmatpush3.bf16.msra.mxu0 %v18358_v7 }
 0xa90   : > { %16534 = vmatprep.subr.bf16.mxu0 %v18361_v14 }
 0xa91   : > { %16555 = vmatpush3.bf16.msra.mxu1 %v18360_v8 }
 0xa92   : > { %16556 = vmatprep.subr.bf16.mxu1 %v18363_v62 }
 0xa93   : > { %16535 = vmatpush3.bf16.msra.mxu0 %v18362_v6 }
 0xa94   : > { %16536 = vmatprep.subr.bf16.mxu0 %v18365_v15 }
 0xa95   : > { %16557 = vmatpush3.bf16.msra.mxu1 %v18364_v52 }
 0xa96   : > { %16558 = vmatprep.subr.bf16.mxu1 %v18367_v49 }
 0xa97   : > { %16537 = vmatpush3.bf16.msra.mxu0 %v18366_v19 }
 0xa99   : > { %16559 = vmatpush3.bf16.msra.mxu1 %v18368_v44 }
 0xa9a   : > { %14294 = vmatmul.mubr.bf16.vlgmr.msra.gmra.mrb[184].mxu0 %v22474_v12 }
 0xa9c   : > { %14334 = vmatmul.mubr.bf16.vlgmr.msra.gmra.mrb[52].mxu1 %v12992_v11 }
 0xb0d   : > { %v16406_v3 = vpop.f32.mrb[172].mxu0 }
 0xb0e   : > { %v16407_v45 = vpop.f32.mrb[173].mxu0 }
 0xb0f   : > { %v16408_v48 = vadd.f32 %v16407_v45, %v16406_v3  ;;  %v16409_v36 = vpop.f32.mrb[174].mxu0  ;;  %v16428_v0 = vpop.f32.mrb[40].mxu1 }
 0xb10   : > { %v16410_v60 = vpop.f32.mrb[175].mxu0  ;;  %v16429_v61 = vpop.f32.mrb[41].mxu1 }
 0xb11   : > { %v14056_v26 = vadd.f32 %v16408_v48, %v13252_v50  ;;  %v16430_v56 = vadd.f32 %v16429_v61, %v16428_v0  ;;  %v16431_v55 = vpop.f32.mrb[42].mxu1 }
 0xb12   : > { %v16432_v57 = vpop.f32.mrb[43].mxu1 }
 0xb13   : > { %v14096_v28 = vadd.f32 %v16430_v56, %v14056_v26 }
 0xb2d   : > { %v16450_v41 = vpop.f32.mrb[176].mxu0 }
 0xb2e   : > { %v16451_v2 = vpop.f32.mrb[177].mxu0 }
 0xb2f   : > { %v16452_v38 = vadd.f32 %v16451_v2, %v16450_v41  ;;  %v16472_v33 = vpop.f32.mrb[44].mxu1  ;;  %v16453_v10 = vpop.f32.mrb[178].mxu0 }
 0xb30   : > { %v16473_v43 = vpop.f32.mrb[45].mxu1  ;;  %v16454_v16 = vpop.f32.mrb[179].mxu0 }
 0xb31   : > { %v14136_v25 = vadd.f32 %v16452_v38, %v14096_v28  ;;  %v16474_v37 = vadd.f32 %v16473_v43, %v16472_v33  ;;  %v16475_v35 = vpop.f32.mrb[46].mxu1 }
 0xb32   : > { %v16476_v23 = vpop.f32.mrb[47].mxu1 }
 0xb33   : > { %v14176_v12 = vadd.f32 %v16474_v37, %v14136_v25 }
 0xb4d   : > { %v16494_v46 = vpop.f32.mrb[180].mxu0 }
 0xb4e   : > { %v16495_v18 = vpop.f32.mrb[181].mxu0 }
 0xb4f   : > { %v16496_v13 = vadd.f32 %v16495_v18, %v16494_v46  ;;  %v16516_v47 = vpop.f32.mrb[48].mxu1  ;;  %v16497_v40 = vpop.f32.mrb[182].mxu0 }
 0xb50   : > { %v16517_v29 = vpop.f32.mrb[49].mxu1  ;;  %v16498_v22 = vpop.f32.mrb[183].mxu0 }
 0xb51   : > { %v14216_v39 = vadd.f32 %v16496_v13, %v14176_v12  ;;  %v16518_v53 = vadd.f32 %v16517_v29, %v16516_v47  ;;  %v16519_v24 = vpop.f32.mrb[50].mxu1 }
 0xb52   : > { %v16520_v27 = vpop.f32.mrb[51].mxu1 }
 0xb53   : > { %v14256_v31 = vadd.f32 %v16518_v53, %v14216_v39 }
 0xb6d   : > { %v16538_v1 = vpop.f32.mrb[184].mxu0 }
 0xb6e   : > { %v16539_v42 = vpop.f32.mrb[185].mxu0 }
 0xb6f   : > { %v16540_v51 = vadd.f32 %v16539_v42, %v16538_v1  ;;  %v16560_v54 = vpop.f32.mrb[52].mxu1  ;;  %v16541_v20 = vpop.f32.mrb[186].mxu0 }
 0xb70   : > { %v16561_v58 = vpop.f32.mrb[53].mxu1  ;;  %v16542_v21 = vpop.f32.mrb[187].mxu0 }
 0xb71   : > { %v14296_v32 = vadd.f32 %v16540_v51, %v14256_v31  ;;  %v16562_v4 = vadd.f32 %v16561_v58, %v16560_v54  ;;  %v16563_v17 = vpop.f32.mrb[54].mxu1 }
 0xb72   : > { %v16564_v34 = vpop.f32.mrb[55].mxu1 }
 0xb73   : > { %v14336_v9 = vadd.f32 %v16562_v4, %v14296_v32 }
 0xb75   : > { %14341 = vst [vmem:[%s378_s25] sm:$0x1] %v14336_v9 }
 0xb76   : > { %18388 = shalt.err (!%p18385_p3)
}
 0xb77   : > { %s18389_s22 = scalar_lea.hbm %s22594_s14, 16  ;;  %s18393_s30 = scalar_lea.hbm %s22647_s11, 32 }
 0xb78   : > { %p18390_p4 = scmp.ne.s32.totalorder %s22594_s14, %s18389_s22  ;;  %p18394_p9 = scmp.lt.u32.totalorder %s22594_s14, %s22647_s11 }
 0xb79   : > { %p18395_p10 = scmp.lt.u32.totalorder %s18393_s30, %s18389_s22  ;;  %p18397_p12 = scmp.lt.u32.totalorder %s18389_s22, %s22594_s14 }
 0xb7a   : > { %p18391_p7 = pnand %p18390_p4, %p18545_p5 }
 0xb7b   : > { %p18396_p11 = por %p18395_p10, %p18394_p9 }
 0xb7c   : > { %p18392_p8 = pneg %p18391_p7 }
 0xb7d   : > { %p18398_p13 = por %p18397_p12, %p18396_p11 }
 0xb7f   : > { %p18399_p0 = pnand %p18398_p13, %p18392_p8 }
 0xb81   : > { %18402 = shalt.err (!%p18399_p0)
}
 0xb82   : > { %17748 = dma.vmem_to_hbm [thread:$0]  (%p18545_p5), %s22596_s29, 16, %s22594_s14, %s14343_s15  }
 0xb83 PF: > { %p17754_p1 = scmp.ge.s32.totalorder %s18437_s20, 2  ;;  %s14367_s0 = sand.u32 1, %s18425_s17  }
 0xb84   : > { %s14368_s21 = scalar_lea.sflag [#allocation7], %s14367_s0 }
 0xb85   : > { %p17751_p2 = pnand %p17754_p1, %p18549_p6 }
 0xb87   : > { %18420 = dma.done.wait (!%p17751_p2), %s14368_s21, 16  }
 0xb88   : > { %18422 = vsyncadd (!%p17751_p2), %s14368_s21, 4294967280  ;;  %p21_p3 = scmp.ge.s32.totalorder %s18532_s23, 4   ;;  %s22663_s17 = smov %s18429_s18 }
 0xb89   : > { %s22664_s18 = smov %s18433_s19  ;;  %s22665_s19 = smov %s18543_s26 }
 0xb8a   : > { %s22666_s20 = smov %s18532_s23  ;;  %23 = sbr.rel (!%p21_p3) target bundleno = 5 (0x5), region = 99 }
 0xb91   :  { %14372 = vsyncpa [#allocation7], 1 }
 0xb92   :  { %14374 = vsyncpa [#allocation7 + $0x1], 1 }

</bundles_post_ra>
